<compile_context>
chip_gen: v5e
topology: v5e:2x2
jax: 0.10.0
libtpu: 0.0.40
codegen_flags: <defaults>
</compile_context>

<pallas_src>
import functools

import jax
import jax.numpy as jnp
from jax import lax
from jax.experimental import pallas as pl
from jax.experimental.pallas import tpu as pltpu


def _layer_norm(x, gamma, beta, eps=1e-5):
    mu = jnp.mean(x, axis=-1, keepdims=True)
    var = jnp.mean((x - mu) ** 2, axis=-1, keepdims=True)
    return (x - mu) * lax.rsqrt(var + eps) * gamma + beta


def encoder_layer_kernel(
    x_ref,
    wqkv_ref, bqkv_ref, wo_ref, bo_ref,
    g1_ref, be1_ref, g2_ref, be2_ref,
    wf1_ref, bf1_ref, wf2_ref, bf2_ref,
    out_ref,
    q_sc, k_sc, v_sc,
    *, n_heads, d_k, tq, mxu_dtype,
):
    qi = pl.program_id(1)
    seq_len, d_model = x_ref.shape
    scale = 1.0 / (d_k ** 0.5)

    # ---- once per batch element (qi == 0): fused QKV projection over the ----
    # ---- full sequence, stored head-major (H, S, d_k) in bf16 scratch.    ----
    @pl.when(qi == 0)
    def _project_qkv():
        x_full = x_ref[...].astype(jnp.float32)
        nq = _layer_norm(x_full, g1_ref[...], be1_ref[...])
        qkv = jnp.dot(nq.astype(mxu_dtype), wqkv_ref[...],
                      preferred_element_type=jnp.float32) + bqkv_ref[...]
        for i, sc in enumerate((q_sc, k_sc, v_sc)):
            t = qkv[:, i * d_model:(i + 1) * d_model]          # aligned lane slice
            if i == 0:
                t = t * scale                                   # fold softmax scale into Q
            t = t.reshape(seq_len, n_heads, d_k)
            sc[...] = jnp.transpose(t, (1, 0, 2)).astype(mxu_dtype)

    # ---- per query tile ----
    row0 = pl.multiple_of(qi * tq, tq)
    x_tile = x_ref[pl.ds(row0, tq), :].astype(jnp.float32)      # (TQ, D)
    q_tile = q_sc[:, pl.ds(row0, tq), :]                        # (H, TQ, d_k) bf16, pre-scaled

    # head-batched scores: contract d_k, no explicit K transpose.
    scores = jnp.einsum("hqd,hkd->hqk", q_tile, k_sc[...],
                        preferred_element_type=jnp.float32)     # (H, TQ, S)
    scores = scores - jnp.max(scores, axis=-1, keepdims=True)
    e = jnp.exp(scores)                                          # f32 softmax math (EUP)
    p = e * pl.reciprocal(jnp.sum(e, axis=-1, keepdims=True), approx=True)

    ctx = jnp.einsum("hqk,hkd->hqd", p.astype(mxu_dtype), v_sc[...],
                     preferred_element_type=jnp.float32)         # (H, TQ, d_k)
    # bf16 transpose (packed sublanes) then merge heads -> lane-dense (TQ, D).
    context = jnp.transpose(ctx.astype(mxu_dtype), (1, 0, 2)).reshape(tq, d_model)

    # ---- output projection + residual 1 ----
    states = jnp.dot(context, wo_ref[...],
                     preferred_element_type=jnp.float32) + bo_ref[...]
    att = x_tile + states

    # ---- norm2 + FFN + residual 2 ----
    natt = _layer_norm(att, g2_ref[...], be2_ref[...])
    h1 = jnp.dot(natt.astype(mxu_dtype), wf1_ref[...],
                 preferred_element_type=jnp.float32) + bf1_ref[...]
    h1 = jnp.maximum(h1, 0.0)
    ff = jnp.dot(h1.astype(mxu_dtype), wf2_ref[...],
                 preferred_element_type=jnp.float32) + bf2_ref[...]
    out_ref[...] = (att + ff).astype(out_ref.dtype)


def encoder_layer(x, params, *, n_heads, tq=None, mxu_dtype=jnp.bfloat16):
    """x: (B, S, D) float32.  params: dict of weights (see init_params).

    For best TPU utilization D and ff_units should be multiples of 128 and
    S a multiple of tq (tq a multiple of 8)."""
    B, S, D = x.shape
    F = params["wf1"].shape[1]
    assert D % n_heads == 0
    d_k = D // n_heads
    if tq is None:
        tq = min(S, 128)
    assert S % tq == 0
    nq_tiles = S // tq

    # Fused QKV weight / bias; big matmul weights cast to bf16 (halves DMA
    # bytes, 2x MXU throughput); biases / LN params stay f32.
    wqkv = jnp.concatenate([params["wq"], params["wk"], params["wv"]], axis=1).astype(mxu_dtype)
    bqkv = jnp.concatenate([params["bq"], params["bk"], params["bv"]], axis=1)
    wo = params["wo"].astype(mxu_dtype)
    wf1 = params["wf1"].astype(mxu_dtype)
    wf2 = params["wf2"].astype(mxu_dtype)

    kern = functools.partial(
        encoder_layer_kernel, n_heads=n_heads, d_k=d_k, tq=tq, mxu_dtype=mxu_dtype)

    def const2d(shape):  # grid-invariant block (loaded once, reused every step)
        return pl.BlockSpec(shape, lambda b, qi: (0, 0))

    in_specs = [
        pl.BlockSpec((None, S, D), lambda b, qi: (b, 0, 0)),   # x: full seq per batch elem
        const2d((D, 3 * D)), const2d((1, 3 * D)),              # fused Wqkv, bqkv
        const2d((D, D)), const2d((1, D)),                      # Wo, bo
        const2d((1, D)), const2d((1, D)),                      # norm1 gamma, beta
        const2d((1, D)), const2d((1, D)),                      # norm2 gamma, beta
        const2d((D, F)), const2d((1, F)),                      # ffn W1, b1
        const2d((F, D)), const2d((1, D)),                      # ffn W2, b2
    ]

    # Advisory cost estimate for the XLA scheduler.
    flops = (2 * B * S * D * (3 * D)      # fused QKV projection
             + 4 * B * S * S * D          # scores + PV
             + 2 * B * S * D * D          # output projection
             + 4 * B * S * D * F)         # FFN
    weight_bytes = 2 * (3 * D * D + D * D + D * F + F * D) + 4 * (3 * D + D + F + D + 4 * D)
    bytes_accessed = 2 * B * S * D * 4 + weight_bytes

    return pl.pallas_call(
        kern,
        out_shape=jax.ShapeDtypeStruct((B, S, D), x.dtype),
        grid=(B, nq_tiles),
        in_specs=in_specs,
        out_specs=pl.BlockSpec((None, tq, D), lambda b, qi: (b, qi, 0)),
        scratch_shapes=[
            pltpu.VMEM((n_heads, S, d_k), mxu_dtype),   # Q (head-major, pre-scaled)
            pltpu.VMEM((n_heads, S, d_k), mxu_dtype),   # K (head-major)
            pltpu.VMEM((n_heads, S, d_k), mxu_dtype),   # V (head-major)
        ],
        compiler_params=pltpu.CompilerParams(
            dimension_semantics=("parallel", "arbitrary"),
            vmem_limit_bytes=48 * 1024 * 1024,          # explicit budget (fits all gens)
        ),
        cost_estimate=pl.CostEstimate(
            flops=int(flops),
            transcendentals=int(B * n_heads * S * S),
            bytes_accessed=int(bytes_accessed),
        ),
    )(
        x,
        wqkv, bqkv, wo, params["bo"],
        params["g1"], params["be1"], params["g2"], params["be2"],
        wf1, params["bf1"], wf2, params["bf2"],
    )


def init_params(key, d_model, ff_units):
    """Deterministic synthetic parameters.  Linear weights stored as [in, out]."""
    keys = jax.random.split(key, 12)
    s = 0.1

    def w(k, shape):
        return jax.random.normal(k, shape, jnp.float32) * s

    return {
        "wq": w(keys[0], (d_model, d_model)), "bq": w(keys[1], (1, d_model)),
        "wk": w(keys[2], (d_model, d_model)), "bk": w(keys[3], (1, d_model)),
        "wv": w(keys[4], (d_model, d_model)), "bv": w(keys[5], (1, d_model)),
        "wo": w(keys[6], (d_model, d_model)), "bo": w(keys[7], (1, d_model)),
        "g1": jnp.ones((1, d_model), jnp.float32), "be1": jnp.zeros((1, d_model), jnp.float32),
        "g2": jnp.ones((1, d_model), jnp.float32), "be2": jnp.zeros((1, d_model), jnp.float32),
        "wf1": w(keys[8], (d_model, ff_units)), "bf1": w(keys[9], (1, ff_units)),
        "wf2": w(keys[10], (ff_units, d_model)), "bf2": w(keys[11], (1, d_model)),
    }


def reference(x, p, n_heads):
    """Pure-JAX f32 reference reproducing the PyTorch forward (eval mode)."""
    B, S, D = x.shape
    d_k = D // n_heads

    def ln(v, g, b):
        mu = jnp.mean(v, -1, keepdims=True)
        var = jnp.mean((v - mu) ** 2, -1, keepdims=True)
        return (v - mu) / jnp.sqrt(var + 1e-5) * g + b

    nq = ln(x, p["g1"], p["be1"])
    q = nq @ p["wq"] + p["bq"]
    k = nq @ p["wk"] + p["bk"]
    v = nq @ p["wv"] + p["bv"]

    def chunks(t):
        return t.reshape(B, S, n_heads, d_k).transpose(0, 2, 1, 3)

    qh, kh, vh = chunks(q), chunks(k), chunks(v)
    scores = jnp.einsum("bhqd,bhkd->bhqk", qh, kh) / jnp.sqrt(jnp.float32(d_k))
    alphas = jax.nn.softmax(scores, axis=-1)
    ctx = jnp.einsum("bhqk,bhkd->bhqd", alphas, vh)
    ctx = ctx.transpose(0, 2, 1, 3).reshape(B, S, D)
    states = ctx @ p["wo"] + p["bo"]
    att = x + states
    natt = ln(att, p["g2"], p["be2"])
    h1 = jnp.maximum(natt @ p["wf1"] + p["bf1"], 0.0)
    return att + h1 @ p["wf2"] + p["bf2"]


if __name__ == "__main__":
    # Small but TPU-friendly shapes: lane-dense D (multiple of 128) and two
    # query tiles per batch element so the sequence-tiling path is exercised.
    B, S, D, H, FF, TQ = 2, 128, 128, 4, 256, 64
    key = jax.random.PRNGKey(0)
    kx, kp = jax.random.split(key)
    x = jax.random.normal(kx, (B, S, D), jnp.float32)
    params = init_params(kp, D, FF)

    out = encoder_layer(x, params, n_heads=H, tq=TQ)
    out = jax.block_until_ready(out)

    ref = reference(x, params, H)
    assert out.shape == (B, S, D)
    err = float(jnp.max(jnp.abs(out - ref)))
    # bf16 MXU operands + approx softmax reciprocal -> loosened tolerance vs f32 reference.
    assert jnp.allclose(out, ref, atol=1e-1, rtol=1e-1), f"max err {err}"
    print("KERNEL_OK")
</pallas_src>

<mosaic_0001>
module attributes {stable_mosaic.version = 11 : i64} {
  func.func @encoder_layer_kernel(%arg0: i32, %arg1: i32, %arg2: memref<1x128x128xf32, #tpu.memory_space<vmem>>, %arg3: memref<128x384xbf16, #tpu.memory_space<vmem>>, %arg4: memref<1x384xf32, #tpu.memory_space<vmem>>, %arg5: memref<128x128xbf16, #tpu.memory_space<vmem>>, %arg6: memref<1x128xf32, #tpu.memory_space<vmem>>, %arg7: memref<1x128xf32, #tpu.memory_space<vmem>>, %arg8: memref<1x128xf32, #tpu.memory_space<vmem>>, %arg9: memref<1x128xf32, #tpu.memory_space<vmem>>, %arg10: memref<1x128xf32, #tpu.memory_space<vmem>>, %arg11: memref<128x256xbf16, #tpu.memory_space<vmem>>, %arg12: memref<1x256xf32, #tpu.memory_space<vmem>>, %arg13: memref<256x128xbf16, #tpu.memory_space<vmem>>, %arg14: memref<1x128xf32, #tpu.memory_space<vmem>>, %arg15: memref<1x64x128xf32, #tpu.memory_space<vmem>>, %arg16: memref<4x128x32xbf16, #tpu.memory_space<vmem>>, %arg17: memref<4x128x32xbf16, #tpu.memory_space<vmem>>, %arg18: memref<4x128x32xbf16, #tpu.memory_space<vmem>>) attributes {dimension_semantics = [#tpu.dimension_semantics<parallel>, #tpu.dimension_semantics<arbitrary>], iteration_bounds = array<i64: 2, 2>, scalar_prefetch = 0 : i64, scratch_operands = 3 : i64, tpu.core_type = #tpu.core_type<tc>, window_params = [{transform_indices = @transform_0, window_bounds = array<i64: 1, 128, 128>}, {pipeline_mode = #tpu.pipeline_mode<synchronous>, transform_indices = @transform_1, window_bounds = array<i64: 128, 384>}, {pipeline_mode = #tpu.pipeline_mode<synchronous>, transform_indices = @transform_2, window_bounds = array<i64: 1, 384>}, {pipeline_mode = #tpu.pipeline_mode<synchronous>, transform_indices = @transform_3, window_bounds = array<i64: 128, 128>}, {pipeline_mode = #tpu.pipeline_mode<synchronous>, transform_indices = @transform_4, window_bounds = array<i64: 1, 128>}, {pipeline_mode = #tpu.pipeline_mode<synchronous>, transform_indices = @transform_5, window_bounds = array<i64: 1, 128>}, {pipeline_mode = #tpu.pipeline_mode<synchronous>, transform_indices = @transform_6, window_bounds = array<i64: 1, 128>}, {pipeline_mode = #tpu.pipeline_mode<synchronous>, transform_indices = @transform_7, window_bounds = array<i64: 1, 128>}, {pipeline_mode = #tpu.pipeline_mode<synchronous>, transform_indices = @transform_8, window_bounds = array<i64: 1, 128>}, {pipeline_mode = #tpu.pipeline_mode<synchronous>, transform_indices = @transform_9, window_bounds = array<i64: 128, 256>}, {pipeline_mode = #tpu.pipeline_mode<synchronous>, transform_indices = @transform_10, window_bounds = array<i64: 1, 256>}, {pipeline_mode = #tpu.pipeline_mode<synchronous>, transform_indices = @transform_11, window_bounds = array<i64: 256, 128>}, {pipeline_mode = #tpu.pipeline_mode<synchronous>, transform_indices = @transform_12, window_bounds = array<i64: 1, 128>}, {transform_indices = @transform_13, window_bounds = array<i64: 1, 64, 128>}]} {
    %c0_i32 = arith.constant 0 : i32
    %0 = arith.cmpi eq, %arg1, %c0_i32 : i32
    %1 = arith.extui %0 : i1 to i32
    %c0_i32_0 = arith.constant 0 : i32
    %2 = arith.cmpi ne, %1, %c0_i32_0 : i32
    scf.if %2 {
      %c0_41 = arith.constant 0 : index
      %c0_42 = arith.constant 0 : index
      %c0_43 = arith.constant 0 : index
      %76 = vector.load %arg2[%c0_41, %c0_42, %c0_43] : memref<1x128x128xf32, #tpu.memory_space<vmem>>, vector<1x128x128xf32>
      %77 = vector.shape_cast %76 : vector<1x128x128xf32> to vector<128x128xf32>
      %c0_44 = arith.constant 0 : index
      %c0_45 = arith.constant 0 : index
      %78 = vector.load %arg7[%c0_44, %c0_45] : memref<1x128xf32, #tpu.memory_space<vmem>>, vector<1x128xf32>
      %c0_46 = arith.constant 0 : index
      %c0_47 = arith.constant 0 : index
      %79 = vector.load %arg8[%c0_46, %c0_47] : memref<1x128xf32, #tpu.memory_space<vmem>>, vector<1x128xf32>
      %cst_48 = arith.constant dense<0.000000e+00> : vector<128xf32>
      %80 = vector.multi_reduction <add>, %77, %cst_48 [1] : vector<128x128xf32> to vector<128xf32>
      %81 = vector.shape_cast %80 : vector<128xf32> to vector<128x1xf32>
      %cst_49 = arith.constant 1.280000e+02 : f32
      %82 = vector.broadcast %cst_49 : f32 to vector<128x1xf32>
      %83 = arith.divf %81, %82 : vector<128x1xf32>
      %84 = vector.broadcast %83 : vector<128x1xf32> to vector<128x128xf32>
      %85 = arith.subf %77, %84 : vector<128x128xf32>
      %86 = arith.mulf %85, %85 : vector<128x128xf32>
      %cst_50 = arith.constant dense<0.000000e+00> : vector<128xf32>
      %87 = vector.multi_reduction <add>, %86, %cst_50 [1] : vector<128x128xf32> to vector<128xf32>
      %88 = vector.shape_cast %87 : vector<128xf32> to vector<128x1xf32>
      %cst_51 = arith.constant 1.280000e+02 : f32
      %89 = vector.broadcast %cst_51 : f32 to vector<128x1xf32>
      %90 = arith.divf %88, %89 : vector<128x1xf32>
      %91 = vector.broadcast %83 : vector<128x1xf32> to vector<128x128xf32>
      %92 = arith.subf %77, %91 : vector<128x128xf32>
      %cst_52 = arith.constant 9.99999974E-6 : f32
      %93 = vector.broadcast %cst_52 : f32 to vector<128x1xf32>
      %94 = arith.addf %90, %93 : vector<128x1xf32>
      %95 = math.rsqrt %94 : vector<128x1xf32>
      %96 = vector.broadcast %95 : vector<128x1xf32> to vector<128x128xf32>
      %97 = arith.mulf %92, %96 : vector<128x128xf32>
      %98 = vector.broadcast %78 : vector<1x128xf32> to vector<128x128xf32>
      %99 = arith.mulf %97, %98 : vector<128x128xf32>
      %100 = vector.broadcast %79 : vector<1x128xf32> to vector<128x128xf32>
      %101 = arith.addf %99, %100 : vector<128x128xf32>
      %102 = arith.truncf %101 : vector<128x128xf32> to vector<128x128xbf16>
      %c0_53 = arith.constant 0 : index
      %c0_54 = arith.constant 0 : index
      %103 = vector.load %arg3[%c0_53, %c0_54] : memref<128x384xbf16, #tpu.memory_space<vmem>>, vector<128x384xbf16>
      %cst_55 = arith.constant dense<0.000000e+00> : vector<128x384xf32>
      %104 = tpu.matmul %102, %103, %cst_55 {dimension_numbers = #tpu.dot_dimension_numbers<[1], [0], [0], [1], [0, 0, 1, 1], [], []>} : vector<128x128xbf16>, vector<128x384xbf16>, vector<128x384xf32> -> vector<128x384xf32>
      %c0_56 = arith.constant 0 : index
      %c0_57 = arith.constant 0 : index
      %105 = vector.load %arg4[%c0_56, %c0_57] : memref<1x384xf32, #tpu.memory_space<vmem>>, vector<1x384xf32>
      %106 = vector.broadcast %105 : vector<1x384xf32> to vector<128x384xf32>
      %107 = arith.addf %104, %106 : vector<128x384xf32>
      %108 = vector.extract_strided_slice %107 {offsets = [0, 0], sizes = [128, 128], strides = [1, 1]} : vector<128x384xf32> to vector<128x128xf32>
      %cst_58 = arith.constant 0.176776692 : f32
      %109 = vector.broadcast %cst_58 : f32 to vector<128x128xf32>
      %110 = arith.mulf %108, %109 : vector<128x128xf32>
      %111 = vector.shape_cast %110 : vector<128x128xf32> to vector<128x4x32xf32>
      %112 = tpu.transpose %111, [1, 0, 2] : vector<128x4x32xf32> -> vector<4x128x32xf32>
      %113 = arith.truncf %112 : vector<4x128x32xf32> to vector<4x128x32xbf16>
      %c0_59 = arith.constant 0 : index
      %c0_60 = arith.constant 0 : index
      %c0_61 = arith.constant 0 : index
      %114 = vector.load %arg16[%c0_59, %c0_60, %c0_61] : memref<4x128x32xbf16, #tpu.memory_space<vmem>>, vector<4x128x32xbf16>
      tpu.vector_store %arg16[%c0_59, %c0_60, %c0_61], %113 {strides = array<i32>} : memref<4x128x32xbf16, #tpu.memory_space<vmem>>, vector<4x128x32xbf16>,
      %115 = vector.extract_strided_slice %107 {offsets = [0, 128], sizes = [128, 128], strides = [1, 1]} : vector<128x384xf32> to vector<128x128xf32>
      %116 = vector.shape_cast %115 : vector<128x128xf32> to vector<128x4x32xf32>
      %117 = tpu.transpose %116, [1, 0, 2] : vector<128x4x32xf32> -> vector<4x128x32xf32>
      %118 = arith.truncf %117 : vector<4x128x32xf32> to vector<4x128x32xbf16>
      %c0_62 = arith.constant 0 : index
      %c0_63 = arith.constant 0 : index
      %c0_64 = arith.constant 0 : index
      %119 = vector.load %arg17[%c0_62, %c0_63, %c0_64] : memref<4x128x32xbf16, #tpu.memory_space<vmem>>, vector<4x128x32xbf16>
      tpu.vector_store %arg17[%c0_62, %c0_63, %c0_64], %118 {strides = array<i32>} : memref<4x128x32xbf16, #tpu.memory_space<vmem>>, vector<4x128x32xbf16>,
      %120 = vector.extract_strided_slice %107 {offsets = [0, 256], sizes = [128, 128], strides = [1, 1]} : vector<128x384xf32> to vector<128x128xf32>
      %121 = vector.shape_cast %120 : vector<128x128xf32> to vector<128x4x32xf32>
      %122 = tpu.transpose %121, [1, 0, 2] : vector<128x4x32xf32> -> vector<4x128x32xf32>
      %123 = arith.truncf %122 : vector<4x128x32xf32> to vector<4x128x32xbf16>
      %c0_65 = arith.constant 0 : index
      %c0_66 = arith.constant 0 : index
      %c0_67 = arith.constant 0 : index
      %124 = vector.load %arg18[%c0_65, %c0_66, %c0_67] : memref<4x128x32xbf16, #tpu.memory_space<vmem>>, vector<4x128x32xbf16>
      tpu.vector_store %arg18[%c0_65, %c0_66, %c0_67], %123 {strides = array<i32>} : memref<4x128x32xbf16, #tpu.memory_space<vmem>>, vector<4x128x32xbf16>,
    } else {
    }
    %c64_i32 = arith.constant 64 : i32
    %3 = arith.muli %arg1, %c64_i32 : i32
    %4 = tpu.assume_multiple %3, 64 : i32
    %c0 = arith.constant 0 : index
    %5 = arith.index_cast %4 : i32 to index
    %c0_1 = arith.constant 0 : index
    %6 = vector.load %arg2[%c0, %5, %c0_1] : memref<1x128x128xf32, #tpu.memory_space<vmem>>, vector<1x64x128xf32>
    %7 = vector.shape_cast %6 : vector<1x64x128xf32> to vector<64x128xf32>
    %c0_2 = arith.constant 0 : index
    %8 = arith.index_cast %4 : i32 to index
    %c0_3 = arith.constant 0 : index
    %9 = vector.load %arg16[%c0_2, %8, %c0_3] : memref<4x128x32xbf16, #tpu.memory_space<vmem>>, vector<4x64x32xbf16>
    %c0_4 = arith.constant 0 : index
    %c0_5 = arith.constant 0 : index
    %c0_6 = arith.constant 0 : index
    %10 = vector.load %arg17[%c0_4, %c0_5, %c0_6] : memref<4x128x32xbf16, #tpu.memory_space<vmem>>, vector<4x128x32xbf16>
    "tpu.trace_start"() <{level = 10 : i32, message = "hqd,hkd->hqk"}> : () -> ()
    %cst = arith.constant dense<0.000000e+00> : vector<4x64x128xf32>
    %11 = tpu.matmul %9, %10, %cst {dimension_numbers = #tpu.dot_dimension_numbers<[2], [2], [1], [1], [0, 0, 0, 1, 1, 1], [0], [0]>} : vector<4x64x32xbf16>, vector<4x128x32xbf16>, vector<4x64x128xf32> -> vector<4x64x128xf32>
    "tpu.trace_stop"() : () -> ()
    %cst_7 = arith.constant dense<0xFF800000> : vector<4x64xf32>
    %12 = vector.multi_reduction <maximumf>, %11, %cst_7 [2] : vector<4x64x128xf32> to vector<4x64xf32>
    %13 = vector.shape_cast %12 : vector<4x64xf32> to vector<4x64x1xf32>
    %14 = vector.broadcast %13 : vector<4x64x1xf32> to vector<4x64x128xf32>
    %15 = arith.subf %11, %14 : vector<4x64x128xf32>
    %16 = math.exp %15 : vector<4x64x128xf32>
    %cst_8 = arith.constant dense<0.000000e+00> : vector<4x64xf32>
    %17 = vector.multi_reduction <add>, %16, %cst_8 [2] : vector<4x64x128xf32> to vector<4x64xf32>
    %18 = vector.shape_cast %17 : vector<4x64xf32> to vector<4x64x1xf32>
    %19 = tpu.reciprocal %18 {approx = true} : vector<4x64x1xf32> -> vector<4x64x1xf32>
    %20 = vector.broadcast %19 : vector<4x64x1xf32> to vector<4x64x128xf32>
    %21 = arith.mulf %16, %20 : vector<4x64x128xf32>
    %22 = arith.truncf %21 : vector<4x64x128xf32> to vector<4x64x128xbf16>
    %c0_9 = arith.constant 0 : index
    %c0_10 = arith.constant 0 : index
    %c0_11 = arith.constant 0 : index
    %23 = vector.load %arg18[%c0_9, %c0_10, %c0_11] : memref<4x128x32xbf16, #tpu.memory_space<vmem>>, vector<4x128x32xbf16>
    "tpu.trace_start"() <{level = 10 : i32, message = "hqk,hkd->hqd"}> : () -> ()
    %cst_12 = arith.constant dense<0.000000e+00> : vector<4x64x32xf32>
    %24 = tpu.matmul %22, %23, %cst_12 {dimension_numbers = #tpu.dot_dimension_numbers<[2], [1], [1], [2], [0, 0, 0, 1, 1, 2], [0], [0]>} : vector<4x64x128xbf16>, vector<4x128x32xbf16>, vector<4x64x32xf32> -> vector<4x64x32xf32>
    "tpu.trace_stop"() : () -> ()
    %25 = arith.truncf %24 : vector<4x64x32xf32> to vector<4x64x32xbf16>
    %26 = tpu.transpose %25, [1, 0, 2] : vector<4x64x32xbf16> -> vector<64x4x32xbf16>
    %27 = vector.shape_cast %26 : vector<64x4x32xbf16> to vector<64x128xbf16>
    %c0_13 = arith.constant 0 : index
    %c0_14 = arith.constant 0 : index
    %28 = vector.load %arg5[%c0_13, %c0_14] : memref<128x128xbf16, #tpu.memory_space<vmem>>, vector<128x128xbf16>
    %cst_15 = arith.constant dense<0.000000e+00> : vector<64x128xf32>
    %29 = tpu.matmul %27, %28, %cst_15 {dimension_numbers = #tpu.dot_dimension_numbers<[1], [0], [0], [1], [0, 0, 1, 1], [], []>} : vector<64x128xbf16>, vector<128x128xbf16>, vector<64x128xf32> -> vector<64x128xf32>
    %c0_16 = arith.constant 0 : index
    %c0_17 = arith.constant 0 : index
    %30 = vector.load %arg6[%c0_16, %c0_17] : memref<1x128xf32, #tpu.memory_space<vmem>>, vector<1x128xf32>
    %31 = vector.broadcast %30 : vector<1x128xf32> to vector<64x128xf32>
    %32 = arith.addf %29, %31 : vector<64x128xf32>
    %33 = arith.addf %7, %32 : vector<64x128xf32>
    %c0_18 = arith.constant 0 : index
    %c0_19 = arith.constant 0 : index
    %34 = vector.load %arg9[%c0_18, %c0_19] : memref<1x128xf32, #tpu.memory_space<vmem>>, vector<1x128xf32>
    %c0_20 = arith.constant 0 : index
    %c0_21 = arith.constant 0 : index
    %35 = vector.load %arg10[%c0_20, %c0_21] : memref<1x128xf32, #tpu.memory_space<vmem>>, vector<1x128xf32>
    %cst_22 = arith.constant dense<0.000000e+00> : vector<64xf32>
    %36 = vector.multi_reduction <add>, %33, %cst_22 [1] : vector<64x128xf32> to vector<64xf32>
    %37 = vector.shape_cast %36 : vector<64xf32> to vector<64x1xf32>
    %cst_23 = arith.constant 1.280000e+02 : f32
    %38 = vector.broadcast %cst_23 : f32 to vector<64x1xf32>
    %39 = arith.divf %37, %38 : vector<64x1xf32>
    %40 = vector.broadcast %39 : vector<64x1xf32> to vector<64x128xf32>
    %41 = arith.subf %33, %40 : vector<64x128xf32>
    %42 = arith.mulf %41, %41 : vector<64x128xf32>
    %cst_24 = arith.constant dense<0.000000e+00> : vector<64xf32>
    %43 = vector.multi_reduction <add>, %42, %cst_24 [1] : vector<64x128xf32> to vector<64xf32>
    %44 = vector.shape_cast %43 : vector<64xf32> to vector<64x1xf32>
    %cst_25 = arith.constant 1.280000e+02 : f32
    %45 = vector.broadcast %cst_25 : f32 to vector<64x1xf32>
    %46 = arith.divf %44, %45 : vector<64x1xf32>
    %47 = vector.broadcast %39 : vector<64x1xf32> to vector<64x128xf32>
    %48 = arith.subf %33, %47 : vector<64x128xf32>
    %cst_26 = arith.constant 9.99999974E-6 : f32
    %49 = vector.broadcast %cst_26 : f32 to vector<64x1xf32>
    %50 = arith.addf %46, %49 : vector<64x1xf32>
    %51 = math.rsqrt %50 : vector<64x1xf32>
    %52 = vector.broadcast %51 : vector<64x1xf32> to vector<64x128xf32>
    %53 = arith.mulf %48, %52 : vector<64x128xf32>
    %54 = vector.broadcast %34 : vector<1x128xf32> to vector<64x128xf32>
    %55 = arith.mulf %53, %54 : vector<64x128xf32>
    %56 = vector.broadcast %35 : vector<1x128xf32> to vector<64x128xf32>
    %57 = arith.addf %55, %56 : vector<64x128xf32>
    %58 = arith.truncf %57 : vector<64x128xf32> to vector<64x128xbf16>
    %c0_27 = arith.constant 0 : index
    %c0_28 = arith.constant 0 : index
    %59 = vector.load %arg11[%c0_27, %c0_28] : memref<128x256xbf16, #tpu.memory_space<vmem>>, vector<128x256xbf16>
    %cst_29 = arith.constant dense<0.000000e+00> : vector<64x256xf32>
    %60 = tpu.matmul %58, %59, %cst_29 {dimension_numbers = #tpu.dot_dimension_numbers<[1], [0], [0], [1], [0, 0, 1, 1], [], []>} : vector<64x128xbf16>, vector<128x256xbf16>, vector<64x256xf32> -> vector<64x256xf32>
    %c0_30 = arith.constant 0 : index
    %c0_31 = arith.constant 0 : index
    %61 = vector.load %arg12[%c0_30, %c0_31] : memref<1x256xf32, #tpu.memory_space<vmem>>, vector<1x256xf32>
    %62 = vector.broadcast %61 : vector<1x256xf32> to vector<64x256xf32>
    %63 = arith.addf %60, %62 : vector<64x256xf32>
    %cst_32 = arith.constant 0.000000e+00 : f32
    %64 = vector.broadcast %cst_32 : f32 to vector<64x256xf32>
    %65 = arith.maximumf %63, %64 : vector<64x256xf32>
    %66 = arith.truncf %65 : vector<64x256xf32> to vector<64x256xbf16>
    %c0_33 = arith.constant 0 : index
    %c0_34 = arith.constant 0 : index
    %67 = vector.load %arg13[%c0_33, %c0_34] : memref<256x128xbf16, #tpu.memory_space<vmem>>, vector<256x128xbf16>
    %cst_35 = arith.constant dense<0.000000e+00> : vector<64x128xf32>
    %68 = tpu.matmul %66, %67, %cst_35 {dimension_numbers = #tpu.dot_dimension_numbers<[1], [0], [0], [1], [0, 0, 1, 1], [], []>} : vector<64x256xbf16>, vector<256x128xbf16>, vector<64x128xf32> -> vector<64x128xf32>
    %c0_36 = arith.constant 0 : index
    %c0_37 = arith.constant 0 : index
    %69 = vector.load %arg14[%c0_36, %c0_37] : memref<1x128xf32, #tpu.memory_space<vmem>>, vector<1x128xf32>
    %70 = vector.broadcast %69 : vector<1x128xf32> to vector<64x128xf32>
    %71 = arith.addf %68, %70 : vector<64x128xf32>
    %72 = arith.addf %33, %71 : vector<64x128xf32>
    %c0_38 = arith.constant 0 : index
    %c0_39 = arith.constant 0 : index
    %c0_40 = arith.constant 0 : index
    %73 = vector.load %arg15[%c0_38, %c0_39, %c0_40] : memref<1x64x128xf32, #tpu.memory_space<vmem>>, vector<1x64x128xf32>
    %74 = vector.shape_cast %73 : vector<1x64x128xf32> to vector<64x128xf32>
    %75 = vector.shape_cast %72 : vector<64x128xf32> to vector<1x64x128xf32>
    tpu.vector_store %arg15[%c0_38, %c0_39, %c0_40], %75 {strides = array<i32>} : memref<1x64x128xf32, #tpu.memory_space<vmem>>, vector<1x64x128xf32>,
    return
  }
  func.func @transform_0(%arg0: i32, %arg1: i32) -> (i32, i32, i32) {
    %c0_i32 = arith.constant 0 : i32
    %c0_i32_0 = arith.constant 0 : i32
    %c0_i32_1 = arith.constant 0 : i32
    return %arg0, %c0_i32, %c0_i32_0 : i32, i32, i32
  }
  func.func @transform_1(%arg0: i32, %arg1: i32) -> (i32, i32) {
    %c0_i32 = arith.constant 0 : i32
    %c0_i32_0 = arith.constant 0 : i32
    %c0_i32_1 = arith.constant 0 : i32
    return %c0_i32, %c0_i32_0 : i32, i32
  }
  func.func @transform_2(%arg0: i32, %arg1: i32) -> (i32, i32) {
    %c0_i32 = arith.constant 0 : i32
    %c0_i32_0 = arith.constant 0 : i32
    %c0_i32_1 = arith.constant 0 : i32
    return %c0_i32, %c0_i32_0 : i32, i32
  }
  func.func @transform_3(%arg0: i32, %arg1: i32) -> (i32, i32) {
    %c0_i32 = arith.constant 0 : i32
    %c0_i32_0 = arith.constant 0 : i32
    %c0_i32_1 = arith.constant 0 : i32
    return %c0_i32, %c0_i32_0 : i32, i32
  }
  func.func @transform_4(%arg0: i32, %arg1: i32) -> (i32, i32) {
    %c0_i32 = arith.constant 0 : i32
    %c0_i32_0 = arith.constant 0 : i32
    %c0_i32_1 = arith.constant 0 : i32
    return %c0_i32, %c0_i32_0 : i32, i32
  }
  func.func @transform_5(%arg0: i32, %arg1: i32) -> (i32, i32) {
    %c0_i32 = arith.constant 0 : i32
    %c0_i32_0 = arith.constant 0 : i32
    %c0_i32_1 = arith.constant 0 : i32
    return %c0_i32, %c0_i32_0 : i32, i32
  }
  func.func @transform_6(%arg0: i32, %arg1: i32) -> (i32, i32) {
    %c0_i32 = arith.constant 0 : i32
    %c0_i32_0 = arith.constant 0 : i32
    %c0_i32_1 = arith.constant 0 : i32
    return %c0_i32, %c0_i32_0 : i32, i32
  }
  func.func @transform_7(%arg0: i32, %arg1: i32) -> (i32, i32) {
    %c0_i32 = arith.constant 0 : i32
    %c0_i32_0 = arith.constant 0 : i32
    %c0_i32_1 = arith.constant 0 : i32
    return %c0_i32, %c0_i32_0 : i32, i32
  }
  func.func @transform_8(%arg0: i32, %arg1: i32) -> (i32, i32) {
    %c0_i32 = arith.constant 0 : i32
    %c0_i32_0 = arith.constant 0 : i32
    %c0_i32_1 = arith.constant 0 : i32
    return %c0_i32, %c0_i32_0 : i32, i32
  }
  func.func @transform_9(%arg0: i32, %arg1: i32) -> (i32, i32) {
    %c0_i32 = arith.constant 0 : i32
    %c0_i32_0 = arith.constant 0 : i32
    %c0_i32_1 = arith.constant 0 : i32
    return %c0_i32, %c0_i32_0 : i32, i32
  }
  func.func @transform_10(%arg0: i32, %arg1: i32) -> (i32, i32) {
    %c0_i32 = arith.constant 0 : i32
    %c0_i32_0 = arith.constant 0 : i32
    %c0_i32_1 = arith.constant 0 : i32
    return %c0_i32, %c0_i32_0 : i32, i32
  }
  func.func @transform_11(%arg0: i32, %arg1: i32) -> (i32, i32) {
    %c0_i32 = arith.constant 0 : i32
    %c0_i32_0 = arith.constant 0 : i32
    %c0_i32_1 = arith.constant 0 : i32
    return %c0_i32, %c0_i32_0 : i32, i32
  }
  func.func @transform_12(%arg0: i32, %arg1: i32) -> (i32, i32) {
    %c0_i32 = arith.constant 0 : i32
    %c0_i32_0 = arith.constant 0 : i32
    %c0_i32_1 = arith.constant 0 : i32
    return %c0_i32, %c0_i32_0 : i32, i32
  }
  func.func @transform_13(%arg0: i32, %arg1: i32) -> (i32, i32, i32) {
    %c0_i32 = arith.constant 0 : i32
    %c0_i32_0 = arith.constant 0 : i32
    return %arg0, %arg1, %c0_i32 : i32, i32, i32
  }
}

</mosaic_0001>

<bundles_post_ra>
// kernel: tpu_custom_call.1
= control target key start
LH: loop header
LB: loop body
LE: loop exit
PB: predicated region body
PF: predicated region fallthrough
CT: control target
= control target key end

     0   :  { %s17746_s0 = inlined_call_operand.hbm [shape: f32[2,128,128], index: 0, kind: input, shape index: {}]   ;;  %s17747_s1 = inlined_call_operand.hbm [shape: bf16[128,384], index: 1, kind: input, shape index: {}]   ;;  %s17748_s2 = inlined_call_operand.hbm [shape: f32[1,384], index: 2, kind: input, shape index: {}]   ;;  %s17749_s3 = inlined_call_operand.hbm [shape: bf16[128,128], index: 3, kind: input, shape index: {}]   ;;  %s17750_s4 = inlined_call_operand.vmem [shape: f32[1,128], index: 4, kind: input, shape index: {}]   ;;  %s17751_s5 = inlined_call_operand.vmem [shape: f32[1,128], index: 5, kind: input, shape index: {}]   ;;  %s17752_s6 = inlined_call_operand.vmem [shape: f32[1,128], index: 6, kind: input, shape index: {}]   ;;  %s17753_s7 = inlined_call_operand.vmem [shape: f32[1,128], index: 7, kind: input, shape index: {}]   ;;  %s17754_s8 = inlined_call_operand.vmem [shape: f32[1,128], index: 8, kind: input, shape index: {}]   ;;  %s17755_s9 = inlined_call_operand.hbm [shape: bf16[128,256], index: 9, kind: input, shape index: {}]   ;;  %s17756_s10 = inlined_call_operand.vmem [shape: f32[1,256], index: 10, kind: input, shape index: {}]   ;;  %s17757_s11 = inlined_call_operand.hbm [shape: bf16[256,128], index: 11, kind: input, shape index: {}]   ;;  %s17758_s12 = inlined_call_operand.vmem [shape: f32[1,128], index: 12, kind: input, shape index: {}]   ;;  %s17759_s13 = inlined_call_operand.hbm [shape: f32[2,128,128], index: 13, kind: output, shape index: {}]  }
   0x1   :  { %17799 = sst [smem:[#allocation39_spill]] %s17746_s0 }
   0x2   :  { %17800 = sst [smem:[#allocation40_spill]] %s17747_s1 }
   0x3   :  { %17801 = sst [smem:[#allocation41_spill]] %s17748_s2 }
   0x4   :  { %17802 = sst [smem:[#allocation42_spill]] %s17749_s3 }
   0x5   :  { %17803 = sst [smem:[#allocation43_spill]] %s17750_s4 }
   0x6   :  { %17804 = sst [smem:[#allocation44_spill]] %s17751_s5 }
   0x7   :  { %17805 = sst [smem:[#allocation45_spill]] %s17752_s6 }
   0x8   :  { %17806 = sst [smem:[#allocation46_spill]] %s17753_s7 }
   0x9   :  { %17807 = sst [smem:[#allocation47_spill]] %s17754_s8 }
   0xa   :  { %17808 = sst [smem:[#allocation48_spill]] %s17755_s9 }
   0xb   :  { %17809 = sst [smem:[#allocation49_spill]] %s17756_s10 }
   0xc   :  { %17810 = sst [smem:[#allocation50_spill]] %s17757_s11 }
   0xd   :  { %17811 = sst [smem:[#allocation51_spill]] %s17758_s12 }
   0xe   :  { %17812 = sst [smem:[#allocation52_spill]] %s17759_s13 }
   0xf   :  { %18 = vsyncpa [#allocation6], 0 }
  0x10   :  { %20 = vsyncpa [#allocation6 + $0x1], 0 }
  0x11   :  { %21 = vsyncpa [#allocation9], 0 }
  0x12   :  { %22 = vsyncpa [#allocation12], 0 }
  0x13   :  { %23 = vsyncpa [#allocation15], 0 }
  0x14   :  { %24 = vsyncpa [#allocation7], 0 }
  0x15   :  { %26 = vsyncpa [#allocation7 + $0x1], 0  ;;  %s12663_s25 = smov 0   ;;  %s12665_s26 = smov 0  }
  0x16   :  { %s12667_s27 = smov 0   ;;  %s12669_s28 = smov 0  }
  0x17   :  { %s12671_s29 = smov 0   ;;  %s12673_s30 = smov 0  }
  0x18   :  { %s12675_s14 = smov 0   ;;  %s12677_s15 = smov 0  }
  0x19   :  { %s12679_s16 = smov 0   ;;  %s12681_s17 = smov 0  }
  0x1a   :  { %s12683_s18 = smov 0  }
  0x1b LB: > { %17813 = sst [smem:[#allocation22_spill]] %s12550_s14  ;;  %s10727_s19 = sadd.s32 4294967295, %s12566_s18   ;;  %s12566_s18 = sphi %s12683_s18, %s32_s18   ;;  %s12562_s17 = sphi %s12681_s17, %s17953_s17   ;;  %s12558_s16 = sphi %s12679_s16, %s17952_s16   ;;  %s12554_s15 = sphi %s12677_s15, %s17951_s15   ;;  %s12550_s14 = sphi %s12675_s14, %s17950_s14   ;;  %s12546_s30 = sphi %s12673_s30, %s17949_s30   ;;  %s12542_s29 = sphi %s12671_s29, %s17948_s29   ;;  %s12538_s28 = sphi %s12669_s28, %s17947_s28   ;;  %s12534_s27 = sphi %s12667_s27, %s17946_s27   ;;  %s12530_s26 = sphi %s12665_s26, %s17945_s26   ;;  %s12526_s25 = sphi %s12663_s25, %s17944_s25  }
  0x1c   : > { %17814 = sst [smem:[#allocation23_spill]] %s12554_s15  ;;  %p10729_p0 = scmp.ge.s32.totalorder %s12566_s18, 1 }
  0x1d   : > { %p12720_p1 = scmp.eq.s32.totalorder %s10727_s19, 0  ;;  %p12724_p2 = scmp.eq.s32.totalorder %s10727_s19, 3 }
  0x1e   : > { %p355_p3 = scmp.lt.s32.totalorder %s12566_s18, 5  ;;  %s17817_s1 = sld [smem:[#allocation40_spill]] }
  0x1f   : > { %s12568_s15 = smov [#allocation8]   ;;  %s17821_s3 = sld [smem:[#allocation42_spill]] }
  0x20   : > { %p12732_p4 = pnand %p10729_p0, %p355_p3  ;;  %s368_s12 = sshll.u32 %s12568_s15, 4  ;;  %s369_s12 = int_to_ptr.vmem [resolvable:$true] %s368_s12 }
  0x21   : > { %s12569_s23 = smov [#allocation11]   ;;  %s12570_s7 = smov 192  }
  0x22   : > { %s17818_s13 = scalar_select %p12732_p4, 1, 0 }
  0x23   : > { %p11557_p5 = pneg %p12732_p4  ;;  %s12571_s15 = smov 12  }
  0x24   : > { %s366_s24 = sshll.u32 %s17817_s1, 4  ;;  %17819 = sst [smem:[#allocation24_spill]] %s17818_s13  ;;  %s367_s24 = int_to_ptr.hbm [resolvable:$true] %s366_s24 }
  0x25   : > { %p12740_p6 = pnand %p11557_p5, %p12720_p1  ;;  %s392_s22 = sshll.u32 %s17821_s3, 4  ;;  %s393_s22 = int_to_ptr.hbm [resolvable:$true] %s392_s22 }
  0x26   : > { %s394_s1 = sshll.u32 %s12569_s23, 4  ;;  %s17822_s2 = sld [smem:[#allocation41_spill]]  ;;  %s395_s1 = int_to_ptr.vmem [resolvable:$true] %s394_s1 }
  0x27   : > { %11560 = dma.hbm_to_vmem [thread:$0]  (!%p12740_p6), %s367_s24, 3072, %s369_s12, [#allocation9], %s12570_s7, %s12570_s7, %s12571_s15  }
  0x28   : > { %s12572_s14 = smov 64   ;;  %s12573_s13 = smov 4  }
  0x29   : > { %11566 = dma.hbm_to_vmem [thread:$0]  (!%p12740_p6), %s393_s22, 1024, %s395_s1, [#allocation12], %s12572_s14, %s12572_s14, %s12573_s13  }
  0x2a   : > { %s12574_s8 = smov [#allocation10]   ;;  %s17823_s9 = sld [smem:[#allocation48_spill]] }
  0x2b   : > { %s383_s10 = sshll.u32 %s12574_s8, 4  ;;  %s12575_s4 = smov [#allocation13]   ;;  %s384_s10 = int_to_ptr.vmem [resolvable:$true] %s383_s10 }
  0x2c   : > { %s381_s5 = sshll.u32 %s17822_s2, 4  ;;  %s423_s6 = sshll.u32 %s12575_s4, 4  ;;  %s382_s5 = int_to_ptr.hbm [resolvable:$true] %s381_s5  ;;  %s424_s6 = int_to_ptr.vmem [resolvable:$true] %s423_s6 }
  0x2d   : > { %11563 = dma.hbm_to_vmem [thread:$0]  (!%p12740_p6), %s382_s5, 48, %s384_s10, [#allocation9]  }
  0x2e   : > { %s17824_s11 = sld [smem:[#allocation50_spill]]  ;;  %s17763_s0 = smov 128  }
  0x2f   : > { %s17764_s3 = smov 8   ;;  %s12578_s5 = smov [#allocation14]  }
  0x30   : > { %s421_s23 = sshll.u32 %s17823_s9, 4  ;;  %s440_s24 = sshll.u32 %s12578_s5, 4  ;;  %s422_s23 = int_to_ptr.hbm [resolvable:$true] %s421_s23  ;;  %s441_s24 = int_to_ptr.vmem [resolvable:$true] %s440_s24 }
  0x31   : > { %11569 = dma.hbm_to_vmem [thread:$0]  (!%p12740_p6), %s422_s23, 2048, %s424_s6, [#allocation12], %s17763_s0, %s17763_s0, %s17764_s3  }
  0x32   : > { %s10728_s22 = sadd.s32 4294967294, %s12566_s18   ;;  %s41_s15 = sadd.s32 1, %s12558_s16 }
  0x33   : > { %p42_p7 = scmp.ge.s32.totalorder %s41_s15, 2  ;;  %s44_s8 = sadd.s32 1, %s12562_s17 }
  0x34   : > { %s438_s12 = sshll.u32 %s17824_s11, 4  ;;  %s51_s10 = sadd.s32 1, %s12546_s30  ;;  %s439_s12 = int_to_ptr.hbm [resolvable:$true] %s438_s12 }
  0x35   : > { %11572 = dma.hbm_to_vmem [thread:$0]  (!%p12740_p6), %s439_s12, 2048, %s441_s24, [#allocation15], %s12572_s14, %s12572_s14, %s12573_s13  }
  0x36   : > { %p58_p8 = scmp.ne.s32.totalorder %s12546_s30, %s12542_s29  ;;  %s17955_s15 = smov (%p42_p7, %s41_s15), 0 }
  0x37   : > { %s17957_s8 = smov (!%p42_p7, %s44_s8), %s12562_s17  ;;  %p59_p9 = scmp.eq.s32.totalorder %s12566_s18, 0 }
  0x38   : > { %p64_p10 = scmp.ne.s32.totalorder %s12542_s29, %s12538_s28  ;;  %p46_p11 = scmp.ge.s32.totalorder %s17957_s8, 2 }
  0x39   : > { %s327_s13 = ssub.s32 %s12558_s16, %s17955_s15  ;;  %p12783_p12 = por %p59_p9, %p58_p8 }
  0x3a   : > { %p12789_p13 = por %p12720_p1, %p64_p10  ;;  %s17959_s8 = smov (%p46_p11, %s17957_s8), 0 }
  0x3b   : > { %17827 = sst [smem:[#allocation25_spill]] %s17959_s8  ;;  %s331_s23 = sadd.s32 1, %s12534_s27 }
  0x3c   : > { %p341_p0 = scmp.ne.s32.totalorder %s12534_s27, %s12530_s26  ;;  %s48_s28 = ssub.s32 %s12562_s17, %s17959_s8 }
  0x3d   : > { %p347_p3 = scmp.ne.s32.totalorder %s12530_s26, %s12526_s25  ;;  %p49_p5 = scmp.eq.s32.totalorder %s48_s28, 0 }
  0x3e   : > { %s328_s4 = sor.u32 %s327_s13, %s48_s28  ;;  %p12804_p7 = por %p12724_p2, %p341_p0 }
  0x3f   : > { %p329_p6 = scmp.eq.s32.totalorder %s328_s4, 0  ;;  %p348_p8 = scmp.eq.s32.totalorder %s10728_s22, 3 }
  0x40   : > { %s12809_s1 = scalar_select %p49_p5, %s12546_s30, %s51_s10  }
  0x41   : > { %s12812_s7 = scalar_select %p329_p6, %s12534_s27, %s331_s23  }
  0x42   : > { %p11586_p9 = scmp.lt.s32.totalorder %s12566_s18, 4  ;;  %s457_s12 = sand.u32 1, %s12546_s30  }
  0x43   : > { %s11348_s5 = sshll.u32 %s12562_s17, 7  ;;  %p12817_p10 = por %p348_p8, %p347_p3 }
  0x44   : > { %s10736_s13 = sshll.u32 %s457_s12, 7  ;;  %s17830_s4 = sld [smem:[#allocation39_spill]] }
  0x45   : > { %s461_s2 = scalar_lea.vmem [#allocation5], %s10736_s13  ;;  %p11574_p2 = pnand %p11586_p9, %p12783_p12 }
  0x46   : > { %s469_s10 = sshll.u32 %s461_s2, 4  ;;  %s458_s22 = scalar_lea.sflag [#allocation6], %s457_s12  ;;  %s470_s10 = int_to_ptr.vmem [resolvable:$true] %s469_s10 }
  0x47   : > { %s17831_s23 = smov 8   ;;  %s17832_s9 = smov 128  }
  0x48   : > { %481 = sbr.rel (%p12732_p4) target bundleno = 3143 (0xc47), region = 72  ;;  %s483_s8 = sand.u32 (!%p12732_p4), 1, %s12542_s29  }
  0x49   : > { %s10740_s28 = sshll.u32 (!%p12732_p4), %s483_s8, 7 }
  0x4a   : > { %s466_s0 = scalar_lea.hbm %s17830_s4, %s11348_s5  ;;  %s484_s5 = scalar_lea.sflag (!%p12732_p4), [#allocation6], %s483_s8 }
  0x4b   : > { %s467_s3 = sshll.u32 %s466_s0, 4  ;;  %s12832_s0 = scalar_lea.vmem (!%p12732_p4), [#allocation5], %s10740_s28  ;;  %s468_s3 = int_to_ptr.hbm [resolvable:$true] %s467_s3 }
  0x4c   : > { %11576 = dma.hbm_to_vmem [thread:$0]  (!%p11574_p2), %s468_s3, 2048, %s470_s10, %s458_s22, %s17832_s9, %s17832_s9, %s17831_s23  }
  0x4d   : > { %12505 = dma.done.wait (%p12789_p13), %s484_s5, 2048  }
  0x4e   : > { %12507 = vsyncadd (%p12789_p13), %s484_s5, 4294965248 }
  0x4f   : > { %12509 = dma.done.wait (%p12720_p1), [#allocation9], 3120  }
  0x50   : > { %12511 = vsyncadd (%p12720_p1), [#allocation9], 4294964176 }
  0x51   : > { %12513 = dma.done.wait (%p12720_p1), [#allocation12], 3072  }
  0x52   : > { %12515 = vsyncadd (%p12720_p1), [#allocation12], 4294964224 }
  0x53   : > { %12517 = dma.done.wait (%p12720_p1), [#allocation15], 2048  }
  0x54   : > { %12519 = vsyncadd (%p12720_p1), [#allocation15], 4294965248  ;;  %s553_s2 = sand.u32 1, %s12530_s26   ;;  %s17834_s3 = sld [smem:[#allocation22_spill]] }
  0x55   : > { %s10746_s9 = sshll.u32 %s553_s2, 6 }
  0x56   : > { %s12853_s11 = scalar_lea.vmem [#allocation16], %s10746_s9 }
  0x5a   : > { %p10747_p4 = scmp.ne.s32.totalorder %s17834_s3, 0 }
  0x5c   : > { %561 = sbr.rel (%p10747_p4) target bundleno = 1469 (0x5bd), region = 100 }
  0x61   : > { %v12857_v0 = vld [vmem:[%s12832_s0 + $0x20] sm:$0xff]  ;;  %v564_v1 = vld [vmem:[%s12832_s0 + $0x10] sm:$0xff]  ;;  %v567_v3 = vld [vmem:[%s12832_s0 + $0x28] sm:$0xff]  ;;  %v12579_v16 = vmov 128.0   ;;  %s17839_s14 = sld [smem:[#allocation44_spill]]  ;;  %s12580_s21 = smov 32  }
  0x62   : > { %v562_v2 = vld [vmem:[%s12832_s0] sm:$0xff]  ;;  %588 = vadd.xlane.f32.xlu2 %v12857_v0  ;;  %584 = vadd.xlane.f32.xlu1 %v564_v1  ;;  %v565_v4 = vld [vmem:[%s12832_s0 + $0x18] sm:$0xff]  ;;  %v563_v5 = vld [vmem:[%s12832_s0 + $0x8] sm:$0xff]  ;;  %12068 = vrcp.f32 %v12579_v16  ;;  %s17842_s13 = sld [smem:[#allocation45_spill]]  ;;  %s12581_s4 = smov 64  }
  0x63   : > { %580 = vadd.xlane.f32.xlu0 %v562_v2  ;;  %v570_v6 = vld [vmem:[%s12832_s0 + $0x40] sm:$0xff]  ;;  %v12867_v7 = vld [vmem:[%s12832_s0 + $0x38] sm:$0xff]  ;;  %v568_v8 = vld [vmem:[%s12832_s0 + $0x30] sm:$0xff]  ;;  %s12582_s10 = smov 96  }
  0x64   : > { %v12872_v9 = vld [vmem:[%s12832_s0 + $0x58] sm:$0xff]  ;;  %v12875_v10 = vld [vmem:[%s12832_s0 + $0x50] sm:$0xff]  ;;  %v12878_v11 = vld [vmem:[%s12832_s0 + $0x48] sm:$0xff] }
  0x65   : > { %v12884_v12 = vld [vmem:[%s12832_s0 + $0x70] sm:$0xff]  ;;  %v12887_v13 = vld [vmem:[%s12832_s0 + $0x68] sm:$0xff]  ;;  %v12890_v14 = vld [vmem:[%s12832_s0 + $0x60] sm:$0xff] }
  0x66   : > { %v12896_v15 = vld [vmem:[%s12832_s0 + $0x78] sm:$0xff] }
  0x68   : > { %v12069_v17 = vpop.eup %12068 }
  0x69   : > { %v613_v18 = vmul.f32 128.0, %v12069_v17  ;;  %vm617_vm0 = vweird.f32 %v12069_v17 }
  0x6a   : > { %590 = vadd.xlane.f32.xlu2 %v567_v3  ;;  %586 = vadd.xlane.f32.xlu1 %v565_v4 }
  0x6b   : > { %582 = vadd.xlane.f32.xlu0 %v563_v5  ;;  %v614_v19 = vsub.f32 1.0, %v613_v18 }
  0x6d   : > { %v615_v20 = vmul.f32 %v12069_v17, %v614_v19 }
  0x6f   : > { %v616_v21 = vadd.f32 %v12069_v17, %v615_v20 }
  0x71   : > { %v12899_v22 = vsel %vm617_vm0, %v12069_v17, %v616_v21 }
  0x72   : > { %596 = vadd.xlane.f32.xlu2 %v570_v6  ;;  %594 = vadd.xlane.f32.xlu1 %v12867_v7 }
  0x73   : > { %592 = vadd.xlane.f32.xlu0 %v568_v8 }
  0x7a   : > { %602 = vadd.xlane.f32.xlu2 %v12872_v9  ;;  %600 = vadd.xlane.f32.xlu1 %v12875_v10 }
  0x7b   : > { %598 = vadd.xlane.f32.xlu0 %v12878_v11 }
  0x82   : > { %608 = vadd.xlane.f32.xlu2 %v12884_v12  ;;  %606 = vadd.xlane.f32.xlu1 %v12887_v13 }
  0x83   : > { %604 = vadd.xlane.f32.xlu0 %v12890_v14 }
  0x8b   : > { %610 = vadd.xlane.f32.xlu0 %v12896_v15 }
  0xd5   : > { %v589_v23 = vpop.xlane.xlu2 %588  ;;  %v585_v24 = vpop.xlane.xlu1 %584 }
  0xd6   : > { %v621_v25 = vmul.f32 %v12899_v22, %v585_v24  ;;  %v581_v26 = vpop.xlane.xlu0 %580  ;;  %v623_v40 = vmul.f32 %v12899_v22, %v589_v23 }
  0xd7   : > { %v619_v27 = vmul.f32 %v12899_v22, %v581_v26  ;;  %v10834_v26 = vld [vmem:[#allocation8 + $0xa8] sm:$0xf] }
  0xd8   : > { %v12903_v28 = vsub.f32 %v564_v1, %v621_v25  ;;  %v12928_v45 = vsub.f32 %v12857_v0, %v623_v40 }
  0xd9   : > { %v12905_v29 = vsub.f32 %v562_v2, %v619_v27  ;;  %v11371_v27 = vld [vmem:[#allocation8 + $0xb0] sm:$0xf0] }
  0xda   : > { %v653_v30 = vmul.f32 %v12903_v28, %v12903_v28  ;;  %v655_v53 = vmul.f32 %v12928_v45, %v12928_v45 }
  0xdb   : > { %v651_v31 = vmul.f32 %v12905_v29, %v12905_v29 }
  0xdc   : > { %671 = vadd.xlane.f32.xlu0 %v653_v30  ;;  %v11370_v30 = vld [vmem:[#allocation8 + $0xac] sm:$0xf] }
  0xdd   : > { %667 = vadd.xlane.f32.xlu1 %v651_v31  ;;  %v591_v32 = vpop.xlane.xlu2 %590  ;;  %v587_v33 = vpop.xlane.xlu1 %586  ;;  %v10835_v31 = vor.u32 %v11371_v27, %v10834_v26  ;;  %v11355_v26 = vld [vmem:[#allocation8 + $0x34] sm:$0xf] }
  0xde   : > { %v624_v34 = vmul.f32 %v12899_v22, %v591_v32  ;;  %v622_v35 = vmul.f32 %v12899_v22, %v587_v33  ;;  %v583_v36 = vpop.xlane.xlu0 %582  ;;  %v10842_v32 = vld [vmem:[#allocation8 + $0xb0] sm:$0xf]  ;;  %v11372_v33 = vld [vmem:[#allocation8 + $0xb8] sm:$0xf0] }
  0xdf   : > { %v620_v37 = vmul.f32 %v12899_v22, %v583_v36  ;;  %1121 = vmatpush.bf16.msra.mxu0 %v10835_v31  ;;  %11493 = vmatpush.bf16.msra.mxu3 %v10835_v31  ;;  %v11368_v36 = vld [vmem:[#allocation8 + $0x98] sm:$0xf0]  ;;  %v10776_v31 = vld [vmem:[#allocation8 + $0x3c] sm:$0xf0] }
  0xe0   : > { %v12914_v38 = vsub.f32 %v567_v3, %v624_v34  ;;  %v12916_v39 = vsub.f32 %v565_v4, %v622_v35  ;;  %v12992_v35 = vor.u32 %v11372_v33, %v10842_v32  ;;  %v11357_v32 = vld [vmem:[#allocation8 + $0x40] sm:$0xf0] }
  0xe1   : > { %v12919_v41 = vsub.f32 %v563_v5, %v620_v37  ;;  %v11367_v37 = vld [vmem:[#allocation8 + $0x94] sm:$0xf] }
  0xe2   : > { %v656_v42 = vmul.f32 %v12914_v38, %v12914_v38  ;;  %v654_v43 = vmul.f32 %v12916_v39, %v12916_v39  ;;  %1219 = vmatpush.bf16.msra.mxu2 %v12992_v35 }
  0xe3   : > { %v652_v44 = vmul.f32 %v12919_v41, %v12919_v41 }
  0xe4   : > { %677 = vadd.xlane.f32.xlu0 %v656_v42  ;;  %v10824_v42 = vld [vmem:[#allocation8 + $0x9c] sm:$0xf0] }
  0xe5   : > { %673 = vadd.xlane.f32.xlu1 %v654_v43  ;;  %669 = vadd.xlane.f32.xlu2 %v652_v44  ;;  %v597_v46 = vpop.xlane.xlu2 %596  ;;  %v595_v47 = vpop.xlane.xlu1 %594  ;;  %v10830_v43 = vld [vmem:[#allocation8 + $0x98] sm:$0xf]  ;;  %v11369_v44 = vld [vmem:[#allocation8 + $0xa0] sm:$0xf0] }
  0xe6   : > { %v627_v48 = vmul.f32 %v12899_v22, %v597_v46  ;;  %v593_v49 = vpop.xlane.xlu0 %592  ;;  %v626_v54 = vmul.f32 %v12899_v22, %v595_v47  ;;  %v12996_v46 = vor.u32 %v11367_v37, %v10824_v42  ;;  %v12998_v47 = vor.u32 %v11369_v44, %v10830_v43  ;;  %v10762_v43 = vld [vmem:[#allocation8 + $0x18] sm:$0xf]  ;;  %v11353_v44 = vld [vmem:[#allocation8 + $0x20] sm:$0xf0] }
  0xe7   : > { %v625_v50 = vmul.f32 %v12899_v22, %v593_v49  ;;  %v11365_v49 = vld [vmem:[#allocation8 + $0x80] sm:$0xf0] }
  0xe8   : > { %v12932_v51 = vsub.f32 %v570_v6, %v627_v48  ;;  %v12944_v58 = vsub.f32 %v12867_v7, %v626_v54  ;;  %1220 = vmatpush.bf16.msra.mxu2 %v12998_v47  ;;  %v10810_v48 = vld [vmem:[#allocation8 + $0x78] sm:$0xf]  ;;  %v10812_v54 = vld [vmem:[#allocation8 + $0x84] sm:$0xf0] }
  0xe9   : > { %v12934_v52 = vsub.f32 %v568_v8, %v625_v50  ;;  %v11364_v50 = vld [vmem:[#allocation8 + $0x7c] sm:$0xf] }
  0xea   : > { %v659_v55 = vmul.f32 %v12932_v51, %v12932_v51  ;;  %v658_v1 = vmul.f32 %v12944_v58, %v12944_v58 }
  0xeb   : > { %v657_v56 = vmul.f32 %v12934_v52, %v12934_v52 }
  0xec   : > { %683 = vadd.xlane.f32.xlu0 %v659_v55  ;;  %v10818_v55 = vld [vmem:[#allocation8 + $0x80] sm:$0xf] }
  0xed   : > { %675 = vadd.xlane.f32.xlu2 %v655_v53  ;;  %679 = vadd.xlane.f32.xlu1 %v657_v56  ;;  %v603_v57 = vpop.xlane.xlu2 %602  ;;  %v601_v59 = vpop.xlane.xlu1 %600  ;;  %v10811_v53 = vor.u32 %v11365_v49, %v10810_v48  ;;  %v11366_v56 = vld [vmem:[#allocation8 + $0x88] sm:$0xf0]  ;;  %v10763_v49 = vor.u32 %v11353_v44, %v10762_v43 }
  0xee   : > { %v630_v60 = vmul.f32 %v12899_v22, %v603_v57  ;;  %v599_v61 = vpop.xlane.xlu0 %598  ;;  %v629_v2 = vmul.f32 %v12899_v22, %v601_v59  ;;  %v13002_v57 = vor.u32 %v11364_v50, %v10812_v54  ;;  %v13004_v59 = vor.u32 %v11366_v56, %v10818_v55  ;;  %v11352_v50 = vld [vmem:[#allocation8 + $0x1c] sm:$0xf]  ;;  %v10770_v55 = vld [vmem:[#allocation8 + $0x20] sm:$0xf]  ;;  %v11354_v56 = vld [vmem:[#allocation8 + $0x28] sm:$0xf0] }
  0xef   : > { %v628_v62 = vmul.f32 %v12899_v22, %v599_v61  ;;  %v11362_v61 = vld [vmem:[#allocation8 + $0x68] sm:$0xf0] }
  0xf0   : > { %v12949_v63 = vsub.f32 %v12872_v9, %v630_v60  ;;  %v12962_v6 = vsub.f32 %v12875_v10, %v629_v2  ;;  %1221 = vmatpush.bf16.msra.mxu2 %v13004_v59  ;;  %v10798_v60 = vld [vmem:[#allocation8 + $0x60] sm:$0xf]  ;;  %v10800_v2 = vld [vmem:[#allocation8 + $0x6c] sm:$0xf0] }
  0xf1   : > { %v12952_v0 = vsub.f32 %v12878_v11, %v628_v62  ;;  %v11361_v62 = vld [vmem:[#allocation8 + $0x64] sm:$0xf] }
  0xf2   : > { %v662_v3 = vmul.f32 %v12949_v63, %v12949_v63  ;;  %v661_v18 = vmul.f32 %v12962_v6, %v12962_v6 }
  0xf3   : > { %v660_v4 = vmul.f32 %v12952_v0, %v12952_v0 }
  0xf4   : > { %689 = vadd.xlane.f32.xlu0 %v662_v3  ;;  %v10806_v3 = vld [vmem:[#allocation8 + $0x68] sm:$0xf] }
  0xf5   : > { %681 = vadd.xlane.f32.xlu2 %v658_v1  ;;  %685 = vadd.xlane.f32.xlu1 %v660_v4  ;;  %v609_v5 = vpop.xlane.xlu2 %608  ;;  %v607_v9 = vpop.xlane.xlu1 %606  ;;  %v10799_v1 = vor.u32 %v11362_v61, %v10798_v60  ;;  %v11363_v4 = vld [vmem:[#allocation8 + $0x70] sm:$0xf0]  ;;  %v13035_v60 = vor.u32 %v11354_v56, %v10770_v55 }
  0xf6   : > { %v633_v7 = vmul.f32 %v12899_v22, %v609_v5  ;;  %v605_v8 = vpop.xlane.xlu0 %604  ;;  %v632_v19 = vmul.f32 %v12899_v22, %v607_v9  ;;  %v13008_v5 = vor.u32 %v11361_v62, %v10800_v2  ;;  %v11359_v9 = vld [vmem:[#allocation8 + $0x50] sm:$0xf0] }
  0xf7   : > { %v631_v11 = vmul.f32 %v12899_v22, %v605_v8  ;;  %v10786_v8 = vld [vmem:[#allocation8 + $0x48] sm:$0xf] }
  0xf8   : > { %v12967_v16 = vsub.f32 %v12884_v12, %v633_v7  ;;  %v12980_v12 = vsub.f32 %v12887_v13, %v632_v19  ;;  %v10836_v13 = vld [vmem:[#allocation8 + $0xb4] sm:$0xf0]  ;;  %v13010_v7 = vor.u32 %v11363_v4, %v10806_v3  ;;  %v10750_v4 = vld [vmem:[#allocation8] sm:$0xf] }
  0xf9   : > { %v12970_v17 = vsub.f32 %v12890_v14, %v631_v11  ;;  %v12990_v34 = vor.u32 %v11370_v30, %v10836_v13  ;;  %v11358_v11 = vld [vmem:[#allocation8 + $0x4c] sm:$0xf]  ;;  %v10788_v19 = vld [vmem:[#allocation8 + $0x54] sm:$0xf0] }
  0xfa   : > { %v665_v10 = vmul.f32 %v12967_v16, %v12967_v16  ;;  %v664_v24 = vmul.f32 %v12980_v12, %v12980_v12  ;;  %1222 = vmatpush.bf16.msra.mxu2 %v13010_v7  ;;  %v10782_v13 = vld [vmem:[#allocation8 + $0x38] sm:$0xf] }
  0xfb   : > { %v663_v20 = vmul.f32 %v12970_v17, %v12970_v17  ;;  %1170 = vmatpush.bf16.msra.mxu1 %v12990_v34  ;;  %v13023_v37 = vor.u32 %v11357_v32, %v10782_v13 }
  0xfc   : > { %695 = vadd.xlane.f32.xlu0 %v665_v10  ;;  %v10794_v10 = vld [vmem:[#allocation8 + $0x50] sm:$0xf] }
  0xfd   : > { %687 = vadd.xlane.f32.xlu2 %v661_v18  ;;  %691 = vadd.xlane.f32.xlu1 %v663_v20  ;;  %v10787_v18 = vor.u32 %v11359_v9, %v10786_v8  ;;  %v11360_v20 = vld [vmem:[#allocation8 + $0x58] sm:$0xf0]  ;;  %v11350_v8 = vld [vmem:[#allocation8 + $0x8] sm:$0xf0] }
  0xfe   : > { %v611_v21 = vpop.xlane.xlu0 %610  ;;  %v10751_v9 = vor.u32 %v11350_v8, %v10750_v4 }
  0xff   : > { %v634_v14 = vmul.f32 %v12899_v22, %v611_v21  ;;  %1171 = vmatpush.bf16.msra.mxu1 %v12996_v46  ;;  %v13014_v21 = vor.u32 %v11358_v11, %v10788_v19  ;;  %v11349_v11 = vld [vmem:[#allocation8 + $0x4] sm:$0xf]  ;;  %v10758_v19 = vld [vmem:[#allocation8 + $0x8] sm:$0xf] }
 0x101   : > { %v12984_v23 = vsub.f32 %v12896_v15, %v634_v14  ;;  %v10822_v15 = vld [vmem:[#allocation8 + $0x90] sm:$0xf]  ;;  %v13016_v14 = vor.u32 %v11360_v20, %v10794_v10 }
 0x102   : > { %v10823_v40 = vor.u32 %v11368_v36, %v10822_v15  ;;  %v13021_v36 = vor.u32 %v11355_v26, %v10776_v31 }
 0x103   : > { %v666_v25 = vmul.f32 %v12984_v23, %v12984_v23  ;;  %1172 = vmatpush.bf16.msra.mxu1 %v13002_v57  ;;  %1223 = vmatpush.bf16.msra.mxu2 %v13016_v14 }
 0x104   : > { %1122 = vmatpush.bf16.msra.mxu0 %v10823_v40  ;;  %11494 = vmatpush.bf16.msra.mxu3 %v10823_v40 }
 0x105   : > { %693 = vadd.xlane.f32.xlu2 %v664_v24  ;;  %697 = vadd.xlane.f32.xlu1 %v666_v25  ;;  %v10774_v24 = vld [vmem:[#allocation8 + $0x30] sm:$0xf]  ;;  %v11356_v25 = vld [vmem:[#allocation8 + $0x38] sm:$0xf0] }
 0x106   : > { %v10775_v30 = vor.u32 %v11356_v25, %v10774_v24  ;;  %v11351_v25 = vld [vmem:[#allocation8 + $0x10] sm:$0xf0] }
 0x107   : > { %1173 = vmatpush.bf16.msra.mxu1 %v13008_v5  ;;  %1224 = vmatpush.bf16.msra.mxu2 %v13023_v37  ;;  %v13058_v13 = vor.u32 %v11351_v25, %v10758_v19 }
 0x108   : > { %1123 = vmatpush.bf16.msra.mxu0 %v10811_v53  ;;  %11495 = vmatpush.bf16.msra.mxu3 %v10811_v53  ;;  %v10764_v53 = vld [vmem:[#allocation8 + $0x24] sm:$0xf0] }
 0x109   : > { %v13032_v54 = vor.u32 %v11352_v50, %v10764_v53 }
 0x10b   : > { %1174 = vmatpush.bf16.msra.mxu1 %v13014_v21  ;;  %1225 = vmatpush.bf16.msra.mxu2 %v13035_v60 }
 0x10c   : > { %1124 = vmatpush.bf16.msra.mxu0 %v10799_v1  ;;  %11496 = vmatpush.bf16.msra.mxu3 %v10799_v1 }
 0x10f   : > { %1175 = vmatpush.bf16.msra.mxu1 %v13021_v36  ;;  %1226 = vmatpush.bf16.msra.mxu2 %v13058_v13 }
 0x110   : > { %1125 = vmatpush.bf16.msra.mxu0 %v10787_v18  ;;  %11497 = vmatpush.bf16.msra.mxu3 %v10787_v18  ;;  %v10752_v18 = vld [vmem:[#allocation8 + $0xc] sm:$0xf0] }
 0x111   : > { %v13056_v31 = vor.u32 %v11349_v11, %v10752_v18 }
 0x113   : > { %1176 = vmatpush.bf16.msra.mxu1 %v13032_v54 }
 0x114   : > { %1126 = vmatpush.bf16.msra.mxu0 %v10775_v30  ;;  %11498 = vmatpush.bf16.msra.mxu3 %v10775_v30 }
 0x117   : > { %1177 = vmatpush.bf16.msra.mxu1 %v13056_v31 }
 0x118   : > { %1127 = vmatpush.bf16.msra.mxu0 %v10763_v49  ;;  %11499 = vmatpush.bf16.msra.mxu3 %v10763_v49 }
 0x11c   : > { %1128 = vmatpush.bf16.msra.mxu0 %v10751_v9  ;;  %11500 = vmatpush.bf16.msra.mxu3 %v10751_v9 }
 0x120   : > { %11501 = vmatpush.bf16.msrb.mxu3 %v12990_v34 }
 0x124   : > { %11502 = vmatpush.bf16.msrb.mxu3 %v12996_v46 }
 0x128   : > { %11503 = vmatpush.bf16.msrb.mxu3 %v13002_v57 }
 0x12c   : > { %11504 = vmatpush.bf16.msrb.mxu3 %v13008_v5 }
 0x130   : > { %11505 = vmatpush.bf16.msrb.mxu3 %v13014_v21 }
 0x134   : > { %11506 = vmatpush.bf16.msrb.mxu3 %v13021_v36 }
 0x138   : > { %11507 = vmatpush.bf16.msrb.mxu3 %v13032_v54 }
 0x13c   : > { %11508 = vmatpush.bf16.msrb.mxu3 %v13056_v31 }
 0x14f   : > { %v672_v27 = vpop.xlane.xlu0 %671 }
 0x150   : > { %v668_v33 = vpop.xlane.xlu1 %667  ;;  %v701_v15 = vmul.f32 %v672_v27, %v12899_v22 }
 0x151   : > { %v699_v40 = vmul.f32 %v668_v33, %v12899_v22 }
 0x152   : > { %v13026_v42 = vadd.f32 1e-05, %v701_v15 }
 0x153   : > { %v13030_v48 = vadd.f32 1e-05, %v699_v40 }
 0x154   : > { %vm757_vm6 = vweird.f32 %v13026_v42 }
 0x155   : > { %12070 = vrsqrt.f32 %v13030_v48  ;;  %vm737_vm2 = vweird.f32 %v13030_v48 }
 0x156   : > { %12072 = vrsqrt.f32 %v13026_v42 }
 0x157   : > { %v678_v61 = vpop.xlane.xlu0 %677 }
 0x158   : > { %v674_v62 = vpop.xlane.xlu1 %673  ;;  %v670_v1 = vpop.xlane.xlu2 %669  ;;  %v704_v27 = vmul.f32 %v678_v61, %v12899_v22 }
 0x159   : > { %v702_v2 = vmul.f32 %v674_v62, %v12899_v22  ;;  %v700_v3 = vmul.f32 %v670_v1, %v12899_v22 }
 0x15a   : > { %v13063_v40 = vadd.f32 1e-05, %v704_v27 }
 0x15b   : > { %v13042_v10 = vpop.eup %12070  ;;  %v13044_v20 = vadd.f32 1e-05, %v702_v2  ;;  %v13046_v24 = vadd.f32 1e-05, %v700_v3 }
 0x15c   : > { %v732_v26 = vmul.f32 %v13042_v10, %v13030_v48  ;;  %v13051_v30 = vpop.eup %12072  ;;  %vm738_vm1 = vweird.f32 %v13042_v10  ;;  %vm787_vm15 = vweird.f32 %v13063_v40 }
 0x15d   : > { %12074 = vrsqrt.f32 %v13044_v20  ;;  %v752_v15 = vmul.f32 %v13051_v30, %v13026_v42  ;;  %vm13097_vm4 = vmor %vm737_vm2, %vm738_vm1  ;;  %vm747_vm5 = vweird.f32 %v13046_v24  ;;  %vm758_vm7 = vweird.f32 %v13051_v30 }
 0x15e   : > { %12076 = vrsqrt.f32 %v13046_v24  ;;  %v733_v32 = vmul.f32 %v13042_v10, %v732_v26  ;;  %vm13140_vm9 = vmor %vm757_vm6, %vm758_vm7  ;;  %vm767_vm10 = vweird.f32 %v13044_v20 }
 0x15f   : > { %v684_v33 = vpop.xlane.xlu0 %683  ;;  %v753_v55 = vmul.f32 %v13051_v30, %v752_v15  ;;  %12078 = vrsqrt.f32 %v13063_v40 }
 0x160   : > { %v676_v43 = vpop.xlane.xlu2 %675  ;;  %v680_v44 = vpop.xlane.xlu1 %679  ;;  %v707_v34 = vmul.f32 %v684_v33, %v12899_v22  ;;  %v734_v50 = vmul.f32 0.5, %v733_v32 }
 0x161   : > { %v703_v46 = vmul.f32 %v676_v43, %v12899_v22  ;;  %v754_v4 = vmul.f32 0.5, %v753_v55 }
 0x162   : > { %v13074_v61 = vadd.f32 1e-05, %v707_v34  ;;  %v735_v62 = vsub.f32 1.5, %v734_v50  ;;  %v13165_v34 = vld [vmem:[%s17842_s13] ss:$0 sm:$0xff] }
 0x163   : > { %v13069_v49 = vpop.eup %12074  ;;  %v13089_v32 = vadd.f32 1e-05, %v703_v46  ;;  %v755_v33 = vsub.f32 1.5, %v754_v4 }
 0x164   : > { %v12077_v53 = vpop.eup %12076  ;;  %v762_v1 = vmul.f32 %v13069_v49, %v13044_v20  ;;  %12080 = vrsqrt.f32 %v13074_v61  ;;  %v736_v25 = vmul.f32 %v13042_v10, %v735_v62  ;;  %v705_v62 = vmul.f32 %v680_v44, %v12899_v22 }
 0x165   : > { %v742_v56 = vmul.f32 %v12077_v53, %v13046_v24  ;;  %v13082_v18 = vpop.eup %12078  ;;  %vm748_vm3 = vweird.f32 %v12077_v53  ;;  %12082 = vrsqrt.f32 %v13089_v32  ;;  %v756_v46 = vmul.f32 %v13051_v30, %v755_v33 }
 0x166   : > { %v763_v26 = vmul.f32 %v13069_v49, %v762_v1  ;;  %v782_v5 = vmul.f32 %v13082_v18, %v13063_v40  ;;  %v740_v48 = vsel %vm13097_vm4, %v13042_v10, %v736_v25  ;;  %vm13112_vm8 = vmor %vm747_vm5, %vm748_vm3  ;;  %v13153_v33 = vadd.f32 1e-05, %v705_v62 }
 0x167   : > { %v743_v2 = vmul.f32 %v12077_v53, %v742_v56  ;;  %v690_v3 = vpop.xlane.xlu0 %689  ;;  %v891_v4 = vmul.f32 %v740_v48, %v12905_v29  ;;  %vm768_vm11 = vweird.f32 %v13069_v49  ;;  %vm817_vm12 = vweird.f32 %v13074_v61 }
 0x168   : > { %v682_v8 = vpop.xlane.xlu2 %681  ;;  %v686_v9 = vpop.xlane.xlu1 %685  ;;  %v710_v19 = vmul.f32 %v690_v3, %v12899_v22  ;;  %v764_v56 = vmul.f32 0.5, %v763_v26  ;;  %v783_v3 = vmul.f32 %v13082_v18, %v782_v5  ;;  %vm13191_vm13 = vmor %vm767_vm10, %vm768_vm11  ;;  %vm788_vm7 = vweird.f32 %v13082_v18 }
 0x169   : > { %v744_v11 = vmul.f32 0.5, %v743_v2  ;;  %v708_v57 = vmul.f32 %v686_v9, %v12899_v22 }
 0x16a   : > { %v13101_v50 = vadd.f32 1e-05, %v710_v19  ;;  %v13103_v55 = vpop.eup %12080 }
 0x16b   : > { %v745_v27 = vsub.f32 1.5, %v744_v11  ;;  %v13094_v43 = vadd.f32 1e-05, %v708_v57  ;;  %v812_v1 = vmul.f32 %v13103_v55, %v13074_v61  ;;  %v13132_v11 = vld [vmem:[%s17839_s14] ss:$0 sm:$0xff]  ;;  %v706_v57 = vmul.f32 %v682_v8, %v12899_v22 }
 0x16c   : > { %v760_v8 = vsel %vm13140_vm9, %v13051_v30, %v756_v46  ;;  %v910_v5 = vmul.f32 %v13132_v11, %v891_v4  ;;  %vm818_vm14 = vweird.f32 %v13103_v55  ;;  %vm847_vm3 = vweird.f32 %v13101_v50 }
 0x16d   : > { %v746_v15 = vmul.f32 %v12077_v53, %v745_v27  ;;  %12084 = vrsqrt.f32 %v13094_v43  ;;  %v813_v44 = vmul.f32 %v13103_v55, %v812_v1  ;;  %v13147_v27 = vpop.eup %12082  ;;  %v13171_v54 = vadd.f32 1e-05, %v706_v57  ;;  %vm13222_vm1 = vmor %vm817_vm12, %vm818_vm14 }
 0x16e   : > { %12086 = vrsqrt.f32 %v13101_v50  ;;  %v13177_v62 = vmul.f32 %v760_v8, %v12903_v28  ;;  %v772_v1 = vmul.f32 %v13147_v27, %v13089_v32  ;;  %vm827_vm0 = vweird.f32 %v13094_v43 }
 0x16f   : > { %v750_v24 = vsel %vm13112_vm8, %v12077_v53, %v746_v15  ;;  %v765_v53 = vsub.f32 1.5, %v764_v56  ;;  %v696_v26 = vpop.xlane.xlu0 %695  ;;  %v814_v42 = vmul.f32 0.5, %v813_v44  ;;  %v13156_v15 = vmul.f32 0.5, %v783_v3 }
 0x170   : > { %v688_v2 = vpop.xlane.xlu2 %687  ;;  %v692_v10 = vpop.xlane.xlu1 %691  ;;  %v892_v36 = vmul.f32 %v750_v24, %v12919_v41  ;;  %v713_v56 = vmul.f32 %v696_v26, %v12899_v22  ;;  %v929_v44 = vadd.f32 %v13165_v34, %v910_v5  ;;  %v773_v29 = vmul.f32 %v13147_v27, %v772_v1 }
 0x171   : > { %v709_v9 = vmul.f32 %v688_v2, %v12899_v22  ;;  %v711_v19 = vmul.f32 %v692_v10, %v12899_v22  ;;  %v766_v48 = vmul.f32 %v13069_v49, %v765_v53  ;;  %v815_v46 = vsub.f32 1.5, %v814_v42 }
 0x172   : > { %v911_v10 = vmul.f32 %v13132_v11, %v892_v36  ;;  %v785_v3 = vsub.f32 1.5, %v13156_v15  ;;  %v13204_v31 = vadd.f32 1e-05, %v713_v56  ;;  %v774_v28 = vmul.f32 0.5, %v773_v29 }
 0x173   : > { %v13145_v25 = vadd.f32 1e-05, %v709_v9  ;;  %v13159_v41 = vadd.f32 1e-05, %v711_v19  ;;  %v13167_v30 = vpop.eup %12084  ;;  %v770_v9 = vsel %vm13191_vm13, %v13069_v49, %v766_v48  ;;  %v816_v49 = vmul.f32 %v13103_v55, %v815_v46  ;;  %vm13295_vm13 = vmor %vm787_vm15, %vm788_vm7 }
 0x174   : > { %v13174_v21 = vpop.eup %12086  ;;  %v822_v2 = vmul.f32 %v13167_v30, %v13094_v43  ;;  %v930_v26 = vadd.f32 %v13165_v34, %v911_v10  ;;  %vm828_vm2 = vweird.f32 %v13167_v30  ;;  %v775_v43 = vsub.f32 1.5, %v774_v28 }
 0x175   : > { %12088 = vrsqrt.f32 %v13145_v25  ;;  %v842_v24 = vmul.f32 %v13174_v21, %v13101_v50  ;;  %vm848_vm4 = vweird.f32 %v13174_v21  ;;  %v820_v29 = vsel %vm13222_vm1, %v13103_v55, %v816_v49  ;;  %vm13250_vm5 = vmor %vm827_vm0, %vm828_vm2 }
 0x176   : > { %12090 = vrsqrt.f32 %v13153_v33  ;;  %v823_v4 = vmul.f32 %v13167_v30, %v822_v2  ;;  %v945_v5 = vpack.c.bf16 %v930_v26, %v929_v44  ;;  %vm777_vm8 = vweird.f32 %v13089_v32  ;;  %vm13267_vm9 = vmor %vm847_vm3, %vm848_vm4 }
 0x177   : > { %12092 = vrsqrt.f32 %v13159_v41  ;;  %v843_v20 = vmul.f32 %v13174_v21, %v842_v24  ;;  %vm837_vm10 = vweird.f32 %v13145_v25  ;;  %vm778_vm12 = vweird.f32 %v13147_v27 }
 0x178   : > { %12094 = vrsqrt.f32 %v13171_v54  ;;  %v694_v53 = vpop.xlane.xlu2 %693  ;;  %v698_v57 = vpop.xlane.xlu1 %697  ;;  %v824_v36 = vmul.f32 0.5, %v823_v4  ;;  %1129 = vmatmul.bf16.vlgmr.msra.gmra.mxu0 %v945_v5  ;;  %1178 = vmatmul.bf16.vlgmr.msra.gmra.mxu1 %v945_v5  ;;  %vm857_vm14 = vweird.f32 %v13159_v41  ;;  %vm13337_vm1 = vmor %vm777_vm8, %vm778_vm12  ;;  %vm877_vm7 = vweird.f32 %v13204_v31 }
 0x179   : > { %v844_v8 = vmul.f32 0.5, %v843_v20  ;;  %v712_v48 = vmul.f32 %v694_v53, %v12899_v22  ;;  %v714_v56 = vmul.f32 %v698_v57, %v12899_v22  ;;  %12096 = vrsqrt.f32 %v13204_v31  ;;  %1227 = vmatmul.bf16.vlgmr.msra.gmra.mxu2 %v945_v5 }
 0x17a   : > { %v825_v15 = vsub.f32 1.5, %v824_v36  ;;  %v894_v57 = vmul.f32 %v770_v9, %v12916_v39  ;;  %v899_v5 = vmul.f32 %v820_v29, %v12932_v51  ;;  %vm797_vm12 = vweird.f32 %v13153_v33 }
 0x17b   : > { %v13206_v19 = vpop.eup %12088  ;;  %v845_v10 = vsub.f32 1.5, %v844_v8  ;;  %v13232_v4 = vadd.f32 1e-05, %v712_v48  ;;  %v13234_v61 = vadd.f32 1e-05, %v714_v56  ;;  %v13275_v8 = vmul.f32 %v13082_v18, %v785_v3 }
 0x17c   : > { %v832_v42 = vmul.f32 %v13206_v19, %v13145_v25  ;;  %v13218_v1 = vpop.eup %12090  ;;  %v826_v22 = vmul.f32 %v13167_v30, %v825_v15  ;;  %vm838_vm6 = vweird.f32 %v13206_v19  ;;  %v912_v48 = vmul.f32 %v13132_v11, %v13177_v62 }
 0x17d   : > { %v13229_v24 = vpop.eup %12092  ;;  %12098 = vrsqrt.f32 %v13232_v4  ;;  %v846_v9 = vmul.f32 %v13174_v21, %v845_v10  ;;  %vm839_vm11 = vmor %vm837_vm10, %vm838_vm6  ;;  %v913_v56 = vmul.f32 %v13132_v11, %v894_v57  ;;  %v776_v62 = vmul.f32 %v13147_v27, %v775_v43 }
 0x17e   : > { %v833_v46 = vmul.f32 %v13206_v19, %v832_v42  ;;  %v13236_v44 = vpop.eup %12094  ;;  %v852_v53 = vmul.f32 %v13229_v24, %v13159_v41  ;;  %v830_v39 = vsel %vm13250_vm5, %v13167_v30, %v826_v22  ;;  %12100 = vrsqrt.f32 %v13234_v61 }
 0x17f   : > { %v13272_v30 = vpop.eup %12096  ;;  %v900_v50 = vmul.f32 %v830_v39, %v12952_v0  ;;  %v850_v3 = vsel %vm13267_vm9, %v13174_v21, %v846_v9  ;;  %vm858_vm0 = vweird.f32 %v13229_v24  ;;  %v932_v41 = vadd.f32 %v13165_v34, %v913_v56 }
 0x180   : > { %v834_v20 = vmul.f32 0.5, %v833_v46  ;;  %v853_v55 = vmul.f32 %v13229_v24, %v852_v53  ;;  %v872_v21 = vmul.f32 %v13272_v30, %v13204_v31  ;;  %v902_v22 = vmul.f32 %v850_v3, %v12949_v63  ;;  %vm13321_vm15 = vmor %vm857_vm14, %vm858_vm0 }
 0x181   : > { %v919_v53 = vmul.f32 %v13132_v11, %v900_v50  ;;  %v790_v57 = vsel %vm13295_vm13, %v13082_v18, %v13275_v8  ;;  %vm867_vm3 = vweird.f32 %v13232_v4  ;;  %vm887_vm5 = vweird.f32 %v13234_v61 }
 0x182   : > { %v835_v26 = vsub.f32 1.5, %v834_v20  ;;  %v854_v15 = vmul.f32 0.5, %v853_v55  ;;  %v918_v20 = vmul.f32 %v13132_v11, %v899_v5  ;;  %v873_v9 = vmul.f32 %v13272_v30, %v872_v21 }
 0x183   : > { %v12099_v51 = vpop.eup %12098  ;;  %v938_v8 = vadd.f32 %v13165_v34, %v919_v53  ;;  %v921_v32 = vmul.f32 %v13132_v11, %v902_v22  ;;  %vm878_vm8 = vweird.f32 %v13272_v30  ;;  %vm798_vm13 = vweird.f32 %v13218_v1 }
 0x184   : > { %v836_v42 = vmul.f32 %v13206_v19, %v835_v26  ;;  %v855_v2 = vsub.f32 1.5, %v854_v15  ;;  %v862_v46 = vmul.f32 %v12099_v51, %v13232_v4  ;;  %v13309_v28 = vpop.eup %12100  ;;  %v931_v26 = vadd.f32 %v13165_v34, %v912_v48  ;;  %vm13377_vm10 = vmor %vm877_vm7, %vm878_vm8 }
 0x185   : > { %v882_v63 = vmul.f32 %v13309_v28, %v13234_v61  ;;  %v937_v18 = vadd.f32 %v13165_v34, %v918_v20  ;;  %vm868_vm2 = vweird.f32 %v12099_v51  ;;  %v874_v0 = vmul.f32 0.5, %v873_v9 }
 0x186   : > { %v840_v25 = vsel %vm839_vm11, %v13206_v19, %v836_v42  ;;  %v802_v19 = vmul.f32 %v13236_v44, %v13171_v54  ;;  %v856_v40 = vmul.f32 %v13229_v24, %v855_v2  ;;  %v863_v36 = vmul.f32 %v12099_v51, %v862_v46  ;;  %vm869_vm4 = vmor %vm867_vm3, %vm868_vm2 }
 0x187   : > { %v901_v10 = vmul.f32 %v840_v25, %v12962_v6  ;;  %v792_v6 = vmul.f32 %v13218_v1, %v13153_v33  ;;  %v883_v49 = vmul.f32 %v13309_v28, %v882_v63  ;;  %v780_v42 = vsel %vm13337_vm1, %v13147_v27, %v776_v62 }
 0x188   : > { %v860_v39 = vsel %vm13321_vm15, %v13229_v24, %v856_v40  ;;  %v864_v43 = vmul.f32 0.5, %v863_v36  ;;  %v803_v15 = vmul.f32 %v13236_v44, %v802_v19  ;;  %v946_v5 = vpack.c.bf16 %v932_v41, %v931_v26  ;;  %vm799_vm15 = vmor %vm797_vm12, %vm798_vm13 }
 0x189   : > { %v920_v24 = vmul.f32 %v13132_v11, %v901_v10  ;;  %v884_v48 = vmul.f32 0.5, %v883_v49  ;;  %v13349_v56 = vpack.c.bf16 %v938_v8, %v937_v18  ;;  %v903_v3 = vmul.f32 %v860_v39, %v12970_v17 }
 0x18a   : > { %v865_v50 = vsub.f32 1.5, %v864_v43  ;;  %1134 = vmatmul.bf16.gmra.mxu0 %v946_v5  ;;  %1183 = vmatmul.bf16.gmra.mxu1 %v946_v5  ;;  %v940_v2 = vadd.f32 %v13165_v34, %v921_v32  ;;  %v793_v27 = vmul.f32 %v13218_v1, %v792_v6  ;;  %v895_v21 = vmul.f32 %v780_v42, %v12928_v45 }
 0x18b   : > { %v939_v25 = vadd.f32 %v13165_v34, %v920_v24  ;;  %1232 = vmatmul.bf16.gmra.mxu2 %v946_v5  ;;  %v804_v10 = vmul.f32 0.5, %v803_v15  ;;  %v885_v40 = vsub.f32 1.5, %v884_v48  ;;  %v896_v46 = vmul.f32 %v790_v57, %v12914_v38 }
 0x18c   : > { %v866_v62 = vmul.f32 %v12099_v51, %v865_v50  ;;  %v922_v41 = vmul.f32 %v13132_v11, %v903_v3  ;;  %v794_v20 = vmul.f32 0.5, %v793_v27  ;;  %v875_v53 = vsub.f32 1.5, %v874_v0 }
 0x18d   : > { %v13357_v19 = vpack.c.bf16 %v940_v2, %v939_v25  ;;  %vm888_vm6 = vweird.f32 %v13309_v28  ;;  %v914_v45 = vmul.f32 %v13132_v11, %v895_v21  ;;  %v805_v6 = vsub.f32 1.5, %v804_v10 }
 0x18e   : > { %v870_v17 = vsel %vm869_vm4, %v12099_v51, %v866_v62  ;;  %v886_v38 = vmul.f32 %v13309_v28, %v885_v40  ;;  %vm13369_vm9 = vmor %vm887_vm5, %vm888_vm6  ;;  %v915_v51 = vmul.f32 %v13132_v11, %v896_v46  ;;  %v941_v61 = vadd.f32 %v13165_v34, %v922_v41 }
 0x18f   : > { %v904_v22 = vmul.f32 %v870_v17, %v12980_v12  ;;  %v795_v29 = vsub.f32 1.5, %v794_v20  ;;  %v876_v36 = vmul.f32 %v13272_v30, %v875_v53  ;;  %v933_v31 = vadd.f32 %v13165_v34, %v914_v45 }
 0x190   : > { %v806_v9 = vmul.f32 %v13236_v44, %v805_v6  ;;  %vm808_vm11 = vweird.f32 %v13236_v44  ;;  %v890_v26 = vsel %vm13369_vm9, %v13309_v28, %v886_v38  ;;  %v934_v18 = vadd.f32 %v13165_v34, %v915_v51 }
 0x191   : > { %v923_v4 = vmul.f32 %v13132_v11, %v904_v22  ;;  %v796_v55 = vmul.f32 %v13218_v1, %v795_v29  ;;  %vm807_vm14 = vweird.f32 %v13171_v54  ;;  %v880_v43 = vsel %vm13377_vm10, %v13272_v30, %v876_v36 }
 0x192   : > { %vm809_vm0 = vmor %vm807_vm14, %vm808_vm11  ;;  %v906_v28 = vmul.f32 %v890_v26, %v12984_v23  ;;  %v947_v49 = vpack.c.bf16 %v934_v18, %v933_v31  ;;  %v905_v8 = vmul.f32 %v880_v43, %v12967_v16  ;;  %vm1445_vm1 = vcmask 1047556  }
 0x193   : > { %v942_v57 = vadd.f32 %v13165_v34, %v923_v4  ;;  %v810_v33 = vsel %vm809_vm0, %v13236_v44, %v806_v9  ;;  %v800_v24 = vsel %vm799_vm15, %v13218_v1, %v796_v55  ;;  %vm3269_vm2 = vcmask 257024  }
 0x194   : > { %v898_v54 = vmul.f32 %v810_v33, %v12944_v58  ;;  %v897_v30 = vmul.f32 %v800_v24, %v12934_v52  ;;  %v924_v23 = vmul.f32 %v13132_v11, %v905_v8 }
 0x195   : > { %v951_v39 = vpack.c.bf16 %v942_v57, %v941_v61 }
 0x196   : > { %v917_v44 = vmul.f32 %v13132_v11, %v898_v54  ;;  %v916_v42 = vmul.f32 %v13132_v11, %v897_v30  ;;  %v943_v1 = vadd.f32 %v13165_v34, %v924_v23 }
 0x197   : > { %1159 = vmatmul.bf16.vlgmr.msra.gmra.mxu3 %v951_v39 }
 0x198   : > { %11509 = vmatpush.bf16.msra.mxu3 %v12992_v35  ;;  %v925_v35 = vmul.f32 %v13132_v11, %v906_v28  ;;  %v936_v58 = vadd.f32 %v13165_v34, %v917_v44  ;;  %v935_v15 = vadd.f32 %v13165_v34, %v916_v42 }
 0x19a   : > { %1139 = vmatmul.bf16.gmra.mxu0 %v947_v49  ;;  %1188 = vmatmul.bf16.gmra.mxu1 %v947_v49  ;;  %v944_v16 = vadd.f32 %v13165_v34, %v925_v35  ;;  %v948_v52 = vpack.c.bf16 %v936_v58, %v935_v15 }
 0x19b   : > { %1237 = vmatmul.bf16.gmra.mxu2 %v947_v49 }
 0x19c   : > { %11510 = vmatpush.bf16.msra.mxu3 %v12998_v47  ;;  %v952_v47 = vpack.c.bf16 %v944_v16, %v943_v1 }
 0x1a0   : > { %11511 = vmatpush.bf16.msra.mxu3 %v13004_v59 }
 0x1a4   : > { %11512 = vmatpush.bf16.msra.mxu3 %v13010_v7 }
 0x1a7   : > { %1164 = vmatmul.bf16.gmra.mxu3 %v952_v47 }
 0x1a8   : > { %11513 = vmatpush.bf16.msra.mxu3 %v13016_v14  ;;  %v985_v14 = vld [vmem:[#allocation10] sm:$0x7] }
 0x1a9   : > { %v13425_v34 = vperm.slane %v985_v14, 0  ;;  %v13439_v3 = vperm.slane %v985_v14, 2 }
 0x1aa   : > { %1144 = vmatmul.bf16.gmra.mxu0 %v948_v52  ;;  %1193 = vmatmul.bf16.gmra.mxu1 %v948_v52 }
 0x1ab   : > { %1242 = vmatmul.bf16.gmra.mxu2 %v948_v52 }
 0x1ac   : > { %11514 = vmatpush.bf16.msra.mxu3 %v13023_v37  ;;  %v13423_v37 = vperm.slane %v985_v14, 1 }
 0x1b0   : > { %11515 = vmatpush.bf16.msra.mxu3 %v13035_v60 }
 0x1b4   : > { %11516 = vmatpush.bf16.msra.mxu3 %v13058_v13 }
 0x1b7   : > { %1208 = vmatmul.bf16.vlgmr.msrb.gmra.mxu3 %v951_v39 }
 0x1ba   : > { %1149 = vmatmul.bf16.gmra.mxu0 %v13349_v56  ;;  %1198 = vmatmul.bf16.gmra.mxu1 %v13349_v56 }
 0x1bb   : > { %1247 = vmatmul.bf16.gmra.mxu2 %v13349_v56 }
 0x1c7   : > { %1213 = vmatmul.bf16.gmra.mxu3 %v952_v47 }
 0x1ca   : > { %1154 = vmatmul.bf16.gmra.mxu0 %v13357_v19  ;;  %1203 = vmatmul.bf16.gmra.mxu1 %v13357_v19 }
 0x1cb   : > { %1252 = vmatmul.bf16.gmra.mxu2 %v13357_v19 }
 0x1d7   : > { %1257 = vmatmul.bf16.vlgmr.msra.gmra.mxu3 %v951_v39 }
 0x1e7   : > { %1262 = vmatmul.bf16.gmra.mxu3 %v952_v47 }
 0x1f5   : > { %v1130_v59 = vpop.f32.mrf.mxu0  ;;  %v1179_v7 = vpop.f32.mrf.mxu1 }
 0x1f6   : > { %v13428_v5 = vadd.f32 %v1179_v7, %v13423_v37  ;;  %v1131_v56 = vadd.f32 %v1130_v59, %v13425_v34 }
 0x1f8   : > { %v13447_v0 = vmul.f32 0.17677669, %v1131_v56 }
 0x1fc   : > { %v1228_v60 = vpop.f32.mrf.mxu2 }
 0x1fd   : > { %v1132_v13 = vpop.f32.mrf.mxu0  ;;  %v1181_v11 = vpop.f32.mrf.mxu1  ;;  %v13450_v62 = vadd.f32 %v1228_v60, %v13439_v3 }
 0x1fe   : > { %v13431_v32 = vadd.f32 %v1181_v11, %v13423_v37  ;;  %v1133_v50 = vadd.f32 %v1132_v13, %v13425_v34 }
 0x200   : > { %v11716_v48 = vpack.i.bf16 %v13431_v32, %v13428_v5  ;;  %v13442_v25 = vmul.f32 0.17677669, %v1133_v50 }
 0x202   : > { %11717 = vrot.lane.b32.xlu0 %v11716_v48, %s12580_s21  ;;  %11712 = vrot.lane.b32.xlu2 %v11716_v48, %s12581_s4  ;;  %v11731_v21 = vpack.i.bf16 %v13442_v25, %v13447_v0 }
 0x203   : > { %11707 = vrot.lane.b32.xlu1 %v11716_v48, %s12582_s10 }
 0x204   : > { %v1230_v2 = vpop.f32.mrf.mxu2 }
 0x205   : > { %v13445_v27 = vadd.f32 %v1230_v2, %v13439_v3 }
 0x207   : > { %v11736_v19 = vpack.i.bf16 %v13445_v27, %v13450_v62  ;;  %v1184_v17 = vpop.f32.mrf.mxu1  ;;  %v1135_v46 = vpop.f32.mrf.mxu0 }
 0x208   : > { %v13477_v12 = vadd.f32 %v1184_v17, %v13423_v37  ;;  %v1136_v29 = vadd.f32 %v1135_v46, %v13425_v34 }
 0x20a   : > { %11732 = vrot.lane.b32.xlu0 %v11731_v21, %s12580_s21  ;;  %11722 = vrot.lane.b32.xlu2 %v11731_v21, %s12582_s10  ;;  %v13488_v31 = vmul.f32 0.17677669, %v1136_v29  ;;  %v3496_v29 = vrot.slane %v13428_v5, 4 }
 0x20b   : > { %11737 = vrot.lane.b32.xlu1 %v11736_v19, %s12582_s10 }
 0x20e   : > { %v1233_v51 = vpop.f32.mrf.mxu2 }
 0x20f   : > { %v1186_v4 = vpop.f32.mrf.mxu1  ;;  %v1137_v38 = vpop.f32.mrf.mxu0  ;;  %v13499_v28 = vadd.f32 %v1233_v51, %v13439_v3 }
 0x210   : > { %v13474_v6 = vadd.f32 %v1186_v4, %v13423_v37  ;;  %v1138_v61 = vadd.f32 %v1137_v38, %v13425_v34 }
 0x212   : > { %11747 = vrot.lane.b32.xlu0 %v11736_v19, %s12580_s21  ;;  %11727 = vrot.lane.b32.xlu2 %v11731_v21, %s12581_s4  ;;  %v11776_v57 = vpack.i.bf16 %v13474_v6, %v13477_v12  ;;  %v13486_v63 = vmul.f32 0.17677669, %v1138_v61 }
 0x214   : > { %v11791_v39 = vpack.i.bf16 %v13486_v63, %v13488_v31 }
 0x216   : > { %v1235_v9 = vpop.f32.mrf.mxu2 }
 0x217   : > { %v1140_v26 = vpop.f32.mrf.mxu0  ;;  %v1189_v18 = vpop.f32.mrf.mxu1  ;;  %v13496_v55 = vadd.f32 %v1235_v9, %v13439_v3 }
 0x218   : > { %v13521_v58 = vadd.f32 %v1189_v18, %v13423_v37  ;;  %v1141_v14 = vadd.f32 %v1140_v26, %v13425_v34  ;;  %v1503_v26 = vrot.slane %v13442_v25, 4 }
 0x219   : > { %v11806_v33 = vpack.i.bf16 %v13496_v55, %v13499_v28 }
 0x21a   : > { %v1160_v10 = vpop.f32.mrf.mxu3  ;;  %11742 = vrot.lane.b32.xlu2 %v11736_v19, %s12581_s4  ;;  %v13535_v11 = vmul.f32 0.17677669, %v1141_v14 }
 0x21b   : > { %v1161_v40 = vadd.f32 %v1160_v10, %v13425_v34 }
 0x21d   : > { %v13464_v20 = vmul.f32 0.17677669, %v1161_v40 }
 0x21e   : > { %v1238_v54 = vpop.f32.mrf.mxu2 }
 0x21f   : > { %v1142_v24 = vpop.f32.mrf.mxu0  ;;  %v1191_v30 = vpop.f32.mrf.mxu1  ;;  %v13551_v17 = vadd.f32 %v1238_v54, %v13439_v3 }
 0x220   : > { %v13518_v42 = vadd.f32 %v1191_v30, %v13423_v37  ;;  %v1143_v52 = vadd.f32 %v1142_v24, %v13425_v34 }
 0x221   : > { %17863 = vst [vmem:[#allocation28_spill] sm:$0xff] %v13551_v17 }
 0x222   : > { %v1162_v22 = vpop.f32.mrf.mxu3  ;;  %v11826_v59 = vpack.i.bf16 %v13518_v42, %v13521_v58  ;;  %v13530_v60 = vmul.f32 0.17677669, %v1143_v52 }
 0x223   : > { %v1163_v41 = vadd.f32 %v1162_v22, %v13425_v34 }
 0x224   : > { %17861 = vst [vmem:[#allocation26_spill] sm:$0xff] %v13530_v60  ;;  %v11846_v21 = vpack.i.bf16 %v13530_v60, %v13535_v11 }
 0x225   : > { %v13466_v53 = vmul.f32 0.17677669, %v1163_v41 }
 0x226   : > { %v1240_v47 = vpop.f32.mrf.mxu2 }
 0x227   : > { %v11761_v45 = vpack.i.bf16 %v13466_v53, %v13464_v20  ;;  %v1145_v1 = vpop.f32.mrf.mxu0  ;;  %v1194_v15 = vpop.f32.mrf.mxu1  ;;  %v13548_v10 = vadd.f32 %v1240_v47, %v13439_v3 }
 0x228   : > { %v1146_v61 = vadd.f32 %v1145_v1, %v13425_v34 }
 0x229   : > { %11762 = vrot.lane.b32.xlu0 %v11761_v45, %s12580_s21  ;;  %11757 = vrot.lane.b32.xlu2 %v11761_v45, %s12581_s4  ;;  %17862 = vst [vmem:[#allocation27_spill] sm:$0xff] %v13548_v10  ;;  %v13555_v46 = vpack.i.bf16 %v13548_v10, %v13551_v17 }
 0x22a   : > { %11752 = vrot.lane.b32.xlu1 %v11761_v45, %s12582_s10  ;;  %v1165_v36 = vpop.f32.mrf.mxu3 }
 0x22b   : > { %v1166_v8 = vadd.f32 %v1165_v36, %v13425_v34  ;;  %v1447_v36 = vrot.slane %v13447_v0, 4 }
 0x22d   : > { %v13510_v23 = vmul.f32 0.17677669, %v1166_v8 }
 0x22e   : > { %v1243_v56 = vpop.f32.mrf.mxu2 }
 0x22f   : > { %v1147_v48 = vpop.f32.mrf.mxu0  ;;  %v1196_v19 = vpop.f32.mrf.mxu1 }
 0x230   : > { %v1148_v38 = vadd.f32 %v1147_v48, %v13425_v34  ;;  %v13563_v51 = vadd.f32 %v1196_v19, %v13423_v37 }
 0x231   : > { %11777 = vrot.lane.b32.xlu2 %v11776_v57, %s12580_s21  ;;  %11767 = vrot.lane.b32.xlu0 %v11776_v57, %s12582_s10 }
 0x232   : > { %11772 = vrot.lane.b32.xlu1 %v11776_v57, %s12581_s4  ;;  %v1167_v43 = vpop.f32.mrf.mxu3  ;;  %v13567_v57 = vadd.f32 %v1194_v15, %v13423_v37 }
 0x233   : > { %v1168_v49 = vadd.f32 %v1167_v43, %v13425_v34  ;;  %v13574_v43 = vmul.f32 0.17677669, %v1148_v38 }
 0x234   : > { %v13580_v24 = vpack.i.bf16 %v13563_v51, %v13567_v57 }
 0x235   : > { %v13508_v35 = vmul.f32 0.17677669, %v1168_v49  ;;  %17864 = vst [vmem:[#allocation29_spill] sm:$0xff] %v13574_v43  ;;  %v12583_v49 = vmov 1983009808  }
 0x236   : > { %v1245_v41 = vpop.f32.mrf.mxu2 }
 0x237   : > { %v11821_v16 = vpack.i.bf16 %v13508_v35, %v13510_v23  ;;  %v1150_v22 = vpop.f32.mrf.mxu0  ;;  %v1199_v4 = vpop.f32.mrf.mxu1  ;;  %v13602_v38 = vadd.f32 %v1245_v41, %v13439_v3 }
 0x238   : > { %v1151_v47 = vadd.f32 %v1150_v22, %v13425_v34  ;;  %v13605_v22 = vadd.f32 %v1199_v4, %v13423_v37 }
 0x239   : > { %11792 = vrot.lane.b32.xlu2 %v11791_v39, %s12580_s21  ;;  %11782 = vrot.lane.b32.xlu0 %v11791_v39, %s12582_s10  ;;  %17867 = vst [vmem:[#allocation32_spill] sm:$0xff] %v13602_v38 }
 0x23a   : > { %11787 = vrot.lane.b32.xlu1 %v11791_v39, %s12581_s4  ;;  %v1209_v44 = vpop.f32.mrf.mxu3  ;;  %v3552_v39 = vrot.slane %v13431_v32, 4  ;;  %17868 = vst [vmem:[#allocation33_spill] sm:$0xff] %v13605_v22 }
 0x23b   : > { %v13538_v50 = vadd.f32 %v1209_v44, %v13423_v37  ;;  %v13583_v44 = vmul.f32 0.17677669, %v1146_v61 }
 0x23d   : > { %17865 = vst [vmem:[#allocation30_spill] sm:$0xff] %v13583_v44 }
 0x23f   : > { %v1152_v15 = vpop.f32.mrf.mxu0 }
 0x241   : > { %11807 = vrot.lane.b32.xlu2 %v11806_v33, %s12580_s21  ;;  %11797 = vrot.lane.b32.xlu0 %v11806_v33, %s12582_s10 }
 0x242   : > { %11802 = vrot.lane.b32.xlu1 %v11806_v33, %s12581_s4  ;;  %v1211_v7 = vpop.f32.mrf.mxu3  ;;  %v1450_v33 = vunpack.c.l.s4 %v12583_v49  ;;  %v13609_v49 = vmul.f32 0.17677669, %v1151_v47 }
 0x243   : > { %v13533_v13 = vadd.f32 %v1211_v7, %v13423_v37  ;;  %v1248_v7 = vpop.f32.mrf.mxu2 }
 0x244   : > { %v13596_v48 = vunpack.c.0.s8 %v1450_v33  ;;  %17869 = vst [vmem:[#allocation34_spill] sm:$0xff] %v13609_v49  ;;  %v13612_v33 = vadd.f32 %v1248_v7, %v13439_v3 }
 0x245   : > { %v11861_v2 = vpack.i.bf16 %v13533_v13, %v13538_v50 }
 0x249   : > { %11822 = vrot.lane.b32.xlu2 %v11821_v16, %s12580_s21  ;;  %11812 = vrot.lane.b32.xlu0 %v11821_v16, %s12582_s10 }
 0x24a   : > { %11817 = vrot.lane.b32.xlu1 %v11821_v16, %s12581_s4  ;;  %v1214_v45 = vpop.f32.mrf.mxu3  ;;  %v13586_v16 = vadd.f32 %v1243_v56, %v13439_v3  ;;  %v11901_v56 = vpack.i.bf16 %v13574_v43, %v13583_v44 }
 0x24b   : > { %v13623_v4 = vadd.f32 %v1214_v45, %v13423_v37 }
 0x24c   : > { %17866 = vst [vmem:[#allocation31_spill] sm:$0xff] %v13586_v16  ;;  %v13643_v45 = vpack.i.bf16 %v13602_v38, %v13586_v16  ;;  %v17876_v38 = vrot.slane %v13445_v27, 4 }
 0x24d   : > { %17872 = vst [vmem:[#allocation37_spill] sm:$0xff] %v13623_v4 }
 0x251   : > { %11827 = vrot.lane.b32.xlu2 %v11826_v59, %s12582_s10  ;;  %11832 = vrot.lane.b32.xlu0 %v11826_v59, %s12581_s4 }
 0x252   : > { %11837 = vrot.lane.b32.xlu1 %v11826_v59, %s12580_s21  ;;  %v1216_v14 = vpop.f32.mrf.mxu3 }
 0x253   : > { %v13615_v1 = vadd.f32 %v1216_v14, %v13423_v37 }
 0x255   : > { %17870 = vst [vmem:[#allocation35_spill] sm:$0xff] %v13615_v1 }
 0x259   : > { %11862 = vrot.lane.b32.xlu2 %v11861_v2, %s12581_s4  ;;  %11847 = vrot.lane.b32.xlu0 %v11846_v21, %s12581_s4 }
 0x25a   : > { %11842 = vrot.lane.b32.xlu1 %v11846_v21, %s12582_s10 }
 0x25c   : > { %v11713_v40 = vpop.permute.xlu2 %11712 }
 0x25d   : > { %v11715_v9 = vunpack.i.h.bf16 %v11713_v40  ;;  %v11714_v54 = vunpack.i.l.bf16 %v11713_v40 }
 0x25f   : > { %v3550_v52 = vrot.slane %v11715_v9, 4  ;;  %v3553_v19 = vsel %vm1445_vm1, %v11715_v9, %v3552_v39  ;;  %v3494_v40 = vrot.slane %v11714_v54, 4  ;;  %v3497_v61 = vsel %vm1445_vm1, %v11714_v54, %v3496_v29 }
 0x260   : > { %v13626_v9 = vperm.slane %v3553_v19, %v13596_v48  ;;  %v12584_v54 = vmov 1934713408   ;;  %v13631_v7 = vperm.slane %v3497_v61, %v13596_v48 }
 0x261   : > { %11872 = vrot.lane.b32.xlu2 %v13555_v46, %s12582_s10  ;;  %11867 = vrot.lane.b32.xlu0 %v11861_v2, %s12580_s21  ;;  %v3551_v39 = vsel %vm1445_vm1, %v3550_v52, %v13431_v32  ;;  %v1474_v47 = vunpack.c.l.s4 %v12584_v54 }
 0x262   : > { %11852 = vrot.lane.b32.xlu1 %v11846_v21, %s12580_s21  ;;  %v1201_v21 = vpop.f32.mrf.mxu1 }
 0x263   : > { %v13620_v41 = vadd.f32 %v1201_v21, %v13423_v37  ;;  %v13636_v21 = vperm.slane %v3551_v39, %v13596_v48  ;;  %v13654_v61 = vunpack.c.0.s8 %v1474_v47  ;;  %v3588_v39 = vrot.slane %v13626_v9, 4 }
 0x264   : > { %v13576_v8 = vpop.permute.xlu2 %11722 }
 0x265   : > { %17871 = vst [vmem:[#allocation36_spill] sm:$0xff] %v13620_v41  ;;  %v13665_v18 = vpack.i.bf16 %v13620_v41, %v13605_v22 }
 0x269   : > { %11892 = vrot.lane.b32.xlu2 %v13580_v24, %s12581_s4  ;;  %11877 = vrot.lane.b32.xlu0 %v13555_v46, %s12581_s4 }
 0x26a   : > { %11857 = vrot.lane.b32.xlu1 %v11861_v2, %s12582_s10  ;;  %v1153_v2 = vadd.f32 %v1152_v15, %v13425_v34  ;;  %v3495_v15 = vsel %vm1445_vm1, %v3494_v40, %v13428_v5  ;;  %v13649_v40 = vpack.i.bf16 %v13615_v1, %v13623_v4 }
 0x26c   : > { %v11728_v29 = vpop.permute.xlu2 %11727  ;;  %v13633_v52 = vmul.f32 0.17677669, %v1153_v2  ;;  %v13652_v2 = vperm.slane %v3495_v15, %v13596_v48 }
 0x26d   : > { %v11730_v14 = vunpack.i.h.bf16 %v11728_v29  ;;  %v11729_v32 = vunpack.i.l.bf16 %v11728_v29 }
 0x26e   : > { %17873 = vst [vmem:[#allocation38_spill] sm:$0xff] %v13633_v52  ;;  %v13682_v15 = vpack.i.bf16 %v13633_v52, %v13609_v49  ;;  %v17874_v52 = vunpack.i.h.bf16 %v13576_v8 }
 0x26f   : > { %v1501_v5 = vrot.slane %v11730_v14, 4  ;;  %v1444_v19 = vrot.slane %v11729_v32, 4  ;;  %v1504_v54 = vsel %vm1445_vm1, %v11730_v14, %v1503_v26  ;;  %v1448_v59 = vsel %vm1445_vm1, %v11729_v32, %v1447_v36 }
 0x270   : > { %v3520_v14 = vrot.slane %v13652_v2, 4  ;;  %v13675_v36 = vperm.slane %v1504_v54, %v13596_v48  ;;  %v13678_v32 = vperm.slane %v1448_v59, %v13596_v48  ;;  %v13694_v49 = vrot.slane %v17874_v52, 4 }
 0x271   : > { %11902 = vrot.lane.b32.xlu2 %v11901_v56, %s12582_s10  ;;  %11897 = vrot.lane.b32.xlu0 %v13580_v24, %s12580_s21  ;;  %v1502_v30 = vsel %vm1445_vm1, %v1501_v5, %v13442_v25  ;;  %v1446_v26 = vsel %vm1445_vm1, %v1444_v19, %v13447_v0 }
 0x272   : > { %11882 = vrot.lane.b32.xlu1 %v13555_v46, %s12580_s21  ;;  %v3576_v46 = vrot.slane %v13636_v21, 4  ;;  %v13685_v0 = vperm.slane %v1502_v30, %v13596_v48  ;;  %v13688_v19 = vperm.slane %v1446_v26, %v13596_v48 }
 0x274   : > { %v11743_v29 = vpop.permute.xlu2 %11742  ;;  %v11718_v1 = vpop.permute.xlu0 %11717 }
 0x275   : > { %v11745_v47 = vunpack.i.h.bf16 %v11743_v29  ;;  %v11744_v41 = vunpack.i.l.bf16 %v11743_v29  ;;  %v11708_v25 = vpop.permute.xlu1 %11707  ;;  %v11720_v5 = vunpack.i.h.bf16 %v11718_v1  ;;  %v11719_v22 = vunpack.i.l.bf16 %v11718_v1 }
 0x276   : > { %v11710_v54 = vunpack.i.h.bf16 %v11708_v25  ;;  %v11709_v59 = vunpack.i.l.bf16 %v11708_v25  ;;  %v17875_v29 = vunpack.i.l.bf16 %v13576_v8 }
 0x277   : > { %v5598_v1 = vrot.slane %v11745_v47, 4  ;;  %v5542_v16 = vrot.slane %v11744_v41, 4  ;;  %v3562_v10 = vrot.slane %v11720_v5, 4  ;;  %v3506_v52 = vrot.slane %v11719_v22, 4 }
 0x278   : > { %v13698_v4 = vrot.slane %v17875_v29, 4  ;;  %v3564_v26 = vrot.slane %v11710_v54, 4  ;;  %v3508_v25 = vrot.slane %v11709_v59, 4 }
 0x279   : > { %11907 = vrot.lane.b32.xlu2 %v11901_v56, %s12581_s4  ;;  %11912 = vrot.lane.b32.xlu0 %v11901_v56, %s12580_s21  ;;  %v5601_v56 = vsel %vm1445_vm1, %v11745_v47, %v17876_v38  ;;  %v3563_v44 = vsel %vm1445_vm1, %v3562_v10, %v11710_v54  ;;  %v3507_v38 = vsel %vm1445_vm1, %v3506_v52, %v11709_v59 }
 0x27a   : > { %11887 = vrot.lane.b32.xlu1 %v13580_v24, %s12582_s10  ;;  %v17877_v24 = vrot.slane %v13450_v62, 4  ;;  %v3565_v60 = vsel %vm1445_vm1, %v11720_v5, %v3564_v26  ;;  %v3509_v47 = vsel %vm1445_vm1, %v11719_v22, %v3508_v25  ;;  %v13720_v17 = vsel %vm1445_vm1, %v5598_v1, %v13445_v27 }
 0x27b   : > { %v13723_v29 = vperm.slane %v5601_v56, %v13596_v48  ;;  %v3569_v43 = vperm.slane %v3563_v44, %v13596_v48  ;;  %v13731_v10 = vsel %vm1445_vm1, %v5542_v16, %v13450_v62  ;;  %v3513_v5 = vperm.slane %v3507_v38, %v13596_v48 }
 0x27c   : > { %v13712_v30 = vsel %vm1445_vm1, %v11744_v41, %v17877_v24  ;;  %v3573_v41 = vperm.slane %v3565_v60, %v13596_v48  ;;  %v13727_v24 = vpop.permute.xlu0 %11732  ;;  %v3517_v22 = vperm.slane %v3509_v47, %v13596_v48 }
 0x27d   : > { %v11735_v27 = vunpack.i.h.bf16 %v13727_v24  ;;  %v3574_v54 = vrot.slane %v3569_v43, 4  ;;  %v3577_v59 = vsel %vm1445_vm1, %v3569_v43, %v3576_v46  ;;  %v3518_v16 = vrot.slane %v3513_v5, 4 }
 0x27e   : > { %v3586_v1 = vrot.slane %v3573_v41, 4  ;;  %v3589_v44 = vsel %vm1445_vm1, %v3573_v41, %v3588_v39  ;;  %v3585_v62 = vperm.slane %v3577_v59, %v13654_v61  ;;  %v3521_v26 = vsel %vm1445_vm1, %v3513_v5, %v3520_v14 }
 0x27f   : > { %v3597_v60 = vperm.slane %v3589_v44, %v13654_v61  ;;  %v3575_v43 = vsel %vm1445_vm1, %v3574_v54, %v13636_v21  ;;  %v3529_v46 = vperm.slane %v3521_v26, %v13654_v61  ;;  %v3530_v25 = vrot.slane %v3517_v22, 4 }
 0x280   : > { %v3587_v39 = vsel %vm1445_vm1, %v3586_v1, %v13626_v9  ;;  %v3581_v56 = vperm.slane %v3575_v43, %v13654_v61  ;;  %v3600_v38 = vrot.slane %v3585_v62, 4  ;;  %v3519_v14 = vsel %vm1445_vm1, %v3518_v16, %v13652_v2 }
 0x281   : > { %11927 = vrot.lane.b32.xlu2 %v13649_v40, %s12580_s21  ;;  %11917 = vrot.lane.b32.xlu0 %v13649_v40, %s12582_s10  ;;  %v3593_v52 = vperm.slane %v3587_v39, %v13654_v61  ;;  %v3604_v47 = vrot.slane %v3597_v60, 4  ;;  %v17878_v21 = vrot.slane %v13631_v7, 4  ;;  %v3544_v9 = vrot.slane %v3529_v46, 4 }
 0x282   : > { %11922 = vrot.lane.b32.xlu1 %v13649_v40, %s12581_s4  ;;  %v3531_v40 = vsel %vm1445_vm1, %v3530_v25, %v13631_v7  ;;  %v3598_v5 = vrot.slane %v3581_v56, 4  ;;  %v3601_v54 = vsel %vm1445_vm1, 0.0, %v3600_v38  ;;  %v4444_v44 = vsel %vm1445_vm1, %v3600_v38, %v3581_v56 }
 0x283   : > { %v3533_v41 = vsel %vm1445_vm1, %v3517_v22, %v17878_v21  ;;  %v3602_v59 = vrot.slane %v3593_v52, 4  ;;  %v3605_v1 = vsel %vm1445_vm1, 0.0, %v3604_v47  ;;  %v4449_v62 = vrot.slane %v3601_v54, 4 }
 0x284   : > { %v4455_v60 = vsel %vm1445_vm1, %v3604_v47, %v3593_v52  ;;  %v4460_v2 = vrot.slane %v3605_v1, 4  ;;  %v3599_v16 = vsel %vm1445_vm1, 0.0, %v3598_v5  ;;  %v4448_v7 = vperm.slane %v4444_v44, %v13596_v48 }
 0x285   : > { %v3603_v26 = vsel %vm1445_vm1, 0.0, %v3602_v59  ;;  %v4459_v22 = vperm.slane %v4455_v60, %v13596_v48  ;;  %v4450_v43 = vsel %vm1445_vm1, %v4449_v62, %v3599_v16  ;;  %v3525_v46 = vperm.slane %v3519_v14, %v13654_v61 }
 0x286   : > { %v4461_v39 = vsel %vm1445_vm1, %v4460_v2, %v3603_v26  ;;  %v3537_v25 = vperm.slane %v3531_v40, %v13654_v61  ;;  %v4454_v56 = vperm.slane %v4450_v43, %v13596_v48  ;;  %v4468_v38 = vrot.slane %v4448_v7, 4 }
 0x287   : > { %v4465_v52 = vperm.slane %v4461_v39, %v13596_v48  ;;  %v4480_v47 = vrot.slane %v4459_v22, 4  ;;  %v3541_v21 = vperm.slane %v3533_v41, %v13654_v61  ;;  %v3542_v14 = vrot.slane %v3525_v46, 4 }
 0x288   : > { %v3545_v40 = vsel %vm1445_vm1, 0.0, %v3544_v9  ;;  %v3546_v5 = vrot.slane %v3537_v25, 4  ;;  %v4466_v54 = vrot.slane %v4454_v56, 4  ;;  %v4469_v59 = vsel %vm1445_vm1, %v4454_v56, %v4468_v38 }
 0x289   : > { %11937 = vrot.lane.b32.xlu2 %v13643_v45, %s12581_s4  ;;  %11942 = vrot.lane.b32.xlu0 %v13643_v45, %s12580_s21  ;;  %v4478_v1 = vrot.slane %v4465_v52, 4  ;;  %v4481_v44 = vsel %vm1445_vm1, %v4465_v52, %v4480_v47  ;;  %v4477_v62 = vperm.slane %v4469_v59, %v13654_v61  ;;  %v3543_v2 = vsel %vm1445_vm1, 0.0, %v3542_v14 }
 0x28a   : > { %11932 = vrot.lane.b32.xlu1 %v13643_v45, %s12582_s10  ;;  %v4489_v60 = vperm.slane %v4481_v44, %v13654_v61  ;;  %v3547_v45 = vsel %vm1445_vm1, 0.0, %v3546_v5  ;;  %v4467_v41 = vsel %vm1445_vm1, %v4466_v54, %v4448_v7  ;;  %v3548_v26 = vrot.slane %v3541_v21, 4 }
 0x28b   : > { %v4479_v16 = vsel %vm1445_vm1, %v4478_v1, %v4459_v22  ;;  %v4390_v43 = vsel %vm1445_vm1, %v3544_v9, %v3525_v46  ;;  %v4473_v39 = vperm.slane %v4467_v41, %v13654_v61  ;;  %v4496_v38 = vrot.slane %v4477_v62, 4 }
 0x28c   : > { %v4485_v56 = vperm.slane %v4479_v16, %v13654_v61  ;;  %v4494_v52 = vrot.slane %v4489_v60, 4  ;;  %v3549_v47 = vsel %vm1445_vm1, 0.0, %v3548_v26  ;;  %v4394_v59 = vperm.slane %v4390_v43, %v13596_v48 }
 0x28d   : > { %v4395_v14 = vrot.slane %v3545_v40, 4  ;;  %v4401_v5 = vsel %vm1445_vm1, %v3548_v26, %v3537_v25  ;;  %v4492_v7 = vrot.slane %v4473_v39, 4  ;;  %v4497_v21 = vsel %vm1445_vm1, %v4489_v60, %v4496_v38 }
 0x28e   : > { %v4490_v44 = vrot.slane %v4485_v56, 4  ;;  %v4495_v22 = vsel %vm1445_vm1, %v4494_v52, %v4477_v62  ;;  %v5303_v46 = vpack.c.bf16 %v4497_v21, %v4497_v21  ;;  %v4405_v1 = vperm.slane %v4401_v5, %v13596_v48 }
 0x28f   : > { %v5287_v9 = vpack.c.bf16 %v4495_v22, %v4495_v22  ;;  %v4396_v54 = vsel %vm1445_vm1, %v4395_v14, %v3543_v2  ;;  %v4493_v40 = vsel %vm1445_vm1, %v4485_v56, %v4492_v7  ;;  %v4406_v41 = vrot.slane %v3549_v47, 4 }
 0x290   : > { %v4491_v25 = vsel %vm1445_vm1, %v4490_v44, %v4473_v39  ;;  %v4400_v62 = vperm.slane %v4396_v54, %v13596_v48  ;;  %v5271_v16 = vpack.c.bf16 %v4493_v40, %v4493_v40  ;;  %v4414_v2 = vrot.slane %v4394_v59, 4  ;;  %5367 = vst.msk [vmem:[#allocation3 + $0xc4] sm:$0xf] %vm3269_vm2, %v5303_v46 }
 0x291   : > { %11957 = vrot.lane.b32.xlu2 %v13665_v18, %s12580_s21  ;;  %11947 = vrot.lane.b32.xlu0 %v13665_v18, %s12582_s10  ;;  %v5255_v60 = vpack.c.bf16 %v4491_v25, %v4491_v25  ;;  %5351 = vst.msk [vmem:[#allocation3 + $0x84] sm:$0xf] %vm3269_vm2, %v5287_v9  ;;  %v4426_v26 = vrot.slane %v4405_v1, 4  ;;  %v13813_v43 = vperm.slane %v13712_v30, %v13596_v48  ;;  %v11734_v52 = vunpack.i.l.bf16 %v13727_v24 }
 0x292   : > { %11952 = vrot.lane.b32.xlu1 %v13665_v18, %s12581_s4  ;;  %v4407_v39 = vsel %vm1445_vm1, %v4406_v41, %v3547_v45  ;;  %v4412_v56 = vrot.slane %v4400_v62, 4  ;;  %v4415_v38 = vsel %vm1445_vm1, %v4400_v62, %v4414_v2  ;;  %v1513_v47 = vrot.slane %v11735_v27, 4  ;;  %5335 = vst.msk [vmem:[#allocation3 + $0x44] sm:$0xf] %vm3269_vm2, %v5271_v16 }
 0x293   : > { %5319 = vst.msk [vmem:[#allocation3 + $0x4] sm:$0xf] %vm3269_vm2, %v5255_v60  ;;  %v4411_v18 = vperm.slane %v4407_v39, %v13596_v48  ;;  %v1516_v30 = vsel %vm1445_vm1, %v11735_v27, %v13694_v49  ;;  %v13829_v45 = vperm.slane %v13720_v17, %v13596_v48  ;;  %v13833_v14 = vperm.slane %v13731_v10, %v13596_v48 }
 0x294   : > { %v4413_v5 = vsel %vm1445_vm1, %v4412_v56, %v4394_v59  ;;  %v4423_v44 = vperm.slane %v4415_v38, %v13654_v61  ;;  %v17879_v49 = vunpack.i.h.bf16 %v13576_v8  ;;  %v1524_v9 = vperm.slane %v1516_v30, %v13596_v48 }
 0x295   : > { %v4419_v7 = vperm.slane %v4413_v5, %v13654_v61  ;;  %v4424_v22 = vrot.slane %v4411_v18, 4  ;;  %v4427_v24 = vsel %vm1445_vm1, %v4411_v18, %v4426_v26  ;;  %v1457_v54 = vrot.slane %v11734_v52, 4 }
 0x296   : > { %v1514_v17 = vsel %vm1445_vm1, %v1513_v47, %v17879_v49  ;;  %v4435_v27 = vperm.slane %v4427_v24, %v13654_v61  ;;  %v4442_v21 = vrot.slane %v4423_v44, 4  ;;  %v1460_v25 = vsel %vm1445_vm1, %v11734_v52, %v13698_v4 }
 0x297   : > { %v1520_v10 = vperm.slane %v1514_v17, %v13596_v48  ;;  %v4425_v59 = vsel %vm1445_vm1, %v4424_v22, %v4405_v1  ;;  %v4438_v46 = vrot.slane %v4419_v7, 4  ;;  %v17880_v1 = vrot.slane %v13685_v0, 4  ;;  %v13870_v22 = vpop.permute.xlu2 %11757 }
 0x298   : > { %v4431_v40 = vperm.slane %v4425_v59, %v13654_v61  ;;  %v4440_v62 = vrot.slane %v4435_v27, 4  ;;  %v4443_v41 = vsel %vm1445_vm1, %v4435_v27, %v4442_v21  ;;  %v1537_v26 = vrot.slane %v1524_v9, 4 }
 0x299   : > { %11972 = vrot.lane.b32.xlu2 %v13682_v15, %s12580_s21  ;;  %v1525_v60 = vrot.slane %v1520_v10, 4  ;;  %11962 = vrot.lane.b32.xlu0 %v13682_v15, %s12582_s10  ;;  %v5302_v16 = vpack.c.bf16 %v4443_v41, %v4443_v41  ;;  %v1528_v2 = vsel %vm1445_vm1, %v1520_v10, %v17880_v1  ;;  %v17881_v4 = vrot.slane %v13675_v36, 4 }
 0x29a   : > { %11967 = vrot.lane.b32.xlu1 %v13682_v15, %s12581_s4  ;;  %v4436_v56 = vrot.slane %v4431_v40, 4  ;;  %v4439_v52 = vsel %vm1445_vm1, %v4431_v40, %v4438_v46  ;;  %v4441_v18 = vsel %vm1445_vm1, %v4440_v62, %v4423_v44  ;;  %v1536_v5 = vperm.slane %v1528_v2, %v13654_v61 }
 0x29b   : > { %v1540_v39 = vsel %vm1445_vm1, %v1524_v9, %v17881_v4  ;;  %v1526_v38 = vsel %vm1445_vm1, %v1525_v60, %v13685_v0  ;;  %v5270_v47 = vpack.c.bf16 %v4439_v52, %v4439_v52  ;;  %v5286_v15 = vpack.c.bf16 %v4441_v18, %v4441_v18  ;;  %5366 = vst.msk [vmem:[#allocation3 + $0xc0] sm:$0xf] %vm3269_vm2, %v5302_v16 }
 0x29c   : > { %v1532_v30 = vperm.slane %v1526_v38, %v13654_v61  ;;  %v4437_v24 = vsel %vm1445_vm1, %v4436_v56, %v4419_v7  ;;  %v1538_v49 = vsel %vm1445_vm1, %v1537_v26, %v13675_v36  ;;  %v1548_v44 = vperm.slane %v1540_v39, %v13654_v61 }
 0x29d   : > { %v17882_v17 = vunpack.i.l.bf16 %v13576_v8  ;;  %v5254_v27 = vpack.c.bf16 %v4437_v24, %v4437_v24  ;;  %5334 = vst.msk [vmem:[#allocation3 + $0x40] sm:$0xf] %vm3269_vm2, %v5270_v47  ;;  %v1544_v21 = vperm.slane %v1538_v49, %v13654_v61  ;;  %v1551_v9 = vrot.slane %v1536_v5, 4 }
 0x29e   : > { %v1549_v10 = vrot.slane %v1532_v30, 4  ;;  %5350 = vst.msk [vmem:[#allocation3 + $0x80] sm:$0xf] %vm3269_vm2, %v5286_v15  ;;  %v1555_v59 = vrot.slane %v1548_v44, 4  ;;  %v1468_v36 = vperm.slane %v1460_v25, %v13596_v48  ;;  %v11760_v46 = vunpack.i.h.bf16 %v13870_v22 }
 0x29f   : > { %v1458_v0 = vsel %vm1445_vm1, %v1457_v54, %v17882_v17  ;;  %5318 = vst.msk [vmem:[#allocation3] sm:$0xf] %vm3269_vm2, %v5254_v27  ;;  %v1552_v54 = vsel %vm1445_vm1, 0.0, %v1551_v9  ;;  %v1553_v40 = vrot.slane %v1544_v21, 4  ;;  %v2395_v62 = vsel %vm1445_vm1, %v1551_v9, %v1532_v30 }
 0x2a0   : > { %v1464_v7 = vperm.slane %v1458_v0, %v13596_v48  ;;  %v1550_v8 = vsel %vm1445_vm1, 0.0, %v1549_v10  ;;  %v1556_v41 = vsel %vm1445_vm1, 0.0, %v1555_v59  ;;  %v2399_v60 = vperm.slane %v2395_v62, %v13596_v48 }
 0x2a1   : > { %v2400_v16 = vrot.slane %v1552_v54, 4  ;;  %v2406_v1 = vsel %vm1445_vm1, %v1555_v59, %v1544_v21  ;;  %v1554_v25 = vsel %vm1445_vm1, 0.0, %v1553_v40  ;;  %v2411_v26 = vrot.slane %v1556_v41, 4 }
 0x2a2   : > { %v2410_v2 = vperm.slane %v2406_v1, %v13596_v48  ;;  %v1469_v4 = vrot.slane %v1464_v7, 4  ;;  %v2419_v56 = vrot.slane %v2399_v60, 4  ;;  %v17883_v52 = vrot.slane %v13688_v19, 4 }
 0x2a3   : > { %v2401_v39 = vsel %vm1445_vm1, %v2400_v16, %v1550_v8  ;;  %v1481_v38 = vrot.slane %v1468_v36, 4  ;;  %v2412_v15 = vsel %vm1445_vm1, %v2411_v26, %v1554_v25  ;;  %v17884_v21 = vrot.slane %v13678_v32, 4 }
 0x2a4   : > { %v1472_v18 = vsel %vm1445_vm1, %v1464_v7, %v17883_v52  ;;  %v2405_v47 = vperm.slane %v2401_v39, %v13596_v48  ;;  %v2431_v30 = vrot.slane %v2410_v2, 4  ;;  %v1470_v5 = vsel %vm1445_vm1, %v1469_v4, %v13688_v19 }
 0x2a5   : > { %v2416_v24 = vperm.slane %v2412_v15, %v13596_v48  ;;  %v1476_v49 = vperm.slane %v1470_v5, %v13654_v61  ;;  %v1480_v44 = vperm.slane %v1472_v18, %v13654_v61  ;;  %v1482_v17 = vsel %vm1445_vm1, %v1481_v38, %v13678_v32  ;;  %v1250_v38 = vpop.f32.mrf.mxu2  ;;  %v1155_v5 = vpop.f32.mrf.mxu0 }
 0x2a6   : > { %v2417_v0 = vrot.slane %v2405_v47, 4  ;;  %v2420_v27 = vsel %vm1445_vm1, %v2405_v47, %v2419_v56  ;;  %v1484_v10 = vsel %vm1445_vm1, %v1468_v36, %v17884_v21  ;;  %v1488_v9 = vperm.slane %v1482_v17, %v13654_v61 }
 0x2a7   : > { %v2428_v19 = vperm.slane %v2420_v27, %v13654_v61  ;;  %v2429_v59 = vrot.slane %v2416_v24, 4  ;;  %v2432_v7 = vsel %vm1445_vm1, %v2416_v24, %v2431_v30  ;;  %v1492_v8 = vperm.slane %v1484_v10, %v13654_v61  ;;  %v13926_v24 = vpop.permute.xlu1 %11737 }
 0x2a8   : > { %v2418_v54 = vsel %vm1445_vm1, %v2417_v0, %v2399_v60  ;;  %v2440_v40 = vperm.slane %v2432_v7, %v13654_v61  ;;  %v1493_v62 = vrot.slane %v1476_v49, 4  ;;  %v1495_v41 = vrot.slane %v1480_v44, 4 }
 0x2a9   : > { %v2424_v16 = vperm.slane %v2418_v54, %v13654_v61  ;;  %v2430_v32 = vsel %vm1445_vm1, %v2429_v59, %v2410_v2  ;;  %v2447_v36 = vrot.slane %v2428_v19, 4  ;;  %v1497_v1 = vrot.slane %v1488_v9, 4 }
 0x2aa   : > { %v2436_v25 = vperm.slane %v2430_v32, %v13654_v61  ;;  %v2445_v26 = vrot.slane %v2440_v40, 4  ;;  %v1494_v4 = vsel %vm1445_vm1, 0.0, %v1493_v62  ;;  %v1496_v39 = vsel %vm1445_vm1, 0.0, %v1495_v41 }
 0x2ab   : > { %v2443_v56 = vrot.slane %v2424_v16, 4  ;;  %v2448_v60 = vsel %vm1445_vm1, %v2440_v40, %v2447_v36  ;;  %v1498_v52 = vsel %vm1445_vm1, 0.0, %v1497_v1  ;;  %v1499_v18 = vrot.slane %v1492_v8, 4 }
 0x2ac   : > { %v2441_v47 = vrot.slane %v2436_v25, 4  ;;  %v2446_v15 = vsel %vm1445_vm1, %v2445_v26, %v2428_v19  ;;  %v3254_v2 = vpack.c.bf16 %v2448_v60, %v2448_v60  ;;  %v2341_v30 = vsel %vm1445_vm1, %v1495_v41, %v1476_v49 }
 0x2ad   : > { %v2444_v44 = vsel %vm1445_vm1, %v2436_v25, %v2443_v56  ;;  %v3238_v17 = vpack.c.bf16 %v2446_v15, %v2446_v15  ;;  %v1500_v0 = vsel %vm1445_vm1, 0.0, %v1499_v18  ;;  %v2345_v27 = vperm.slane %v2341_v30, %v13596_v48 }
 0x2ae   : > { %v2442_v21 = vsel %vm1445_vm1, %v2441_v47, %v2424_v16  ;;  %v3222_v10 = vpack.c.bf16 %v2444_v44, %v2444_v44  ;;  %3319 = vst.msk [vmem:[#allocation2 + $0xc4] sm:$0xf] %vm3269_vm2, %v3254_v2  ;;  %v2346_v59 = vrot.slane %v1496_v39, 4  ;;  %v2352_v19 = vsel %vm1445_vm1, %v1499_v18, %v1488_v9 }
 0x2af   : > { %v3206_v7 = vpack.c.bf16 %v2442_v21, %v2442_v21  ;;  %3303 = vst.msk [vmem:[#allocation2 + $0x84] sm:$0xf] %vm3269_vm2, %v3238_v17  ;;  %v2356_v49 = vperm.slane %v2352_v19, %v13596_v48  ;;  %v2357_v8 = vrot.slane %v1500_v0, 4  ;;  %v2365_v54 = vrot.slane %v2345_v27, 4 }
 0x2b0   : > { %v13937_v40 = vadd.f32 %v1250_v38, %v13439_v3  ;;  %v13940_v62 = vadd.f32 %v1155_v5, %v13425_v34  ;;  %v11740_v41 = vunpack.i.h.bf16 %v13926_v24  ;;  %3287 = vst.msk [vmem:[#allocation2 + $0x44] sm:$0xf] %vm3269_vm2, %v3222_v10  ;;  %v2347_v16 = vsel %vm1445_vm1, %v2346_v59, %v1494_v4  ;;  %v11748_v5 = vpop.permute.xlu0 %11747 }
 0x2b1   : > { %v11739_v9 = vunpack.i.l.bf16 %v13926_v24  ;;  %3271 = vst.msk [vmem:[#allocation2 + $0x4] sm:$0xf] %vm3269_vm2, %v3206_v7  ;;  %v2351_v32 = vperm.slane %v2347_v16, %v13596_v48  ;;  %v2358_v36 = vsel %vm1445_vm1, %v2357_v8, %v1498_v52  ;;  %v2377_v1 = vrot.slane %v2356_v49, 4 }
 0x2b2   : > { %v5624_v25 = vrot.slane %v13829_v45, 4  ;;  %v5636_v26 = vrot.slane %v13723_v29, 4  ;;  %v5580_v39 = vrot.slane %v13813_v43, 4  ;;  %v2362_v56 = vperm.slane %v2358_v36, %v13596_v48 }
 0x2b3   : > { %v5568_v60 = vrot.slane %v13833_v14, 4  ;;  %v2363_v4 = vrot.slane %v2351_v32, 4  ;;  %v2366_v18 = vsel %vm1445_vm1, %v2351_v32, %v2365_v54  ;;  %v2173_v38 = vrot.slane %v11760_v46, 4 }
 0x2b4   : > { %v2374_v47 = vperm.slane %v2366_v18, %v13654_v61  ;;  %v2375_v52 = vrot.slane %v2362_v56, 4  ;;  %v2378_v15 = vsel %vm1445_vm1, %v2362_v56, %v2377_v1  ;;  %v17885_v2 = vrot.slane %v13466_v53, 4 }
 0x2b5   : > { %v5612_v24 = vrot.slane %v11740_v41, 4  ;;  %v5556_v44 = vrot.slane %v11739_v9, 4  ;;  %v2364_v17 = vsel %vm1445_vm1, %v2363_v4, %v2345_v27  ;;  %v2386_v0 = vperm.slane %v2378_v15, %v13654_v61 }
 0x2b6   : > { %v2176_v30 = vsel %vm1445_vm1, %v11760_v46, %v17885_v2  ;;  %v2370_v21 = vperm.slane %v2364_v17, %v13654_v61  ;;  %v2376_v10 = vsel %vm1445_vm1, %v2375_v52, %v2356_v49  ;;  %v2393_v59 = vrot.slane %v2374_v47, 4 }
 0x2b7   : > { %v11759_v19 = vunpack.i.l.bf16 %v13870_v22  ;;  %v2382_v7 = vperm.slane %v2376_v10, %v13654_v61  ;;  %v2391_v8 = vrot.slane %v2386_v0, 4  ;;  %v13971_v54 = vperm.slane %v2176_v30, %v13596_v48 }
 0x2b8   : > { %v11750_v46 = vunpack.i.h.bf16 %v11748_v5  ;;  %v2389_v16 = vrot.slane %v2370_v21, 4  ;;  %v2394_v32 = vsel %vm1445_vm1, %v2386_v0, %v2393_v59  ;;  %v13976_v27 = vsel %vm1445_vm1, %v2173_v38, %v13466_v53 }
 0x2b9   : > { %v11749_v36 = vunpack.i.l.bf16 %v11748_v5  ;;  %v2387_v1 = vrot.slane %v2382_v7, 4  ;;  %v2392_v49 = vsel %vm1445_vm1, %v2391_v8, %v2374_v47  ;;  %v3253_v56 = vpack.c.bf16 %v2394_v32, %v2394_v32 }
 0x2ba   : > { %v5610_v4 = vrot.slane %v11750_v46, 4  ;;  %v2390_v18 = vsel %vm1445_vm1, %v2382_v7, %v2389_v16  ;;  %v3237_v52 = vpack.c.bf16 %v2392_v49, %v2392_v49  ;;  %v5613_v15 = vsel %vm1445_vm1, %v11750_v46, %v5612_v24 }
 0x2bb   : > { %v5554_v2 = vrot.slane %v11749_v36, 4  ;;  %v2388_v30 = vsel %vm1445_vm1, %v2387_v1, %v2370_v21  ;;  %v3221_v17 = vpack.c.bf16 %v2390_v18, %v2390_v18  ;;  %3318 = vst.msk [vmem:[#allocation2 + $0xc0] sm:$0xf] %vm3269_vm2, %v3253_v56  ;;  %v5621_v38 = vperm.slane %v5613_v15, %v13596_v48 }
 0x2bc   : > { %v5611_v53 = vsel %vm1445_vm1, %v5610_v4, %v11740_v41  ;;  %v3205_v5 = vpack.c.bf16 %v2388_v30, %v2388_v30  ;;  %3302 = vst.msk [vmem:[#allocation2 + $0x80] sm:$0xf] %vm3269_vm2, %v3237_v52  ;;  %v5557_v10 = vsel %vm1445_vm1, %v11749_v36, %v5556_v44  ;;  %v2117_v7 = vrot.slane %v11759_v19, 4 }
 0x2bd   : > { %v5617_v47 = vperm.slane %v5611_v53, %v13596_v48  ;;  %v5555_v0 = vsel %vm1445_vm1, %v5554_v2, %v11739_v9  ;;  %3286 = vst.msk [vmem:[#allocation2 + $0x40] sm:$0xf] %vm3269_vm2, %v3221_v17  ;;  %v5634_v24 = vrot.slane %v5621_v38, 4  ;;  %v5637_v21 = vsel %vm1445_vm1, %v5621_v38, %v5636_v26 }
 0x2be   : > { %v5561_v59 = vperm.slane %v5555_v0, %v13596_v48  ;;  %v5565_v41 = vperm.slane %v5557_v10, %v13596_v48  ;;  %3270 = vst.msk [vmem:[#allocation2] sm:$0xf] %vm3269_vm2, %v3205_v5  ;;  %v5645_v9 = vperm.slane %v5637_v21, %v13654_v61 }
 0x2bf   : > { %v5622_v8 = vrot.slane %v5617_v47, 4  ;;  %v5625_v46 = vsel %vm1445_vm1, %v5617_v47, %v5624_v25  ;;  %v5635_v16 = vsel %vm1445_vm1, %v5634_v24, %v13723_v29 }
 0x2c0   : > { %v5633_v44 = vperm.slane %v5625_v46, %v13654_v61  ;;  %v5566_v26 = vrot.slane %v5561_v59, 4  ;;  %v5569_v32 = vsel %vm1445_vm1, %v5561_v59, %v5568_v60  ;;  %v5641_v1 = vperm.slane %v5635_v16, %v13654_v61 }
 0x2c1   : > { %v5623_v36 = vsel %vm1445_vm1, %v5622_v8, %v13829_v45  ;;  %v5652_v49 = vrot.slane %v5645_v9, 4  ;;  %v5577_v56 = vperm.slane %v5569_v32, %v13654_v61  ;;  %v5578_v52 = vrot.slane %v5565_v41, 4 }
 0x2c2   : > { %v5629_v25 = vperm.slane %v5623_v36, %v13654_v61  ;;  %v5648_v4 = vrot.slane %v5633_v44, 4  ;;  %v5567_v18 = vsel %vm1445_vm1, %v5566_v26, %v13833_v14  ;;  %v5650_v15 = vrot.slane %v5641_v1, 4  ;;  %v1258_v36 = vpop.f32.mrf.mxu3 }
 0x2c3   : > { %v5653_v29 = vsel %vm1445_vm1, 0.0, %v5652_v49  ;;  %v6503_v60 = vsel %vm1445_vm1, %v5652_v49, %v5641_v1  ;;  %v5573_v2 = vperm.slane %v5567_v18, %v13654_v61  ;;  %v5579_v24 = vsel %vm1445_vm1, %v5578_v52, %v13813_v43 }
 0x2c4   : > { %v5646_v45 = vrot.slane %v5629_v25, 4  ;;  %v5649_v30 = vsel %vm1445_vm1, 0.0, %v5648_v4  ;;  %v6492_v17 = vsel %vm1445_vm1, %v5648_v4, %v5629_v25  ;;  %v6507_v53 = vperm.slane %v6503_v60, %v13596_v48 }
 0x2c5   : > { %v5651_v38 = vsel %vm1445_vm1, 0.0, %v5650_v15  ;;  %v6496_v5 = vperm.slane %v6492_v17, %v13596_v48  ;;  %v6497_v14 = vrot.slane %v5649_v30, 4  ;;  %v6508_v47 = vrot.slane %v5653_v29, 4 }
 0x2c6   : > { %v5647_v0 = vsel %vm1445_vm1, 0.0, %v5646_v45  ;;  %v6528_v10 = vrot.slane %v6507_v53, 4  ;;  %v5581_v21 = vsel %vm1445_vm1, %v5565_v41, %v5580_v39  ;;  %v5585_v9 = vperm.slane %v5579_v24, %v13654_v61 }
 0x2c7   : > { %v6498_v59 = vsel %vm1445_vm1, %v6497_v14, %v5647_v0  ;;  %v6509_v8 = vsel %vm1445_vm1, %v6508_v47, %v5651_v38  ;;  %v6516_v46 = vrot.slane %v6496_v5, 4  ;;  %v5589_v26 = vperm.slane %v5581_v21, %v13654_v61 }
 0x2c8   : > { %v6502_v44 = vperm.slane %v6498_v59, %v13596_v48  ;;  %v6513_v16 = vperm.slane %v6509_v8, %v13596_v48  ;;  %v5590_v32 = vrot.slane %v5573_v2, 4  ;;  %v2118_v43 = vsel %vm1445_vm1, %v2117_v7, %v13464_v20 }
 0x2c9   : > { %v17886_v39 = vrot.slane %v13464_v20, 4  ;;  %v5592_v1 = vrot.slane %v5577_v56, 4  ;;  %v5594_v49 = vrot.slane %v5585_v9, 4  ;;  %v5596_v60 = vrot.slane %v5589_v26, 4 }
 0x2ca   : > { %v6514_v25 = vrot.slane %v6502_v44, 4  ;;  %v6517_v4 = vsel %vm1445_vm1, %v6502_v44, %v6516_v46  ;;  %v6526_v18 = vrot.slane %v6513_v16, 4  ;;  %v6529_v52 = vsel %vm1445_vm1, %v6513_v16, %v6528_v10 }
 0x2cb   : > { %v2120_v41 = vsel %vm1445_vm1, %v11759_v19, %v17886_v39  ;;  %v6525_v15 = vperm.slane %v6517_v4, %v13654_v61  ;;  %v6537_v29 = vperm.slane %v6529_v52, %v13654_v61  ;;  %v5591_v7 = vsel %vm1445_vm1, 0.0, %v5590_v32  ;;  %v11753_v32 = vpop.permute.xlu1 %11752 }
 0x2cc   : > { %v5593_v20 = vsel %vm1445_vm1, 0.0, %v5592_v1  ;;  %v6515_v22 = vsel %vm1445_vm1, %v6514_v25, %v6496_v5  ;;  %v6527_v19 = vsel %vm1445_vm1, %v6526_v18, %v6507_v53  ;;  %v5595_v56 = vsel %vm1445_vm1, 0.0, %v5594_v49  ;;  %v1260_v18 = vpop.f32.mrf.mxu3 }
 0x2cd   : > { %v6521_v45 = vperm.slane %v6515_v22, %v13654_v61  ;;  %v6533_v30 = vperm.slane %v6527_v19, %v13654_v61  ;;  %v6542_v17 = vrot.slane %v6537_v29, 4  ;;  %v6544_v38 = vrot.slane %v6525_v15, 4 }
 0x2ce   : > { %v5597_v14 = vsel %vm1445_vm1, 0.0, %v5596_v60  ;;  %v6438_v47 = vsel %vm1445_vm1, %v5592_v1, %v5573_v2  ;;  %v6443_v0 = vrot.slane %v5593_v20, 4  ;;  %v6449_v10 = vsel %vm1445_vm1, %v5596_v60, %v5585_v9 }
 0x2cf   : > { %v6538_v24 = vrot.slane %v6533_v30, 4  ;;  %v6540_v5 = vrot.slane %v6521_v45, 4  ;;  %v6543_v53 = vsel %vm1445_vm1, %v6542_v17, %v6525_v15  ;;  %v6545_v21 = vsel %vm1445_vm1, %v6537_v29, %v6544_v38  ;;  %v11763_v38 = vpop.permute.xlu0 %11762 }
 0x2d0   : > { %v7335_v59 = vpack.c.bf16 %v6543_v53, %v6543_v53  ;;  %v7351_v8 = vpack.c.bf16 %v6545_v21, %v6545_v21  ;;  %v6442_v46 = vperm.slane %v6438_v47, %v13596_v48  ;;  %v6444_v44 = vsel %vm1445_vm1, %v6443_v0, %v5591_v7 }
 0x2d1   : > { %v6539_v16 = vsel %vm1445_vm1, %v6538_v24, %v6521_v45  ;;  %v6541_v26 = vsel %vm1445_vm1, %v6533_v30, %v6540_v5  ;;  %v6448_v2 = vperm.slane %v6444_v44, %v13596_v48  ;;  %v6453_v9 = vperm.slane %v6449_v10, %v13596_v48 }
 0x2d2   : > { %v7303_v39 = vpack.c.bf16 %v6539_v16, %v6539_v16  ;;  %v7319_v1 = vpack.c.bf16 %v6541_v26, %v6541_v26  ;;  %7399 = vst.msk [vmem:[#allocation4 + $0x84] sm:$0xf] %vm3269_vm2, %v7335_v59  ;;  %v6454_v49 = vrot.slane %v5597_v14, 4  ;;  %v6462_v25 = vrot.slane %v6442_v46, 4 }
 0x2d3   : > { %v14060_v4 = vadd.f32 %v1258_v36, %v13439_v3  ;;  %v14064_v52 = vperm.slane %v13976_v27, %v13596_v48  ;;  %7415 = vst.msk [vmem:[#allocation4 + $0xc4] sm:$0xf] %vm3269_vm2, %v7351_v8  ;;  %v6460_v15 = vrot.slane %v6448_v2, 4  ;;  %v6474_v29 = vrot.slane %v6453_v9, 4 }
 0x2d4   : > { %v14068_v7 = vperm.slane %v2118_v43, %v13596_v48  ;;  %7367 = vst.msk [vmem:[#allocation4 + $0x4] sm:$0xf] %vm3269_vm2, %v7303_v39  ;;  %v6455_v20 = vsel %vm1445_vm1, %v6454_v49, %v5595_v56  ;;  %v6463_v22 = vsel %vm1445_vm1, %v6448_v2, %v6462_v25  ;;  %v11755_v36 = vunpack.i.h.bf16 %v11753_v32 }
 0x2d5   : > { %v14074_v19 = vperm.slane %v2120_v41, %v13596_v48  ;;  %7383 = vst.msk [vmem:[#allocation4 + $0x44] sm:$0xf] %vm3269_vm2, %v7319_v1  ;;  %v6459_v27 = vperm.slane %v6455_v20, %v13596_v48  ;;  %v6461_v60 = vsel %vm1445_vm1, %v6460_v15, %v6442_v46  ;;  %v6471_v45 = vperm.slane %v6463_v22, %v13654_v61 }
 0x2d6   : > { %v14081_v43 = vadd.f32 %v1260_v18, %v13439_v3  ;;  %v2211_v30 = vrot.slane %v13971_v54, 4  ;;  %v6467_v56 = vperm.slane %v6461_v60, %v13654_v61  ;;  %v11754_v17 = vunpack.i.l.bf16 %v11753_v32 }
 0x2d7   : > { %v6472_v14 = vrot.slane %v6459_v27, 4  ;;  %v6475_v41 = vsel %vm1445_vm1, %v6459_v27, %v6474_v29  ;;  %v6490_v47 = vrot.slane %v6471_v45, 4  ;;  %v2187_v0 = vrot.slane %v11755_v36, 4 }
 0x2d8   : > { %v2199_v10 = vrot.slane %v14064_v52, 4  ;;  %v2143_v24 = vrot.slane %v14068_v7, 4  ;;  %v6483_v5 = vperm.slane %v6475_v41, %v13654_v61  ;;  %v6486_v53 = vrot.slane %v6467_v56, 4 }
 0x2d9   : > { %v2155_v21 = vrot.slane %v14074_v19, 4  ;;  %v6473_v59 = vsel %vm1445_vm1, %v6472_v14, %v6453_v9  ;;  %v11765_v8 = vunpack.i.h.bf16 %v11763_v38  ;;  %v11764_v46 = vunpack.i.l.bf16 %v11763_v38 }
 0x2da   : > { %v6479_v44 = vperm.slane %v6473_v59, %v13654_v61  ;;  %v6488_v16 = vrot.slane %v6483_v5, 4  ;;  %v6491_v26 = vsel %vm1445_vm1, %v6483_v5, %v6490_v47  ;;  %v2131_v2 = vrot.slane %v11754_v17, 4 }
 0x2db   : > { %v7350_v32 = vpack.c.bf16 %v6491_v26, %v6491_v26  ;;  %v2185_v39 = vrot.slane %v11765_v8, 4  ;;  %v2188_v1 = vsel %vm1445_vm1, %v11765_v8, %v2187_v0  ;;  %v2129_v49 = vrot.slane %v11764_v46, 4 }
 0x2dc   : > { %v6484_v25 = vrot.slane %v6479_v44, 4  ;;  %v6487_v18 = vsel %vm1445_vm1, %v6479_v44, %v6486_v53  ;;  %v6489_v15 = vsel %vm1445_vm1, %v6488_v16, %v6471_v45  ;;  %v2196_v9 = vperm.slane %v2188_v1, %v13596_v48 }
 0x2dd   : > { %v7318_v29 = vpack.c.bf16 %v6487_v18, %v6487_v18  ;;  %v7334_v20 = vpack.c.bf16 %v6489_v15, %v6489_v15  ;;  %7414 = vst.msk [vmem:[#allocation4 + $0xc0] sm:$0xf] %vm3269_vm2, %v7350_v32  ;;  %v2186_v22 = vsel %vm1445_vm1, %v2185_v39, %v11755_v36  ;;  %v2130_v27 = vsel %vm1445_vm1, %v2129_v49, %v11754_v17 }
 0x2de   : > { %v6485_v60 = vsel %vm1445_vm1, %v6484_v25, %v6467_v56  ;;  %v2192_v38 = vperm.slane %v2186_v22, %v13596_v48  ;;  %v2209_v14 = vrot.slane %v2196_v9, 4  ;;  %v2212_v41 = vsel %vm1445_vm1, %v2196_v9, %v2211_v30 }
 0x2df   : > { %v7302_v47 = vpack.c.bf16 %v6485_v60, %v6485_v60  ;;  %7382 = vst.msk [vmem:[#allocation4 + $0x40] sm:$0xf] %vm3269_vm2, %v7318_v29  ;;  %v2220_v45 = vperm.slane %v2212_v41, %v13654_v61  ;;  %v2132_v0 = vsel %vm1445_vm1, %v11764_v46, %v2131_v2  ;;  %v2136_v5 = vperm.slane %v2130_v27, %v13596_v48 }
 0x2e0   : > { %7398 = vst.msk [vmem:[#allocation4 + $0x80] sm:$0xf] %vm3269_vm2, %v7334_v20  ;;  %v2197_v36 = vrot.slane %v2192_v38, 4  ;;  %v2200_v17 = vsel %vm1445_vm1, %v2192_v38, %v2199_v10  ;;  %v2210_v56 = vsel %vm1445_vm1, %v2209_v14, %v13971_v54  ;;  %v2140_v53 = vperm.slane %v2132_v0, %v13596_v48 }
 0x2e1   : > { %7366 = vst.msk [vmem:[#allocation4] sm:$0xf] %vm3269_vm2, %v7302_v47  ;;  %v2208_v30 = vperm.slane %v2200_v17, %v13654_v61  ;;  %v2216_v59 = vperm.slane %v2210_v56, %v13654_v61  ;;  %v2227_v8 = vrot.slane %v2220_v45, 4  ;;  %v2141_v46 = vrot.slane %v2136_v5, 4 }
 0x2e2   : > { %v2198_v44 = vsel %vm1445_vm1, %v2197_v36, %v14064_v52  ;;  %v2144_v16 = vsel %vm1445_vm1, %v2136_v5, %v2143_v24  ;;  %v2153_v26 = vrot.slane %v2140_v53, 4  ;;  %v2156_v10 = vsel %vm1445_vm1, %v2140_v53, %v2155_v21 }
 0x2e3   : > { %v2204_v54 = vperm.slane %v2198_v44, %v13654_v61  ;;  %v2223_v2 = vrot.slane %v2208_v30, 4  ;;  %v2225_v32 = vrot.slane %v2216_v59, 4  ;;  %v2228_v39 = vsel %vm1445_vm1, 0.0, %v2227_v8 }
 0x2e4   : > { %v3054_v1 = vsel %vm1445_vm1, %v2227_v8, %v2216_v59  ;;  %v3059_v49 = vrot.slane %v2228_v39, 4  ;;  %v2142_v25 = vsel %vm1445_vm1, %v2141_v46, %v14068_v7  ;;  %v2152_v18 = vperm.slane %v2144_v16, %v13654_v61 }
 0x2e5   : > { %v2221_v52 = vrot.slane %v2204_v54, 4  ;;  %v2224_v24 = vsel %vm1445_vm1, 0.0, %v2223_v2  ;;  %v2226_v15 = vsel %vm1445_vm1, 0.0, %v2225_v32  ;;  %v3043_v21 = vsel %vm1445_vm1, %v2223_v2, %v2204_v54 }
 0x2e6   : > { %v3047_v9 = vperm.slane %v3043_v21, %v13596_v48  ;;  %v3048_v29 = vrot.slane %v2224_v24, 4  ;;  %v3058_v20 = vperm.slane %v3054_v1, %v13596_v48  ;;  %v3060_v22 = vsel %vm1445_vm1, %v3059_v49, %v2226_v15 }
 0x2e7   : > { %v2222_v27 = vsel %vm1445_vm1, 0.0, %v2221_v52  ;;  %v3064_v7 = vperm.slane %v3060_v22, %v13596_v48  ;;  %v2148_v60 = vperm.slane %v2142_v25, %v13654_v61  ;;  %v2154_v38 = vsel %vm1445_vm1, %v2153_v26, %v14074_v19 }
 0x2e8   : > { %v3049_v14 = vsel %vm1445_vm1, %v3048_v29, %v2222_v27  ;;  %v3067_v41 = vrot.slane %v3047_v9, 4  ;;  %v3079_v47 = vrot.slane %v3058_v20, 4  ;;  %v2160_v45 = vperm.slane %v2154_v38, %v13654_v61 }
 0x2e9   : > { %v3053_v0 = vperm.slane %v3049_v14, %v13596_v48  ;;  %v3077_v5 = vrot.slane %v3064_v7, 4  ;;  %v2164_v36 = vperm.slane %v2156_v10, %v13654_v61  ;;  %v2165_v17 = vrot.slane %v2148_v60, 4 }
 0x2ea   : > { %v3080_v56 = vsel %vm1445_vm1, %v3064_v7, %v3079_v47  ;;  %v2167_v53 = vrot.slane %v2152_v18, 4  ;;  %v2169_v30 = vrot.slane %v2160_v45, 4  ;;  %v14143_v59 = vpack.i.bf16 %v14081_v43, %v14060_v4  ;;  %v1204_v7 = vpop.f32.mrf.mxu1 }
 0x2eb   : > { %v3065_v19 = vrot.slane %v3053_v0, 4  ;;  %v3068_v8 = vsel %vm1445_vm1, %v3053_v0, %v3067_v41  ;;  %v3078_v46 = vsel %vm1445_vm1, %v3077_v5, %v3058_v20  ;;  %v3088_v44 = vperm.slane %v3080_v56, %v13654_v61  ;;  %v14169_v56 = vpop.permute.xlu2 %11777 }
 0x2ec   : > { %v3076_v16 = vperm.slane %v3068_v8, %v13654_v61  ;;  %v3084_v26 = vperm.slane %v3078_v46, %v13654_v61  ;;  %v2166_v10 = vsel %vm1445_vm1, 0.0, %v2165_v17  ;;  %v2168_v54 = vsel %vm1445_vm1, 0.0, %v2167_v53  ;;  %11992 = vrot.lane.b32.xlu2 %v14143_v59, %s12581_s4  ;;  %v11773_v17 = vpop.permute.xlu1 %11772  ;;  %11982 = vrot.lane.b32.xlu1 %v14143_v59, %s12582_s10 }
 0x2ed   : > { %v3066_v2 = vsel %vm1445_vm1, %v3065_v19, %v3047_v9  ;;  %v3093_v32 = vrot.slane %v3088_v44, 4  ;;  %v2170_v39 = vsel %vm1445_vm1, 0.0, %v2169_v30  ;;  %v2171_v1 = vrot.slane %v2164_v36, 4 }
 0x2ee   : > { %v3072_v49 = vperm.slane %v3066_v2, %v13654_v61  ;;  %v3089_v25 = vrot.slane %v3084_v26, 4  ;;  %v3095_v18 = vrot.slane %v3076_v16, 4  ;;  %v2989_v52 = vsel %vm1445_vm1, %v2167_v53, %v2148_v60 }
 0x2ef   : > { %v3094_v24 = vsel %vm1445_vm1, %v3093_v32, %v3076_v16  ;;  %v2172_v15 = vsel %vm1445_vm1, 0.0, %v2171_v1  ;;  %v2993_v21 = vperm.slane %v2989_v52, %v13596_v48  ;;  %v2994_v29 = vrot.slane %v2168_v54, 4 }
 0x2f0   : > { %v3090_v20 = vsel %vm1445_vm1, %v3089_v25, %v3072_v49  ;;  %v3091_v9 = vrot.slane %v3072_v49, 4  ;;  %v3096_v22 = vsel %vm1445_vm1, %v3088_v44, %v3095_v18  ;;  %v3250_v27 = vpack.c.bf16 %v3094_v24, %v3094_v24 }
 0x2f1   : > { %v3218_v38 = vpack.c.bf16 %v3090_v20, %v3090_v20  ;;  %v3266_v14 = vpack.c.bf16 %v3096_v22, %v3096_v22  ;;  %v2995_v41 = vsel %vm1445_vm1, %v2994_v29, %v2166_v10  ;;  %v3000_v60 = vsel %vm1445_vm1, %v2171_v1, %v2160_v45 }
 0x2f2   : > { %v3092_v47 = vsel %vm1445_vm1, %v3084_v26, %v3091_v9  ;;  %3315 = vst.msk [vmem:[#allocation2 + $0xb4] sm:$0xf] %vm3269_vm2, %v3250_v27  ;;  %v2999_v0 = vperm.slane %v2995_v41, %v13596_v48  ;;  %v3004_v5 = vperm.slane %v3000_v60, %v13596_v48  ;;  %v3005_v36 = vrot.slane %v2172_v15, 4  ;;  %v1157_v9 = vpop.f32.mrf.mxu0 }
 0x2f3   : > { %v3234_v53 = vpack.c.bf16 %v3092_v47, %v3092_v47  ;;  %3283 = vst.msk [vmem:[#allocation2 + $0x34] sm:$0xf] %vm3269_vm2, %v3218_v38  ;;  %v3013_v30 = vrot.slane %v2993_v21, 4  ;;  %v14174_v19 = vpack.i.bf16 %v13937_v40, %v13612_v33  ;;  %v14177_v45 = vadd.f32 %v1204_v7, %v13423_v37 }
 0x2f4   : > { %3331 = vst.msk [vmem:[#allocation2 + $0xf4] sm:$0xf] %vm3269_vm2, %v3266_v14  ;;  %v3006_v8 = vsel %vm1445_vm1, %v3005_v36, %v2170_v39  ;;  %v3011_v46 = vrot.slane %v2999_v0, 4  ;;  %v3025_v44 = vrot.slane %v3004_v5, 4  ;;  %v11775_v10 = vunpack.i.h.bf16 %v11773_v17 }
 0x2f5   : > { %3299 = vst.msk [vmem:[#allocation2 + $0x74] sm:$0xf] %vm3269_vm2, %v3234_v53  ;;  %v3010_v16 = vperm.slane %v3006_v8, %v13596_v48  ;;  %v3014_v26 = vsel %vm1445_vm1, %v2999_v0, %v3013_v30  ;;  %11977 = vrot.lane.b32.xlu0 %v14174_v19, %s12582_s10  ;;  %v11774_v54 = vunpack.i.l.bf16 %v11773_v17  ;;  %v11780_v2 = vunpack.i.h.bf16 %v14169_v56  ;;  %v11768_v17 = vpop.permute.xlu0 %11767  ;;  %11997 = vrot.lane.b32.xlu2 %v14174_v19, %s12580_s21 }
 0x2f6   : > { %v11779_v32 = vunpack.i.l.bf16 %v14169_v56  ;;  %v3012_v39 = vsel %vm1445_vm1, %v3011_v46, %v2993_v21  ;;  %v3022_v1 = vperm.slane %v3014_v26, %v13654_v61  ;;  %v3662_v52 = vrot.slane %v11775_v10, 4  ;;  %v1206_v46 = vpop.f32.mrf.mxu1  ;;  %11987 = vrot.lane.b32.xlu1 %v14174_v19, %s12581_s4 }
 0x2f7   : > { %v3018_v49 = vperm.slane %v3012_v39, %v13654_v61  ;;  %v3023_v25 = vrot.slane %v3010_v16, 4  ;;  %v3026_v18 = vsel %vm1445_vm1, %v3010_v16, %v3025_v44  ;;  %v3664_v29 = vrot.slane %v13474_v6, 4 }
 0x2f8   : > { %v3034_v24 = vperm.slane %v3026_v18, %v13654_v61  ;;  %v3041_v15 = vrot.slane %v3022_v1, 4  ;;  %v3606_v20 = vrot.slane %v11774_v54, 4  ;;  %v3663_v21 = vsel %vm1445_vm1, %v3662_v52, %v13474_v6  ;;  %v14219_v18 = vpop.permute.xlu2 %11792 }
 0x2f9   : > { %v3024_v22 = vsel %vm1445_vm1, %v3023_v25, %v3004_v5  ;;  %v3037_v27 = vrot.slane %v3018_v49, 4  ;;  %v3608_v7 = vrot.slane %v13477_v12, 4  ;;  %v3665_v60 = vsel %vm1445_vm1, %v11775_v10, %v3664_v29 }
 0x2fa   : > { %v3030_v38 = vperm.slane %v3024_v22, %v13654_v61  ;;  %v3039_v14 = vrot.slane %v3034_v24, 4  ;;  %v3042_v41 = vsel %vm1445_vm1, %v3034_v24, %v3041_v15  ;;  %v3669_v0 = vperm.slane %v3663_v21, %v13596_v48 }
 0x2fb   : > { %v3265_v47 = vpack.c.bf16 %v3042_v41, %v3042_v41  ;;  %v3607_v36 = vsel %vm1445_vm1, %v3606_v20, %v13477_v12  ;;  %v3609_v5 = vsel %vm1445_vm1, %v11774_v54, %v3608_v7  ;;  %v14208_v6 = vadd.f32 %v1157_v9, %v13425_v34 }
 0x2fc   : > { %v3035_v53 = vrot.slane %v3030_v38, 4  ;;  %v3038_v30 = vsel %vm1445_vm1, %v3030_v38, %v3037_v27  ;;  %v3040_v8 = vsel %vm1445_vm1, %v3039_v14, %v3022_v1  ;;  %v3673_v26 = vperm.slane %v3665_v60, %v13596_v48 }
 0x2fd   : > { %v3233_v44 = vpack.c.bf16 %v3038_v30, %v3038_v30  ;;  %v3249_v16 = vpack.c.bf16 %v3040_v8, %v3040_v8  ;;  %3330 = vst.msk [vmem:[#allocation2 + $0xf0] sm:$0xf] %vm3269_vm2, %v3265_v47  ;;  %v3613_v12 = vperm.slane %v3607_v36, %v13596_v48  ;;  %v3674_v10 = vrot.slane %v11780_v2, 4 }
 0x2fe   : > { %v3036_v54 = vsel %vm1445_vm1, %v3035_v53, %v3018_v49  ;;  %v3617_v34 = vperm.slane %v3609_v5, %v13596_v48  ;;  %v11770_v39 = vunpack.i.h.bf16 %v11768_v17  ;;  %v3618_v25 = vrot.slane %v11779_v32, 4 }
 0x2ff   : > { %v3217_v1 = vpack.c.bf16 %v3036_v54, %v3036_v54  ;;  %3298 = vst.msk [vmem:[#allocation2 + $0x70] sm:$0xf] %vm3269_vm2, %v3233_v44  ;;  %v3688_v52 = vrot.slane %v3669_v0, 4  ;;  %v11769_v24 = vunpack.i.l.bf16 %v11768_v17  ;;  %v14223_v15 = vadd.f32 %v1206_v46, %v13423_v37 }
 0x300   : > { %3314 = vst.msk [vmem:[#allocation2 + $0xb0] sm:$0xf] %vm3269_vm2, %v3249_v16  ;;  %v3632_v29 = vrot.slane %v3613_v12, 4  ;;  %v3675_v49 = vsel %vm1445_vm1, %v3674_v10, %v11770_v39  ;;  %v3676_v20 = vrot.slane %v11770_v39, 4  ;;  %v3700_v9 = vrot.slane %v3673_v26, 4 }
 0x301   : > { %3282 = vst.msk [vmem:[#allocation2 + $0x30] sm:$0xf] %vm3269_vm2, %v3217_v1  ;;  %v3681_v22 = vperm.slane %v3675_v49, %v13596_v48  ;;  %v3619_v27 = vsel %vm1445_vm1, %v3618_v25, %v11769_v24  ;;  %v3620_v21 = vrot.slane %v11769_v24, 4  ;;  %v11795_v7 = vunpack.i.h.bf16 %v14219_v18 }
 0x302   : > { %v3644_v38 = vrot.slane %v3617_v34, 4  ;;  %v3677_v37 = vsel %vm1445_vm1, %v11780_v2, %v3676_v20  ;;  %v3625_v14 = vperm.slane %v3619_v27, %v13596_v48 }
 0x303   : > { %v3685_v41 = vperm.slane %v3677_v37, %v13596_v48  ;;  %v3686_v60 = vrot.slane %v3681_v22, 4  ;;  %v3689_v47 = vsel %vm1445_vm1, %v3681_v22, %v3688_v52  ;;  %v3621_v36 = vsel %vm1445_vm1, %v11779_v32, %v3620_v21 }
 0x304   : > { %v3697_v5 = vperm.slane %v3689_v47, %v13654_v61  ;;  %v3629_v17 = vperm.slane %v3621_v36, %v13596_v48  ;;  %v3630_v53 = vrot.slane %v3625_v14, 4  ;;  %v3633_v30 = vsel %vm1445_vm1, %v3625_v14, %v3632_v29 }
 0x305   : > { %v3687_v2 = vsel %vm1445_vm1, %v3686_v60, %v3669_v0  ;;  %v3698_v8 = vrot.slane %v3685_v41, 4  ;;  %v3701_v46 = vsel %vm1445_vm1, %v3685_v41, %v3700_v9  ;;  %v3641_v44 = vperm.slane %v3633_v30, %v13654_v61 }
 0x306   : > { %v3693_v16 = vperm.slane %v3687_v2, %v13654_v61  ;;  %v3709_v56 = vperm.slane %v3701_v46, %v13654_v61  ;;  %v3712_v10 = vrot.slane %v3697_v5, 4  ;;  %v3631_v32 = vsel %vm1445_vm1, %v3630_v53, %v3613_v12 }
 0x307   : > { %v3699_v54 = vsel %vm1445_vm1, %v3698_v8, %v3673_v26  ;;  %v3637_v39 = vperm.slane %v3631_v32, %v13654_v61  ;;  %v3642_v25 = vrot.slane %v3629_v17, 4  ;;  %v3645_v1 = vsel %vm1445_vm1, %v3629_v17, %v3644_v38 }
 0x308   : > { %v3705_v0 = vperm.slane %v3699_v54, %v13654_v61  ;;  %v3710_v52 = vrot.slane %v3693_v16, 4  ;;  %v3713_v24 = vsel %vm1445_vm1, 0.0, %v3712_v10  ;;  %v3716_v29 = vrot.slane %v3709_v56, 4 }
 0x309   : > { %v4552_v49 = vsel %vm1445_vm1, %v3712_v10, %v3693_v16  ;;  %v4557_v20 = vrot.slane %v3713_v24, 4  ;;  %v3643_v9 = vsel %vm1445_vm1, %v3642_v25, %v3617_v34  ;;  %v3653_v12 = vperm.slane %v3645_v1, %v13654_v61 }
 0x30a   : > { %v3711_v26 = vsel %vm1445_vm1, 0.0, %v3710_v52  ;;  %v3714_v22 = vrot.slane %v3705_v0, 4  ;;  %v3717_v27 = vsel %vm1445_vm1, 0.0, %v3716_v29  ;;  %v4556_v21 = vperm.slane %v4552_v49, %v13596_v48 }
 0x30b   : > { %v4558_v38 = vsel %vm1445_vm1, %v4557_v20, %v3711_v26  ;;  %v4563_v37 = vsel %vm1445_vm1, %v3716_v29, %v3705_v0  ;;  %v4568_v14 = vrot.slane %v3717_v27, 4  ;;  %v3649_v41 = vperm.slane %v3643_v9, %v13654_v61 }
 0x30c   : > { %v3715_v60 = vsel %vm1445_vm1, 0.0, %v3714_v22  ;;  %v4562_v34 = vperm.slane %v4558_v38, %v13596_v48  ;;  %v4567_v47 = vperm.slane %v4563_v37, %v13596_v48  ;;  %v4576_v36 = vrot.slane %v4556_v21, 4 }
 0x30d   : > { %v4569_v5 = vsel %vm1445_vm1, %v4568_v14, %v3715_v60  ;;  %v3654_v17 = vrot.slane %v3637_v39, 4  ;;  %v3656_v53 = vrot.slane %v3641_v44, 4  ;;  %v3658_v30 = vrot.slane %v3649_v41, 4 }
 0x30e   : > { %v4573_v2 = vperm.slane %v4569_v5, %v13596_v48  ;;  %v4574_v8 = vrot.slane %v4562_v34, 4  ;;  %v4577_v46 = vsel %vm1445_vm1, %v4562_v34, %v4576_v36  ;;  %v4588_v16 = vrot.slane %v4567_v47, 4 }
 0x30f   : > { %v4585_v56 = vperm.slane %v4577_v46, %v13654_v61  ;;  %v3655_v10 = vsel %vm1445_vm1, 0.0, %v3654_v17  ;;  %v3657_v32 = vsel %vm1445_vm1, 0.0, %v3656_v53  ;;  %v3659_v54 = vsel %vm1445_vm1, 0.0, %v3658_v30 }
 0x310   : > { %v4575_v25 = vsel %vm1445_vm1, %v4574_v8, %v4556_v21  ;;  %v4586_v1 = vrot.slane %v4573_v2, 4  ;;  %v4589_v44 = vsel %vm1445_vm1, %v4573_v2, %v4588_v16  ;;  %v3660_v0 = vrot.slane %v3653_v12, 4  ;;  %v1253_v8 = vpop.f32.mrf.mxu2 }
 0x311   : > { %v4581_v52 = vperm.slane %v4575_v25, %v13654_v61  ;;  %v4597_v24 = vperm.slane %v4589_v44, %v13654_v61  ;;  %v4604_v29 = vrot.slane %v4585_v56, 4  ;;  %v4498_v49 = vsel %vm1445_vm1, %v3656_v53, %v3637_v39  ;;  %v11788_v25 = vpop.permute.xlu1 %11787 }
 0x312   : > { %v4587_v20 = vsel %vm1445_vm1, %v4586_v1, %v4567_v47  ;;  %v3661_v9 = vsel %vm1445_vm1, 0.0, %v3660_v0  ;;  %v4502_v26 = vperm.slane %v4498_v49, %v13596_v48  ;;  %v4503_v22 = vrot.slane %v3657_v32, 4 }
 0x313   : > { %v4593_v27 = vperm.slane %v4587_v20, %v13654_v61  ;;  %v4600_v21 = vrot.slane %v4581_v52, 4  ;;  %v4602_v38 = vrot.slane %v4597_v24, 4  ;;  %v4605_v12 = vsel %vm1445_vm1, %v4597_v24, %v4604_v29 }
 0x314   : > { %v5305_v37 = vpack.c.bf16 %v4605_v12, %v4605_v12  ;;  %v4504_v14 = vsel %vm1445_vm1, %v4503_v22, %v3655_v10  ;;  %v4509_v60 = vsel %vm1445_vm1, %v3660_v0, %v3649_v41  ;;  %v4514_v34 = vrot.slane %v3661_v9, 4 }
 0x315   : > { %v4598_v39 = vrot.slane %v4593_v27, 4  ;;  %v4601_v47 = vsel %vm1445_vm1, %v4593_v27, %v4600_v21  ;;  %v4603_v36 = vsel %vm1445_vm1, %v4602_v38, %v4585_v56  ;;  %v4508_v5 = vperm.slane %v4504_v14, %v13596_v48 }
 0x316   : > { %v5273_v17 = vpack.c.bf16 %v4601_v47, %v4601_v47  ;;  %v5289_v53 = vpack.c.bf16 %v4603_v36, %v4603_v36  ;;  %5369 = vst.msk [vmem:[#allocation3 + $0xcc] sm:$0xf] %vm3269_vm2, %v5305_v37  ;;  %v4513_v30 = vperm.slane %v4509_v60, %v13596_v48  ;;  %v4515_v2 = vsel %vm1445_vm1, %v4514_v34, %v3659_v54 }
 0x317   : > { %v4599_v46 = vsel %vm1445_vm1, %v4598_v39, %v4581_v52  ;;  %v4519_v41 = vperm.slane %v4515_v2, %v13596_v48  ;;  %v4520_v16 = vrot.slane %v4508_v5, 4  ;;  %v4522_v10 = vrot.slane %v4502_v26, 4 }
 0x318   : > { %v5257_v32 = vpack.c.bf16 %v4599_v46, %v4599_v46  ;;  %5337 = vst.msk [vmem:[#allocation3 + $0x4c] sm:$0xf] %vm3269_vm2, %v5273_v17  ;;  %v4534_v56 = vrot.slane %v4513_v30, 4  ;;  %v14297_v54 = vpack.i.bf16 %v14223_v15, %v14177_v45  ;;  %v11790_v9 = vunpack.i.h.bf16 %v11788_v25 }
 0x319   : > { %5353 = vst.msk [vmem:[#allocation3 + $0x8c] sm:$0xf] %vm3269_vm2, %v5289_v53  ;;  %v4521_v1 = vsel %vm1445_vm1, %v4520_v16, %v4502_v26  ;;  %v4523_v44 = vsel %vm1445_vm1, %v4508_v5, %v4522_v10  ;;  %v4532_v0 = vrot.slane %v4519_v41, 4  ;;  %v11789_v26 = vunpack.i.l.bf16 %v11788_v25  ;;  %v11783_v16 = vpop.permute.xlu0 %11782 }
 0x31a   : > { %5321 = vst.msk [vmem:[#allocation3 + $0xc] sm:$0xf] %vm3269_vm2, %v5257_v32  ;;  %v4527_v52 = vperm.slane %v4521_v1, %v13654_v61  ;;  %v4531_v24 = vperm.slane %v4523_v44, %v13654_v61  ;;  %v4535_v29 = vsel %vm1445_vm1, %v4519_v41, %v4534_v56  ;;  %12007 = vrot.lane.b32.xlu0 %v14297_v54, %s12581_s4  ;;  %v11794_v22 = vunpack.i.l.bf16 %v14219_v18  ;;  %v1255_v32 = vpop.f32.mrf.mxu2 }
 0x31b   : > { %v4533_v49 = vsel %vm1445_vm1, %v4532_v0, %v4513_v30  ;;  %v4543_v20 = vperm.slane %v4535_v29, %v13654_v61  ;;  %v1615_v37 = vrot.slane %v13486_v63, 4  ;;  %v1613_v14 = vrot.slane %v11790_v9, 4  ;;  %12002 = vrot.lane.b32.xlu2 %v14297_v54, %s12582_s10  ;;  %12012 = vrot.lane.b32.xlu1 %v14297_v54, %s12580_s21 }
 0x31c   : > { %v4539_v27 = vperm.slane %v4533_v49, %v13654_v61  ;;  %v4546_v21 = vrot.slane %v4527_v52, 4  ;;  %v4550_v38 = vrot.slane %v4531_v24, 4  ;;  %v1557_v19 = vrot.slane %v11789_v26, 4 }
 0x31d   : > { %v4548_v12 = vrot.slane %v4543_v20, 4  ;;  %v1559_v47 = vrot.slane %v13488_v31, 4  ;;  %v1614_v17 = vsel %vm1445_vm1, %v1613_v14, %v13486_v63  ;;  %v1616_v53 = vsel %vm1445_vm1, %v11790_v9, %v1615_v37 }
 0x31e   : > { %v4544_v60 = vrot.slane %v4539_v27, 4  ;;  %v4547_v34 = vsel %vm1445_vm1, %v4539_v27, %v4546_v21  ;;  %v4551_v39 = vsel %vm1445_vm1, %v4543_v20, %v4550_v38  ;;  %v1620_v41 = vperm.slane %v1614_v17, %v13596_v48 }
 0x31f   : > { %v4549_v36 = vsel %vm1445_vm1, %v4548_v12, %v4531_v24  ;;  %v5272_v5 = vpack.c.bf16 %v4547_v34, %v4547_v34  ;;  %v5304_v46 = vpack.c.bf16 %v4551_v39, %v4551_v39  ;;  %v14324_v10 = vmul.f32 0.17677669, %v13940_v62 }
 0x320   : > { %v4545_v30 = vsel %vm1445_vm1, %v4544_v60, %v4527_v52  ;;  %v5288_v2 = vpack.c.bf16 %v4549_v36, %v4549_v36  ;;  %v1558_v25 = vsel %vm1445_vm1, %v1557_v19, %v13488_v31  ;;  %v1560_v63 = vsel %vm1445_vm1, %v11789_v26, %v1559_v47 }
 0x321   : > { %v5256_v56 = vpack.c.bf16 %v4545_v30, %v4545_v30  ;;  %5336 = vst.msk [vmem:[#allocation3 + $0x48] sm:$0xf] %vm3269_vm2, %v5272_v5  ;;  %v14331_v1 = vadd.f32 %v1253_v8, %v13439_v3  ;;  %v1624_v44 = vperm.slane %v1616_v53, %v13596_v48  ;;  %v1564_v0 = vperm.slane %v1558_v25, %v13596_v48 }
 0x322   : > { %5352 = vst.msk [vmem:[#allocation3 + $0x88] sm:$0xf] %vm3269_vm2, %v5288_v2  ;;  %v1568_v62 = vperm.slane %v1560_v63, %v13596_v48  ;;  %v1625_v52 = vrot.slane %v11795_v7, 4  ;;  %v1569_v24 = vrot.slane %v11794_v22, 4  ;;  %v11785_v31 = vunpack.i.h.bf16 %v11783_v16 }
 0x323   : > { %5320 = vst.msk [vmem:[#allocation3 + $0x8] sm:$0xf] %vm3269_vm2, %v5256_v56  ;;  %v11784_v29 = vunpack.i.l.bf16 %v11783_v16  ;;  %v14341_v49 = vmul.f32 0.17677669, %v14208_v6  ;;  %v14344_v8 = vadd.f32 %v1255_v32, %v13439_v3  ;;  %v1639_v20 = vrot.slane %v1620_v41, 4 }
 0x324   : > { %5368 = vst.msk [vmem:[#allocation3 + $0xc8] sm:$0xf] %vm3269_vm2, %v5304_v46  ;;  %v1583_v9 = vrot.slane %v1564_v0, 4  ;;  %v1626_v26 = vsel %vm1445_vm1, %v1625_v52, %v11785_v31  ;;  %v1627_v27 = vrot.slane %v11785_v31, 4  ;;  %v1651_v12 = vrot.slane %v1624_v44, 4  ;;  %v14371_v46 = vpop.permute.xlu2 %11807 }
 0x325   : > { %v1570_v21 = vsel %vm1445_vm1, %v1569_v24, %v11784_v29  ;;  %v1571_v38 = vrot.slane %v11784_v29, 4  ;;  %v1595_v37 = vrot.slane %v1568_v62, 4  ;;  %v1632_v14 = vperm.slane %v1626_v26, %v13596_v48 }
 0x326   : > { %v1576_v6 = vperm.slane %v1570_v21, %v13596_v48  ;;  %v1628_v19 = vsel %vm1445_vm1, %v11795_v7, %v1627_v27  ;;  %v14366_v18 = vpack.i.bf16 %v14341_v49, %v14324_v10 }
 0x327   : > { %v1572_v60 = vsel %vm1445_vm1, %v11794_v22, %v1571_v38  ;;  %v1636_v34 = vperm.slane %v1628_v19, %v13596_v48  ;;  %v1637_v39 = vrot.slane %v1632_v14, 4  ;;  %v1640_v47 = vsel %vm1445_vm1, %v1632_v14, %v1639_v20 }
 0x328   : > { %v1580_v36 = vperm.slane %v1572_v60, %v13596_v48  ;;  %v1648_v5 = vperm.slane %v1640_v47, %v13654_v61  ;;  %v1581_v17 = vrot.slane %v1576_v6, 4  ;;  %v1584_v53 = vsel %vm1445_vm1, %v1576_v6, %v1583_v9  ;;  %12022 = vrot.lane.b32.xlu0 %v14366_v18, %s12581_s4  ;;  %12017 = vrot.lane.b32.xlu2 %v14366_v18, %s12582_s10 }
 0x329   : > { %v1638_v7 = vsel %vm1445_vm1, %v1637_v39, %v1620_v41  ;;  %v1649_v22 = vrot.slane %v1636_v34, 4  ;;  %v1652_v30 = vsel %vm1445_vm1, %v1636_v34, %v1651_v12  ;;  %v1592_v2 = vperm.slane %v1584_v53, %v13654_v61  ;;  %12027 = vrot.lane.b32.xlu1 %v14366_v18, %s12580_s21 }
 0x32a   : > { %v1644_v16 = vperm.slane %v1638_v7, %v13654_v61  ;;  %v1660_v32 = vperm.slane %v1652_v30, %v13654_v61  ;;  %v1663_v56 = vrot.slane %v1648_v5, 4  ;;  %v1582_v54 = vsel %vm1445_vm1, %v1581_v17, %v1564_v0 }
 0x32b   : > { %v1650_v25 = vsel %vm1445_vm1, %v1649_v22, %v1624_v44  ;;  %v1588_v41 = vperm.slane %v1582_v54, %v13654_v61  ;;  %v1593_v63 = vrot.slane %v1580_v36, 4  ;;  %v1596_v52 = vsel %vm1445_vm1, %v1580_v36, %v1595_v37 }
 0x32c   : > { %v1656_v24 = vperm.slane %v1650_v25, %v13654_v61  ;;  %v1661_v31 = vrot.slane %v1644_v16, 4  ;;  %v1664_v29 = vsel %vm1445_vm1, 0.0, %v1663_v56  ;;  %v1667_v20 = vrot.slane %v1660_v32, 4  ;;  %v14402_v25 = vpop.permute.xlu2 %11822 }
 0x32d   : > { %v2503_v9 = vsel %vm1445_vm1, %v1663_v56, %v1644_v16  ;;  %v2508_v26 = vrot.slane %v1664_v29, 4  ;;  %v1594_v0 = vsel %vm1445_vm1, %v1593_v63, %v1568_v62  ;;  %v1604_v27 = vperm.slane %v1596_v52, %v13654_v61 }
 0x32e   : > { %v1662_v44 = vsel %vm1445_vm1, 0.0, %v1661_v31  ;;  %v1665_v21 = vrot.slane %v1656_v24, 4  ;;  %v1668_v38 = vsel %vm1445_vm1, 0.0, %v1667_v20  ;;  %v2507_v12 = vperm.slane %v2503_v9, %v13596_v48 }
 0x32f   : > { %v2509_v37 = vsel %vm1445_vm1, %v2508_v26, %v1662_v44  ;;  %v2514_v14 = vsel %vm1445_vm1, %v1667_v20, %v1656_v24  ;;  %v2519_v6 = vrot.slane %v1668_v38, 4  ;;  %v1600_v19 = vperm.slane %v1594_v0, %v13654_v61 }
 0x330   : > { %v1666_v60 = vsel %vm1445_vm1, 0.0, %v1665_v21  ;;  %v2513_v62 = vperm.slane %v2509_v37, %v13596_v48  ;;  %v2518_v34 = vperm.slane %v2514_v14, %v13596_v48  ;;  %v2527_v39 = vrot.slane %v2507_v12, 4  ;;  %v1263_v14 = vpop.f32.mrf.mxu3 }
 0x331   : > { %v2520_v47 = vsel %vm1445_vm1, %v2519_v6, %v1666_v60  ;;  %v1605_v36 = vrot.slane %v1588_v41, 4  ;;  %v1607_v5 = vrot.slane %v1592_v2, 4  ;;  %v1609_v17 = vrot.slane %v1600_v19, 4 }
 0x332   : > { %v2524_v53 = vperm.slane %v2520_v47, %v13596_v48  ;;  %v2525_v7 = vrot.slane %v2513_v62, 4  ;;  %v2528_v22 = vsel %vm1445_vm1, %v2513_v62, %v2527_v39  ;;  %v2539_v30 = vrot.slane %v2518_v34, 4 }
 0x333   : > { %v2536_v16 = vperm.slane %v2528_v22, %v13654_v61  ;;  %v1606_v32 = vsel %vm1445_vm1, 0.0, %v1605_v36  ;;  %v1608_v56 = vsel %vm1445_vm1, 0.0, %v1607_v5  ;;  %v1610_v54 = vsel %vm1445_vm1, 0.0, %v1609_v17 }
 0x334   : > { %v2526_v63 = vsel %vm1445_vm1, %v2525_v7, %v2507_v12  ;;  %v2537_v2 = vrot.slane %v2524_v53, 4  ;;  %v2540_v52 = vsel %vm1445_vm1, %v2524_v53, %v2539_v30  ;;  %v1611_v24 = vrot.slane %v1604_v27, 4 }
 0x335   : > { %v2532_v31 = vperm.slane %v2526_v63, %v13654_v61  ;;  %v2548_v29 = vperm.slane %v2540_v52, %v13654_v61  ;;  %v2555_v20 = vrot.slane %v2536_v16, 4  ;;  %v2449_v9 = vsel %vm1445_vm1, %v1607_v5, %v1588_v41  ;;  %v11803_v5 = vpop.permute.xlu1 %11802 }
 0x336   : > { %v2538_v26 = vsel %vm1445_vm1, %v2537_v2, %v2518_v34  ;;  %v1612_v0 = vsel %vm1445_vm1, 0.0, %v1611_v24  ;;  %v2453_v44 = vperm.slane %v2449_v9, %v13596_v48  ;;  %v2454_v21 = vrot.slane %v1608_v56, 4 }
 0x337   : > { %v2544_v38 = vperm.slane %v2538_v26, %v13654_v61  ;;  %v2551_v12 = vrot.slane %v2532_v31, 4  ;;  %v2553_v37 = vrot.slane %v2548_v29, 4  ;;  %v2556_v27 = vsel %vm1445_vm1, %v2548_v29, %v2555_v20 }
 0x338   : > { %v3256_v6 = vpack.c.bf16 %v2556_v27, %v2556_v27  ;;  %v2455_v60 = vsel %vm1445_vm1, %v2454_v21, %v1606_v32  ;;  %v2460_v62 = vsel %vm1445_vm1, %v1611_v24, %v1600_v19  ;;  %v2465_v41 = vrot.slane %v1612_v0, 4 }
 0x339   : > { %v2549_v39 = vrot.slane %v2544_v38, 4  ;;  %v2552_v34 = vsel %vm1445_vm1, %v2544_v38, %v2551_v12  ;;  %v2554_v47 = vsel %vm1445_vm1, %v2553_v37, %v2536_v16  ;;  %v2459_v36 = vperm.slane %v2455_v60, %v13596_v48 }
 0x33a   : > { %v3224_v17 = vpack.c.bf16 %v2552_v34, %v2552_v34  ;;  %v3240_v53 = vpack.c.bf16 %v2554_v47, %v2554_v47  ;;  %3321 = vst.msk [vmem:[#allocation2 + $0xcc] sm:$0xf] %vm3269_vm2, %v3256_v6  ;;  %v2464_v7 = vperm.slane %v2460_v62, %v13596_v48  ;;  %v2466_v22 = vsel %vm1445_vm1, %v2465_v41, %v1610_v54 }
 0x33b   : > { %v2550_v30 = vsel %vm1445_vm1, %v2549_v39, %v2532_v31  ;;  %v2470_v19 = vperm.slane %v2466_v22, %v13596_v48  ;;  %v2471_v32 = vrot.slane %v2459_v36, 4  ;;  %v2473_v56 = vrot.slane %v2453_v44, 4  ;;  %v14429_v31 = vpop.permute.xlu2 %11827 }
 0x33c   : > { %v3208_v63 = vpack.c.bf16 %v2550_v30, %v2550_v30  ;;  %3289 = vst.msk [vmem:[#allocation2 + $0x4c] sm:$0xf] %vm3269_vm2, %v3224_v17  ;;  %v2485_v16 = vrot.slane %v2464_v7, 4  ;;  %v11805_v2 = vunpack.i.h.bf16 %v11803_v5  ;;  %v11804_v52 = vunpack.i.l.bf16 %v11803_v5 }
 0x33d   : > { %v11810_v24 = vunpack.i.h.bf16 %v14371_v46  ;;  %3305 = vst.msk [vmem:[#allocation2 + $0x8c] sm:$0xf] %vm3269_vm2, %v3240_v53  ;;  %v2472_v29 = vsel %vm1445_vm1, %v2471_v32, %v2453_v44  ;;  %v2474_v54 = vsel %vm1445_vm1, %v2459_v36, %v2473_v56  ;;  %v2483_v20 = vrot.slane %v2470_v19, 4  ;;  %v1265_v36 = vpop.f32.mrf.mxu3  ;;  %v11798_v56 = vpop.permute.xlu0 %11797 }
 0x33e   : > { %3273 = vst.msk [vmem:[#allocation2 + $0xc] sm:$0xf] %vm3269_vm2, %v3208_v63  ;;  %v2478_v9 = vperm.slane %v2472_v29, %v13654_v61  ;;  %v2482_v26 = vperm.slane %v2474_v54, %v13654_v61  ;;  %v2486_v0 = vsel %vm1445_vm1, %v2470_v19, %v2485_v16  ;;  %v5710_v21 = vrot.slane %v11805_v2, 4 }
 0x33f   : > { %v11809_v38 = vunpack.i.l.bf16 %v14371_v46  ;;  %v2484_v12 = vsel %vm1445_vm1, %v2483_v20, %v2464_v7  ;;  %v2494_v44 = vperm.slane %v2486_v0, %v13654_v61  ;;  %v5654_v37 = vrot.slane %v11804_v52, 4 }
 0x340   : > { %v11825_v27 = vunpack.i.h.bf16 %v14402_v25  ;;  %v2490_v6 = vperm.slane %v2484_v12, %v13654_v61  ;;  %v2497_v60 = vrot.slane %v2478_v9, 4  ;;  %v2501_v62 = vrot.slane %v2482_v26, 4 }
 0x341   : > { %v11824_v41 = vunpack.i.l.bf16 %v14402_v25  ;;  %v2499_v39 = vrot.slane %v2494_v44, 4  ;;  %v5712_v34 = vrot.slane %v13496_v55, 4  ;;  %v5711_v47 = vsel %vm1445_vm1, %v5710_v21, %v13496_v55 }
 0x342   : > { %v2495_v5 = vrot.slane %v2490_v6, 4  ;;  %v2498_v17 = vsel %vm1445_vm1, %v2490_v6, %v2497_v60  ;;  %v2502_v53 = vsel %vm1445_vm1, %v2494_v44, %v2501_v62  ;;  %v5656_v7 = vrot.slane %v13499_v28, 4 }
 0x343   : > { %v2500_v22 = vsel %vm1445_vm1, %v2499_v39, %v2482_v26  ;;  %v3223_v30 = vpack.c.bf16 %v2498_v17, %v2498_v17  ;;  %v5713_v19 = vsel %vm1445_vm1, %v11805_v2, %v5712_v34  ;;  %v5655_v32 = vsel %vm1445_vm1, %v5654_v37, %v13499_v28  ;;  %v14480_v60 = vpop.permute.xlu2 %11862 }
 0x344   : > { %v2496_v63 = vsel %vm1445_vm1, %v2495_v5, %v2478_v9  ;;  %v3239_v55 = vpack.c.bf16 %v2500_v22, %v2500_v22  ;;  %v3255_v16 = vpack.c.bf16 %v2502_v53, %v2502_v53  ;;  %v5717_v29 = vperm.slane %v5711_v47, %v13596_v48 }
 0x345   : > { %v14454_v54 = vadd.f32 %v1263_v14, %v13439_v3  ;;  %v14457_v20 = vadd.f32 %v1265_v36, %v13439_v3  ;;  %v5722_v26 = vrot.slane %v11810_v24, 4  ;;  %v3207_v2 = vpack.c.bf16 %v2496_v63, %v2496_v63  ;;  %3288 = vst.msk [vmem:[#allocation2 + $0x48] sm:$0xf] %vm3269_vm2, %v3223_v30 }
 0x346   : > { %3304 = vst.msk [vmem:[#allocation2 + $0x88] sm:$0xf] %vm3269_vm2, %v3239_v55  ;;  %v5721_v28 = vperm.slane %v5713_v19, %v13596_v48  ;;  %v5657_v9 = vsel %vm1445_vm1, %v11804_v52, %v5656_v7  ;;  %v5661_v0 = vperm.slane %v5655_v32, %v13596_v48  ;;  %v11800_v21 = vunpack.i.h.bf16 %v11798_v56 }
 0x347   : > { %v5666_v14 = vrot.slane %v11809_v38, 4  ;;  %v14470_v3 = vrot.slane %v11825_v27, 4  ;;  %3272 = vst.msk [vmem:[#allocation2 + $0x8] sm:$0xf] %vm3269_vm2, %v3207_v2  ;;  %v11799_v12 = vunpack.i.l.bf16 %v11798_v56  ;;  %v14475_v44 = vrot.slane %v11824_v41, 4 }
 0x348   : > { %v11830_v37 = vunpack.i.h.bf16 %v14429_v31  ;;  %v11829_v52 = vunpack.i.l.bf16 %v14429_v31  ;;  %3320 = vst.msk [vmem:[#allocation2 + $0xc8] sm:$0xf] %vm3269_vm2, %v3255_v16  ;;  %v5736_v6 = vrot.slane %v5717_v29, 4  ;;  %v5665_v62 = vperm.slane %v5657_v9, %v13596_v48 }
 0x349   : > { %v5723_v39 = vsel %vm1445_vm1, %v5722_v26, %v11800_v21  ;;  %v5724_v34 = vrot.slane %v11800_v21, 4  ;;  %v5667_v47 = vsel %vm1445_vm1, %v5666_v14, %v11799_v12  ;;  %v5748_v36 = vrot.slane %v5721_v28, 4 }
 0x34a   : > { %v5680_v5 = vrot.slane %v5661_v0, 4  ;;  %v5729_v17 = vperm.slane %v5723_v39, %v13596_v48  ;;  %v5668_v53 = vrot.slane %v11799_v12, 4  ;;  %v4224_v7 = vrot.slane %v13533_v13, 4 }
 0x34b   : > { %v11865_v22 = vunpack.i.h.bf16 %v14480_v60  ;;  %v5725_v30 = vsel %vm1445_vm1, %v11810_v24, %v5724_v34  ;;  %v5673_v19 = vperm.slane %v5667_v47, %v13596_v48  ;;  %v5692_v16 = vrot.slane %v5665_v62, 4 }
 0x34c   : > { %v5733_v32 = vperm.slane %v5725_v30, %v13596_v48  ;;  %v5734_v56 = vrot.slane %v5729_v17, 4  ;;  %v5737_v63 = vsel %vm1445_vm1, %v5729_v17, %v5736_v6  ;;  %v5669_v55 = vsel %vm1445_vm1, %v11809_v38, %v5668_v53 }
 0x34d   : > { %v5745_v26 = vperm.slane %v5737_v63, %v13654_v61  ;;  %v5677_v2 = vperm.slane %v5669_v55, %v13596_v48  ;;  %v5678_v9 = vrot.slane %v5673_v19, 4  ;;  %v5681_v12 = vsel %vm1445_vm1, %v5673_v19, %v5680_v5 }
 0x34e   : > { %v5735_v21 = vsel %vm1445_vm1, %v5734_v56, %v5717_v29  ;;  %v5746_v24 = vrot.slane %v5733_v32, 4  ;;  %v5749_v14 = vsel %vm1445_vm1, %v5733_v32, %v5748_v36  ;;  %v5689_v17 = vperm.slane %v5681_v12, %v13654_v61 }
 0x34f   : > { %v5741_v39 = vperm.slane %v5735_v21, %v13654_v61  ;;  %v5757_v6 = vperm.slane %v5749_v14, %v13654_v61  ;;  %v5760_v46 = vrot.slane %v5745_v26, 4  ;;  %v5679_v38 = vsel %vm1445_vm1, %v5678_v9, %v5661_v0 }
 0x350   : > { %v5747_v34 = vsel %vm1445_vm1, %v5746_v24, %v5721_v28  ;;  %v5685_v47 = vperm.slane %v5679_v38, %v13654_v61  ;;  %v5690_v53 = vrot.slane %v5677_v2, 4  ;;  %v5693_v0 = vsel %vm1445_vm1, %v5677_v2, %v5692_v16 }
 0x351   : > { %v5753_v29 = vperm.slane %v5747_v34, %v13654_v61  ;;  %v5758_v30 = vrot.slane %v5741_v39, 4  ;;  %v5761_v36 = vsel %vm1445_vm1, 0.0, %v5760_v46  ;;  %v5764_v5 = vrot.slane %v5757_v6, 4 }
 0x352   : > { %v6600_v19 = vsel %vm1445_vm1, %v5760_v46, %v5741_v39  ;;  %v6605_v32 = vrot.slane %v5761_v36, 4  ;;  %v5691_v56 = vsel %vm1445_vm1, %v5690_v53, %v5665_v62  ;;  %v5701_v6 = vperm.slane %v5693_v0, %v13654_v61 }
 0x353   : > { %v5759_v28 = vsel %vm1445_vm1, 0.0, %v5758_v30  ;;  %v5762_v63 = vrot.slane %v5753_v29, 4  ;;  %v5765_v55 = vsel %vm1445_vm1, 0.0, %v5764_v5  ;;  %v6604_v26 = vperm.slane %v6600_v19, %v13596_v48 }
 0x354   : > { %v6606_v9 = vsel %vm1445_vm1, %v6605_v32, %v5759_v28  ;;  %v6611_v21 = vsel %vm1445_vm1, %v5764_v5, %v5753_v29  ;;  %v6616_v24 = vrot.slane %v5765_v55, 4  ;;  %v5697_v14 = vperm.slane %v5691_v56, %v13654_v61 }
 0x355   : > { %v5763_v12 = vsel %vm1445_vm1, 0.0, %v5762_v63  ;;  %v6610_v62 = vperm.slane %v6606_v9, %v13596_v48  ;;  %v6615_v16 = vperm.slane %v6611_v21, %v13596_v48  ;;  %v6624_v2 = vrot.slane %v6604_v26, 4 }
 0x356   : > { %v6617_v39 = vsel %vm1445_vm1, %v6616_v24, %v5763_v12  ;;  %v5702_v46 = vrot.slane %v5685_v47, 4  ;;  %v5704_v38 = vrot.slane %v5689_v17, 4  ;;  %v5706_v32 = vrot.slane %v5697_v14, 4 }
 0x357   : > { %v6621_v34 = vperm.slane %v6617_v39, %v13596_v48  ;;  %v6622_v53 = vrot.slane %v6610_v62, 4  ;;  %v6625_v29 = vsel %vm1445_vm1, %v6610_v62, %v6624_v2  ;;  %v6636_v30 = vrot.slane %v6615_v16, 4 }
 0x358   : > { %v6633_v36 = vperm.slane %v6625_v29, %v13654_v61  ;;  %v5703_v5 = vsel %vm1445_vm1, 0.0, %v5702_v46  ;;  %v5705_v19 = vsel %vm1445_vm1, 0.0, %v5704_v38  ;;  %v5708_v63 = vrot.slane %v5701_v6, 4 }
 0x359   : > { %v6623_v56 = vsel %vm1445_vm1, %v6622_v53, %v6604_v26  ;;  %v6634_v28 = vrot.slane %v6621_v34, 4  ;;  %v6637_v0 = vsel %vm1445_vm1, %v6621_v34, %v6636_v30  ;;  %v5707_v21 = vsel %vm1445_vm1, 0.0, %v5706_v32 }
 0x35a   : > { %v6629_v17 = vperm.slane %v6623_v56, %v13654_v61  ;;  %v6645_v55 = vperm.slane %v6637_v0, %v13654_v61  ;;  %v6652_v9 = vrot.slane %v6633_v36, 4  ;;  %v5709_v12 = vsel %vm1445_vm1, 0.0, %v5708_v63 }
 0x35b   : > { %v6635_v24 = vsel %vm1445_vm1, %v6634_v28, %v6615_v16  ;;  %v6546_v62 = vsel %vm1445_vm1, %v5704_v38, %v5685_v47  ;;  %v6551_v2 = vrot.slane %v5705_v19, 4  ;;  %v6557_v30 = vsel %vm1445_vm1, %v5708_v63, %v5697_v14 }
 0x35c   : > { %v6641_v26 = vperm.slane %v6635_v24, %v13654_v61  ;;  %v6648_v39 = vrot.slane %v6629_v17, 4  ;;  %v6650_v46 = vrot.slane %v6645_v55, 4  ;;  %v6653_v6 = vsel %vm1445_vm1, %v6645_v55, %v6652_v9 }
 0x35d   : > { %v7353_v34 = vpack.c.bf16 %v6653_v6, %v6653_v6  ;;  %v6550_v53 = vperm.slane %v6546_v62, %v13596_v48  ;;  %v6552_v29 = vsel %vm1445_vm1, %v6551_v2, %v5703_v5  ;;  %v6561_v28 = vperm.slane %v6557_v30, %v13596_v48  ;;  %v11818_v62 = vpop.permute.xlu1 %11817 }
 0x35e   : > { %v6646_v32 = vrot.slane %v6641_v26, 4  ;;  %v6649_v16 = vsel %vm1445_vm1, %v6641_v26, %v6648_v39  ;;  %v6651_v56 = vsel %vm1445_vm1, %v6650_v46, %v6633_v36  ;;  %v6556_v47 = vperm.slane %v6552_v29, %v13596_v48 }
 0x35f   : > { %v7321_v38 = vpack.c.bf16 %v6649_v16, %v6649_v16  ;;  %v7337_v19 = vpack.c.bf16 %v6651_v56, %v6651_v56  ;;  %7417 = vst.msk [vmem:[#allocation4 + $0xcc] sm:$0xf] %vm3269_vm2, %v7353_v34  ;;  %v6562_v0 = vrot.slane %v5709_v12, 4  ;;  %v6570_v5 = vrot.slane %v6550_v53, 4 }
 0x360   : > { %v6647_v55 = vsel %vm1445_vm1, %v6646_v32, %v6629_v17  ;;  %v6568_v9 = vrot.slane %v6556_v47, 4  ;;  %v6582_v63 = vrot.slane %v6561_v28, 4  ;;  %v14554_v36 = vpack.i.bf16 %v14457_v20, %v14454_v54 }
 0x361   : > { %v7305_v24 = vpack.c.bf16 %v6647_v55, %v6647_v55  ;;  %7385 = vst.msk [vmem:[#allocation4 + $0x4c] sm:$0xf] %vm3269_vm2, %v7321_v38  ;;  %v6563_v14 = vsel %vm1445_vm1, %v6562_v0, %v5707_v21  ;;  %v4168_v2 = vrot.slane %v13538_v50, 4  ;;  %v6571_v26 = vsel %vm1445_vm1, %v6556_v47, %v6570_v5 }
 0x362   : > { %7401 = vst.msk [vmem:[#allocation4 + $0x8c] sm:$0xf] %vm3269_vm2, %v7337_v19  ;;  %v6567_v12 = vperm.slane %v6563_v14, %v13596_v48  ;;  %v6569_v17 = vsel %vm1445_vm1, %v6568_v9, %v6550_v53  ;;  %v4222_v21 = vrot.slane %v11865_v22, 4  ;;  %v4225_v39 = vsel %vm1445_vm1, %v11865_v22, %v4224_v7  ;;  %12037 = vrot.lane.b32.xlu0 %v14554_v36, %s12582_s10 }
 0x363   : > { %7369 = vst.msk [vmem:[#allocation4 + $0xc] sm:$0xf] %vm3269_vm2, %v7305_v24  ;;  %v6575_v46 = vperm.slane %v6569_v17, %v13654_v61  ;;  %v6579_v6 = vperm.slane %v6571_v26, %v13654_v61  ;;  %v2287_v53 = vrot.slane %v13508_v35, 4  ;;  %v11820_v29 = vunpack.i.h.bf16 %v11818_v62  ;;  %v11813_v17 = vpop.permute.xlu0 %11812  ;;  %12047 = vrot.lane.b32.xlu1 %v14554_v36, %s12581_s4 }
 0x364   : > { %v6580_v34 = vrot.slane %v6567_v12, 4  ;;  %v6583_v18 = vsel %vm1445_vm1, %v6567_v12, %v6582_v63  ;;  %v11864_v30 = vunpack.i.l.bf16 %v14480_v60  ;;  %v11819_v38 = vunpack.i.l.bf16 %v11818_v62 }
 0x365   : > { %v6591_v32 = vperm.slane %v6583_v18, %v13654_v61  ;;  %v6594_v7 = vrot.slane %v6575_v46, 4  ;;  %v6598_v22 = vrot.slane %v6579_v6, 4  ;;  %v2285_v56 = vrot.slane %v11820_v29, 4 }
 0x366   : > { %v6581_v16 = vsel %vm1445_vm1, %v6580_v34, %v6561_v28  ;;  %v2288_v47 = vsel %vm1445_vm1, %v11820_v29, %v2287_v53  ;;  %v2229_v24 = vrot.slane %v11819_v38, 4  ;;  %v2231_v14 = vrot.slane %v13510_v23, 4 }
 0x367   : > { %v6587_v19 = vperm.slane %v6581_v16, %v13654_v61  ;;  %v6596_v0 = vrot.slane %v6591_v32, 4  ;;  %v6599_v55 = vsel %vm1445_vm1, %v6591_v32, %v6598_v22  ;;  %v2296_v9 = vperm.slane %v2288_v47, %v13596_v48 }
 0x368   : > { %v7352_v5 = vpack.c.bf16 %v6599_v55, %v6599_v55  ;;  %v2286_v60 = vsel %vm1445_vm1, %v2285_v56, %v13508_v35  ;;  %v4223_v26 = vsel %vm1445_vm1, %v4222_v21, %v13533_v13  ;;  %v2230_v35 = vsel %vm1445_vm1, %v2229_v24, %v13510_v23 }
 0x369   : > { %v6592_v63 = vrot.slane %v6587_v19, 4  ;;  %v6595_v28 = vsel %vm1445_vm1, %v6587_v19, %v6594_v7  ;;  %v6597_v12 = vsel %vm1445_vm1, %v6596_v0, %v6579_v6  ;;  %v2292_v62 = vperm.slane %v2286_v60, %v13596_v48 }
 0x36a   : > { %v7320_v34 = vpack.c.bf16 %v6595_v28, %v6595_v28  ;;  %v7336_v18 = vpack.c.bf16 %v6597_v12, %v6597_v12  ;;  %7416 = vst.msk [vmem:[#allocation4 + $0xc8] sm:$0xf] %vm3269_vm2, %v7352_v5  ;;  %v14596_v53 = vperm.slane %v4225_v39, %v13596_v48  ;;  %v2232_v6 = vsel %vm1445_vm1, %v11819_v38, %v2231_v14 }
 0x36b   : > { %v6593_v29 = vsel %vm1445_vm1, %v6592_v63, %v6575_v46  ;;  %v2236_v32 = vperm.slane %v2230_v35, %v13596_v48  ;;  %v2240_v13 = vperm.slane %v2232_v6, %v13596_v48  ;;  %v11815_v21 = vunpack.i.h.bf16 %v11813_v17 }
 0x36c   : > { %v7304_v7 = vpack.c.bf16 %v6593_v29, %v6593_v29  ;;  %7384 = vst.msk [vmem:[#allocation4 + $0x48] sm:$0xf] %vm3269_vm2, %v7320_v34  ;;  %v11814_v22 = vunpack.i.l.bf16 %v11813_v17  ;;  %v14604_v16 = vperm.slane %v4223_v26, %v13596_v48  ;;  %v14606_v23 = vrot.slane %v11864_v30, 4 }
 0x36d   : > { %7400 = vst.msk [vmem:[#allocation4 + $0x88] sm:$0xf] %vm3269_vm2, %v7336_v18  ;;  %v2311_v39 = vrot.slane %v2292_v62, 4  ;;  %v2323_v46 = vrot.slane %v2296_v9, 4  ;;  %v2255_v56 = vrot.slane %v2236_v32, 4  ;;  %v2298_v47 = vsel %vm1445_vm1, %v14470_v3, %v11815_v21 }
 0x36e   : > { %7368 = vst.msk [vmem:[#allocation4 + $0x8] sm:$0xf] %vm3269_vm2, %v7304_v7  ;;  %v2299_v38 = vrot.slane %v11815_v21, 4  ;;  %v2242_v19 = vsel %vm1445_vm1, %v14475_v44, %v11814_v22  ;;  %v2304_v0 = vperm.slane %v2298_v47, %v13596_v48  ;;  %v2243_v55 = vrot.slane %v11814_v22, 4 }
 0x36f   : > { %v2248_v5 = vperm.slane %v2242_v19, %v13596_v48  ;;  %v14618_v60 = vpack.i.bf16 %v14344_v8, %v14331_v1  ;;  %v14623_v24 = vsel %vm1445_vm1, %v11864_v30, %v4168_v2  ;;  %v2267_v14 = vrot.slane %v2240_v13, 4 }
 0x370   : > { %v2300_v3 = vsel %vm1445_vm1, %v11825_v27, %v2299_v38  ;;  %v2309_v63 = vrot.slane %v2304_v0, 4  ;;  %v2312_v28 = vsel %vm1445_vm1, %v2304_v0, %v2311_v39  ;;  %v2244_v12 = vsel %vm1445_vm1, %v11824_v41, %v2243_v55 }
 0x371   : > { %v2308_v44 = vperm.slane %v2300_v3, %v13596_v48  ;;  %12032 = vrot.lane.b32.xlu2 %v14618_v60, %s12582_s10  ;;  %v2320_v2 = vperm.slane %v2312_v28, %v13654_v61  ;;  %v2252_v30 = vperm.slane %v2244_v12, %v13596_v48  ;;  %v2253_v17 = vrot.slane %v2248_v5, 4  ;;  %12042 = vrot.lane.b32.xlu0 %v14618_v60, %s12581_s4 }
 0x372   : > { %v2256_v26 = vsel %vm1445_vm1, %v2248_v5, %v2255_v56  ;;  %v2310_v27 = vsel %vm1445_vm1, %v2309_v63, %v2292_v62  ;;  %12052 = vrot.lane.b32.xlu1 %v14618_v60, %s12580_s21 }
 0x373   : > { %v2321_v34 = vrot.slane %v2308_v44, 4  ;;  %v2324_v25 = vsel %vm1445_vm1, %v2308_v44, %v2323_v46  ;;  %v2264_v41 = vperm.slane %v2256_v26, %v13654_v61  ;;  %v2316_v18 = vperm.slane %v2310_v27, %v13654_v61 }
 0x374   : > { %v2332_v35 = vperm.slane %v2324_v25, %v13654_v61  ;;  %v2335_v29 = vrot.slane %v2320_v2, 4  ;;  %v2254_v6 = vsel %vm1445_vm1, %v2253_v17, %v2236_v32  ;;  %v2265_v22 = vrot.slane %v2252_v30, 4 }
 0x375   : > { %v2322_v7 = vsel %vm1445_vm1, %v2321_v34, %v2296_v9  ;;  %v2260_v21 = vperm.slane %v2254_v6, %v13654_v61  ;;  %v2268_v39 = vsel %vm1445_vm1, %v2252_v30, %v2267_v14  ;;  %v2333_v56 = vrot.slane %v2316_v18, 4 }
 0x376   : > { %v2328_v62 = vperm.slane %v2322_v7, %v13654_v61  ;;  %v2336_v46 = vsel %vm1445_vm1, 0.0, %v2335_v29  ;;  %v2339_v47 = vrot.slane %v2332_v35, 4  ;;  %v3151_v38 = vsel %vm1445_vm1, %v2335_v29, %v2316_v18 }
 0x377   : > { %v3156_v19 = vrot.slane %v2336_v46, 4  ;;  %v2266_v0 = vsel %vm1445_vm1, %v2265_v22, %v2240_v13  ;;  %v2276_v32 = vperm.slane %v2268_v39, %v13654_v61  ;;  %v2334_v9 = vsel %vm1445_vm1, 0.0, %v2333_v56 }
 0x378   : > { %v2337_v55 = vrot.slane %v2328_v62, 4  ;;  %v2340_v5 = vsel %vm1445_vm1, 0.0, %v2339_v47  ;;  %v3155_v14 = vperm.slane %v3151_v38, %v13596_v48  ;;  %v3162_v44 = vsel %vm1445_vm1, %v2339_v47, %v2328_v62  ;;  %v14670_v62 = vpop.permute.xlu2 %11872 }
 0x379   : > { %v3157_v3 = vsel %vm1445_vm1, %v3156_v19, %v2334_v9  ;;  %v3167_v63 = vrot.slane %v2340_v5, 4  ;;  %v2272_v28 = vperm.slane %v2266_v0, %v13654_v61  ;;  %v3166_v2 = vperm.slane %v3162_v44, %v13596_v48  ;;  %12062 = vrot.lane.b32.xlu2 %v14554_v36, %s12580_s21  ;;  %12057 = vrot.lane.b32.xlu0 %v14143_v59, %s12580_s21 }
 0x37a   : > { %v2338_v12 = vsel %vm1445_vm1, 0.0, %v2337_v55  ;;  %v3161_v13 = vperm.slane %v3157_v3, %v13596_v48  ;;  %v3175_v30 = vrot.slane %v3155_v14, 4  ;;  %v2277_v26 = vrot.slane %v2260_v21, 4 }
 0x37b   : > { %v3168_v17 = vsel %vm1445_vm1, %v3167_v63, %v2338_v12  ;;  %v2279_v27 = vrot.slane %v2264_v41, 4  ;;  %v2281_v34 = vrot.slane %v2272_v28, 4  ;;  %v3187_v29 = vrot.slane %v3166_v2, 4 }
 0x37c   : > { %v3172_v25 = vperm.slane %v3168_v17, %v13596_v48  ;;  %v3173_v18 = vrot.slane %v3161_v13, 4  ;;  %v3176_v35 = vsel %vm1445_vm1, %v3161_v13, %v3175_v30  ;;  %v2278_v7 = vsel %vm1445_vm1, 0.0, %v2277_v26 }
 0x37d   : > { %v3184_v6 = vperm.slane %v3176_v35, %v13654_v61  ;;  %v2280_v22 = vsel %vm1445_vm1, 0.0, %v2279_v27  ;;  %v2282_v39 = vsel %vm1445_vm1, 0.0, %v2281_v34  ;;  %v2283_v47 = vrot.slane %v2276_v32, 4 }
 0x37e   : > { %v3174_v56 = vsel %vm1445_vm1, %v3173_v18, %v3155_v14  ;;  %v3185_v41 = vrot.slane %v3172_v25, 4  ;;  %v3188_v46 = vsel %vm1445_vm1, %v3172_v25, %v3187_v29  ;;  %v3097_v9 = vsel %vm1445_vm1, %v2279_v27, %v2260_v21 }
 0x37f   : > { %v3180_v38 = vperm.slane %v3174_v56, %v13654_v61  ;;  %v3196_v19 = vperm.slane %v3188_v46, %v13654_v61  ;;  %v3203_v0 = vrot.slane %v3184_v6, 4  ;;  %v2284_v5 = vsel %vm1445_vm1, 0.0, %v2283_v47 }
 0x380   : > { %v3186_v55 = vsel %vm1445_vm1, %v3185_v41, %v3166_v2  ;;  %v3101_v3 = vperm.slane %v3097_v9, %v13596_v48  ;;  %v3102_v44 = vrot.slane %v2280_v22, 4  ;;  %v3108_v17 = vsel %vm1445_vm1, %v2283_v47, %v2272_v28 }
 0x381   : > { %v3192_v14 = vperm.slane %v3186_v55, %v13654_v61  ;;  %v3199_v63 = vrot.slane %v3180_v38, 4  ;;  %v3201_v12 = vrot.slane %v3196_v19, 4  ;;  %v3204_v32 = vsel %vm1445_vm1, %v3196_v19, %v3203_v0 }
 0x382   : > { %v3268_v13 = vpack.c.bf16 %v3204_v32, %v3204_v32  ;;  %v3103_v30 = vsel %vm1445_vm1, %v3102_v44, %v2278_v7  ;;  %v3113_v26 = vrot.slane %v2284_v5, 4  ;;  %v3112_v35 = vperm.slane %v3108_v17, %v13596_v48 }
 0x383   : > { %v3197_v21 = vrot.slane %v3192_v14, 4  ;;  %v3200_v2 = vsel %vm1445_vm1, %v3192_v14, %v3199_v63  ;;  %v3202_v27 = vsel %vm1445_vm1, %v3201_v12, %v3184_v6  ;;  %v3107_v34 = vperm.slane %v3103_v30, %v13596_v48 }
 0x384   : > { %v3236_v25 = vpack.c.bf16 %v3200_v2, %v3200_v2  ;;  %v3252_v18 = vpack.c.bf16 %v3202_v27, %v3202_v27  ;;  %3333 = vst.msk [vmem:[#allocation2 + $0xfc] sm:$0xf] %vm3269_vm2, %v3268_v13  ;;  %v3114_v29 = vsel %vm1445_vm1, %v3113_v26, %v2282_v39  ;;  %v3121_v56 = vrot.slane %v3101_v3, 4 }
 0x385   : > { %v3198_v7 = vsel %vm1445_vm1, %v3197_v21, %v3180_v38  ;;  %v3118_v28 = vperm.slane %v3114_v29, %v13596_v48  ;;  %v3119_v22 = vrot.slane %v3107_v34, 4  ;;  %v14694_v41 = vperm.slane %v14623_v24, %v13596_v48 }
 0x386   : > { %v3220_v6 = vpack.c.bf16 %v3198_v7, %v3198_v7  ;;  %3301 = vst.msk [vmem:[#allocation2 + $0x7c] sm:$0xf] %vm3269_vm2, %v3236_v25  ;;  %v3133_v46 = vrot.slane %v3112_v35, 4  ;;  %v4167_v47 = vsel %vm1445_vm1, %v14606_v23, %v13538_v50  ;;  %v3122_v38 = vsel %vm1445_vm1, %v3107_v34, %v3121_v56  ;;  %v14711_v50 = vpop.permute.xlu2 %11892  ;;  %v11838_v25 = vpop.permute.xlu1 %11837 }
 0x387   : > { %3317 = vst.msk [vmem:[#allocation2 + $0xbc] sm:$0xf] %vm3269_vm2, %v3252_v18  ;;  %v3120_v39 = vsel %vm1445_vm1, %v3119_v22, %v3101_v3  ;;  %v3131_v19 = vrot.slane %v3118_v28, 4  ;;  %v3788_v0 = vrot.slane %v11830_v37, 4  ;;  %v3130_v9 = vperm.slane %v3122_v38, %v13654_v61 }
 0x388   : > { %3285 = vst.msk [vmem:[#allocation2 + $0x3c] sm:$0xf] %vm3269_vm2, %v3220_v6  ;;  %v3126_v24 = vperm.slane %v3120_v39, %v13654_v61  ;;  %v3134_v55 = vsel %vm1445_vm1, %v3118_v28, %v3133_v46  ;;  %v3732_v23 = vrot.slane %v11829_v52, 4  ;;  %v4248_v14 = vrot.slane %v14604_v16, 4  ;;  %v11833_v28 = vpop.permute.xlu0 %11832 }
 0x389   : > { %v3132_v3 = vsel %vm1445_vm1, %v3131_v19, %v3112_v35  ;;  %v3142_v44 = vperm.slane %v3134_v55, %v13654_v61  ;;  %v3149_v32 = vrot.slane %v3130_v9, 4  ;;  %v14721_v13 = vperm.slane %v4167_v47, %v13596_v48 }
 0x38a   : > { %v3138_v63 = vperm.slane %v3132_v3, %v13654_v61  ;;  %v3145_v12 = vrot.slane %v3126_v24, 4  ;;  %v11895_v26 = vunpack.i.h.bf16 %v14711_v50  ;;  %v11894_v34 = vunpack.i.l.bf16 %v14711_v50 }
 0x38b   : > { %v3147_v17 = vrot.slane %v3142_v44, 4  ;;  %v3150_v27 = vsel %vm1445_vm1, %v3142_v44, %v3149_v32  ;;  %v17794_v18 = vunpack.i.h.bf16 %v14670_v62  ;;  %v3888_v7 = vrot.slane %v13563_v51, 4 }
 0x38c   : > { %v3143_v21 = vrot.slane %v3138_v63, 4  ;;  %v3146_v2 = vsel %vm1445_vm1, %v3138_v63, %v3145_v12  ;;  %v3267_v6 = vpack.c.bf16 %v3150_v27, %v3150_v27  ;;  %v3720_v46 = vrot.slane %v13521_v58, 4 }
 0x38d   : > { %v3148_v35 = vsel %vm1445_vm1, %v3147_v17, %v3130_v9  ;;  %v3235_v29 = vpack.c.bf16 %v3146_v2, %v3146_v2  ;;  %v11840_v39 = vunpack.i.h.bf16 %v11838_v25  ;;  %v11839_v38 = vunpack.i.l.bf16 %v11838_v25 }
 0x38e   : > { %v3144_v22 = vsel %vm1445_vm1, %v3143_v21, %v3126_v24  ;;  %v3251_v56 = vpack.c.bf16 %v3148_v35, %v3148_v35  ;;  %v3776_v19 = vrot.slane %v13518_v42, 4  ;;  %v14738_v9 = vrot.slane %v11895_v26, 4  ;;  %3332 = vst.msk [vmem:[#allocation2 + $0xf8] sm:$0xf] %vm3269_vm2, %v3267_v6 }
 0x38f   : > { %v3219_v47 = vpack.c.bf16 %v3144_v22, %v3144_v22  ;;  %3300 = vst.msk [vmem:[#allocation2 + $0x78] sm:$0xf] %vm3269_vm2, %v3235_v29  ;;  %v14742_v24 = vrot.slane %v11894_v34, 4  ;;  %v11835_v55 = vunpack.i.h.bf16 %v11833_v28  ;;  %v3786_v3 = vrot.slane %v11840_v39, 4 }
 0x390   : > { %3316 = vst.msk [vmem:[#allocation2 + $0xb8] sm:$0xf] %vm3269_vm2, %v3251_v56  ;;  %v3789_v44 = vsel %vm1445_vm1, %v11840_v39, %v3788_v0  ;;  %v3730_v63 = vrot.slane %v11839_v38, 4  ;;  %v11834_v12 = vunpack.i.l.bf16 %v11833_v28  ;;  %v3733_v17 = vsel %vm1445_vm1, %v11839_v38, %v3732_v23 }
 0x391   : > { %3284 = vst.msk [vmem:[#allocation2 + $0x38] sm:$0xf] %vm3269_vm2, %v3219_v47  ;;  %v3797_v32 = vperm.slane %v3789_v44, %v13596_v48  ;;  %v3774_v21 = vrot.slane %v11835_v55, 4  ;;  %v3777_v2 = vsel %vm1445_vm1, %v11835_v55, %v3776_v19  ;;  %v3787_v27 = vsel %vm1445_vm1, %v3786_v3, %v11830_v37 }
 0x392   : > { %v3731_v0 = vsel %vm1445_vm1, %v3730_v63, %v11829_v52  ;;  %v3741_v25 = vperm.slane %v3733_v17, %v13596_v48  ;;  %v3785_v35 = vperm.slane %v3777_v2, %v13596_v48  ;;  %v3793_v23 = vperm.slane %v3787_v27, %v13596_v48 }
 0x393   : > { %v3810_v29 = vrot.slane %v3797_v32, 4  ;;  %v3737_v28 = vperm.slane %v3731_v0, %v13596_v48  ;;  %v3775_v60 = vsel %vm1445_vm1, %v3774_v21, %v13518_v42  ;;  %v3718_v6 = vrot.slane %v11834_v12, 4 }
 0x394   : > { %v3754_v22 = vrot.slane %v3741_v25, 4  ;;  %v3781_v56 = vperm.slane %v3775_v60, %v13596_v48  ;;  %v3812_v37 = vrot.slane %v3785_v35, 4  ;;  %v3798_v31 = vrot.slane %v3793_v23, 4 }
 0x395   : > { %v3742_v47 = vrot.slane %v3737_v28, 4  ;;  %v3811_v52 = vsel %vm1445_vm1, %v3810_v29, %v3785_v35  ;;  %v3721_v39 = vsel %vm1445_vm1, %v11834_v12, %v3720_v46  ;;  %v3719_v3 = vsel %vm1445_vm1, %v3718_v6, %v13521_v58 }
 0x396   : > { %v3800_v38 = vrot.slane %v3781_v56, 4  ;;  %v3813_v19 = vsel %vm1445_vm1, %v3797_v32, %v3812_v37  ;;  %v3817_v55 = vperm.slane %v3811_v52, %v13654_v61  ;;  %v3799_v42 = vsel %vm1445_vm1, %v3798_v31, %v3781_v56 }
 0x397   : > { %v3821_v44 = vperm.slane %v3813_v19, %v13654_v61  ;;  %v3725_v63 = vperm.slane %v3719_v3, %v13596_v48  ;;  %v3729_v17 = vperm.slane %v3721_v39, %v13596_v48  ;;  %v3805_v46 = vperm.slane %v3799_v42, %v13654_v61 }
 0x398   : > { %v3801_v21 = vsel %vm1445_vm1, %v3793_v23, %v3800_v38  ;;  %v3826_v12 = vrot.slane %v3817_v55, 4  ;;  %v3831_v59 = vsel %vm1445_vm1, %v14742_v24, %v13567_v57 }
 0x399   : > { %v3809_v32 = vperm.slane %v3801_v21, %v13654_v61  ;;  %v3828_v2 = vrot.slane %v3821_v44, 4  ;;  %v3743_v27 = vsel %vm1445_vm1, %v3742_v47, %v3725_v63  ;;  %v3744_v0 = vrot.slane %v3725_v63, 4 }
 0x39a   : > { %v3822_v58 = vrot.slane %v3805_v46, 4  ;;  %v3827_v35 = vsel %vm1445_vm1, 0.0, %v3826_v12  ;;  %v3749_v29 = vperm.slane %v3743_v27, %v13654_v61  ;;  %v3755_v60 = vsel %vm1445_vm1, %v3754_v22, %v3729_v17 }
 0x39b   : > { %v3824_v23 = vrot.slane %v3809_v32, 4  ;;  %v3829_v56 = vsel %vm1445_vm1, 0.0, %v3828_v2  ;;  %v4671_v37 = vsel %vm1445_vm1, %v3828_v2, %v3817_v55  ;;  %v3745_v6 = vsel %vm1445_vm1, %v3737_v28, %v3744_v0 }
 0x39c   : > { %v3823_v31 = vsel %vm1445_vm1, 0.0, %v3822_v58  ;;  %v4675_v47 = vperm.slane %v4671_v37, %v13596_v48  ;;  %v4676_v52 = vrot.slane %v3829_v56, 4  ;;  %v3753_v39 = vperm.slane %v3745_v6, %v13654_v61 }
 0x39d   : > { %v3825_v38 = vsel %vm1445_vm1, 0.0, %v3824_v23  ;;  %v4660_v22 = vsel %vm1445_vm1, %v3824_v23, %v3805_v46  ;;  %v3756_v19 = vrot.slane %v3729_v17, 4  ;;  %v3761_v36 = vperm.slane %v3755_v60, %v13654_v61 }
 0x39e   : > { %v4664_v3 = vperm.slane %v4660_v22, %v13596_v48  ;;  %v4665_v42 = vrot.slane %v3825_v38, 4  ;;  %v4677_v55 = vsel %vm1445_vm1, %v4676_v52, %v3827_v35  ;;  %v4696_v28 = vrot.slane %v4675_v47, 4 }
 0x39f   : > { %v4681_v44 = vperm.slane %v4677_v55, %v13596_v48  ;;  %v3757_v63 = vsel %vm1445_vm1, %v3741_v25, %v3756_v19  ;;  %v3766_v21 = vrot.slane %v3749_v29, 4  ;;  %v3768_v12 = vrot.slane %v3753_v39, 4 }
 0x3a0   : > { %v4666_v32 = vsel %vm1445_vm1, %v4665_v42, %v3823_v31  ;;  %v4684_v2 = vrot.slane %v4664_v3, 4  ;;  %v3765_v46 = vperm.slane %v3757_v63, %v13654_v61  ;;  %v3770_v17 = vrot.slane %v3761_v36, 4 }
 0x3a1   : > { %v4670_v27 = vperm.slane %v4666_v32, %v13596_v48  ;;  %v4694_v0 = vrot.slane %v4681_v44, 4  ;;  %v4697_v58 = vsel %vm1445_vm1, %v4681_v44, %v4696_v28  ;;  %v3767_v35 = vsel %vm1445_vm1, 0.0, %v3766_v21 }
 0x3a2   : > { %v4705_v60 = vperm.slane %v4697_v58, %v13654_v61  ;;  %v3769_v23 = vsel %vm1445_vm1, 0.0, %v3768_v12  ;;  %v3771_v25 = vsel %vm1445_vm1, 0.0, %v3770_v17  ;;  %v3772_v56 = vrot.slane %v3765_v46, 4 }
 0x3a3   : > { %v4682_v37 = vrot.slane %v4670_v27, 4  ;;  %v4685_v6 = vsel %vm1445_vm1, %v4670_v27, %v4684_v2  ;;  %v4695_v31 = vsel %vm1445_vm1, %v4694_v0, %v4675_v47  ;;  %v4606_v52 = vsel %vm1445_vm1, %v3768_v12, %v3749_v29 }
 0x3a4   : > { %v4693_v39 = vperm.slane %v4685_v6, %v13654_v61  ;;  %v4701_v38 = vperm.slane %v4695_v31, %v13654_v61  ;;  %v4710_v22 = vrot.slane %v4705_v60, 4  ;;  %v3773_v19 = vsel %vm1445_vm1, 0.0, %v3772_v56 }
 0x3a5   : > { %v4683_v42 = vsel %vm1445_vm1, %v4682_v37, %v4664_v3  ;;  %v4610_v55 = vperm.slane %v4606_v52, %v13596_v48  ;;  %v4611_v28 = vrot.slane %v3769_v23, 4  ;;  %v4617_v44 = vsel %vm1445_vm1, %v3772_v56, %v3761_v36 }
 0x3a6   : > { %v4689_v63 = vperm.slane %v4683_v42, %v13654_v61  ;;  %v4706_v21 = vrot.slane %v4701_v38, 4  ;;  %v4711_v47 = vsel %vm1445_vm1, %v4710_v22, %v4693_v39  ;;  %v4712_v29 = vrot.slane %v4693_v39, 4  ;;  %v14830_v22 = vpop.permute.xlu2 %11902 }
 0x3a7   : > { %v5291_v12 = vpack.c.bf16 %v4711_v47, %v4711_v47  ;;  %v4612_v32 = vsel %vm1445_vm1, %v4611_v28, %v3767_v35  ;;  %v4621_v2 = vperm.slane %v4617_v44, %v13596_v48  ;;  %v4622_v46 = vrot.slane %v3773_v19, 4  ;;  %v14836_v28 = vpop.permute.xlu1 %11842 }
 0x3a8   : > { %v4707_v17 = vsel %vm1445_vm1, %v4706_v21, %v4689_v63  ;;  %v4708_v3 = vrot.slane %v4689_v63, 4  ;;  %v4713_v27 = vsel %vm1445_vm1, %v4705_v60, %v4712_v29  ;;  %v4616_v0 = vperm.slane %v4612_v32, %v13596_v48 }
 0x3a9   : > { %v5259_v36 = vpack.c.bf16 %v4707_v17, %v4707_v17  ;;  %v5307_v58 = vpack.c.bf16 %v4713_v27, %v4713_v27  ;;  %5355 = vst.msk [vmem:[#allocation3 + $0x94] sm:$0xf] %vm3269_vm2, %v5291_v12  ;;  %v4623_v23 = vsel %vm1445_vm1, %v4622_v46, %v3771_v25  ;;  %v4630_v56 = vrot.slane %v4610_v55, 4  ;;  %v11848_v46 = vpop.permute.xlu0 %11847 }
 0x3aa   : > { %v4709_v37 = vsel %vm1445_vm1, %v4701_v38, %v4708_v3  ;;  %v4627_v35 = vperm.slane %v4623_v23, %v13596_v48  ;;  %v4628_v6 = vrot.slane %v4616_v0, 4  ;;  %v4642_v31 = vrot.slane %v4621_v2, 4 }
 0x3ab   : > { %v3887_v52 = vsel %vm1445_vm1, %v14738_v9, %v13563_v51  ;;  %v5275_v60 = vpack.c.bf16 %v4709_v37, %v4709_v37  ;;  %5323 = vst.msk [vmem:[#allocation3 + $0x14] sm:$0xf] %vm3269_vm2, %v5259_v36  ;;  %v4631_v39 = vsel %vm1445_vm1, %v4616_v0, %v4630_v56  ;;  %v17793_v9 = vunpack.i.l.bf16 %v14670_v62 }
 0x3ac   : > { %5371 = vst.msk [vmem:[#allocation3 + $0xd4] sm:$0xf] %vm3269_vm2, %v5307_v58  ;;  %v4629_v25 = vsel %vm1445_vm1, %v4628_v6, %v4610_v55  ;;  %v4639_v38 = vperm.slane %v4631_v39, %v13654_v61  ;;  %v4640_v19 = vrot.slane %v4627_v35, 4  ;;  %v4643_v42 = vsel %vm1445_vm1, %v4627_v35, %v4642_v31  ;;  %v17887_v31 = vld [vmem:[#allocation26_spill] sm:$0xff] }
 0x3ad   : > { %v3889_v44 = vsel %vm1445_vm1, %v11895_v26, %v3888_v7  ;;  %5339 = vst.msk [vmem:[#allocation3 + $0x54] sm:$0xf] %vm3269_vm2, %v5275_v60  ;;  %v4635_v63 = vperm.slane %v4629_v25, %v13654_v61  ;;  %v4651_v55 = vperm.slane %v4643_v42, %v13654_v61  ;;  %v3832_v21 = vrot.slane %v13567_v57, 4 }
 0x3ae   : > { %v4641_v47 = vsel %vm1445_vm1, %v4640_v19, %v4621_v2  ;;  %v4658_v29 = vrot.slane %v4639_v38, 4  ;;  %v1671_v51 = vrot.slane %v13535_v11, 4  ;;  %v14853_v12 = vperm.slane %v3887_v52, %v13596_v48 }
 0x3af   : > { %v4647_v26 = vperm.slane %v4641_v47, %v13654_v61  ;;  %v4654_v7 = vrot.slane %v4635_v63, 4  ;;  %v4656_v32 = vrot.slane %v4651_v55, 4  ;;  %v14857_v17 = vperm.slane %v3889_v44, %v13596_v48  ;;  %v14890_v44 = vpop.permute.xlu2 %11907 }
 0x3b0   : > { %v3833_v2 = vsel %vm1445_vm1, %v11894_v34, %v3832_v21  ;;  %v4659_v3 = vsel %vm1445_vm1, %v4651_v55, %v4658_v29  ;;  %v11850_v37 = vunpack.i.h.bf16 %v11848_v46  ;;  %v11849_v35 = vunpack.i.l.bf16 %v11848_v46  ;;  %v11853_v29 = vpop.permute.xlu1 %11852 }
 0x3b1   : > { %v4652_v27 = vrot.slane %v4647_v26, 4  ;;  %v4655_v0 = vsel %vm1445_vm1, %v4647_v26, %v4654_v7  ;;  %v4657_v36 = vsel %vm1445_vm1, %v4656_v32, %v4639_v38  ;;  %v5306_v58 = vpack.c.bf16 %v4659_v3, %v4659_v3 }
 0x3b2   : > { %v5274_v23 = vpack.c.bf16 %v4655_v0, %v4655_v0  ;;  %v5290_v56 = vpack.c.bf16 %v4657_v36, %v4657_v36  ;;  %v14869_v6 = vperm.slane %v3831_v59, %v13596_v48  ;;  %v14872_v57 = vperm.slane %v3833_v2, %v13596_v48 }
 0x3b3   : > { %v4653_v50 = vsel %vm1445_vm1, %v4652_v27, %v4635_v63  ;;  %5370 = vst.msk [vmem:[#allocation3 + $0xd0] sm:$0xf] %vm3269_vm2, %v5306_v58  ;;  %v11844_v34 = vunpack.i.l.bf16 %v14836_v28  ;;  %v1727_v52 = vrot.slane %v17887_v31, 4  ;;  %v1725_v60 = vrot.slane %v11850_v37, 4 }
 0x3b4   : > { %v5258_v24 = vpack.c.bf16 %v4653_v50, %v4653_v50  ;;  %5338 = vst.msk [vmem:[#allocation3 + $0x50] sm:$0xf] %vm3269_vm2, %v5274_v23  ;;  %v1669_v39 = vrot.slane %v11849_v35, 4  ;;  %v14882_v38 = vrot.slane %v17794_v18, 4  ;;  %v14886_v19 = vrot.slane %v17793_v9, 4  ;;  %v17888_v23 = vld [vmem:[#allocation30_spill] sm:$0xff] }
 0x3b5   : > { %5354 = vst.msk [vmem:[#allocation3 + $0x90] sm:$0xf] %vm3269_vm2, %v5290_v56  ;;  %v1672_v42 = vsel %vm1445_vm1, %v11849_v35, %v1671_v51  ;;  %v17792_v63 = vunpack.i.h.bf16 %v14830_v22  ;;  %v11845_v55 = vunpack.i.h.bf16 %v14836_v28  ;;  %v1728_v21 = vsel %vm1445_vm1, %v11850_v37, %v1727_v52  ;;  %v17889_v37 = vld [vmem:[#allocation29_spill] sm:$0xff] }
 0x3b6   : > { %5322 = vst.msk [vmem:[#allocation3 + $0x10] sm:$0xf] %vm3269_vm2, %v5258_v24  ;;  %v1670_v47 = vsel %vm1445_vm1, %v1669_v39, %v13535_v11  ;;  %v1683_v46 = vrot.slane %v11844_v34, 4  ;;  %v1726_v59 = vsel %vm1445_vm1, %v1725_v60, %v17887_v31  ;;  %v1680_v28 = vperm.slane %v1672_v42, %v13596_v48 }
 0x3b7   : > { %v11910_v2 = vunpack.i.h.bf16 %v14890_v44  ;;  %v1736_v3 = vperm.slane %v1728_v21, %v13596_v48  ;;  %v1676_v11 = vperm.slane %v1670_v47, %v13596_v48  ;;  %v11855_v27 = vunpack.i.h.bf16 %v11853_v29 }
 0x3b8   : > { %v11854_v0 = vunpack.i.l.bf16 %v11853_v29  ;;  %v14910_v36 = vrot.slane %v17792_v63, 4  ;;  %v1739_v58 = vrot.slane %v11845_v55, 4  ;;  %v1783_v56 = vrot.slane %v17888_v23, 4 }
 0x3b9   : > { %v1839_v35 = vrot.slane %v17889_v37, 4  ;;  %v1732_v50 = vperm.slane %v1726_v59, %v13596_v48  ;;  %v1737_v24 = vrot.slane %v11855_v27, 4  ;;  %v1707_v60 = vrot.slane %v1680_v28, 4 }
 0x3ba   : > { %v1681_v31 = vrot.slane %v11854_v0, 4  ;;  %v1684_v52 = vsel %vm1445_vm1, %v11854_v0, %v1683_v46  ;;  %v14918_v39 = vrot.slane %v11910_v2, 4  ;;  %v1740_v21 = vsel %vm1445_vm1, %v11855_v27, %v1739_v58 }
 0x3bb   : > { %v1692_v42 = vperm.slane %v1684_v52, %v13596_v48  ;;  %v1763_v47 = vrot.slane %v1736_v3, 4  ;;  %v1695_v29 = vrot.slane %v1676_v11, 4  ;;  %v1738_v7 = vsel %vm1445_vm1, %v1737_v24, %v11845_v55 }
 0x3bc   : > { %v1682_v63 = vsel %vm1445_vm1, %v1681_v31, %v11844_v34  ;;  %v1744_v0 = vperm.slane %v1738_v7, %v13596_v48  ;;  %v1751_v26 = vrot.slane %v1732_v50, 4  ;;  %v11909_v51 = vunpack.i.l.bf16 %v14890_v44 }
 0x3bd   : > { %v1688_v59 = vperm.slane %v1682_v63, %v13596_v48  ;;  %v1705_v32 = vrot.slane %v1692_v42, 4  ;;  %v1708_v46 = vsel %vm1445_vm1, %v1692_v42, %v1707_v60  ;;  %v1748_v27 = vperm.slane %v1740_v21, %v13596_v48 }
 0x3be   : > { %v1716_v52 = vperm.slane %v1708_v46, %v13654_v61  ;;  %v1749_v55 = vrot.slane %v1744_v0, 4  ;;  %v1752_v7 = vsel %vm1445_vm1, %v1744_v0, %v1751_v26 }
 0x3bf   : > { %v1693_v58 = vrot.slane %v1688_v59, 4  ;;  %v1696_v9 = vsel %vm1445_vm1, %v1688_v59, %v1695_v29  ;;  %v1706_v34 = vsel %vm1445_vm1, %v1705_v32, %v1680_v28  ;;  %v1760_v46 = vperm.slane %v1752_v7, %v13654_v61 }
 0x3c0   : > { %v1704_v63 = vperm.slane %v1696_v9, %v13654_v61  ;;  %v1712_v24 = vperm.slane %v1706_v34, %v13654_v61  ;;  %v1723_v31 = vrot.slane %v1716_v52, 4  ;;  %v1750_v42 = vsel %vm1445_vm1, %v1749_v55, %v1732_v50 }
 0x3c1   : > { %v1694_v60 = vsel %vm1445_vm1, %v1693_v58, %v1676_v11  ;;  %v1761_v21 = vrot.slane %v1748_v27, 4  ;;  %v1756_v9 = vperm.slane %v1750_v42, %v13654_v61  ;;  %v1764_v52 = vsel %vm1445_vm1, %v1748_v27, %v1763_v47 }
 0x3c2   : > { %v1700_v18 = vperm.slane %v1694_v60, %v13654_v61  ;;  %v1719_v29 = vrot.slane %v1704_v63, 4  ;;  %v1721_v59 = vrot.slane %v1712_v24, 4  ;;  %v1724_v32 = vsel %vm1445_vm1, 0.0, %v1723_v31 }
 0x3c3   : > { %v1762_v28 = vsel %vm1445_vm1, %v1761_v21, %v1736_v3  ;;  %v1775_v26 = vrot.slane %v1760_v46, 4  ;;  %v1772_v34 = vperm.slane %v1764_v52, %v13654_v61  ;;  %v1773_v55 = vrot.slane %v1756_v9, 4 }
 0x3c4   : > { %v1717_v0 = vrot.slane %v1700_v18, 4  ;;  %v1720_v11 = vsel %vm1445_vm1, 0.0, %v1719_v29  ;;  %v1722_v50 = vsel %vm1445_vm1, 0.0, %v1721_v59  ;;  %v1768_v58 = vperm.slane %v1762_v28, %v13654_v61 }
 0x3c5   : > { %v1776_v63 = vsel %vm1445_vm1, 0.0, %v1775_v26  ;;  %v2557_v7 = vsel %vm1445_vm1, %v1719_v29, %v1700_v18  ;;  %v2562_v27 = vrot.slane %v1720_v11, 4  ;;  %v1774_v42 = vsel %vm1445_vm1, 0.0, %v1773_v55 }
 0x3c6   : > { %v1718_v60 = vsel %vm1445_vm1, 0.0, %v1717_v0  ;;  %v1777_v3 = vrot.slane %v1768_v58, 4  ;;  %v2561_v47 = vperm.slane %v2557_v7, %v13596_v48  ;;  %v1779_v46 = vrot.slane %v1772_v34, 4 }
 0x3c7   : > { %v2568_v21 = vsel %vm1445_vm1, %v1723_v31, %v1712_v24  ;;  %v2573_v59 = vrot.slane %v1724_v32, 4  ;;  %v2563_v52 = vsel %vm1445_vm1, %v2562_v27, %v1718_v60  ;;  %v2611_v11 = vsel %vm1445_vm1, %v1775_v26, %v1756_v9  ;;  %v14964_v27 = vpop.permute.xlu0 %11867 }
 0x3c8   : > { %v1778_v28 = vsel %vm1445_vm1, 0.0, %v1777_v3  ;;  %v2572_v30 = vperm.slane %v2568_v21, %v13596_v48  ;;  %v2581_v5 = vrot.slane %v2561_v47, 4  ;;  %v1780_v18 = vsel %vm1445_vm1, 0.0, %v1779_v46 }
 0x3c9   : > { %v2567_v29 = vperm.slane %v2563_v52, %v13596_v48  ;;  %v2574_v0 = vsel %vm1445_vm1, %v2573_v59, %v1722_v50  ;;  %v2615_v24 = vperm.slane %v2611_v11, %v13596_v48  ;;  %v2616_v31 = vrot.slane %v1776_v63, 4 }
 0x3ca   : > { %v2578_v34 = vperm.slane %v2574_v0, %v13596_v48  ;;  %v2593_v55 = vrot.slane %v2572_v30, 4  ;;  %v2622_v60 = vsel %vm1445_vm1, %v1779_v46, %v1768_v58  ;;  %v2627_v3 = vrot.slane %v1780_v18, 4 }
 0x3cb   : > { %v2579_v32 = vrot.slane %v2567_v29, 4  ;;  %v2582_v7 = vsel %vm1445_vm1, %v2567_v29, %v2581_v5  ;;  %v2617_v9 = vsel %vm1445_vm1, %v2616_v31, %v1774_v42  ;;  %v2626_v5 = vperm.slane %v2622_v60, %v13596_v48 }
 0x3cc   : > { %v2590_v21 = vperm.slane %v2582_v7, %v13654_v61  ;;  %v2591_v52 = vrot.slane %v2578_v34, 4  ;;  %v2594_v50 = vsel %vm1445_vm1, %v2578_v34, %v2593_v55  ;;  %v2621_v63 = vperm.slane %v2617_v9, %v13596_v48 }
 0x3cd   : > { %v2580_v26 = vsel %vm1445_vm1, %v2579_v32, %v2561_v47  ;;  %v2602_v59 = vperm.slane %v2594_v50, %v13654_v61  ;;  %v2628_v18 = vsel %vm1445_vm1, %v2627_v3, %v1778_v28  ;;  %v11870_v29 = vunpack.i.h.bf16 %v14964_v27 }
 0x3ce   : > { %v2586_v58 = vperm.slane %v2580_v26, %v13654_v61  ;;  %v2592_v46 = vsel %vm1445_vm1, %v2591_v52, %v2572_v30  ;;  %v2632_v42 = vperm.slane %v2628_v18, %v13596_v48  ;;  %v2633_v47 = vrot.slane %v2621_v63, 4 }
 0x3cf   : > { %v2598_v0 = vperm.slane %v2592_v46, %v13654_v61  ;;  %v2607_v11 = vrot.slane %v2602_v59, 4  ;;  %v2609_v55 = vrot.slane %v2590_v21, 4  ;;  %v2635_v31 = vrot.slane %v2615_v24, 4 }
 0x3d0   : > { %v2605_v34 = vrot.slane %v2586_v58, 4  ;;  %v2647_v32 = vrot.slane %v2626_v5, 4  ;;  %v2634_v50 = vsel %vm1445_vm1, %v2633_v47, %v2615_v24  ;;  %v2645_v30 = vrot.slane %v2632_v42, 4 }
 0x3d1   : > { %v2603_v7 = vrot.slane %v2598_v0, 4  ;;  %v2608_v60 = vsel %vm1445_vm1, %v2607_v11, %v2590_v21  ;;  %v2636_v3 = vsel %vm1445_vm1, %v2621_v63, %v2635_v31  ;;  %v2640_v52 = vperm.slane %v2634_v50, %v13654_v61 }
 0x3d2   : > { %v2606_v28 = vsel %vm1445_vm1, %v2598_v0, %v2605_v34  ;;  %v2648_v9 = vsel %vm1445_vm1, %v2632_v42, %v2647_v32  ;;  %v2644_v46 = vperm.slane %v2636_v3, %v13654_v61  ;;  %v2646_v18 = vsel %vm1445_vm1, %v2645_v30, %v2626_v5 }
 0x3d3   : > { %v2604_v26 = vsel %vm1445_vm1, %v2603_v7, %v2586_v58  ;;  %v2656_v25 = vperm.slane %v2648_v9, %v13654_v61  ;;  %v2652_v21 = vperm.slane %v2646_v18, %v13654_v61  ;;  %v2659_v24 = vrot.slane %v2640_v52, 4  ;;  %v11858_v7 = vpop.permute.xlu1 %11857 }
 0x3d4   : > { %v3209_v11 = vpack.c.bf16 %v2604_v26, %v2604_v26  ;;  %v3225_v47 = vpack.c.bf16 %v2606_v28, %v2606_v28  ;;  %v2610_v0 = vsel %vm1445_vm1, %v2602_v59, %v2609_v55  ;;  %v2663_v34 = vrot.slane %v2644_v46, 4 }
 0x3d5   : > { %v2661_v63 = vrot.slane %v2656_v25, 4  ;;  %v3241_v31 = vpack.c.bf16 %v2608_v60, %v2608_v60  ;;  %v1840_v58 = vsel %vm1445_vm1, %v11910_v2, %v1839_v35  ;;  %v2657_v42 = vrot.slane %v2652_v21, 4 }
 0x3d6   : > { %v2660_v5 = vsel %vm1445_vm1, %v2652_v21, %v2659_v24  ;;  %3274 = vst.msk [vmem:[#allocation2 + $0x10] sm:$0xf] %vm3269_vm2, %v3209_v11  ;;  %v11869_v32 = vunpack.i.l.bf16 %v14964_v27  ;;  %v1838_v59 = vsel %vm1445_vm1, %v14918_v39, %v17889_v37  ;;  %v2664_v60 = vsel %vm1445_vm1, %v2656_v25, %v2663_v34 }
 0x3d7   : > { %v2662_v55 = vsel %vm1445_vm1, %v2661_v63, %v2644_v46  ;;  %v3226_v50 = vpack.c.bf16 %v2660_v5, %v2660_v5  ;;  %3290 = vst.msk [vmem:[#allocation2 + $0x50] sm:$0xf] %vm3269_vm2, %v3225_v47  ;;  %v1781_v2 = vrot.slane %v11909_v51, 4  ;;  %v2658_v35 = vsel %vm1445_vm1, %v2657_v42, %v2640_v52  ;;  %v17890_v47 = vld [vmem:[#allocation28_spill] sm:$0xff] }
 0x3d8   : > { %v3242_v30 = vpack.c.bf16 %v2662_v55, %v2662_v55  ;;  %v3257_v28 = vpack.c.bf16 %v2610_v0, %v2610_v0  ;;  %3306 = vst.msk [vmem:[#allocation2 + $0x90] sm:$0xf] %vm3269_vm2, %v3241_v31  ;;  %v3210_v3 = vpack.c.bf16 %v2658_v35, %v2658_v35  ;;  %v3258_v9 = vpack.c.bf16 %v2664_v60, %v2664_v60 }
 0x3d9   : > { %3291 = vst.msk [vmem:[#allocation2 + $0x54] sm:$0xf] %vm3269_vm2, %v3226_v50  ;;  %v4234_v37 = vrot.slane %v11870_v29, 4  ;;  %v11860_v25 = vunpack.i.h.bf16 %v11858_v7  ;;  %v17797_v39 = vunpack.i.l.bf16 %v14830_v22  ;;  %v1784_v52 = vsel %vm1445_vm1, %v11909_v51, %v1783_v56 }
 0x3da   : > { %3307 = vst.msk [vmem:[#allocation2 + $0x94] sm:$0xf] %vm3269_vm2, %v3242_v30  ;;  %v4178_v26 = vrot.slane %v11869_v32, 4  ;;  %v11859_v46 = vunpack.i.l.bf16 %v11858_v7  ;;  %v15020_v18 = vperm.slane %v1838_v59, %v13596_v48  ;;  %v15023_v21 = vperm.slane %v1840_v58, %v13596_v48 }
 0x3db   : > { %3275 = vst.msk [vmem:[#allocation2 + $0x14] sm:$0xf] %vm3269_vm2, %v3210_v3  ;;  %v4236_v24 = vrot.slane %v11860_v25, 4  ;;  %v4235_v11 = vsel %vm1445_vm1, %v4234_v37, %v11860_v25  ;;  %v5768_v0 = vrot.slane %v17890_v47, 4  ;;  %v15033_v63 = vsel %vm1445_vm1, %v1781_v2, %v17888_v23 }
 0x3dc   : > { %3322 = vst.msk [vmem:[#allocation2 + $0xd0] sm:$0xf] %vm3269_vm2, %v3257_v28  ;;  %v4179_v44 = vsel %vm1445_vm1, %v4178_v26, %v11859_v46  ;;  %v4180_v51 = vrot.slane %v11859_v46, 4  ;;  %v4241_v56 = vperm.slane %v4235_v11, %v13596_v48  ;;  %v15036_v34 = vperm.slane %v1784_v52, %v13596_v48 }
 0x3dd   : > { %3323 = vst.msk [vmem:[#allocation2 + $0xd4] sm:$0xf] %vm3269_vm2, %v3258_v9  ;;  %v4185_v31 = vperm.slane %v4179_v44, %v13596_v48  ;;  %v4237_v58 = vsel %vm1445_vm1, %v11870_v29, %v4236_v24  ;;  %v17891_v60 = vrot.slane %v14721_v13, 4  ;;  %v17892_v35 = vrot.slane %v14596_v53, 4 }
 0x3de   : > { %v4181_v42 = vsel %vm1445_vm1, %v11869_v32, %v4180_v51  ;;  %v4245_v5 = vperm.slane %v4237_v58, %v13596_v48  ;;  %v4246_v7 = vrot.slane %v4241_v56, 4  ;;  %v4249_v23 = vsel %vm1445_vm1, %v4241_v56, %v4248_v14 }
 0x3df   : > { %v4189_v59 = vperm.slane %v4181_v42, %v13596_v48  ;;  %v4190_v55 = vrot.slane %v4185_v31, 4  ;;  %v4193_v50 = vsel %vm1445_vm1, %v4185_v31, %v17891_v60  ;;  %v4257_v27 = vperm.slane %v4249_v23, %v13654_v61 }
 0x3e0   : > { %v4201_v29 = vperm.slane %v4193_v50, %v13654_v61  ;;  %v4247_v32 = vsel %vm1445_vm1, %v4246_v7, %v14604_v16  ;;  %v4258_v2 = vrot.slane %v4245_v5, 4  ;;  %v4261_v30 = vsel %vm1445_vm1, %v4245_v5, %v17892_v35 }
 0x3e1   : > { %v4191_v14 = vsel %vm1445_vm1, %v4190_v55, %v14721_v13  ;;  %v4202_v28 = vrot.slane %v4189_v59, 4  ;;  %v17893_v3 = vrot.slane %v14694_v41, 4  ;;  %v4253_v37 = vperm.slane %v4247_v32, %v13654_v61 }
 0x3e2   : > { %v4197_v25 = vperm.slane %v4191_v14, %v13654_v61  ;;  %v4216_v16 = vrot.slane %v4201_v29, 4  ;;  %v4259_v26 = vsel %vm1445_vm1, %v4258_v2, %v14596_v53  ;;  %v4269_v24 = vperm.slane %v4261_v30, %v13654_v61 }
 0x3e3   : > { %v4205_v9 = vsel %vm1445_vm1, %v4189_v59, %v17893_v3  ;;  %v4203_v46 = vsel %vm1445_vm1, %v4202_v28, %v14694_v41  ;;  %v4265_v13 = vperm.slane %v4259_v26, %v13654_v61  ;;  %v4270_v11 = vrot.slane %v4253_v37, 4 }
 0x3e4   : > { %v4213_v52 = vperm.slane %v4205_v9, %v13654_v61  ;;  %v4209_v44 = vperm.slane %v4203_v46, %v13654_v61  ;;  %v4214_v51 = vrot.slane %v4197_v25, 4  ;;  %v4217_v56 = vsel %vm1445_vm1, 0.0, %v4216_v16 }
 0x3e5   : > { %v4271_v58 = vsel %vm1445_vm1, 0.0, %v4270_v11  ;;  %v4272_v42 = vrot.slane %v4257_v27, 4  ;;  %v4274_v5 = vrot.slane %v4265_v13, 4  ;;  %v4276_v7 = vrot.slane %v4269_v24, 4 }
 0x3e6   : > { %v4220_v31 = vrot.slane %v4213_v52, 4  ;;  %v4215_v53 = vsel %vm1445_vm1, 0.0, %v4214_v51  ;;  %v4218_v23 = vrot.slane %v4209_v44, 4  ;;  %v5038_v59 = vsel %vm1445_vm1, %v4216_v16, %v4197_v25 }
 0x3e7   : > { %v4273_v55 = vsel %vm1445_vm1, 0.0, %v4272_v42  ;;  %v4275_v60 = vsel %vm1445_vm1, 0.0, %v4274_v5  ;;  %v4277_v50 = vsel %vm1445_vm1, 0.0, %v4276_v7  ;;  %v5042_v29 = vperm.slane %v5038_v59, %v13596_v48 }
 0x3e8   : > { %v4221_v41 = vsel %vm1445_vm1, 0.0, %v4220_v31  ;;  %v4219_v32 = vsel %vm1445_vm1, 0.0, %v4218_v23  ;;  %v5043_v27 = vrot.slane %v4217_v56, 4  ;;  %v5049_v2 = vsel %vm1445_vm1, %v4220_v31, %v4209_v44  ;;  %v15096_v31 = vpop.permute.xlu2 %11927 }
 0x3e9   : > { %v5054_v35 = vrot.slane %v4221_v41, 4  ;;  %v5053_v30 = vperm.slane %v5049_v2, %v13596_v48  ;;  %v5062_v14 = vrot.slane %v5042_v29, 4  ;;  %v5092_v28 = vsel %vm1445_vm1, %v4272_v42, %v4253_v37 }
 0x3ea   : > { %v5097_v3 = vrot.slane %v4273_v55, 4  ;;  %v5044_v9 = vsel %vm1445_vm1, %v5043_v27, %v4215_v53  ;;  %v5096_v52 = vperm.slane %v5092_v28, %v13596_v48  ;;  %v5103_v16 = vsel %vm1445_vm1, %v4276_v7, %v4265_v13 }
 0x3eb   : > { %v5055_v25 = vsel %vm1445_vm1, %v5054_v35, %v4219_v32  ;;  %v5048_v26 = vperm.slane %v5044_v9, %v13596_v48  ;;  %v5074_v24 = vrot.slane %v5053_v30, 4  ;;  %v5107_v37 = vperm.slane %v5103_v16, %v13596_v48 }
 0x3ec   : > { %v5059_v46 = vperm.slane %v5055_v25, %v13596_v48  ;;  %v5098_v11 = vsel %vm1445_vm1, %v5097_v3, %v4271_v58  ;;  %v5108_v51 = vrot.slane %v4277_v50, 4  ;;  %v5116_v56 = vrot.slane %v5096_v52, 4 }
 0x3ed   : > { %v5102_v44 = vperm.slane %v5098_v11, %v13596_v48  ;;  %v5060_v42 = vrot.slane %v5048_v26, 4  ;;  %v5063_v5 = vsel %vm1445_vm1, %v5048_v26, %v5062_v14  ;;  %v17894_v14 = vld [vmem:[#allocation27_spill] sm:$0xff]  ;;  %v5128_v25 = vrot.slane %v5107_v37, 4 }
 0x3ee   : > { %v5072_v53 = vrot.slane %v5059_v46, 4  ;;  %v5075_v13 = vsel %vm1445_vm1, %v5059_v46, %v5074_v24  ;;  %v5071_v7 = vperm.slane %v5063_v5, %v13654_v61  ;;  %v5109_v58 = vsel %vm1445_vm1, %v5108_v51, %v4275_v60  ;;  %v11878_v5 = vpop.permute.xlu0 %11877 }
 0x3ef   : > { %v5083_v23 = vperm.slane %v5075_v13, %v13654_v61  ;;  %v5114_v41 = vrot.slane %v5102_v44, 4  ;;  %v5061_v59 = vsel %vm1445_vm1, %v5060_v42, %v5042_v29  ;;  %v5113_v50 = vperm.slane %v5109_v58, %v13596_v48 }
 0x3f0   : > { %v5073_v55 = vsel %vm1445_vm1, %v5072_v53, %v5053_v30  ;;  %v5117_v32 = vsel %vm1445_vm1, %v5102_v44, %v5116_v56  ;;  %v5067_v27 = vperm.slane %v5061_v59, %v13654_v61  ;;  %v5824_v28 = vrot.slane %v17894_v14, 4 }
 0x3f1   : > { %v5079_v2 = vperm.slane %v5073_v55, %v13654_v61  ;;  %v5088_v35 = vrot.slane %v5083_v23, 4  ;;  %v5115_v3 = vsel %vm1445_vm1, %v5114_v41, %v5096_v52  ;;  %v5125_v60 = vperm.slane %v5117_v32, %v13654_v61 }
 0x3f2   : > { %v5126_v9 = vrot.slane %v5113_v50, 4  ;;  %v5086_v16 = vrot.slane %v5067_v27, 4  ;;  %v5090_v26 = vrot.slane %v5071_v7, 4  ;;  %v5121_v46 = vperm.slane %v5115_v3, %v13654_v61 }
 0x3f3   : > { %v5084_v29 = vrot.slane %v5079_v2, 4  ;;  %v5089_v30 = vsel %vm1445_vm1, %v5088_v35, %v5071_v7  ;;  %v5129_v11 = vsel %vm1445_vm1, %v5113_v50, %v5128_v25  ;;  %v5144_v44 = vrot.slane %v5125_v60, 4  ;;  %v15128_v35 = vpop.permute.xlu2 %11937 }
 0x3f4   : > { %v5127_v24 = vsel %vm1445_vm1, %v5126_v9, %v5107_v37  ;;  %v5087_v52 = vsel %vm1445_vm1, %v5079_v2, %v5086_v16  ;;  %v5137_v42 = vperm.slane %v5129_v11, %v13654_v61  ;;  %v5140_v53 = vrot.slane %v5121_v46, 4 }
 0x3f5   : > { %v5085_v51 = vsel %vm1445_vm1, %v5084_v29, %v5067_v27  ;;  %v5133_v56 = vperm.slane %v5127_v24, %v13654_v61  ;;  %v5282_v58 = vpack.c.bf16 %v5087_v52, %v5087_v52  ;;  %v5298_v7 = vpack.c.bf16 %v5089_v30, %v5089_v30 }
 0x3f6   : > { %v5266_v13 = vpack.c.bf16 %v5085_v51, %v5085_v51  ;;  %v15122_v41 = vperm.slane %v15033_v63, %v13596_v48  ;;  %v5091_v37 = vsel %vm1445_vm1, %v5083_v23, %v5090_v26  ;;  %v5142_v55 = vrot.slane %v5137_v42, 4 }
 0x3f7   : > { %v5138_v59 = vrot.slane %v5133_v56, 4  ;;  %v5141_v50 = vsel %vm1445_vm1, %v5133_v56, %v5140_v53  ;;  %v5145_v32 = vsel %vm1445_vm1, %v5137_v42, %v5144_v44  ;;  %v11880_v27 = vunpack.i.h.bf16 %v11878_v5  ;;  %5346 = vst.msk [vmem:[#allocation3 + $0x70] sm:$0xf] %vm3269_vm2, %v5282_v58  ;;  %v11883_v56 = vpop.permute.xlu1 %11882 }
 0x3f8   : > { %5330 = vst.msk [vmem:[#allocation3 + $0x30] sm:$0xf] %vm3269_vm2, %v5266_v13  ;;  %v11879_v2 = vunpack.i.l.bf16 %v11878_v5  ;;  %v17796_v3 = vunpack.i.h.bf16 %v15096_v31  ;;  %v5143_v63 = vsel %vm1445_vm1, %v5142_v55, %v5125_v60  ;;  %v5283_v25 = vpack.c.bf16 %v5141_v50, %v5141_v50 }
 0x3f9   : > { %v5139_v9 = vsel %vm1445_vm1, %v5138_v59, %v5121_v46  ;;  %v5299_v29 = vpack.c.bf16 %v5143_v63, %v5143_v63  ;;  %v5314_v16 = vpack.c.bf16 %v5091_v37, %v5091_v37  ;;  %5362 = vst.msk [vmem:[#allocation3 + $0xb0] sm:$0xf] %vm3269_vm2, %v5298_v7  ;;  %v5822_v30 = vrot.slane %v11880_v27, 4  ;;  %v17895_v37 = vld [vmem:[#allocation31_spill] sm:$0xff] }
 0x3fa   : > { %v5267_v23 = vpack.c.bf16 %v5139_v9, %v5139_v9  ;;  %v5315_v26 = vpack.c.bf16 %v5145_v32, %v5145_v32  ;;  %5347 = vst.msk [vmem:[#allocation3 + $0x74] sm:$0xf] %vm3269_vm2, %v5283_v25  ;;  %v5825_v24 = vsel %vm1445_vm1, %v11880_v27, %v5824_v28  ;;  %v5766_v11 = vrot.slane %v11879_v2, 4  ;;  %v17898_v25 = vld [vmem:[#allocation33_spill] sm:$0xff] }
 0x3fb   : > { %v11940_v44 = vunpack.i.h.bf16 %v15128_v35  ;;  %v15140_v60 = vrot.slane %v17797_v39, 4  ;;  %v1875_v51 = vrot.slane %v15023_v21, 4  ;;  %v17795_v52 = vunpack.i.l.bf16 %v15096_v31  ;;  %5363 = vst.msk [vmem:[#allocation3 + $0xb4] sm:$0xf] %vm3269_vm2, %v5299_v29 }
 0x3fc   : > { %5331 = vst.msk [vmem:[#allocation3 + $0x34] sm:$0xf] %vm3269_vm2, %v5267_v23  ;;  %v5823_v5 = vsel %vm1445_vm1, %v5822_v30, %v17894_v14  ;;  %v5769_v53 = vsel %vm1445_vm1, %v11879_v2, %v5768_v0  ;;  %v15156_v13 = vrot.slane %v17796_v3, 4  ;;  %v5833_v58 = vperm.slane %v5825_v24, %v13596_v48  ;;  %v17896_v14 = vld [vmem:[#allocation32_spill] sm:$0xff]  ;;  %v17897_v0 = vld [vmem:[#allocation37_spill] sm:$0xff] }
 0x3fd   : > { %5378 = vst.msk [vmem:[#allocation3 + $0xf0] sm:$0xf] %vm3269_vm2, %v5314_v16  ;;  %v5767_v7 = vsel %vm1445_vm1, %v5766_v11, %v17890_v47  ;;  %v5880_v59 = vrot.slane %v17895_v37, 4  ;;  %v5936_v55 = vrot.slane %v17896_v14, 4  ;;  %v5934_v50 = vrot.slane %v11940_v44, 4 }
 0x3fe   : > { %5379 = vst.msk [vmem:[#allocation3 + $0xf4] sm:$0xf] %vm3269_vm2, %v5315_v26  ;;  %v11885_v32 = vunpack.i.h.bf16 %v11883_v56  ;;  %v15168_v2 = vrot.slane %v17795_v52, 4  ;;  %v5829_v9 = vperm.slane %v5823_v5, %v13596_v48  ;;  %v5777_v63 = vperm.slane %v5769_v53, %v13596_v48 }
 0x3ff   : > { %v5773_v23 = vperm.slane %v5767_v7, %v13596_v48  ;;  %v11884_v30 = vunpack.i.l.bf16 %v11883_v56  ;;  %v5860_v26 = vrot.slane %v5833_v58, 4  ;;  %v15177_v24 = vsel %vm1445_vm1, %v11940_v44, %v5936_v55 }
 0x400   : > { %v5834_v29 = vrot.slane %v11885_v32, 4  ;;  %v5837_v16 = vsel %vm1445_vm1, %v11885_v32, %v14882_v38  ;;  %v11939_v11 = vunpack.i.l.bf16 %v15128_v35  ;;  %v15183_v5 = vsel %vm1445_vm1, %v5934_v50, %v17896_v14 }
 0x401   : > { %v5845_v52 = vperm.slane %v5837_v16, %v13596_v48  ;;  %v17899_v53 = vunpack.i.h.bf16 %v14670_v62  ;;  %v5778_v47 = vrot.slane %v11884_v30, 4  ;;  %v5781_v38 = vsel %vm1445_vm1, %v11884_v30, %v14886_v19 }
 0x402   : > { %v5804_v56 = vrot.slane %v5777_v63, 4  ;;  %v5789_v32 = vperm.slane %v5781_v38, %v13596_v48  ;;  %v5848_v3 = vrot.slane %v5829_v9, 4  ;;  %v5792_v16 = vrot.slane %v5773_v23, 4 }
 0x403   : > { %v5835_v7 = vsel %vm1445_vm1, %v5834_v29, %v17899_v53  ;;  %v5858_v55 = vrot.slane %v5845_v52, 4  ;;  %v17900_v27 = vunpack.i.l.bf16 %v14670_v62  ;;  %v5861_v50 = vsel %vm1445_vm1, %v5845_v52, %v5860_v26 }
 0x404   : > { %v5841_v44 = vperm.slane %v5835_v7, %v13596_v48  ;;  %v5802_v53 = vrot.slane %v5789_v32, 4  ;;  %v5805_v19 = vsel %vm1445_vm1, %v5789_v32, %v5804_v56  ;;  %v5869_v42 = vperm.slane %v5861_v50, %v13654_v61 }
 0x405   : > { %v5779_v14 = vsel %vm1445_vm1, %v5778_v47, %v17900_v27  ;;  %v5813_v30 = vperm.slane %v5805_v19, %v13654_v61  ;;  %v5859_v38 = vsel %vm1445_vm1, %v5858_v55, %v5833_v58 }
 0x406   : > { %v5846_v28 = vrot.slane %v5841_v44, 4  ;;  %v5785_v29 = vperm.slane %v5779_v14, %v13596_v48  ;;  %v5849_v7 = vsel %vm1445_vm1, %v5841_v44, %v5848_v3  ;;  %v5803_v27 = vsel %vm1445_vm1, %v5802_v53, %v5777_v63 }
 0x407   : > { %v5809_v26 = vperm.slane %v5803_v27, %v13654_v61  ;;  %v5820_v56 = vrot.slane %v5813_v30, 4  ;;  %v5857_v58 = vperm.slane %v5849_v7, %v13654_v61  ;;  %v5865_v44 = vperm.slane %v5859_v38, %v13654_v61 }
 0x408   : > { %v5790_v39 = vrot.slane %v5785_v29, 4  ;;  %v5793_v62 = vsel %vm1445_vm1, %v5785_v29, %v5792_v16  ;;  %v5847_v52 = vsel %vm1445_vm1, %v5846_v28, %v5829_v9  ;;  %v5876_v55 = vrot.slane %v5869_v42, 4 }
 0x409   : > { %v5801_v47 = vperm.slane %v5793_v62, %v13654_v61  ;;  %v5853_v32 = vperm.slane %v5847_v52, %v13654_v61  ;;  %v5818_v63 = vrot.slane %v5809_v26, 4  ;;  %v5821_v28 = vsel %vm1445_vm1, 0.0, %v5820_v56 }
 0x40a   : > { %v5791_v3 = vsel %vm1445_vm1, %v5790_v39, %v5773_v23  ;;  %v5872_v50 = vrot.slane %v5857_v58, 4  ;;  %v5874_v29 = vrot.slane %v5865_v44, 4  ;;  %v5877_v53 = vsel %vm1445_vm1, 0.0, %v5876_v55 }
 0x40b   : > { %v5797_v16 = vperm.slane %v5791_v3, %v13654_v61  ;;  %v5816_v14 = vrot.slane %v5801_v47, 4  ;;  %v5870_v9 = vrot.slane %v5853_v32, 4  ;;  %v5819_v39 = vsel %vm1445_vm1, 0.0, %v5818_v63 }
 0x40c   : > { %v5873_v7 = vsel %vm1445_vm1, 0.0, %v5872_v50  ;;  %v5875_v38 = vsel %vm1445_vm1, 0.0, %v5874_v29  ;;  %v6665_v47 = vsel %vm1445_vm1, %v5820_v56, %v5809_v26  ;;  %v6670_v3 = vrot.slane %v5821_v28, 4 }
 0x40d   : > { %v5814_v19 = vrot.slane %v5797_v16, 4  ;;  %v5817_v30 = vsel %vm1445_vm1, 0.0, %v5816_v14  ;;  %v6654_v23 = vsel %vm1445_vm1, %v5816_v14, %v5797_v16  ;;  %v5871_v42 = vsel %vm1445_vm1, 0.0, %v5870_v9 }
 0x40e   : > { %v6658_v62 = vperm.slane %v6654_v23, %v13596_v48  ;;  %v6659_v52 = vrot.slane %v5817_v30, 4  ;;  %v6669_v58 = vperm.slane %v6665_v47, %v13596_v48  ;;  %v6708_v63 = vsel %vm1445_vm1, %v5872_v50, %v5853_v32 }
 0x40f   : > { %v5815_v27 = vsel %vm1445_vm1, 0.0, %v5814_v19  ;;  %v6713_v16 = vrot.slane %v5873_v7, 4  ;;  %v6671_v9 = vsel %vm1445_vm1, %v6670_v3, %v5819_v39  ;;  %v6712_v29 = vperm.slane %v6708_v63, %v13596_v48 }
 0x410   : > { %v6678_v46 = vrot.slane %v6658_v62, 4  ;;  %v6660_v14 = vsel %vm1445_vm1, %v6659_v52, %v5815_v27  ;;  %v6719_v23 = vsel %vm1445_vm1, %v5876_v55, %v5865_v44  ;;  %v6675_v30 = vperm.slane %v6671_v9, %v13596_v48 }
 0x411   : > { %v6664_v19 = vperm.slane %v6660_v14, %v13596_v48  ;;  %v6690_v26 = vrot.slane %v6669_v58, 4  ;;  %v6714_v56 = vsel %vm1445_vm1, %v6713_v16, %v5871_v42  ;;  %v6723_v32 = vperm.slane %v6719_v23, %v13596_v48 }
 0x412   : > { %v6718_v28 = vperm.slane %v6714_v56, %v13596_v48  ;;  %v6724_v50 = vrot.slane %v5877_v53, 4  ;;  %v6732_v7 = vrot.slane %v6712_v29, 4  ;;  %v6688_v52 = vrot.slane %v6675_v30, 4 }
 0x413   : > { %v6676_v27 = vrot.slane %v6664_v19, 4  ;;  %v6679_v39 = vsel %vm1445_vm1, %v6664_v19, %v6678_v46  ;;  %v6691_v47 = vsel %vm1445_vm1, %v6675_v30, %v6690_v26  ;;  %v15245_v46 = vperm.slane %v15183_v5, %v13596_v48 }
 0x414   : > { %v6687_v44 = vperm.slane %v6679_v39, %v13654_v61  ;;  %v6699_v55 = vperm.slane %v6691_v47, %v13654_v61  ;;  %v6725_v3 = vsel %vm1445_vm1, %v6724_v50, %v5875_v38  ;;  %v6730_v63 = vrot.slane %v6718_v28, 4 }
 0x415   : > { %v6677_v42 = vsel %vm1445_vm1, %v6676_v27, %v6658_v62  ;;  %v6689_v16 = vsel %vm1445_vm1, %v6688_v52, %v6669_v58  ;;  %v6729_v53 = vperm.slane %v6725_v3, %v13596_v48  ;;  %v6733_v14 = vsel %vm1445_vm1, %v6718_v28, %v6732_v7 }
 0x416   : > { %v6683_v9 = vperm.slane %v6677_v42, %v13654_v61  ;;  %v6695_v23 = vperm.slane %v6689_v16, %v13654_v61  ;;  %v6704_v19 = vrot.slane %v6699_v55, 4  ;;  %v6731_v38 = vsel %vm1445_vm1, %v6730_v63, %v6712_v29  ;;  %v11898_v63 = vpop.permute.xlu0 %11897 }
 0x417   : > { %v6741_v30 = vperm.slane %v6733_v14, %v13654_v61  ;;  %v6742_v62 = vrot.slane %v6729_v53, 4  ;;  %v6744_v26 = vrot.slane %v6723_v32, 4  ;;  %v6706_v28 = vrot.slane %v6687_v44, 4 }
 0x418   : > { %v6700_v58 = vrot.slane %v6695_v23, 4  ;;  %v6702_v56 = vrot.slane %v6683_v9, 4  ;;  %v6705_v50 = vsel %vm1445_vm1, %v6704_v19, %v6687_v44  ;;  %v6737_v7 = vperm.slane %v6731_v38, %v13654_v61 }
 0x419   : > { %v6743_v5 = vsel %vm1445_vm1, %v6742_v62, %v6723_v32  ;;  %v6745_v27 = vsel %vm1445_vm1, %v6729_v53, %v6744_v26  ;;  %v6760_v39 = vrot.slane %v6741_v30, 4  ;;  %v7338_v44 = vpack.c.bf16 %v6705_v50, %v6705_v50 }
 0x41a   : > { %v6701_v52 = vsel %vm1445_vm1, %v6700_v58, %v6683_v9  ;;  %v6703_v29 = vsel %vm1445_vm1, %v6695_v23, %v6702_v56  ;;  %v6749_v47 = vperm.slane %v6743_v5, %v13654_v61  ;;  %v6753_v3 = vperm.slane %v6745_v27, %v13654_v61  ;;  %v11888_v58 = vpop.permute.xlu1 %11887 }
 0x41b   : > { %v6756_v42 = vrot.slane %v6737_v7, 4  ;;  %v7306_v16 = vpack.c.bf16 %v6701_v52, %v6701_v52  ;;  %v7322_v14 = vpack.c.bf16 %v6703_v29, %v6703_v29  ;;  %v15261_v19 = vperm.slane %v15177_v24, %v13596_v48  ;;  %7402 = vst.msk [vmem:[#allocation4 + $0x90] sm:$0xf] %vm3269_vm2, %v7338_v44 }
 0x41c   : > { %v6707_v32 = vsel %vm1445_vm1, %v6699_v55, %v6706_v28  ;;  %v6754_v53 = vrot.slane %v6749_v47, 4  ;;  %v6758_v38 = vrot.slane %v6753_v3, 4  ;;  %v6761_v23 = vsel %vm1445_vm1, %v6753_v3, %v6760_v39  ;;  %v17901_v3 = vld [vmem:[#allocation36_spill] sm:$0xff] }
 0x41d   : > { %v6757_v9 = vsel %vm1445_vm1, %v6749_v47, %v6756_v42  ;;  %7370 = vst.msk [vmem:[#allocation4 + $0x10] sm:$0xf] %vm3269_vm2, %v7306_v16  ;;  %v11900_v62 = vunpack.i.h.bf16 %v11898_v63  ;;  %v11899_v26 = vunpack.i.l.bf16 %v11898_v63  ;;  %v5878_v56 = vrot.slane %v11939_v11, 4  ;;  %v17902_v42 = vld [vmem:[#allocation34_spill] sm:$0xff] }
 0x41e   : > { %v6755_v50 = vsel %vm1445_vm1, %v6754_v53, %v6737_v7  ;;  %v6759_v24 = vsel %vm1445_vm1, %v6758_v38, %v6741_v30  ;;  %v7323_v5 = vpack.c.bf16 %v6757_v9, %v6757_v9  ;;  %7386 = vst.msk [vmem:[#allocation4 + $0x50] sm:$0xf] %vm3269_vm2, %v7322_v14  ;;  %v5881_v55 = vsel %vm1445_vm1, %v11939_v11, %v5880_v59  ;;  %v17903_v16 = vld [vmem:[#allocation38_spill] sm:$0xff] }
 0x41f   : > { %v7307_v28 = vpack.c.bf16 %v6755_v50, %v6755_v50  ;;  %v7339_v27 = vpack.c.bf16 %v6759_v24, %v6759_v24  ;;  %v7354_v39 = vpack.c.bf16 %v6707_v32, %v6707_v32  ;;  %v7355_v52 = vpack.c.bf16 %v6761_v23, %v6761_v23 }
 0x420   : > { %7387 = vst.msk [vmem:[#allocation4 + $0x54] sm:$0xf] %vm3269_vm2, %v7323_v5  ;;  %v3842_v7 = vrot.slane %v11899_v26, 4  ;;  %v11890_v29 = vunpack.i.h.bf16 %v11888_v58  ;;  %v11889_v30 = vunpack.i.l.bf16 %v11888_v58  ;;  %v3898_v47 = vrot.slane %v11900_v62, 4 }
 0x421   : > { %7371 = vst.msk [vmem:[#allocation4 + $0x14] sm:$0xf] %vm3269_vm2, %v7307_v28  ;;  %v5972_v53 = vrot.slane %v15261_v19, 4  ;;  %v15288_v38 = vperm.slane %v5881_v55, %v13596_v48  ;;  %v15295_v58 = vsel %vm1445_vm1, %v5878_v56, %v17895_v37  ;;  %v15301_v55 = vpop.permute.xlu0 %11912 }
 0x422   : > { %7403 = vst.msk [vmem:[#allocation4 + $0x94] sm:$0xf] %vm3269_vm2, %v7339_v27  ;;  %v3900_v14 = vrot.slane %v11890_v29, 4  ;;  %v3843_v44 = vsel %vm1445_vm1, %v3842_v7, %v11889_v30  ;;  %v3844_v32 = vrot.slane %v11889_v30, 4  ;;  %v3899_v23 = vsel %vm1445_vm1, %v3898_v47, %v11890_v29 }
 0x423   : > { %7418 = vst.msk [vmem:[#allocation4 + $0xd0] sm:$0xf] %vm3269_vm2, %v7354_v39  ;;  %v3849_v9 = vperm.slane %v3843_v44, %v13596_v48  ;;  %v3905_v5 = vperm.slane %v3899_v23, %v13596_v48  ;;  %v17904_v39 = vrot.slane %v14869_v6, 4  ;;  %v11915_v29 = vunpack.i.h.bf16 %v15301_v55 }
 0x424   : > { %7419 = vst.msk [vmem:[#allocation4 + $0xd4] sm:$0xf] %vm3269_vm2, %v7355_v52  ;;  %v3845_v50 = vsel %vm1445_vm1, %v11899_v26, %v3844_v32  ;;  %v3901_v24 = vsel %vm1445_vm1, %v11900_v62, %v3900_v14  ;;  %v17905_v26 = vrot.slane %v14853_v12, 4  ;;  %v17906_v14 = vrot.slane %v14872_v57, 4 }
 0x425   : > { %v3853_v28 = vperm.slane %v3845_v50, %v13596_v48  ;;  %v3854_v27 = vrot.slane %v3849_v9, 4  ;;  %v3857_v7 = vsel %vm1445_vm1, %v3849_v9, %v17904_v39  ;;  %v3909_v37 = vperm.slane %v3901_v24, %v13596_v48 }
 0x426   : > { %v3865_v56 = vperm.slane %v3857_v7, %v13654_v61  ;;  %v3910_v52 = vrot.slane %v3905_v5, 4  ;;  %v3913_v62 = vsel %vm1445_vm1, %v3905_v5, %v17905_v26  ;;  %v17907_v39 = vrot.slane %v14857_v17, 4 }
 0x427   : > { %v3855_v30 = vsel %vm1445_vm1, %v3854_v27, %v14869_v6  ;;  %v3866_v47 = vrot.slane %v3853_v28, 4  ;;  %v3869_v44 = vsel %vm1445_vm1, %v3853_v28, %v17906_v14  ;;  %v3921_v32 = vperm.slane %v3913_v62, %v13654_v61 }
 0x428   : > { %v3861_v9 = vperm.slane %v3855_v30, %v13654_v61  ;;  %v3877_v23 = vperm.slane %v3869_v44, %v13654_v61  ;;  %v3880_v50 = vrot.slane %v3865_v56, 4  ;;  %v3911_v24 = vsel %vm1445_vm1, %v3910_v52, %v14853_v12 }
 0x429   : > { %v3867_v5 = vsel %vm1445_vm1, %v3866_v47, %v14872_v57  ;;  %v3917_v6 = vperm.slane %v3911_v24, %v13654_v61  ;;  %v3922_v27 = vrot.slane %v3909_v37, 4  ;;  %v3925_v28 = vsel %vm1445_vm1, %v3909_v37, %v17907_v39 }
 0x42a   : > { %v3873_v7 = vperm.slane %v3867_v5, %v13654_v61  ;;  %v3878_v26 = vrot.slane %v3861_v9, 4  ;;  %v3881_v62 = vsel %vm1445_vm1, 0.0, %v3880_v50  ;;  %v3884_v30 = vrot.slane %v3877_v23, 4 }
 0x42b   : > { %v3923_v56 = vsel %vm1445_vm1, %v3922_v27, %v14857_v17  ;;  %v3933_v12 = vperm.slane %v3925_v28, %v13654_v61  ;;  %v3934_v52 = vrot.slane %v3917_v6, 4  ;;  %v3936_v57 = vrot.slane %v3921_v32, 4 }
 0x42c   : > { %v3879_v47 = vsel %vm1445_vm1, 0.0, %v3878_v26  ;;  %v3882_v14 = vrot.slane %v3873_v7, 4  ;;  %v3885_v44 = vsel %vm1445_vm1, 0.0, %v3884_v30  ;;  %v3929_v37 = vperm.slane %v3923_v56, %v13654_v61 }
 0x42d   : > { %v3935_v24 = vsel %vm1445_vm1, 0.0, %v3934_v52  ;;  %v3937_v5 = vsel %vm1445_vm1, 0.0, %v3936_v57  ;;  %v3940_v39 = vrot.slane %v3933_v12, 4  ;;  %v4714_v23 = vsel %vm1445_vm1, %v3880_v50, %v3861_v9 }
 0x42e   : > { %v3883_v17 = vsel %vm1445_vm1, 0.0, %v3882_v14  ;;  %v3938_v27 = vrot.slane %v3929_v37, 4  ;;  %v4718_v28 = vperm.slane %v4714_v23, %v13596_v48  ;;  %v4719_v32 = vrot.slane %v3881_v62, 4 }
 0x42f   : > { %v3941_v26 = vsel %vm1445_vm1, 0.0, %v3940_v39  ;;  %v4725_v35 = vsel %vm1445_vm1, %v3884_v30, %v3873_v7  ;;  %v4730_v59 = vrot.slane %v3885_v44, 4  ;;  %v4768_v56 = vsel %vm1445_vm1, %v3936_v57, %v3917_v6 }
 0x430   : > { %v3939_v52 = vsel %vm1445_vm1, 0.0, %v3938_v27  ;;  %v4720_v63 = vsel %vm1445_vm1, %v4719_v32, %v3879_v47  ;;  %v4729_v12 = vperm.slane %v4725_v35, %v13596_v48  ;;  %v4738_v9 = vrot.slane %v4718_v28, 4 }
 0x431   : > { %v4724_v50 = vperm.slane %v4720_v63, %v13596_v48  ;;  %v4731_v14 = vsel %vm1445_vm1, %v4730_v59, %v3883_v17  ;;  %v4772_v62 = vperm.slane %v4768_v56, %v13596_v48  ;;  %v4773_v23 = vrot.slane %v3937_v5, 4 }
 0x432   : > { %v4735_v11 = vperm.slane %v4731_v14, %v13596_v48  ;;  %v4750_v7 = vrot.slane %v4729_v12, 4  ;;  %v4779_v30 = vsel %vm1445_vm1, %v3940_v39, %v3929_v37  ;;  %v4784_v6 = vrot.slane %v3941_v26, 4 }
 0x433   : > { %v4736_v57 = vrot.slane %v4724_v50, 4  ;;  %v4739_v44 = vsel %vm1445_vm1, %v4724_v50, %v4738_v9  ;;  %v4774_v47 = vsel %vm1445_vm1, %v4773_v23, %v3935_v24  ;;  %v4783_v35 = vperm.slane %v4779_v30, %v13596_v48 }
 0x434   : > { %v4747_v63 = vperm.slane %v4739_v44, %v13654_v61  ;;  %v4748_v27 = vrot.slane %v4735_v11, 4  ;;  %v4751_v59 = vsel %vm1445_vm1, %v4735_v11, %v4750_v7  ;;  %v4778_v5 = vperm.slane %v4774_v47, %v13596_v48 }
 0x435   : > { %v4737_v17 = vsel %vm1445_vm1, %v4736_v57, %v4718_v28  ;;  %v4759_v32 = vperm.slane %v4751_v59, %v13654_v61  ;;  %v4785_v37 = vsel %vm1445_vm1, %v4784_v6, %v3939_v52  ;;  %v4792_v39 = vrot.slane %v4772_v62, 4 }
 0x436   : > { %v4743_v26 = vperm.slane %v4737_v17, %v13654_v61  ;;  %v4749_v24 = vsel %vm1445_vm1, %v4748_v27, %v4729_v12  ;;  %v4766_v56 = vrot.slane %v4747_v63, 4  ;;  %v4789_v9 = vperm.slane %v4785_v37, %v13596_v48 }
 0x437   : > { %v4755_v50 = vperm.slane %v4749_v24, %v13654_v61  ;;  %v4764_v14 = vrot.slane %v4759_v32, 4  ;;  %v4790_v11 = vrot.slane %v4778_v5, 4  ;;  %v4793_v23 = vsel %vm1445_vm1, %v4778_v5, %v4792_v39 }
 0x438   : > { %v4762_v7 = vrot.slane %v4743_v26, 4  ;;  %v4767_v28 = vsel %vm1445_vm1, %v4759_v32, %v4766_v56  ;;  %v4801_v30 = vperm.slane %v4793_v23, %v13654_v61  ;;  %v4802_v52 = vrot.slane %v4789_v9, 4 }
 0x439   : > { %v4760_v6 = vrot.slane %v4755_v50, 4  ;;  %v4765_v57 = vsel %vm1445_vm1, %v4764_v14, %v4747_v63  ;;  %v4791_v12 = vsel %vm1445_vm1, %v4790_v11, %v4772_v62  ;;  %v4804_v44 = vrot.slane %v4783_v35, 4 }
 0x43a   : > { %v4763_v47 = vsel %vm1445_vm1, %v4755_v50, %v4762_v7  ;;  %v4797_v27 = vperm.slane %v4791_v12, %v13654_v61  ;;  %v4803_v59 = vsel %vm1445_vm1, %v4802_v52, %v4783_v35  ;;  %v4820_v17 = vrot.slane %v4801_v30, 4 }
 0x43b   : > { %v4761_v5 = vsel %vm1445_vm1, %v4760_v6, %v4743_v26  ;;  %v4805_v32 = vsel %vm1445_vm1, %v4789_v9, %v4804_v44  ;;  %v4809_v37 = vperm.slane %v4803_v59, %v13654_v61  ;;  %v5276_v39 = vpack.c.bf16 %v4763_v47, %v4763_v47 }
 0x43c   : > { %v4813_v24 = vperm.slane %v4805_v32, %v13654_v61  ;;  %v4816_v63 = vrot.slane %v4797_v27, 4  ;;  %v5260_v56 = vpack.c.bf16 %v4761_v5, %v4761_v5  ;;  %v5292_v62 = vpack.c.bf16 %v4765_v57, %v4765_v57 }
 0x43d   : > { %v4814_v14 = vrot.slane %v4809_v37, 4  ;;  %v5308_v11 = vpack.c.bf16 %v4767_v28, %v4767_v28  ;;  %5340 = vst.msk [vmem:[#allocation3 + $0x58] sm:$0xf] %vm3269_vm2, %v5276_v39  ;;  %v1849_v35 = vrot.slane %v11915_v29, 4  ;;  %v1852_v26 = vsel %vm1445_vm1, %v11915_v29, %v14910_v36 }
 0x43e   : > { %v4817_v9 = vsel %vm1445_vm1, %v4809_v37, %v4816_v63  ;;  %v4818_v50 = vrot.slane %v4813_v24, 4  ;;  %v4821_v23 = vsel %vm1445_vm1, %v4813_v24, %v4820_v17  ;;  %5324 = vst.msk [vmem:[#allocation3 + $0x18] sm:$0xf] %vm3269_vm2, %v5260_v56  ;;  %v1860_v7 = vperm.slane %v1852_v26, %v13596_v48 }
 0x43f   : > { %v4815_v28 = vsel %vm1445_vm1, %v4814_v14, %v4797_v27  ;;  %v5277_v52 = vpack.c.bf16 %v4817_v9, %v4817_v9  ;;  %v5309_v6 = vpack.c.bf16 %v4821_v23, %v4821_v23  ;;  %5356 = vst.msk [vmem:[#allocation3 + $0x98] sm:$0xf] %vm3269_vm2, %v5292_v62  ;;  %v17908_v57 = vunpack.i.h.bf16 %v14830_v22 }
 0x440   : > { %v4819_v36 = vsel %vm1445_vm1, %v4818_v50, %v4801_v30  ;;  %v5261_v29 = vpack.c.bf16 %v4815_v28, %v4815_v28  ;;  %5372 = vst.msk [vmem:[#allocation3 + $0xd8] sm:$0xf] %vm3269_vm2, %v5308_v11  ;;  %v1873_v47 = vrot.slane %v1860_v7, 4  ;;  %v15399_v59 = vperm.slane %v15295_v58, %v13596_v48 }
 0x441   : > { %v1850_v12 = vsel %vm1445_vm1, %v1849_v35, %v17908_v57  ;;  %v5293_v27 = vpack.c.bf16 %v4819_v36, %v4819_v36  ;;  %5341 = vst.msk [vmem:[#allocation3 + $0x5c] sm:$0xf] %vm3269_vm2, %v5277_v52  ;;  %v1876_v17 = vsel %vm1445_vm1, %v1860_v7, %v1875_v51  ;;  %v11914_v5 = vunpack.i.l.bf16 %v15301_v55 }
 0x442   : > { %v1856_v44 = vperm.slane %v1850_v12, %v13596_v48  ;;  %5325 = vst.msk [vmem:[#allocation3 + $0x1c] sm:$0xf] %vm3269_vm2, %v5261_v29  ;;  %v17909_v32 = vrot.slane %v15020_v18, 4  ;;  %v1874_v58 = vsel %vm1445_vm1, %v1873_v47, %v15023_v21  ;;  %v1884_v39 = vperm.slane %v1876_v17, %v13654_v61 }
 0x443   : > { %5357 = vst.msk [vmem:[#allocation3 + $0x9c] sm:$0xf] %vm3269_vm2, %v5293_v27  ;;  %v1880_v51 = vperm.slane %v1874_v58, %v13654_v61  ;;  %v1793_v63 = vrot.slane %v11914_v5, 4  ;;  %v1796_v55 = vsel %vm1445_vm1, %v11914_v5, %v15140_v60  ;;  %v5916_v56 = vrot.slane %v15288_v38, 4 }
 0x444   : > { %v1861_v30 = vrot.slane %v1856_v44, 4  ;;  %v1864_v37 = vsel %vm1445_vm1, %v1856_v44, %v17909_v32  ;;  %5373 = vst.msk [vmem:[#allocation3 + $0xdc] sm:$0xf] %vm3269_vm2, %v5309_v6  ;;  %v1891_v21 = vrot.slane %v1884_v39, 4  ;;  %v1804_v14 = vperm.slane %v1796_v55, %v13596_v48 }
 0x445   : > { %v1872_v24 = vperm.slane %v1864_v37, %v13654_v61  ;;  %v1889_v26 = vrot.slane %v1880_v51, 4  ;;  %v17910_v9 = vunpack.i.l.bf16 %v14830_v22  ;;  %v17911_v27 = vrot.slane %v15122_v41, 4 }
 0x446   : > { %v1862_v62 = vsel %vm1445_vm1, %v1861_v30, %v15020_v18  ;;  %v1892_v60 = vsel %vm1445_vm1, 0.0, %v1891_v21  ;;  %v2730_v23 = vsel %vm1445_vm1, %v1891_v21, %v1880_v51  ;;  %v1817_v28 = vrot.slane %v1804_v14, 4 }
 0x447   : > { %v1868_v11 = vperm.slane %v1862_v62, %v13654_v61  ;;  %v1887_v35 = vrot.slane %v1872_v24, 4  ;;  %v1794_v50 = vsel %vm1445_vm1, %v1793_v63, %v17910_v9  ;;  %v1890_v6 = vsel %vm1445_vm1, 0.0, %v1889_v26 }
 0x448   : > { %v1800_v7 = vperm.slane %v1794_v50, %v13596_v48  ;;  %v2734_v22 = vperm.slane %v2730_v23, %v13596_v48  ;;  %v2735_v29 = vrot.slane %v1892_v60, 4  ;;  %v1818_v5 = vsel %vm1445_vm1, %v1817_v28, %v15036_v34 }
 0x449   : > { %v1885_v52 = vrot.slane %v1868_v11, 4  ;;  %v1888_v18 = vsel %vm1445_vm1, 0.0, %v1887_v35  ;;  %v2719_v57 = vsel %vm1445_vm1, %v1887_v35, %v1868_v11  ;;  %v17912_v62 = vrot.slane %v15036_v34, 4  ;;  %v17913_v35 = vld [vmem:[#allocation35_spill] sm:$0xff] }
 0x44a   : > { %v2723_v12 = vperm.slane %v2719_v57, %v13596_v48  ;;  %v2724_v36 = vrot.slane %v1888_v18, 4  ;;  %v1805_v47 = vrot.slane %v1800_v7, 4  ;;  %v1808_v17 = vsel %vm1445_vm1, %v1800_v7, %v17911_v27 }
 0x44b   : > { %v1886_v44 = vsel %vm1445_vm1, 0.0, %v1885_v52  ;;  %v2736_v32 = vsel %vm1445_vm1, %v2735_v29, %v1890_v6  ;;  %v2755_v58 = vrot.slane %v2734_v22, 4  ;;  %v1816_v63 = vperm.slane %v1808_v17, %v13654_v61 }
 0x44c   : > { %v2725_v30 = vsel %vm1445_vm1, %v2724_v36, %v1886_v44  ;;  %v2743_v37 = vrot.slane %v2723_v12, 4  ;;  %v2740_v24 = vperm.slane %v2736_v32, %v13596_v48  ;;  %v1806_v51 = vsel %vm1445_vm1, %v1805_v47, %v15122_v41 }
 0x44d   : > { %v2729_v39 = vperm.slane %v2725_v30, %v13596_v48  ;;  %v1812_v55 = vperm.slane %v1806_v51, %v13654_v61  ;;  %v1820_v21 = vsel %vm1445_vm1, %v1804_v14, %v17912_v62  ;;  %v1824_v11 = vperm.slane %v1818_v5, %v13654_v61 }
 0x44e   : > { %v4336_v26 = vrot.slane %v17913_v35, 4  ;;  %v2753_v60 = vrot.slane %v2740_v24, 4  ;;  %v2756_v23 = vsel %vm1445_vm1, %v2740_v24, %v2755_v58  ;;  %v1828_v28 = vperm.slane %v1820_v21, %v13654_v61 }
 0x44f   : > { %v2741_v9 = vrot.slane %v2729_v39, 4  ;;  %v2744_v50 = vsel %vm1445_vm1, %v2729_v39, %v2743_v37  ;;  %v2764_v7 = vperm.slane %v2756_v23, %v13654_v61  ;;  %v1829_v52 = vrot.slane %v1812_v55, 4 }
 0x450   : > { %v2752_v41 = vperm.slane %v2744_v50, %v13654_v61  ;;  %v2754_v14 = vsel %vm1445_vm1, %v2753_v60, %v2734_v22  ;;  %v1831_v18 = vrot.slane %v1816_v63, 4  ;;  %v1833_v6 = vrot.slane %v1824_v11, 4  ;;  %v15473_v50 = vpop.permute.xlu2 %11957 }
 0x451   : > { %v2742_v34 = vsel %vm1445_vm1, %v2741_v9, %v2723_v12  ;;  %v2760_v36 = vperm.slane %v2754_v14, %v13654_v61  ;;  %v2769_v29 = vrot.slane %v2764_v7, 4  ;;  %v1830_v47 = vsel %vm1445_vm1, 0.0, %v1829_v52  ;;  %v11923_v9 = vpop.permute.xlu1 %11922 }
 0x452   : > { %v2748_v57 = vperm.slane %v2742_v34, %v13654_v61  ;;  %v2771_v44 = vrot.slane %v2752_v41, 4  ;;  %v1832_v27 = vsel %vm1445_vm1, 0.0, %v1831_v18  ;;  %v1834_v17 = vsel %vm1445_vm1, 0.0, %v1833_v6 }
 0x453   : > { %v1835_v5 = vrot.slane %v1828_v28, 4  ;;  %v2765_v30 = vrot.slane %v2760_v36, 4  ;;  %v2770_v12 = vsel %vm1445_vm1, %v2769_v29, %v2752_v41  ;;  %v2665_v24 = vsel %vm1445_vm1, %v1831_v18, %v1812_v55 }
 0x454   : > { %v2767_v32 = vrot.slane %v2748_v57, 4  ;;  %v2772_v22 = vsel %vm1445_vm1, %v2764_v7, %v2771_v44  ;;  %v3244_v37 = vpack.c.bf16 %v2770_v12, %v2770_v12  ;;  %v2669_v62 = vperm.slane %v2665_v24, %v13596_v48  ;;  %v11918_v44 = vpop.permute.xlu0 %11917 }
 0x455   : > { %v3260_v58 = vpack.c.bf16 %v2772_v22, %v2772_v22  ;;  %v1836_v39 = vsel %vm1445_vm1, 0.0, %v1835_v5  ;;  %v2766_v51 = vsel %vm1445_vm1, %v2765_v30, %v2748_v57  ;;  %v2670_v21 = vrot.slane %v1832_v27, 4 }
 0x456   : > { %v2768_v63 = vsel %vm1445_vm1, %v2760_v36, %v2767_v32  ;;  %v3212_v60 = vpack.c.bf16 %v2766_v51, %v2766_v51  ;;  %3309 = vst.msk [vmem:[#allocation2 + $0x9c] sm:$0xf] %vm3269_vm2, %v3244_v37  ;;  %v2676_v41 = vsel %vm1445_vm1, %v1835_v5, %v1824_v11  ;;  %v2681_v7 = vrot.slane %v1836_v39, 4 }
 0x457   : > { %v3228_v23 = vpack.c.bf16 %v2768_v63, %v2768_v63  ;;  %3325 = vst.msk [vmem:[#allocation2 + $0xdc] sm:$0xf] %vm3269_vm2, %v3260_v58  ;;  %v2671_v55 = vsel %vm1445_vm1, %v2670_v21, %v1830_v47  ;;  %v2680_v28 = vperm.slane %v2676_v41, %v13596_v48  ;;  %v2689_v52 = vrot.slane %v2669_v62, 4 }
 0x458   : > { %v6216_v34 = vrot.slane %v14060_v4, 4  ;;  %v5904_v14 = vrot.slane %v15399_v59, 4  ;;  %3277 = vst.msk [vmem:[#allocation2 + $0x1c] sm:$0xf] %vm3269_vm2, %v3212_v60  ;;  %v2675_v18 = vperm.slane %v2671_v55, %v13596_v48  ;;  %v2682_v6 = vsel %vm1445_vm1, %v2681_v7, %v1834_v17 }
 0x459   : > { %v11925_v57 = vunpack.i.h.bf16 %v11923_v9  ;;  %v11960_v11 = vunpack.i.h.bf16 %v15473_v50  ;;  %3293 = vst.msk [vmem:[#allocation2 + $0x5c] sm:$0xf] %vm3269_vm2, %v3228_v23  ;;  %v2686_v36 = vperm.slane %v2682_v6, %v13596_v48  ;;  %v2701_v29 = vrot.slane %v2680_v28, 4 }
 0x45a   : > { %v6272_v47 = vrot.slane %v14081_v43, 4  ;;  %v2687_v27 = vrot.slane %v2675_v18, 4  ;;  %v2690_v5 = vsel %vm1445_vm1, %v2675_v18, %v2689_v52  ;;  %v11924_v32 = vunpack.i.l.bf16 %v11923_v9 }
 0x45b   : > { %v4334_v30 = vrot.slane %v11925_v57, 4  ;;  %v2698_v12 = vperm.slane %v2690_v5, %v13654_v61  ;;  %v2699_v22 = vrot.slane %v2686_v36, 4  ;;  %v2702_v17 = vsel %vm1445_vm1, %v2686_v36, %v2701_v29 }
 0x45c   : > { %v4337_v37 = vsel %vm1445_vm1, %v11925_v57, %v4336_v26  ;;  %v2688_v58 = vsel %vm1445_vm1, %v2687_v27, %v2669_v62  ;;  %v2710_v39 = vperm.slane %v2702_v17, %v13654_v61  ;;  %v11920_v51 = vunpack.i.h.bf16 %v11918_v44 }
 0x45d   : > { %v4335_v24 = vsel %vm1445_vm1, %v4334_v30, %v17913_v35  ;;  %v2694_v63 = vperm.slane %v2688_v58, %v13654_v61  ;;  %v2700_v21 = vsel %vm1445_vm1, %v2699_v22, %v2680_v28  ;;  %v2717_v9 = vrot.slane %v2698_v12, 4 }
 0x45e   : > { %v4341_v60 = vperm.slane %v4335_v24, %v13596_v48  ;;  %v2706_v23 = vperm.slane %v2700_v21, %v13654_v61  ;;  %v2715_v41 = vrot.slane %v2710_v39, 4  ;;  %v4345_v26 = vperm.slane %v4337_v37, %v13596_v48 }
 0x45f   : > { %v4278_v7 = vrot.slane %v11924_v32, 4  ;;  %v2713_v62 = vrot.slane %v2694_v63, 4  ;;  %v2718_v55 = vsel %vm1445_vm1, %v2710_v39, %v2717_v9  ;;  %v17914_v35 = vrot.slane %v17897_v0, 4 }
 0x460   : > { %v4360_v52 = vrot.slane %v4341_v60, 4  ;;  %v2711_v6 = vrot.slane %v2706_v23, 4  ;;  %v2716_v28 = vsel %vm1445_vm1, %v2715_v41, %v2698_v12  ;;  %v3259_v57 = vpack.c.bf16 %v2718_v55, %v2718_v55 }
 0x461   : > { %v4281_v18 = vsel %vm1445_vm1, %v11924_v32, %v17914_v35  ;;  %v4279_v36 = vsel %vm1445_vm1, %v4278_v7, %v17897_v0  ;;  %v2714_v29 = vsel %vm1445_vm1, %v2706_v23, %v2713_v62  ;;  %v3243_v27 = vpack.c.bf16 %v2716_v28, %v2716_v28 }
 0x462   : > { %v4285_v5 = vperm.slane %v4279_v36, %v13596_v48  ;;  %v15514_v30 = vperm.slane %v4281_v18, %v13596_v48  ;;  %v2712_v22 = vsel %vm1445_vm1, %v2711_v6, %v2694_v63  ;;  %v3227_v17 = vpack.c.bf16 %v2714_v29, %v2714_v29  ;;  %3324 = vst.msk [vmem:[#allocation2 + $0xd8] sm:$0xf] %vm3269_vm2, %v3259_v57 }
 0x463   : > { %v4347_v32 = vsel %vm1445_vm1, %v15156_v13, %v11920_v51  ;;  %v4348_v12 = vrot.slane %v11920_v51, 4  ;;  %v3211_v37 = vpack.c.bf16 %v2712_v22, %v2712_v22  ;;  %3308 = vst.msk [vmem:[#allocation2 + $0x98] sm:$0xf] %vm3269_vm2, %v3243_v27  ;;  %v4372_v0 = vrot.slane %v4345_v26, 4 }
 0x464   : > { %v4353_v58 = vperm.slane %v4347_v32, %v13596_v48  ;;  %v5992_v39 = vrot.slane %v13612_v33, 4  ;;  %v15525_v24 = vrot.slane %v11960_v11, 4  ;;  %v11959_v63 = vunpack.i.l.bf16 %v15473_v50  ;;  %3292 = vst.msk [vmem:[#allocation2 + $0x58] sm:$0xf] %vm3269_vm2, %v3227_v17 }
 0x465   : > { %v17915_v21 = vunpack.i.h.bf16 %v15096_v31  ;;  %v11919_v51 = vunpack.i.l.bf16 %v11918_v44  ;;  %3276 = vst.msk [vmem:[#allocation2 + $0x18] sm:$0xf] %vm3269_vm2, %v3211_v37  ;;  %v4304_v9 = vrot.slane %v4285_v5, 4  ;;  %v4316_v62 = vrot.slane %v15514_v30, 4 }
 0x466   : > { %v4358_v41 = vrot.slane %v4353_v58, 4  ;;  %v4361_v7 = vsel %vm1445_vm1, %v4353_v58, %v4360_v52  ;;  %v17916_v27 = vunpack.i.l.bf16 %v15096_v31 }
 0x467   : > { %v4349_v13 = vsel %vm1445_vm1, %v17915_v21, %v4348_v12  ;;  %v4369_v55 = vperm.slane %v4361_v7, %v13654_v61  ;;  %v4291_v35 = vsel %vm1445_vm1, %v15168_v2, %v11919_v51  ;;  %v4292_v18 = vrot.slane %v11919_v51, 4 }
 0x468   : > { %v4357_v23 = vperm.slane %v4349_v13, %v13596_v48  ;;  %v4359_v6 = vsel %vm1445_vm1, %v4358_v41, %v4341_v60  ;;  %v4297_v57 = vperm.slane %v4291_v35, %v13596_v48 }
 0x469   : > { %v4365_v36 = vperm.slane %v4359_v6, %v13654_v61  ;;  %v4384_v52 = vrot.slane %v4369_v55, 4  ;;  %v4293_v22 = vsel %vm1445_vm1, %v17916_v27, %v4292_v18 }
 0x46a   : > { %v4370_v28 = vrot.slane %v4357_v23, 4  ;;  %v4373_v44 = vsel %vm1445_vm1, %v4357_v23, %v4372_v0  ;;  %v4301_v2 = vperm.slane %v4293_v22, %v13596_v48  ;;  %v4302_v32 = vrot.slane %v4297_v57, 4  ;;  %v15555_v23 = vpop.permute.xlu2 %11972 }
 0x46b   : > { %v4381_v29 = vperm.slane %v4373_v44, %v13654_v61  ;;  %v4305_v60 = vsel %vm1445_vm1, %v4297_v57, %v4304_v9  ;;  %v4382_v37 = vrot.slane %v4365_v36, 4  ;;  %v4385_v0 = vsel %vm1445_vm1, 0.0, %v4384_v52 }
 0x46c   : > { %v4371_v17 = vsel %vm1445_vm1, %v4370_v28, %v4345_v26  ;;  %v5200_v21 = vsel %vm1445_vm1, %v4384_v52, %v4365_v36  ;;  %v5205_v13 = vrot.slane %v4385_v0, 4  ;;  %v4303_v31 = vsel %vm1445_vm1, %v4302_v32, %v4285_v5 }
 0x46d   : > { %v4377_v12 = vperm.slane %v4371_v17, %v13654_v61  ;;  %v4388_v58 = vrot.slane %v4381_v29, 4  ;;  %v4313_v51 = vperm.slane %v4305_v60, %v13654_v61  ;;  %v4383_v26 = vsel %vm1445_vm1, 0.0, %v4382_v37 }
 0x46e   : > { %v5204_v7 = vperm.slane %v5200_v21, %v13596_v48  ;;  %v5206_v55 = vsel %vm1445_vm1, %v5205_v13, %v4383_v26  ;;  %v4309_v6 = vperm.slane %v4303_v31, %v13654_v61  ;;  %v4314_v29 = vrot.slane %v4301_v2, 4 }
 0x46f   : > { %v4386_v41 = vrot.slane %v4377_v12, 4  ;;  %v4389_v9 = vsel %vm1445_vm1, 0.0, %v4388_v58  ;;  %v5211_v35 = vsel %vm1445_vm1, %v4388_v58, %v4377_v12  ;;  %v5210_v28 = vperm.slane %v5206_v55, %v13596_v48 }
 0x470   : > { %v5216_v18 = vrot.slane %v4389_v9, 4  ;;  %v5215_v44 = vperm.slane %v5211_v35, %v13596_v48  ;;  %v5224_v57 = vrot.slane %v5204_v7, 4  ;;  %v4317_v52 = vsel %vm1445_vm1, %v4301_v2, %v4316_v62 }
 0x471   : > { %v4387_v5 = vsel %vm1445_vm1, 0.0, %v4386_v41  ;;  %v4326_v27 = vrot.slane %v4309_v6, 4  ;;  %v5222_v17 = vrot.slane %v5210_v28, 4  ;;  %v4315_v37 = vsel %vm1445_vm1, %v4314_v29, %v15514_v30 }
 0x472   : > { %v5217_v36 = vsel %vm1445_vm1, %v5216_v18, %v4387_v5  ;;  %v5225_v32 = vsel %vm1445_vm1, %v5210_v28, %v5224_v57  ;;  %v5236_v60 = vrot.slane %v5215_v44, 4  ;;  %v4325_v0 = vperm.slane %v4317_v52, %v13654_v61 }
 0x473   : > { %v5221_v22 = vperm.slane %v5217_v36, %v13596_v48  ;;  %v5233_v12 = vperm.slane %v5225_v32, %v13654_v61  ;;  %v6048_v58 = vrot.slane %v13937_v40, 4  ;;  %v5223_v21 = vsel %vm1445_vm1, %v5222_v17, %v5204_v7 }
 0x474   : > { %v4321_v2 = vperm.slane %v4315_v37, %v13654_v61  ;;  %v5229_v31 = vperm.slane %v5223_v21, %v13654_v61  ;;  %v4328_v9 = vrot.slane %v4313_v51, 4  ;;  %v4327_v30 = vsel %vm1445_vm1, 0.0, %v4326_v27  ;;  %v15587_v51 = vpop.permute.xlu2 %11992 }
 0x475   : > { %v5234_v13 = vrot.slane %v5221_v22, 4  ;;  %v5237_v62 = vsel %vm1445_vm1, %v5221_v22, %v5236_v60  ;;  %v5252_v41 = vrot.slane %v5233_v12, 4  ;;  %v4332_v18 = vrot.slane %v4325_v0, 4 }
 0x476   : > { %v5245_v26 = vperm.slane %v5237_v62, %v13654_v61  ;;  %v4330_v35 = vrot.slane %v4321_v2, 4  ;;  %v5248_v7 = vrot.slane %v5229_v31, 4  ;;  %v4329_v29 = vsel %vm1445_vm1, 0.0, %v4328_v9 }
 0x477   : > { %v5235_v55 = vsel %vm1445_vm1, %v5234_v13, %v5215_v44  ;;  %v4333_v22 = vsel %vm1445_vm1, 0.0, %v4332_v18  ;;  %v5146_v32 = vsel %vm1445_vm1, %v4328_v9, %v4309_v6  ;;  %v5151_v21 = vrot.slane %v4329_v29, 4 }
 0x478   : > { %v5241_v5 = vperm.slane %v5235_v55, %v13654_v61  ;;  %v5250_v28 = vrot.slane %v5245_v26, 4  ;;  %v5253_v57 = vsel %vm1445_vm1, %v5245_v26, %v5252_v41  ;;  %v4331_v52 = vsel %vm1445_vm1, 0.0, %v4330_v35 }
 0x479   : > { %v5317_v36 = vpack.c.bf16 %v5253_v57, %v5253_v57  ;;  %v5150_v0 = vperm.slane %v5146_v32, %v13596_v48  ;;  %v5157_v62 = vsel %vm1445_vm1, %v4332_v18, %v4321_v2  ;;  %v5162_v26 = vrot.slane %v4333_v22, 4 }
 0x47a   : > { %v5246_v44 = vrot.slane %v5241_v5, 4  ;;  %v5249_v27 = vsel %vm1445_vm1, %v5241_v5, %v5248_v7  ;;  %v5251_v17 = vsel %vm1445_vm1, %v5250_v28, %v5233_v12  ;;  %v11995_v41 = vunpack.i.h.bf16 %v15587_v51  ;;  %v11933_v28 = vpop.permute.xlu1 %11932 }
 0x47b   : > { %v5285_v60 = vpack.c.bf16 %v5249_v27, %v5249_v27  ;;  %v5301_v37 = vpack.c.bf16 %v5251_v17, %v5251_v17  ;;  %5381 = vst.msk [vmem:[#allocation3 + $0xfc] sm:$0xf] %vm3269_vm2, %v5317_v36  ;;  %v5152_v12 = vsel %vm1445_vm1, %v5151_v21, %v4327_v30  ;;  %v5161_v6 = vperm.slane %v5157_v62, %v13596_v48 }
 0x47c   : > { %v5247_v13 = vsel %vm1445_vm1, %v5246_v44, %v5229_v31  ;;  %v5170_v9 = vrot.slane %v5150_v0, 4  ;;  %v5156_v35 = vperm.slane %v5152_v12, %v13596_v48  ;;  %v5163_v5 = vsel %vm1445_vm1, %v5162_v26, %v4331_v52 }
 0x47d   : > { %v5269_v55 = vpack.c.bf16 %v5247_v13, %v5247_v13  ;;  %5349 = vst.msk [vmem:[#allocation3 + $0x7c] sm:$0xf] %vm3269_vm2, %v5285_v60  ;;  %v15607_v18 = vrot.slane %v11959_v63, 4  ;;  %v5167_v30 = vperm.slane %v5163_v5, %v13596_v48  ;;  %v5182_v7 = vrot.slane %v5161_v6, 4 }
 0x47e   : > { %5365 = vst.msk [vmem:[#allocation3 + $0xbc] sm:$0xf] %vm3269_vm2, %v5301_v37  ;;  %v11975_v36 = vunpack.i.h.bf16 %v15555_v23  ;;  %v11974_v29 = vunpack.i.l.bf16 %v15555_v23  ;;  %v5168_v52 = vrot.slane %v5156_v35, 4  ;;  %v5171_v22 = vsel %vm1445_vm1, %v5156_v35, %v5170_v9 }
 0x47f   : > { %5333 = vst.msk [vmem:[#allocation3 + $0x3c] sm:$0xf] %vm3269_vm2, %v5269_v55  ;;  %v5179_v44 = vperm.slane %v5171_v22, %v13654_v61  ;;  %v5180_v27 = vrot.slane %v5167_v30, 4  ;;  %v5183_v17 = vsel %vm1445_vm1, %v5167_v30, %v5182_v7  ;;  %v6270_v32 = vrot.slane %v11995_v41, 4 }
 0x480   : > { %v5169_v60 = vsel %vm1445_vm1, %v5168_v52, %v5150_v0  ;;  %v5191_v37 = vperm.slane %v5183_v17, %v13654_v61  ;;  %v11935_v21 = vunpack.i.h.bf16 %v11933_v28  ;;  %v11994_v12 = vunpack.i.l.bf16 %v15587_v51  ;;  %v11943_v52 = vpop.permute.xlu0 %11942 }
 0x481   : > { %v5175_v62 = vperm.slane %v5169_v60, %v13654_v61  ;;  %v5181_v26 = vsel %vm1445_vm1, %v5180_v27, %v5161_v6  ;;  %v5198_v55 = vrot.slane %v5179_v44, 4  ;;  %v15625_v9 = vrot.slane %v11975_v36, 4 }
 0x482   : > { %v15629_v35 = vrot.slane %v11974_v29, 4  ;;  %v5187_v0 = vperm.slane %v5181_v26, %v13654_v61  ;;  %v5196_v5 = vrot.slane %v5191_v37, 4  ;;  %v6271_v6 = vsel %vm1445_vm1, %v6270_v32, %v14081_v43 }
 0x483   : > { %v5194_v30 = vrot.slane %v5175_v62, 4  ;;  %v5199_v7 = vsel %vm1445_vm1, %v5191_v37, %v5198_v55  ;;  %v6273_v51 = vsel %vm1445_vm1, %v11995_v41, %v6272_v47  ;;  %v5948_v60 = vrot.slane %v11935_v21, 4 }
 0x484   : > { %v5192_v22 = vrot.slane %v5187_v0, 4  ;;  %v5197_v27 = vsel %vm1445_vm1, %v5196_v5, %v5179_v44  ;;  %v5316_v17 = vpack.c.bf16 %v5199_v7, %v5199_v7  ;;  %v6214_v13 = vrot.slane %v11994_v12, 4 }
 0x485   : > { %v5195_v57 = vsel %vm1445_vm1, %v5187_v0, %v5194_v30  ;;  %v5300_v26 = vpack.c.bf16 %v5197_v27, %v5197_v27  ;;  %v11934_v31 = vunpack.i.l.bf16 %v11933_v28  ;;  %v11945_v32 = vunpack.i.h.bf16 %v11943_v52 }
 0x486   : > { %v5193_v37 = vsel %vm1445_vm1, %v5192_v22, %v5175_v62  ;;  %v5284_v55 = vpack.c.bf16 %v5195_v57, %v5195_v57  ;;  %5380 = vst.msk [vmem:[#allocation3 + $0xf8] sm:$0xf] %vm3269_vm2, %v5316_v17  ;;  %v11944_v43 = vunpack.i.l.bf16 %v11943_v52  ;;  %v6104_v41 = vrot.slane %v14331_v1, 4 }
 0x487   : > { %v5268_v2 = vpack.c.bf16 %v5193_v37, %v5193_v37  ;;  %5364 = vst.msk [vmem:[#allocation3 + $0xb8] sm:$0xf] %vm3269_vm2, %v5300_v26  ;;  %v5892_v47 = vrot.slane %v11934_v31, 4  ;;  %v6160_v44 = vrot.slane %v14344_v8, 4  ;;  %v15647_v0 = vperm.slane %v6271_v6, %v13596_v48 }
 0x488   : > { %5348 = vst.msk [vmem:[#allocation3 + $0x78] sm:$0xf] %vm3269_vm2, %v5284_v55  ;;  %v5946_v28 = vrot.slane %v11945_v32, 4  ;;  %v5949_v57 = vsel %vm1445_vm1, %v11945_v32, %v5948_v60  ;;  %v5890_v62 = vrot.slane %v11944_v43, 4  ;;  %v15652_v5 = vperm.slane %v6273_v51, %v13596_v48 }
 0x489   : > { %5332 = vst.msk [vmem:[#allocation3 + $0x38] sm:$0xf] %vm3269_vm2, %v5268_v2  ;;  %v6217_v30 = vsel %vm1445_vm1, %v11994_v12, %v6216_v34  ;;  %v5957_v7 = vperm.slane %v5949_v57, %v13596_v48  ;;  %v5893_v52 = vsel %vm1445_vm1, %v11944_v43, %v5892_v47  ;;  %v15661_v6 = vsel %vm1445_vm1, %v6214_v13, %v14060_v4 }
 0x48a   : > { %v5947_v22 = vsel %vm1445_vm1, %v5946_v28, %v11935_v21  ;;  %v5891_v27 = vsel %vm1445_vm1, %v5890_v62, %v11934_v31  ;;  %v5901_v2 = vperm.slane %v5893_v52, %v13596_v48  ;;  %v15672_v60 = vperm.slane %v6217_v30, %v13596_v48 }
 0x48b   : > { %v5953_v51 = vperm.slane %v5947_v22, %v13596_v48  ;;  %v5970_v17 = vrot.slane %v5957_v7, 4  ;;  %v5973_v34 = vsel %vm1445_vm1, %v5957_v7, %v5972_v53  ;;  %v5897_v12 = vperm.slane %v5891_v27, %v13596_v48 }
 0x48c   : > { %v5981_v4 = vperm.slane %v5973_v34, %v13654_v61  ;;  %v5914_v13 = vrot.slane %v5901_v2, 4  ;;  %v5917_v31 = vsel %vm1445_vm1, %v5901_v2, %v5916_v56  ;;  %v17917_v26 = vrot.slane %v15245_v46, 4 }
 0x48d   : > { %v5958_v21 = vrot.slane %v5953_v51, 4  ;;  %v5971_v53 = vsel %vm1445_vm1, %v5970_v17, %v15261_v19  ;;  %v5902_v55 = vrot.slane %v5897_v12, 4  ;;  %v5905_v28 = vsel %vm1445_vm1, %v5897_v12, %v5904_v14 }
 0x48e   : > { %v5961_v37 = vsel %vm1445_vm1, %v5953_v51, %v17917_v26  ;;  %v5977_v43 = vperm.slane %v5971_v53, %v13654_v61  ;;  %v5988_v47 = vrot.slane %v5981_v4, 4  ;;  %v5913_v62 = vperm.slane %v5905_v28, %v13654_v61 }
 0x48f   : > { %v5969_v32 = vperm.slane %v5961_v37, %v13654_v61  ;;  %v5959_v56 = vsel %vm1445_vm1, %v5958_v21, %v15245_v46  ;;  %v5903_v57 = vsel %vm1445_vm1, %v5902_v55, %v15399_v59  ;;  %v5915_v19 = vsel %vm1445_vm1, %v5914_v13, %v15288_v38 }
 0x490   : > { %v5965_v30 = vperm.slane %v5959_v56, %v13654_v61  ;;  %v5986_v52 = vrot.slane %v5977_v43, 4  ;;  %v5989_v22 = vsel %vm1445_vm1, 0.0, %v5988_v47  ;;  %v6827_v27 = vsel %vm1445_vm1, %v5988_v47, %v5977_v43 }
 0x491   : > { %v5984_v7 = vrot.slane %v5969_v32, 4  ;;  %v6832_v14 = vrot.slane %v5989_v22, 4  ;;  %v5909_v2 = vperm.slane %v5903_v57, %v13654_v61  ;;  %v5921_v46 = vperm.slane %v5915_v19, %v13654_v61 }
 0x492   : > { %v5982_v51 = vrot.slane %v5965_v30, 4  ;;  %v5987_v17 = vsel %vm1445_vm1, 0.0, %v5986_v52  ;;  %v6831_v4 = vperm.slane %v6827_v27, %v13596_v48  ;;  %v5925_v37 = vperm.slane %v5917_v31, %v13654_v61 }
 0x493   : > { %v5985_v59 = vsel %vm1445_vm1, 0.0, %v5984_v7  ;;  %v6816_v38 = vsel %vm1445_vm1, %v5984_v7, %v5965_v30  ;;  %v6833_v13 = vsel %vm1445_vm1, %v6832_v14, %v5987_v17  ;;  %v5926_v53 = vrot.slane %v5909_v2, 4 }
 0x494   : > { %v6820_v34 = vperm.slane %v6816_v38, %v13596_v48  ;;  %v6821_v12 = vrot.slane %v5985_v59, 4  ;;  %v5983_v21 = vsel %vm1445_vm1, 0.0, %v5982_v51  ;;  %v6837_v26 = vperm.slane %v6833_v13, %v13596_v48 }
 0x495   : > { %v6852_v43 = vrot.slane %v6831_v4, 4  ;;  %v5928_v47 = vrot.slane %v5913_v62, 4  ;;  %v5927_v57 = vsel %vm1445_vm1, 0.0, %v5926_v53  ;;  %v5930_v19 = vrot.slane %v5921_v46, 4 }
 0x496   : > { %v6822_v55 = vsel %vm1445_vm1, %v6821_v12, %v5983_v21  ;;  %v6840_v32 = vrot.slane %v6820_v34, 4  ;;  %v6850_v56 = vrot.slane %v6837_v26, 4  ;;  %v5932_v52 = vrot.slane %v5925_v37, 4 }
 0x497   : > { %v6826_v28 = vperm.slane %v6822_v55, %v13596_v48  ;;  %v6853_v30 = vsel %vm1445_vm1, %v6837_v26, %v6852_v43  ;;  %v5929_v7 = vsel %vm1445_vm1, 0.0, %v5928_v47  ;;  %v6762_v22 = vsel %vm1445_vm1, %v5928_v47, %v5909_v2 }
 0x498   : > { %v6851_v14 = vsel %vm1445_vm1, %v6850_v56, %v6831_v4  ;;  %v6861_v62 = vperm.slane %v6853_v30, %v13654_v61  ;;  %v5931_v17 = vsel %vm1445_vm1, 0.0, %v5930_v19  ;;  %v5933_v38 = vsel %vm1445_vm1, 0.0, %v5932_v52 }
 0x499   : > { %v6838_v31 = vrot.slane %v6826_v28, 4  ;;  %v6841_v27 = vsel %vm1445_vm1, %v6826_v28, %v6840_v32  ;;  %v6857_v59 = vperm.slane %v6851_v14, %v13654_v61  ;;  %v6766_v2 = vperm.slane %v6762_v22, %v13596_v48 }
 0x49a   : > { %v6849_v51 = vperm.slane %v6841_v27, %v13654_v61  ;;  %v6866_v13 = vrot.slane %v6861_v62, 4  ;;  %v6767_v21 = vrot.slane %v5929_v7, 4  ;;  %v6773_v53 = vsel %vm1445_vm1, %v5932_v52, %v5921_v46  ;;  %v11953_v46 = vpop.permute.xlu1 %11952 }
 0x49b   : > { %v6839_v12 = vsel %vm1445_vm1, %v6838_v31, %v6820_v34  ;;  %v6862_v37 = vrot.slane %v6857_v59, 4  ;;  %v6777_v43 = vperm.slane %v6773_v53, %v13596_v48  ;;  %v6778_v47 = vrot.slane %v5933_v38, 4 }
 0x49c   : > { %v6845_v26 = vperm.slane %v6839_v12, %v13654_v61  ;;  %v6868_v4 = vrot.slane %v6849_v51, 4  ;;  %v6867_v55 = vsel %vm1445_vm1, %v6866_v13, %v6849_v51  ;;  %v6768_v32 = vsel %vm1445_vm1, %v6767_v21, %v5927_v57 }
 0x49d   : > { %v7341_v19 = vpack.c.bf16 %v6867_v55, %v6867_v55  ;;  %v6772_v22 = vperm.slane %v6768_v32, %v13596_v48  ;;  %v6779_v31 = vsel %vm1445_vm1, %v6778_v47, %v5931_v17  ;;  %v6786_v27 = vrot.slane %v6766_v2, 4 }
 0x49e   : > { %v6863_v28 = vsel %vm1445_vm1, %v6862_v37, %v6845_v26  ;;  %v6864_v34 = vrot.slane %v6845_v26, 4  ;;  %v6869_v56 = vsel %vm1445_vm1, %v6861_v62, %v6868_v4  ;;  %v6783_v57 = vperm.slane %v6779_v31, %v13596_v48 }
 0x49f   : > { %v7309_v30 = vpack.c.bf16 %v6863_v28, %v6863_v28  ;;  %v7357_v7 = vpack.c.bf16 %v6869_v56, %v6869_v56  ;;  %7405 = vst.msk [vmem:[#allocation4 + $0x9c] sm:$0xf] %vm3269_vm2, %v7341_v19  ;;  %v6798_v14 = vrot.slane %v6777_v43, 4  ;;  %v6784_v12 = vrot.slane %v6772_v22, 4 }
 0x4a0   : > { %v6865_v52 = vsel %vm1445_vm1, %v6857_v59, %v6864_v34  ;;  %v6787_v17 = vsel %vm1445_vm1, %v6772_v22, %v6786_v27  ;;  %v6796_v13 = vrot.slane %v6783_v57, 4  ;;  %v11955_v21 = vunpack.i.h.bf16 %v11953_v46 }
 0x4a1   : > { %v7325_v38 = vpack.c.bf16 %v6865_v52, %v6865_v52  ;;  %7373 = vst.msk [vmem:[#allocation4 + $0x1c] sm:$0xf] %vm3269_vm2, %v7309_v30  ;;  %v6799_v59 = vsel %vm1445_vm1, %v6783_v57, %v6798_v14  ;;  %v15744_v26 = vperm.slane %v15661_v6, %v13596_v48  ;;  %v6785_v37 = vsel %vm1445_vm1, %v6784_v12, %v6766_v2  ;;  %v11948_v14 = vpop.permute.xlu0 %11947 }
 0x4a2   : > { %7421 = vst.msk [vmem:[#allocation4 + $0xdc] sm:$0xf] %vm3269_vm2, %v7357_v7  ;;  %v6795_v4 = vperm.slane %v6787_v17, %v13654_v61  ;;  %v6807_v53 = vperm.slane %v6799_v59, %v13654_v61  ;;  %v6791_v32 = vperm.slane %v6785_v37, %v13654_v61  ;;  %v6797_v47 = vsel %vm1445_vm1, %v6796_v13, %v6777_v43  ;;  %v15764_v17 = vpop.permute.xlu2 %11997 }
 0x4a3   : > { %7389 = vst.msk [vmem:[#allocation4 + $0x5c] sm:$0xf] %vm3269_vm2, %v7325_v38  ;;  %v3998_v28 = vrot.slane %v11955_v21, 4  ;;  %v6803_v34 = vperm.slane %v6797_v47, %v13654_v61  ;;  %v17918_v19 = vrot.slane %v17901_v3, 4  ;;  %v11954_v22 = vunpack.i.l.bf16 %v11953_v46 }
 0x4a4   : > { %v6812_v56 = vrot.slane %v6807_v53, 4  ;;  %v6814_v6 = vrot.slane %v6795_v4, 4  ;;  %v6810_v2 = vrot.slane %v6791_v32, 4  ;;  %v6328_v31 = vrot.slane %v14454_v54, 4 }
 0x4a5   : > { %v4001_v30 = vsel %vm1445_vm1, %v11955_v21, %v17918_v19  ;;  %v3999_v7 = vsel %vm1445_vm1, %v3998_v28, %v17901_v3  ;;  %v6808_v52 = vrot.slane %v6803_v34, 4  ;;  %v6384_v3 = vrot.slane %v14457_v20, 4 }
 0x4a6   : > { %v6813_v57 = vsel %vm1445_vm1, %v6812_v56, %v6795_v4  ;;  %v6815_v43 = vsel %vm1445_vm1, %v6807_v53, %v6814_v6  ;;  %v4005_v27 = vperm.slane %v3999_v7, %v13596_v48  ;;  %v6811_v38 = vsel %vm1445_vm1, %v6803_v34, %v6810_v2 }
 0x4a7   : > { %v7340_v12 = vpack.c.bf16 %v6813_v57, %v6813_v57  ;;  %v4009_v13 = vperm.slane %v4001_v30, %v13596_v48  ;;  %v6809_v46 = vsel %vm1445_vm1, %v6808_v52, %v6791_v32  ;;  %v7324_v59 = vpack.c.bf16 %v6811_v38, %v6811_v38 }
 0x4a8   : > { %v7356_v21 = vpack.c.bf16 %v6815_v43, %v6815_v43  ;;  %v3942_v37 = vrot.slane %v11954_v22, 4  ;;  %v7308_v4 = vpack.c.bf16 %v6809_v46, %v6809_v46  ;;  %v17919_v53 = vrot.slane %v17898_v25, 4 }
 0x4a9   : > { %7404 = vst.msk [vmem:[#allocation4 + $0x98] sm:$0xf] %vm3269_vm2, %v7340_v12  ;;  %v11950_v28 = vunpack.i.h.bf16 %v11948_v14  ;;  %v11949_v34 = vunpack.i.l.bf16 %v11948_v14  ;;  %v12000_v56 = vunpack.i.h.bf16 %v15764_v17  ;;  %v4024_v6 = vrot.slane %v4005_v27, 4 }
 0x4aa   : > { %v3945_v47 = vsel %vm1445_vm1, %v11954_v22, %v17919_v53  ;;  %7388 = vst.msk [vmem:[#allocation4 + $0x58] sm:$0xf] %vm3269_vm2, %v7324_v59  ;;  %v3943_v32 = vsel %vm1445_vm1, %v3942_v37, %v17898_v25  ;;  %v4036_v52 = vrot.slane %v4009_v13, 4  ;;  %v11999_v14 = vunpack.i.l.bf16 %v15764_v17 }
 0x4ab   : > { %v3953_v19 = vperm.slane %v3945_v47, %v13596_v48  ;;  %7372 = vst.msk [vmem:[#allocation4 + $0x18] sm:$0xf] %vm3269_vm2, %v7308_v4  ;;  %v3949_v30 = vperm.slane %v3943_v32, %v13596_v48  ;;  %v4011_v2 = vsel %vm1445_vm1, %v15525_v24, %v11950_v28  ;;  %v4012_v7 = vrot.slane %v11950_v28, 4 }
 0x4ac   : > { %v3955_v22 = vsel %vm1445_vm1, %v15607_v18, %v11949_v34  ;;  %7420 = vst.msk [vmem:[#allocation4 + $0xd8] sm:$0xf] %vm3269_vm2, %v7356_v21  ;;  %v4017_v57 = vperm.slane %v4011_v2, %v13596_v48  ;;  %v3956_v43 = vrot.slane %v11949_v34, 4 }
 0x4ad   : > { %v3961_v25 = vperm.slane %v3955_v22, %v13596_v48  ;;  %v3968_v38 = vrot.slane %v3949_v30, 4  ;;  %v3980_v12 = vrot.slane %v3953_v19, 4  ;;  %v4013_v24 = vsel %vm1445_vm1, %v11960_v11, %v4012_v7 }
 0x4ae   : > { %v4021_v46 = vperm.slane %v4013_v24, %v13596_v48  ;;  %v4022_v59 = vrot.slane %v4017_v57, 4  ;;  %v4025_v18 = vsel %vm1445_vm1, %v4017_v57, %v4024_v6  ;;  %v3957_v21 = vsel %vm1445_vm1, %v11959_v63, %v3956_v43 }
 0x4af   : > { %v4033_v37 = vperm.slane %v4025_v18, %v13654_v61  ;;  %v3965_v4 = vperm.slane %v3957_v21, %v13596_v48  ;;  %v3966_v53 = vrot.slane %v3961_v25, 4  ;;  %v3969_v47 = vsel %vm1445_vm1, %v3961_v25, %v3968_v38 }
 0x4b0   : > { %v4023_v28 = vsel %vm1445_vm1, %v4022_v59, %v4005_v27  ;;  %v4034_v34 = vrot.slane %v4021_v46, 4  ;;  %v4037_v11 = vsel %vm1445_vm1, %v4021_v46, %v4036_v52  ;;  %v3977_v32 = vperm.slane %v3969_v47, %v13654_v61 }
 0x4b1   : > { %v4029_v6 = vperm.slane %v4023_v28, %v13654_v61  ;;  %v4045_v50 = vperm.slane %v4037_v11, %v13654_v61  ;;  %v4048_v2 = vrot.slane %v4033_v37, 4  ;;  %v3967_v63 = vsel %vm1445_vm1, %v3966_v53, %v3949_v30 }
 0x4b2   : > { %v4035_v7 = vsel %vm1445_vm1, %v4034_v34, %v4009_v13  ;;  %v3973_v22 = vperm.slane %v3967_v63, %v13654_v61  ;;  %v3978_v57 = vrot.slane %v3965_v4, 4  ;;  %v3981_v43 = vsel %vm1445_vm1, %v3965_v4, %v3980_v12 }
 0x4b3   : > { %v4041_v27 = vperm.slane %v4035_v7, %v13654_v61  ;;  %v4046_v25 = vrot.slane %v4029_v6, 4  ;;  %v4049_v52 = vsel %vm1445_vm1, 0.0, %v4048_v2  ;;  %v4052_v38 = vrot.slane %v4045_v50, 4 }
 0x4b4   : > { %v4876_v24 = vsel %vm1445_vm1, %v4048_v2, %v4029_v6  ;;  %v4881_v46 = vrot.slane %v4049_v52, 4  ;;  %v3979_v59 = vsel %vm1445_vm1, %v3978_v57, %v3953_v19  ;;  %v3989_v30 = vperm.slane %v3981_v43, %v13654_v61 }
 0x4b5   : > { %v4047_v13 = vsel %vm1445_vm1, 0.0, %v4046_v25  ;;  %v4050_v18 = vrot.slane %v4041_v27, 4  ;;  %v4053_v21 = vsel %vm1445_vm1, 0.0, %v4052_v38  ;;  %v4880_v12 = vperm.slane %v4876_v24, %v13596_v48 }
 0x4b6   : > { %v4882_v37 = vsel %vm1445_vm1, %v4881_v46, %v4047_v13  ;;  %v4887_v4 = vsel %vm1445_vm1, %v4052_v38, %v4041_v27  ;;  %v4892_v53 = vrot.slane %v4053_v21, 4  ;;  %v3985_v47 = vperm.slane %v3979_v59, %v13654_v61 }
 0x4b7   : > { %v4051_v28 = vsel %vm1445_vm1, 0.0, %v4050_v18  ;;  %v4886_v19 = vperm.slane %v4882_v37, %v13596_v48  ;;  %v4891_v34 = vperm.slane %v4887_v4, %v13596_v48  ;;  %v4900_v11 = vrot.slane %v4880_v12, 4 }
 0x4b8   : > { %v4893_v6 = vsel %vm1445_vm1, %v4892_v53, %v4051_v28  ;;  %v3990_v50 = vrot.slane %v3973_v22, 4  ;;  %v3992_v2 = vrot.slane %v3977_v32, 4  ;;  %v3994_v63 = vrot.slane %v3985_v47, 4 }
 0x4b9   : > { %v4897_v7 = vperm.slane %v4893_v6, %v13596_v48  ;;  %v4898_v57 = vrot.slane %v4886_v19, 4  ;;  %v4901_v43 = vsel %vm1445_vm1, %v4886_v19, %v4900_v11  ;;  %v4912_v27 = vrot.slane %v4891_v34, 4 }
 0x4ba   : > { %v4909_v25 = vperm.slane %v4901_v43, %v13654_v61  ;;  %v3991_v52 = vsel %vm1445_vm1, 0.0, %v3990_v50  ;;  %v3993_v38 = vsel %vm1445_vm1, 0.0, %v3992_v2  ;;  %v3995_v24 = vsel %vm1445_vm1, 0.0, %v3994_v63 }
 0x4bb   : > { %v4899_v46 = vsel %vm1445_vm1, %v4898_v57, %v4880_v12  ;;  %v4910_v59 = vrot.slane %v4897_v7, 4  ;;  %v4913_v32 = vsel %vm1445_vm1, %v4897_v7, %v4912_v27  ;;  %v3996_v13 = vrot.slane %v3989_v30, 4 }
 0x4bc   : > { %v4905_v18 = vperm.slane %v4899_v46, %v13654_v61  ;;  %v4921_v21 = vperm.slane %v4913_v32, %v13654_v61  ;;  %v4928_v37 = vrot.slane %v4909_v25, 4  ;;  %v4822_v4 = vsel %vm1445_vm1, %v3992_v2, %v3973_v22 }
 0x4bd   : > { %v4911_v53 = vsel %vm1445_vm1, %v4910_v59, %v4891_v34  ;;  %v3997_v28 = vsel %vm1445_vm1, 0.0, %v3996_v13  ;;  %v4826_v19 = vperm.slane %v4822_v4, %v13596_v48  ;;  %v4827_v11 = vrot.slane %v3993_v38, 4  ;;  %v11968_v38 = vpop.permute.xlu1 %11967 }
 0x4be   : > { %v4917_v12 = vperm.slane %v4911_v53, %v13654_v61  ;;  %v4924_v6 = vrot.slane %v4905_v18, 4  ;;  %v4926_v50 = vrot.slane %v4921_v21, 4  ;;  %v4929_v30 = vsel %vm1445_vm1, %v4921_v21, %v4928_v37 }
 0x4bf   : > { %v5311_v63 = vpack.c.bf16 %v4929_v30, %v4929_v30  ;;  %v4828_v7 = vsel %vm1445_vm1, %v4827_v11, %v3991_v52  ;;  %v4833_v57 = vsel %vm1445_vm1, %v3996_v13, %v3985_v47  ;;  %v4838_v43 = vrot.slane %v3997_v28, 4 }
 0x4c0   : > { %v4922_v22 = vrot.slane %v4917_v12, 4  ;;  %v4925_v34 = vsel %vm1445_vm1, %v4917_v12, %v4924_v6  ;;  %v4927_v2 = vsel %vm1445_vm1, %v4926_v50, %v4909_v25  ;;  %v4832_v27 = vperm.slane %v4828_v7, %v13596_v48  ;;  %v11963_v7 = vpop.permute.xlu0 %11962 }
 0x4c1   : > { %v5279_v46 = vpack.c.bf16 %v4925_v34, %v4925_v34  ;;  %v5295_v59 = vpack.c.bf16 %v4927_v2, %v4927_v2  ;;  %5375 = vst.msk [vmem:[#allocation3 + $0xe4] sm:$0xf] %vm3269_vm2, %v5311_v63  ;;  %v4837_v32 = vperm.slane %v4833_v57, %v13596_v48  ;;  %v4839_v21 = vsel %vm1445_vm1, %v4838_v43, %v3995_v24 }
 0x4c2   : > { %v4923_v52 = vsel %vm1445_vm1, %v4922_v22, %v4905_v18  ;;  %v4843_v47 = vperm.slane %v4839_v21, %v13596_v48  ;;  %v4844_v13 = vrot.slane %v4832_v27, 4  ;;  %v4846_v37 = vrot.slane %v4826_v19, 4 }
 0x4c3   : > { %v5263_v4 = vpack.c.bf16 %v4923_v52, %v4923_v52  ;;  %5343 = vst.msk [vmem:[#allocation3 + $0x64] sm:$0xf] %vm3269_vm2, %v5279_v46  ;;  %v4858_v25 = vrot.slane %v4837_v32, 4  ;;  %v11970_v53 = vunpack.i.h.bf16 %v11968_v38  ;;  %v11969_v28 = vunpack.i.l.bf16 %v11968_v38 }
 0x4c4   : > { %v15852_v11 = vrot.slane %v12000_v56, 4  ;;  %5359 = vst.msk [vmem:[#allocation3 + $0xa4] sm:$0xf] %vm3269_vm2, %v5295_v59  ;;  %v4845_v24 = vsel %vm1445_vm1, %v4844_v13, %v4826_v19  ;;  %v4847_v18 = vsel %vm1445_vm1, %v4832_v27, %v4846_v37  ;;  %v4856_v12 = vrot.slane %v4843_v47, 4 }
 0x4c5   : > { %5327 = vst.msk [vmem:[#allocation3 + $0x24] sm:$0xf] %vm3269_vm2, %v5263_v4  ;;  %v4851_v6 = vperm.slane %v4845_v24, %v13654_v61  ;;  %v4855_v50 = vperm.slane %v4847_v18, %v13654_v61  ;;  %v4859_v30 = vsel %vm1445_vm1, %v4843_v47, %v4858_v25  ;;  %v1949_v63 = vrot.slane %v11970_v53, 4  ;;  %v15874_v4 = vpop.permute.xlu2 %12002 }
 0x4c6   : > { %v4857_v57 = vsel %vm1445_vm1, %v4856_v12, %v4837_v32  ;;  %v4867_v43 = vperm.slane %v4859_v30, %v13654_v61  ;;  %v17920_v22 = vrot.slane %v17903_v16, 4  ;;  %v1893_v34 = vrot.slane %v11969_v28, 4 }
 0x4c7   : > { %v4863_v2 = vperm.slane %v4857_v57, %v13654_v61  ;;  %v4870_v27 = vrot.slane %v4851_v6, 4  ;;  %v4874_v38 = vrot.slane %v4855_v50, 4  ;;  %v1950_v46 = vsel %vm1445_vm1, %v1949_v63, %v17903_v16 }
 0x4c8   : > { %v1952_v19 = vsel %vm1445_vm1, %v11970_v53, %v17920_v22  ;;  %v4872_v59 = vrot.slane %v4867_v43, 4  ;;  %v1956_v21 = vperm.slane %v1950_v46, %v13596_v48  ;;  %v1894_v32 = vsel %vm1445_vm1, %v1893_v34, %v17902_v42 }
 0x4c9   : > { %v11965_v52 = vunpack.i.h.bf16 %v11963_v7  ;;  %v4868_v47 = vrot.slane %v4863_v2, 4  ;;  %v4871_v13 = vsel %vm1445_vm1, %v4863_v2, %v4870_v27  ;;  %v4875_v37 = vsel %vm1445_vm1, %v4867_v43, %v4874_v38 }
 0x4ca   : > { %v1960_v25 = vperm.slane %v1952_v19, %v13596_v48  ;;  %v4873_v53 = vsel %vm1445_vm1, %v4872_v59, %v4855_v50  ;;  %v5278_v24 = vpack.c.bf16 %v4871_v13, %v4871_v13  ;;  %v5310_v16 = vpack.c.bf16 %v4875_v37, %v4875_v37 }
 0x4cb   : > { %v17921_v18 = vrot.slane %v17902_v42, 4  ;;  %v4869_v30 = vsel %vm1445_vm1, %v4868_v47, %v4851_v6  ;;  %v5294_v63 = vpack.c.bf16 %v4873_v53, %v4873_v53  ;;  %v1975_v57 = vrot.slane %v1956_v21, 4 }
 0x4cc   : > { %v1900_v22 = vperm.slane %v1894_v32, %v13596_v48  ;;  %v5262_v34 = vpack.c.bf16 %v4869_v30, %v4869_v30  ;;  %5342 = vst.msk [vmem:[#allocation3 + $0x60] sm:$0xf] %vm3269_vm2, %v5278_v24  ;;  %v12005_v43 = vunpack.i.h.bf16 %v15874_v4  ;;  %v1962_v50 = vsel %vm1445_vm1, %v15625_v9, %v11965_v52 }
 0x4cd   : > { %v1896_v12 = vsel %vm1445_vm1, %v11969_v28, %v17921_v18  ;;  %v1963_v19 = vrot.slane %v11965_v52, 4  ;;  %5358 = vst.msk [vmem:[#allocation3 + $0xa0] sm:$0xf] %vm3269_vm2, %v5294_v63  ;;  %v12004_v42 = vunpack.i.l.bf16 %v15874_v4  ;;  %v1987_v28 = vrot.slane %v1960_v25, 4 }
 0x4ce   : > { %v1968_v6 = vperm.slane %v1962_v50, %v13596_v48  ;;  %v11964_v2 = vunpack.i.l.bf16 %v11963_v7  ;;  %v15892_v27 = vrot.slane %v11999_v14, 4  ;;  %5326 = vst.msk [vmem:[#allocation3 + $0x20] sm:$0xf] %vm3269_vm2, %v5262_v34  ;;  %v1904_v38 = vperm.slane %v1896_v12, %v13596_v48 }
 0x4cf   : > { %v1919_v46 = vrot.slane %v1900_v22, 4  ;;  %v1964_v9 = vsel %vm1445_vm1, %v11975_v36, %v1963_v19  ;;  %5374 = vst.msk [vmem:[#allocation3 + $0xe0] sm:$0xf] %vm3269_vm2, %v5310_v16  ;;  %v15906_v47 = vrot.slane %v12005_v43, 4  ;;  %v15912_v36 = vrot.slane %v12004_v42, 4 }
 0x4d0   : > { %v1972_v59 = vperm.slane %v1964_v9, %v13596_v48  ;;  %v1973_v32 = vrot.slane %v1968_v6, 4  ;;  %v1976_v7 = vsel %vm1445_vm1, %v1968_v6, %v1975_v57  ;;  %v1906_v52 = vsel %vm1445_vm1, %v15629_v35, %v11964_v2 }
 0x4d1   : > { %v1984_v13 = vperm.slane %v1976_v7, %v13654_v61  ;;  %v1907_v37 = vrot.slane %v11964_v2, 4  ;;  %v1912_v53 = vperm.slane %v1906_v52, %v13596_v48  ;;  %v1931_v57 = vrot.slane %v1904_v38, 4 }
 0x4d2   : > { %v1974_v24 = vsel %vm1445_vm1, %v1973_v32, %v1956_v21  ;;  %v1985_v16 = vrot.slane %v1972_v59, 4  ;;  %v1988_v18 = vsel %vm1445_vm1, %v1972_v59, %v1987_v28 }
 0x4d3   : > { %v1980_v35 = vperm.slane %v1974_v24, %v13654_v61  ;;  %v1996_v12 = vperm.slane %v1988_v18, %v13654_v61  ;;  %v1999_v30 = vrot.slane %v1984_v13, 4  ;;  %v1908_v63 = vsel %vm1445_vm1, %v11974_v29, %v1907_v37 }
 0x4d4   : > { %v1986_v34 = vsel %vm1445_vm1, %v1985_v16, %v1960_v25  ;;  %v1917_v50 = vrot.slane %v1912_v53, 4  ;;  %v1920_v19 = vsel %vm1445_vm1, %v1912_v53, %v1919_v46  ;;  %v1916_v32 = vperm.slane %v1908_v63, %v13596_v48 }
 0x4d5   : > { %v1992_v21 = vperm.slane %v1986_v34, %v13654_v61  ;;  %v1997_v6 = vrot.slane %v1980_v35, 4  ;;  %v2000_v28 = vsel %vm1445_vm1, 0.0, %v1999_v30  ;;  %v2003_v2 = vrot.slane %v1996_v12, 4 }
 0x4d6   : > { %v2827_v9 = vsel %vm1445_vm1, %v1999_v30, %v1980_v35  ;;  %v2832_v59 = vrot.slane %v2000_v28, 4  ;;  %v1918_v23 = vsel %vm1445_vm1, %v1917_v50, %v1900_v22  ;;  %v1928_v53 = vperm.slane %v1920_v19, %v13654_v61  ;;  %v15937_v35 = vpop.permute.xlu2 %12017 }
 0x4d7   : > { %v1998_v29 = vsel %vm1445_vm1, 0.0, %v1997_v6  ;;  %v2001_v7 = vrot.slane %v1992_v21, 4  ;;  %v2004_v25 = vsel %vm1445_vm1, 0.0, %v2003_v2  ;;  %v2831_v46 = vperm.slane %v2827_v9, %v13596_v48 }
 0x4d8   : > { %v2833_v52 = vsel %vm1445_vm1, %v2832_v59, %v1998_v29  ;;  %v2838_v13 = vsel %vm1445_vm1, %v2003_v2, %v1992_v21  ;;  %v2843_v37 = vrot.slane %v2004_v25, 4  ;;  %v1924_v30 = vperm.slane %v1918_v23, %v13654_v61 }
 0x4d9   : > { %v2002_v24 = vsel %vm1445_vm1, 0.0, %v2001_v7  ;;  %v2837_v16 = vperm.slane %v2833_v52, %v13596_v48  ;;  %v2842_v22 = vperm.slane %v2838_v13, %v13596_v48  ;;  %v2851_v18 = vrot.slane %v2831_v46, 4 }
 0x4da   : > { %v2844_v12 = vsel %vm1445_vm1, %v2843_v37, %v2002_v24  ;;  %v1929_v63 = vrot.slane %v1916_v32, 4  ;;  %v1932_v34 = vsel %vm1445_vm1, %v1916_v32, %v1931_v57  ;;  %v12020_v59 = vunpack.i.h.bf16 %v15937_v35 }
 0x4db   : > { %v2848_v50 = vperm.slane %v2844_v12, %v13596_v48  ;;  %v2849_v21 = vrot.slane %v2837_v16, 4  ;;  %v2852_v19 = vsel %vm1445_vm1, %v2837_v16, %v2851_v18  ;;  %v2863_v6 = vrot.slane %v2842_v22, 4 }
 0x4dc   : > { %v2860_v28 = vperm.slane %v2852_v19, %v13654_v61  ;;  %v1930_v2 = vsel %vm1445_vm1, %v1929_v63, %v1904_v38  ;;  %v1940_v9 = vperm.slane %v1932_v34, %v13654_v61  ;;  %v1943_v13 = vrot.slane %v1928_v53, 4 }
 0x4dd   : > { %v2850_v29 = vsel %vm1445_vm1, %v2849_v21, %v2831_v46  ;;  %v2861_v23 = vrot.slane %v2848_v50, 4  ;;  %v2864_v7 = vsel %vm1445_vm1, %v2848_v50, %v2863_v6  ;;  %v1936_v57 = vperm.slane %v1930_v2, %v13654_v61 }
 0x4de   : > { %v2856_v32 = vperm.slane %v2850_v29, %v13654_v61  ;;  %v2872_v25 = vperm.slane %v2864_v7, %v13654_v61  ;;  %v2879_v52 = vrot.slane %v2860_v28, 4  ;;  %v1941_v38 = vrot.slane %v1924_v30, 4 }
 0x4df   : > { %v2862_v37 = vsel %vm1445_vm1, %v2861_v23, %v2842_v22  ;;  %v1945_v24 = vrot.slane %v1936_v57, 4  ;;  %v1947_v16 = vrot.slane %v1940_v9, 4  ;;  %v1944_v50 = vsel %vm1445_vm1, 0.0, %v1943_v13 }
 0x4e0   : > { %v2868_v18 = vperm.slane %v2862_v37, %v13654_v61  ;;  %v2875_v12 = vrot.slane %v2856_v32, 4  ;;  %v2877_v46 = vrot.slane %v2872_v25, 4  ;;  %v2880_v63 = vsel %vm1445_vm1, %v2872_v25, %v2879_v52  ;;  %v11978_v25 = vpop.permute.xlu0 %11977 }
 0x4e1   : > { %v3262_v34 = vpack.c.bf16 %v2880_v63, %v2880_v63  ;;  %v1946_v21 = vsel %vm1445_vm1, 0.0, %v1945_v24  ;;  %v1948_v19 = vsel %vm1445_vm1, 0.0, %v1947_v16  ;;  %v2773_v2 = vsel %vm1445_vm1, %v1943_v13, %v1924_v30 }
 0x4e2   : > { %v2873_v6 = vrot.slane %v2868_v18, 4  ;;  %v2876_v53 = vsel %vm1445_vm1, %v2868_v18, %v2875_v12  ;;  %v2878_v22 = vsel %vm1445_vm1, %v2877_v46, %v2860_v28  ;;  %v2777_v23 = vperm.slane %v2773_v2, %v13596_v48  ;;  %v15967_v18 = vpop.permute.xlu1 %11982 }
 0x4e3   : > { %v3230_v9 = vpack.c.bf16 %v2876_v53, %v2876_v53  ;;  %v3246_v29 = vpack.c.bf16 %v2878_v22, %v2878_v22  ;;  %3327 = vst.msk [vmem:[#allocation2 + $0xe4] sm:$0xf] %vm3269_vm2, %v3262_v34  ;;  %v2778_v7 = vrot.slane %v1944_v50, 4  ;;  %v1942_v37 = vsel %vm1445_vm1, 0.0, %v1941_v38 }
 0x4e4   : > { %v2874_v52 = vsel %vm1445_vm1, %v2873_v6, %v2856_v32  ;;  %v2784_v24 = vsel %vm1445_vm1, %v1947_v16, %v1936_v57  ;;  %v2789_v63 = vrot.slane %v1948_v19, 4  ;;  %v2797_v12 = vrot.slane %v2777_v23, 4 }
 0x4e5   : > { %v3214_v28 = vpack.c.bf16 %v2874_v52, %v2874_v52  ;;  %3295 = vst.msk [vmem:[#allocation2 + $0x64] sm:$0xf] %vm3269_vm2, %v3230_v9  ;;  %v2779_v30 = vsel %vm1445_vm1, %v2778_v7, %v1942_v37  ;;  %v2788_v13 = vperm.slane %v2784_v24, %v13596_v48  ;;  %v12019_v38 = vunpack.i.l.bf16 %v15937_v35 }
 0x4e6   : > { %3311 = vst.msk [vmem:[#allocation2 + $0xa4] sm:$0xf] %vm3269_vm2, %v3246_v29  ;;  %v2783_v46 = vperm.slane %v2779_v30, %v13596_v48  ;;  %v2790_v32 = vsel %vm1445_vm1, %v2789_v63, %v1946_v21  ;;  %v11980_v57 = vunpack.i.h.bf16 %v11978_v25  ;;  %v17798_v50 = vunpack.i.h.bf16 %v15967_v18 }
 0x4e7   : > { %3279 = vst.msk [vmem:[#allocation2 + $0x24] sm:$0xf] %vm3269_vm2, %v3214_v28  ;;  %v2794_v16 = vperm.slane %v2790_v32, %v13596_v48  ;;  %v2809_v34 = vrot.slane %v2788_v13, 4  ;;  %v11979_v19 = vunpack.i.l.bf16 %v11978_v25  ;;  %v15982_v22 = vrot.slane %v12020_v59, 4 }
 0x4e8   : > { %v2795_v6 = vrot.slane %v2783_v46, 4  ;;  %v2798_v53 = vsel %vm1445_vm1, %v2783_v46, %v2797_v12  ;;  %v6060_v2 = vrot.slane %v11980_v57, 4  ;;  %v6059_v7 = vsel %vm1445_vm1, %v15852_v11, %v11980_v57 }
 0x4e9   : > { %v2806_v21 = vperm.slane %v2798_v53, %v13654_v61  ;;  %v2807_v9 = vrot.slane %v2794_v16, 4  ;;  %v2810_v29 = vsel %vm1445_vm1, %v2794_v16, %v2809_v34  ;;  %v6003_v24 = vsel %vm1445_vm1, %v15892_v27, %v11979_v19 }
 0x4ea   : > { %v2796_v52 = vsel %vm1445_vm1, %v2795_v6, %v2777_v23  ;;  %v2818_v25 = vperm.slane %v2810_v29, %v13654_v61  ;;  %v6061_v37 = vsel %vm1445_vm1, %v12000_v56, %v6060_v2  ;;  %v15999_v12 = vrot.slane %v12019_v38, 4 }
 0x4eb   : > { %v2802_v63 = vperm.slane %v2796_v52, %v13654_v61  ;;  %v2808_v28 = vsel %vm1445_vm1, %v2807_v9, %v2788_v13  ;;  %v2825_v30 = vrot.slane %v2806_v21, 4  ;;  %v16003_v46 = vperm.slane %v6059_v7, %v13596_v48  ;;  %v16008_v13 = vpop.permute.xlu2 %12032  ;;  %v11988_v9 = vpop.permute.xlu1 %11987 }
 0x4ec   : > { %v2814_v11 = vperm.slane %v2808_v28, %v13654_v61  ;;  %v2823_v23 = vrot.slane %v2818_v25, 4  ;;  %v6004_v32 = vrot.slane %v11979_v19, 4  ;;  %v6069_v27 = vperm.slane %v6061_v37, %v13596_v48 }
 0x4ed   : > { %v2821_v56 = vrot.slane %v2802_v63, 4  ;;  %v2826_v57 = vsel %vm1445_vm1, %v2818_v25, %v2825_v30  ;;  %v6009_v16 = vperm.slane %v6003_v24, %v13596_v48  ;;  %v16017_v7 = vrot.slane %v17798_v50, 4  ;;  %v16020_v25 = vpop.permute.xlu0 %12007 }
 0x4ee   : > { %v2819_v34 = vrot.slane %v2814_v11, 4  ;;  %v2824_v6 = vsel %vm1445_vm1, %v2823_v23, %v2806_v21  ;;  %v3261_v53 = vpack.c.bf16 %v2826_v57, %v2826_v57  ;;  %v6005_v2 = vsel %vm1445_vm1, %v11999_v14, %v6004_v32 }
 0x4ef   : > { %v2822_v19 = vsel %vm1445_vm1, %v2814_v11, %v2821_v56  ;;  %v3245_v29 = vpack.c.bf16 %v2824_v6, %v2824_v6  ;;  %v6013_v17 = vperm.slane %v6005_v2, %v13596_v48  ;;  %v12035_v14 = vunpack.i.h.bf16 %v16008_v13 }
 0x4f0   : > { %v2820_v37 = vsel %vm1445_vm1, %v2819_v34, %v2802_v63  ;;  %v3229_v21 = vpack.c.bf16 %v2822_v19, %v2822_v19  ;;  %3326 = vst.msk [vmem:[#allocation2 + $0xe0] sm:$0xf] %vm3269_vm2, %v3261_v53  ;;  %v6070_v28 = vrot.slane %v16003_v46, 4  ;;  %v11990_v30 = vunpack.i.h.bf16 %v11988_v9 }
 0x4f1   : > { %v3213_v24 = vpack.c.bf16 %v2820_v37, %v2820_v37  ;;  %3310 = vst.msk [vmem:[#allocation2 + $0xa0] sm:$0xf] %vm3269_vm2, %v3245_v29  ;;  %v11989_v11 = vunpack.i.l.bf16 %v11988_v9  ;;  %v6082_v23 = vrot.slane %v6069_v27, 4  ;;  %v6014_v32 = vrot.slane %v6009_v16, 4 }
 0x4f2   : > { %3294 = vst.msk [vmem:[#allocation2 + $0x60] sm:$0xf] %vm3269_vm2, %v3229_v21  ;;  %v12034_v63 = vunpack.i.l.bf16 %v16008_v13  ;;  %v12010_v56 = vunpack.i.h.bf16 %v16020_v25  ;;  %v6046_v57 = vrot.slane %v11990_v30, 4  ;;  %v6049_v34 = vsel %vm1445_vm1, %v11990_v30, %v6048_v58 }
 0x4f3   : > { %3278 = vst.msk [vmem:[#allocation2 + $0x20] sm:$0xf] %vm3269_vm2, %v3213_v24  ;;  %v5990_v6 = vrot.slane %v11989_v11, 4  ;;  %v5993_v53 = vsel %vm1445_vm1, %v11989_v11, %v5992_v39  ;;  %v6026_v2 = vrot.slane %v6013_v17, 4  ;;  %v6057_v9 = vperm.slane %v6049_v34, %v13596_v48 }
 0x4f4   : > { %v6001_v19 = vperm.slane %v5993_v53, %v13596_v48  ;;  %v17922_v29 = vrot.slane %v14223_v15, 4  ;;  %v6047_v21 = vsel %vm1445_vm1, %v6046_v57, %v13937_v40  ;;  %v4110_v24 = vrot.slane %v12010_v56, 4 }
 0x4f5   : > { %v5991_v58 = vsel %vm1445_vm1, %v5990_v6, %v13612_v33  ;;  %v12009_v30 = vunpack.i.l.bf16 %v16020_v25  ;;  %v6053_v39 = vperm.slane %v6047_v21, %v13596_v48  ;;  %v6084_v11 = vrot.slane %v6057_v9, 4 }
 0x4f6   : > { %v4113_v37 = vsel %vm1445_vm1, %v12010_v56, %v17922_v29  ;;  %v5997_v34 = vperm.slane %v5991_v58, %v13596_v48  ;;  %v6027_v53 = vsel %vm1445_vm1, %v6026_v2, %v6001_v19  ;;  %v6028_v55 = vrot.slane %v6001_v19, 4 }
 0x4f7   : > { %v6033_v62 = vperm.slane %v6027_v53, %v13654_v61  ;;  %v6083_v29 = vsel %vm1445_vm1, %v6082_v23, %v6057_v9  ;;  %v16054_v40 = vperm.slane %v4113_v37, %v13596_v48  ;;  %v6072_v57 = vrot.slane %v6053_v39, 4 }
 0x4f8   : > { %v6015_v33 = vsel %vm1445_vm1, %v6014_v32, %v5997_v34  ;;  %v6016_v56 = vrot.slane %v5997_v34, 4  ;;  %v6071_v6 = vsel %vm1445_vm1, %v6070_v28, %v6053_v39  ;;  %v6029_v58 = vsel %vm1445_vm1, %v6013_v17, %v6028_v55 }
 0x4f9   : > { %v6021_v21 = vperm.slane %v6015_v33, %v13654_v61  ;;  %v6042_v51 = vrot.slane %v6033_v62, 4  ;;  %v6077_v2 = vperm.slane %v6071_v6, %v13654_v61  ;;  %v6037_v23 = vperm.slane %v6029_v58, %v13654_v61 }
 0x4fa   : > { %v6017_v19 = vsel %vm1445_vm1, %v6009_v16, %v6016_v56  ;;  %v6073_v9 = vsel %vm1445_vm1, %v16003_v46, %v6072_v57  ;;  %v6085_v37 = vsel %vm1445_vm1, %v6069_v27, %v6084_v11  ;;  %v16070_v55 = vrot.slane %v12009_v30, 4 }
 0x4fb   : > { %v6025_v32 = vperm.slane %v6017_v19, %v13654_v61  ;;  %v6038_v34 = vrot.slane %v6021_v21, 4  ;;  %v6081_v28 = vperm.slane %v6073_v9, %v13654_v61  ;;  %v6044_v17 = vrot.slane %v6037_v23, 4 }
 0x4fc   : > { %v6089_v39 = vperm.slane %v6083_v29, %v13654_v61  ;;  %v6093_v16 = vperm.slane %v6085_v37, %v13654_v61  ;;  %v6094_v53 = vrot.slane %v6077_v2, 4  ;;  %v6043_v46 = vsel %vm1445_vm1, 0.0, %v6042_v51 }
 0x4fd   : > { %v6040_v33 = vrot.slane %v6025_v32, 4  ;;  %v6096_v57 = vrot.slane %v6081_v28, 4  ;;  %v16077_v27 = vsel %vm1445_vm1, %v4110_v24, %v14223_v15  ;;  %v6039_v11 = vsel %vm1445_vm1, 0.0, %v6038_v34 }
 0x4fe   : > { %v6045_v56 = vsel %vm1445_vm1, 0.0, %v6044_v17  ;;  %v6095_v6 = vsel %vm1445_vm1, 0.0, %v6094_v53  ;;  %v6100_v58 = vrot.slane %v6093_v16, 4  ;;  %v6881_v51 = vsel %vm1445_vm1, %v6044_v17, %v6033_v62 }
 0x4ff   : > { %v6041_v29 = vsel %vm1445_vm1, 0.0, %v6040_v33  ;;  %v6097_v19 = vsel %vm1445_vm1, 0.0, %v6096_v57  ;;  %v6870_v23 = vsel %vm1445_vm1, %v6040_v33, %v6021_v21  ;;  %v6098_v9 = vrot.slane %v6089_v39, 4 }
 0x500   : > { %v6101_v37 = vsel %vm1445_vm1, 0.0, %v6100_v58  ;;  %v6874_v15 = vperm.slane %v6870_v23, %v13596_v48  ;;  %v6875_v24 = vrot.slane %v6041_v29, 4  ;;  %v6885_v32 = vperm.slane %v6881_v51, %v13596_v48 }
 0x501   : > { %v6886_v34 = vrot.slane %v6045_v56, 4  ;;  %v6924_v28 = vsel %vm1445_vm1, %v6096_v57, %v6077_v2  ;;  %v6929_v16 = vrot.slane %v6097_v19, 4  ;;  %v6935_v21 = vsel %vm1445_vm1, %v6100_v58, %v6089_v39 }
 0x502   : > { %v6876_v53 = vsel %vm1445_vm1, %v6875_v24, %v6039_v11  ;;  %v6894_v50 = vrot.slane %v6874_v15, 4  ;;  %v6928_v52 = vperm.slane %v6924_v28, %v13596_v48  ;;  %v6906_v33 = vrot.slane %v6885_v32, 4 }
 0x503   : > { %v6880_v62 = vperm.slane %v6876_v53, %v13596_v48  ;;  %v6887_v17 = vsel %vm1445_vm1, %v6886_v34, %v6043_v46  ;;  %v6930_v29 = vsel %vm1445_vm1, %v6929_v16, %v6095_v6  ;;  %v6099_v23 = vsel %vm1445_vm1, 0.0, %v6098_v9 }
 0x504   : > { %v6891_v56 = vperm.slane %v6887_v17, %v13596_v48  ;;  %v6934_v2 = vperm.slane %v6930_v29, %v13596_v48  ;;  %v6940_v57 = vrot.slane %v6101_v37, 4  ;;  %v6939_v51 = vperm.slane %v6935_v21, %v13596_v48 }
 0x505   : > { %v6892_v11 = vrot.slane %v6880_v62, 4  ;;  %v6895_v19 = vsel %vm1445_vm1, %v6880_v62, %v6894_v50  ;;  %v6948_v39 = vrot.slane %v6928_v52, 4 }
 0x506   : > { %v6903_v58 = vperm.slane %v6895_v19, %v13654_v61  ;;  %v6904_v24 = vrot.slane %v6891_v56, 4  ;;  %v6907_v46 = vsel %vm1445_vm1, %v6891_v56, %v6906_v33  ;;  %v6941_v6 = vsel %vm1445_vm1, %v6940_v57, %v6099_v23 }
 0x507   : > { %v6893_v9 = vsel %vm1445_vm1, %v6892_v11, %v6874_v15  ;;  %v6915_v34 = vperm.slane %v6907_v46, %v13654_v61  ;;  %v6945_v28 = vperm.slane %v6941_v6, %v13596_v48  ;;  %v6946_v37 = vrot.slane %v6934_v2, 4 }
 0x508   : > { %v6899_v16 = vperm.slane %v6893_v9, %v13654_v61  ;;  %v6905_v50 = vsel %vm1445_vm1, %v6904_v24, %v6885_v32  ;;  %v6922_v53 = vrot.slane %v6903_v58, 4  ;;  %v6949_v21 = vsel %vm1445_vm1, %v6934_v2, %v6948_v39 }
 0x509   : > { %v6911_v62 = vperm.slane %v6905_v50, %v13654_v61  ;;  %v6920_v17 = vrot.slane %v6915_v34, 4  ;;  %v6947_v33 = vsel %vm1445_vm1, %v6946_v37, %v6928_v52  ;;  %v6957_v29 = vperm.slane %v6949_v21, %v13654_v61 }
 0x50a   : > { %v6918_v15 = vrot.slane %v6899_v16, 4  ;;  %v6923_v23 = vsel %vm1445_vm1, %v6915_v34, %v6922_v53  ;;  %v6953_v56 = vperm.slane %v6947_v33, %v13654_v61  ;;  %v6958_v57 = vrot.slane %v6945_v28, 4 }
 0x50b   : > { %v6916_v11 = vrot.slane %v6911_v62, 4  ;;  %v6921_v19 = vsel %vm1445_vm1, %v6920_v17, %v6903_v58  ;;  %v6960_v32 = vrot.slane %v6939_v51, 4  ;;  %v6976_v24 = vrot.slane %v6957_v29, 4 }
 0x50c   : > { %v6919_v2 = vsel %vm1445_vm1, %v6911_v62, %v6918_v15  ;;  %v6959_v39 = vsel %vm1445_vm1, %v6958_v57, %v6939_v51  ;;  %v6972_v46 = vrot.slane %v6953_v56, 4  ;;  %v7342_v6 = vpack.c.bf16 %v6921_v19, %v6921_v19  ;;  %v16140_v57 = vpop.permute.xlu2 %12062  ;;  %v16149_v19 = vpop.permute.xlu0 %12022 }
 0x50d   : > { %v6917_v52 = vsel %vm1445_vm1, %v6916_v11, %v6899_v16  ;;  %v6961_v9 = vsel %vm1445_vm1, %v6945_v28, %v6960_v32  ;;  %v6965_v34 = vperm.slane %v6959_v39, %v13654_v61  ;;  %v7326_v37 = vpack.c.bf16 %v6919_v2, %v6919_v2  ;;  %v12013_v11 = vpop.permute.xlu1 %12012 }
 0x50e   : > { %v6969_v50 = vperm.slane %v6961_v9, %v13654_v61  ;;  %v7310_v53 = vpack.c.bf16 %v6917_v52, %v6917_v52  ;;  %v7358_v21 = vpack.c.bf16 %v6923_v23, %v6923_v23  ;;  %7406 = vst.msk [vmem:[#allocation4 + $0xa0] sm:$0xf] %vm3269_vm2, %v7342_v6  ;;  %v16125_v58 = vperm.slane %v16077_v27, %v13596_v48 }
 0x50f   : > { %v6970_v51 = vrot.slane %v6965_v34, 4  ;;  %v6973_v62 = vsel %vm1445_vm1, %v6965_v34, %v6972_v46  ;;  %7390 = vst.msk [vmem:[#allocation4 + $0x60] sm:$0xf] %vm3269_vm2, %v7326_v37  ;;  %v4055_v28 = vsel %vm1445_vm1, %v16070_v55, %v14177_v45  ;;  %v17923_v16 = vrot.slane %v14177_v45, 4 }
 0x510   : > { %v6974_v33 = vrot.slane %v6969_v50, 4  ;;  %v6977_v15 = vsel %vm1445_vm1, %v6969_v50, %v6976_v24  ;;  %v7327_v27 = vpack.c.bf16 %v6973_v62, %v6973_v62  ;;  %7374 = vst.msk [vmem:[#allocation4 + $0x20] sm:$0xf] %vm3269_vm2, %v7310_v53  ;;  %v4061_v23 = vperm.slane %v4055_v28, %v13596_v48 }
 0x511   : > { %v4057_v17 = vsel %vm1445_vm1, %v12009_v30, %v17923_v16  ;;  %v16144_v55 = vrot.slane %v12035_v14, 4  ;;  %v6971_v45 = vsel %vm1445_vm1, %v6970_v51, %v6953_v56  ;;  %v7359_v25 = vpack.c.bf16 %v6977_v15, %v6977_v15  ;;  %7422 = vst.msk [vmem:[#allocation4 + $0xe0] sm:$0xf] %vm3269_vm2, %v7358_v21 }
 0x512   : > { %v4065_v30 = vperm.slane %v4057_v17, %v13596_v48  ;;  %v16153_v32 = vrot.slane %v12034_v63, 4  ;;  %v6975_v24 = vsel %vm1445_vm1, %v6974_v33, %v6957_v29  ;;  %v7311_v2 = vpack.c.bf16 %v6971_v45, %v6971_v45  ;;  %7391 = vst.msk [vmem:[#allocation4 + $0x64] sm:$0xf] %vm3269_vm2, %v7327_v27 }
 0x513   : > { %v4136_v39 = vrot.slane %v16125_v58, 4  ;;  %v7343_v46 = vpack.c.bf16 %v6975_v24, %v6975_v24  ;;  %7423 = vst.msk [vmem:[#allocation4 + $0xe4] sm:$0xf] %vm3269_vm2, %v7359_v25  ;;  %v4148_v56 = vrot.slane %v16054_v40, 4  ;;  %v12065_v6 = vunpack.i.h.bf16 %v16140_v57 }
 0x514   : > { %v12015_v52 = vunpack.i.h.bf16 %v12013_v11  ;;  %7375 = vst.msk [vmem:[#allocation4 + $0x24] sm:$0xf] %vm3269_vm2, %v7311_v2  ;;  %v4080_v9 = vrot.slane %v4061_v23, 4  ;;  %v12014_v34 = vunpack.i.l.bf16 %v12013_v11  ;;  %v12025_v37 = vunpack.i.h.bf16 %v16149_v19 }
 0x515   : > { %v12024_v29 = vunpack.i.l.bf16 %v16149_v19  ;;  %7407 = vst.msk [vmem:[#allocation4 + $0xa4] sm:$0xf] %vm3269_vm2, %v7343_v46  ;;  %v4092_v50 = vrot.slane %v4065_v30, 4  ;;  %v12064_v53 = vunpack.i.l.bf16 %v16140_v57  ;;  %v17924_v27 = vrot.slane %v14341_v49, 4 }
 0x516   : > { %v4122_v21 = vrot.slane %v12015_v52, 4  ;;  %v4125_v51 = vsel %vm1445_vm1, %v12015_v52, %v15906_v47  ;;  %v4066_v28 = vrot.slane %v12014_v34, 4  ;;  %v4069_v16 = vsel %vm1445_vm1, %v12014_v34, %v15912_v36 }
 0x517   : > { %v4133_v62 = vperm.slane %v4125_v51, %v13596_v48  ;;  %v16171_v17 = vrot.slane %v12025_v37, 4  ;;  %v4077_v15 = vperm.slane %v4069_v16, %v13596_v48  ;;  %v16180_v11 = vsel %vm1445_vm1, %v12025_v37, %v17924_v27 }
 0x518   : > { %v4123_v33 = vsel %vm1445_vm1, %v4122_v21, %v12005_v43  ;;  %v16184_v47 = vrot.slane %v12024_v29, 4  ;;  %v4067_v25 = vsel %vm1445_vm1, %v4066_v28, %v12004_v42 }
 0x519   : > { %v4129_v45 = vperm.slane %v4123_v33, %v13596_v48  ;;  %v4146_v36 = vrot.slane %v4133_v62, 4  ;;  %v4149_v43 = vsel %vm1445_vm1, %v4133_v62, %v4148_v56  ;;  %v4073_v24 = vperm.slane %v4067_v25, %v13596_v48 }
 0x51a   : > { %v4090_v2 = vrot.slane %v4077_v15, 4  ;;  %v4093_v46 = vsel %vm1445_vm1, %v4077_v15, %v4092_v50  ;;  %v4157_v52 = vperm.slane %v4149_v43, %v13654_v61 }
 0x51b   : > { %v4134_v34 = vrot.slane %v4129_v45, 4  ;;  %v4101_v37 = vperm.slane %v4093_v46, %v13654_v61  ;;  %v4137_v21 = vsel %vm1445_vm1, %v4129_v45, %v4136_v39  ;;  %v4147_v51 = vsel %vm1445_vm1, %v4146_v36, %v16054_v40 }
 0x51c   : > { %v4078_v4 = vrot.slane %v4073_v24, 4  ;;  %v4081_v42 = vsel %vm1445_vm1, %v4073_v24, %v4080_v9  ;;  %v4091_v56 = vsel %vm1445_vm1, %v4090_v2, %v4065_v30  ;;  %v4145_v62 = vperm.slane %v4137_v21, %v13654_v61 }
 0x51d   : > { %v4089_v28 = vperm.slane %v4081_v42, %v13654_v61  ;;  %v4097_v50 = vperm.slane %v4091_v56, %v13654_v61  ;;  %v4108_v16 = vrot.slane %v4101_v37, 4  ;;  %v4135_v33 = vsel %vm1445_vm1, %v4134_v34, %v16125_v58 }
 0x51e   : > { %v4079_v39 = vsel %vm1445_vm1, %v4078_v4, %v4061_v23  ;;  %v4141_v15 = vperm.slane %v4135_v33, %v13654_v61  ;;  %v4153_v40 = vperm.slane %v4147_v51, %v13654_v61  ;;  %v4160_v27 = vrot.slane %v4145_v62, 4 }
 0x51f   : > { %v4085_v9 = vperm.slane %v4079_v39, %v13654_v61  ;;  %v4104_v30 = vrot.slane %v4089_v28, 4  ;;  %v4106_v45 = vrot.slane %v4097_v50, 4  ;;  %v4109_v36 = vsel %vm1445_vm1, 0.0, %v4108_v16 }
 0x520   : > { %v4158_v25 = vrot.slane %v4141_v15, 4  ;;  %v4161_v43 = vsel %vm1445_vm1, 0.0, %v4160_v27  ;;  %v4162_v24 = vrot.slane %v4153_v40, 4  ;;  %v4164_v2 = vrot.slane %v4157_v52, 4 }
 0x521   : > { %v4102_v46 = vrot.slane %v4085_v9, 4  ;;  %v4105_v58 = vsel %vm1445_vm1, 0.0, %v4104_v30  ;;  %v4107_v23 = vsel %vm1445_vm1, 0.0, %v4106_v45  ;;  %v4930_v34 = vsel %vm1445_vm1, %v4104_v30, %v4085_v9 }
 0x522   : > { %v4159_v37 = vsel %vm1445_vm1, 0.0, %v4158_v25  ;;  %v4163_v21 = vsel %vm1445_vm1, 0.0, %v4162_v24  ;;  %v4165_v51 = vsel %vm1445_vm1, 0.0, %v4164_v2  ;;  %v4934_v4 = vperm.slane %v4930_v34, %v13596_v48 }
 0x523   : > { %v4103_v42 = vsel %vm1445_vm1, 0.0, %v4102_v46  ;;  %v4935_v56 = vrot.slane %v4105_v58, 4  ;;  %v4941_v52 = vsel %vm1445_vm1, %v4108_v16, %v4097_v50  ;;  %v4946_v62 = vrot.slane %v4109_v36, 4 }
 0x524   : > { %v4945_v28 = vperm.slane %v4941_v52, %v13596_v48  ;;  %v4954_v33 = vrot.slane %v4934_v4, 4  ;;  %v4984_v39 = vsel %vm1445_vm1, %v4160_v27, %v4141_v15  ;;  %v4989_v9 = vrot.slane %v4161_v43, 4 }
 0x525   : > { %v4936_v30 = vsel %vm1445_vm1, %v4935_v56, %v4103_v42  ;;  %v4947_v45 = vsel %vm1445_vm1, %v4946_v62, %v4107_v23  ;;  %v4988_v25 = vperm.slane %v4984_v39, %v13596_v48  ;;  %v4995_v24 = vsel %vm1445_vm1, %v4164_v2, %v4153_v40 }
 0x526   : > { %v4940_v46 = vperm.slane %v4936_v30, %v13596_v48  ;;  %v4951_v58 = vperm.slane %v4947_v45, %v13596_v48  ;;  %v4966_v50 = vrot.slane %v4945_v28, 4  ;;  %v4990_v16 = vsel %vm1445_vm1, %v4989_v9, %v4159_v37 }
 0x527   : > { %v4994_v36 = vperm.slane %v4990_v16, %v13596_v48  ;;  %v4999_v15 = vperm.slane %v4995_v24, %v13596_v48  ;;  %v5000_v27 = vrot.slane %v4165_v51, 4  ;;  %v5008_v43 = vrot.slane %v4988_v25, 4 }
 0x528   : > { %v4952_v34 = vrot.slane %v4940_v46, 4  ;;  %v4955_v23 = vsel %vm1445_vm1, %v4940_v46, %v4954_v33  ;;  %v4964_v42 = vrot.slane %v4951_v58, 4  ;;  %v4967_v56 = vsel %vm1445_vm1, %v4951_v58, %v4966_v50 }
 0x529   : > { %v4963_v40 = vperm.slane %v4955_v23, %v13654_v61  ;;  %v4975_v2 = vperm.slane %v4967_v56, %v13654_v61  ;;  %v5001_v52 = vsel %vm1445_vm1, %v5000_v27, %v4163_v21  ;;  %v5006_v62 = vrot.slane %v4994_v36, 4 }
 0x52a   : > { %v4953_v37 = vsel %vm1445_vm1, %v4952_v34, %v4934_v4  ;;  %v4965_v39 = vsel %vm1445_vm1, %v4964_v42, %v4945_v28  ;;  %v5005_v51 = vperm.slane %v5001_v52, %v13596_v48  ;;  %v5009_v9 = vsel %vm1445_vm1, %v4994_v36, %v5008_v43 }
 0x52b   : > { %v4959_v33 = vperm.slane %v4953_v37, %v13654_v61  ;;  %v4971_v30 = vperm.slane %v4965_v39, %v13654_v61  ;;  %v4980_v45 = vrot.slane %v4975_v2, 4  ;;  %v4982_v24 = vrot.slane %v4963_v40, 4 }
 0x52c   : > { %v5007_v46 = vsel %vm1445_vm1, %v5006_v62, %v4988_v25  ;;  %v5017_v58 = vperm.slane %v5009_v9, %v13654_v61  ;;  %v5018_v21 = vrot.slane %v5005_v51, 4  ;;  %v5020_v50 = vrot.slane %v4999_v15, 4 }
 0x52d   : > { %v4976_v16 = vrot.slane %v4971_v30, 4  ;;  %v4978_v4 = vrot.slane %v4959_v33, 4  ;;  %v4981_v28 = vsel %vm1445_vm1, %v4980_v45, %v4963_v40  ;;  %v4983_v27 = vsel %vm1445_vm1, %v4975_v2, %v4982_v24 }
 0x52e   : > { %v5013_v36 = vperm.slane %v5007_v46, %v13654_v61  ;;  %v5019_v43 = vsel %vm1445_vm1, %v5018_v21, %v4999_v15  ;;  %v5021_v34 = vsel %vm1445_vm1, %v5005_v51, %v5020_v50  ;;  %v5036_v23 = vrot.slane %v5017_v58, 4  ;;  %v12028_v46 = vpop.permute.xlu1 %12027 }
 0x52f   : > { %v4977_v42 = vsel %vm1445_vm1, %v4976_v16, %v4959_v33  ;;  %v4979_v25 = vsel %vm1445_vm1, %v4971_v30, %v4978_v4  ;;  %v5025_v56 = vperm.slane %v5019_v43, %v13654_v61  ;;  %v5029_v52 = vperm.slane %v5021_v34, %v13654_v61 }
 0x530   : > { %v5032_v62 = vrot.slane %v5013_v36, 4  ;;  %v5264_v37 = vpack.c.bf16 %v4977_v42, %v4977_v42  ;;  %v5280_v40 = vpack.c.bf16 %v4979_v25, %v4979_v25  ;;  %v5296_v39 = vpack.c.bf16 %v4981_v28, %v4981_v28  ;;  %v16267_v28 = vpop.permute.xlu0 %12037 }
 0x531   : > { %v6394_v2 = vrot.slane %v12065_v6, 4  ;;  %v5030_v9 = vrot.slane %v5025_v56, 4  ;;  %v5034_v15 = vrot.slane %v5029_v52, 4  ;;  %v5037_v51 = vsel %vm1445_vm1, %v5029_v52, %v5036_v23 }
 0x532   : > { %v5033_v45 = vsel %vm1445_vm1, %v5025_v56, %v5032_v62  ;;  %v5312_v33 = vpack.c.bf16 %v4983_v27, %v4983_v27  ;;  %5328 = vst.msk [vmem:[#allocation3 + $0x28] sm:$0xf] %vm3269_vm2, %v5264_v37  ;;  %v2062_v30 = vsel %vm1445_vm1, %v16171_v17, %v14341_v49  ;;  %v2072_v24 = vperm.slane %v16180_v11, %v13596_v48 }
 0x533   : > { %v5031_v21 = vsel %vm1445_vm1, %v5030_v9, %v5013_v36  ;;  %v5035_v50 = vsel %vm1445_vm1, %v5034_v15, %v5017_v58  ;;  %v5281_v16 = vpack.c.bf16 %v5033_v45, %v5033_v45  ;;  %5344 = vst.msk [vmem:[#allocation3 + $0x68] sm:$0xf] %vm3269_vm2, %v5280_v40  ;;  %v2068_v4 = vperm.slane %v2062_v30, %v13596_v48 }
 0x534   : > { %v5265_v27 = vpack.c.bf16 %v5031_v21, %v5031_v21  ;;  %v5297_v43 = vpack.c.bf16 %v5035_v50, %v5035_v50  ;;  %v5313_v34 = vpack.c.bf16 %v5037_v51, %v5037_v51  ;;  %5360 = vst.msk [vmem:[#allocation3 + $0xa8] sm:$0xf] %vm3269_vm2, %v5296_v39  ;;  %v2006_v49 = vsel %vm1445_vm1, %v16184_v47, %v14324_v10 }
 0x535   : > { %5345 = vst.msk [vmem:[#allocation3 + $0x6c] sm:$0xf] %vm3269_vm2, %v5281_v16  ;;  %v2099_v17 = vrot.slane %v2072_v24, 4  ;;  %v17925_v11 = vrot.slane %v14324_v10, 4  ;;  %v2012_v36 = vperm.slane %v2006_v49, %v13596_v48  ;;  %v12030_v23 = vunpack.i.h.bf16 %v12028_v46 }
 0x536   : > { %5329 = vst.msk [vmem:[#allocation3 + $0x2c] sm:$0xf] %vm3269_vm2, %v5265_v27  ;;  %v2087_v42 = vrot.slane %v2068_v4, 4  ;;  %v12029_v56 = vunpack.i.l.bf16 %v12028_v46  ;;  %v12040_v47 = vunpack.i.h.bf16 %v16267_v28  ;;  %v12039_v19 = vunpack.i.l.bf16 %v16267_v28 }
 0x537   : > { %v2008_v58 = vsel %vm1445_vm1, %v12024_v29, %v17925_v11  ;;  %5361 = vst.msk [vmem:[#allocation3 + $0xac] sm:$0xf] %vm3269_vm2, %v5297_v43  ;;  %v2031_v52 = vrot.slane %v2012_v36, 4  ;;  %v2073_v62 = vrot.slane %v12030_v23, 4  ;;  %v2076_v10 = vsel %vm1445_vm1, %v12030_v23, %v15982_v22 }
 0x538   : > { %v2016_v25 = vperm.slane %v2008_v58, %v13596_v48  ;;  %5376 = vst.msk [vmem:[#allocation3 + $0xe8] sm:$0xf] %vm3269_vm2, %v5312_v33  ;;  %v2084_v37 = vperm.slane %v2076_v10, %v13596_v48  ;;  %v2017_v40 = vrot.slane %v12029_v56, 4  ;;  %v2020_v39 = vsel %vm1445_vm1, %v12029_v56, %v15999_v12 }
 0x539   : > { %5377 = vst.msk [vmem:[#allocation3 + $0xec] sm:$0xf] %vm3269_vm2, %v5313_v34  ;;  %v2074_v9 = vsel %vm1445_vm1, %v2073_v62, %v12020_v59  ;;  %v2028_v15 = vperm.slane %v2020_v39, %v13596_v48  ;;  %v16297_v22 = vsel %vm1445_vm1, %v6394_v2, %v12040_v47  ;;  %v16299_v51 = vrot.slane %v12040_v47, 4 }
 0x53a   : > { %v2043_v29 = vrot.slane %v2016_v25, 4  ;;  %v2080_v45 = vperm.slane %v2074_v9, %v13596_v48  ;;  %v2097_v33 = vrot.slane %v2084_v37, 4  ;;  %v2018_v12 = vsel %vm1445_vm1, %v2017_v40, %v12019_v38 }
 0x53b   : > { %v2100_v30 = vsel %vm1445_vm1, %v2084_v37, %v2099_v17  ;;  %v2024_v46 = vperm.slane %v2018_v12, %v13596_v48  ;;  %v2041_v21 = vrot.slane %v2028_v15, 4 }
 0x53c   : > { %v2044_v59 = vsel %vm1445_vm1, %v2028_v15, %v2043_v29  ;;  %v2108_v50 = vperm.slane %v2100_v30, %v13654_v61  ;;  %v2085_v2 = vrot.slane %v2080_v45, 4  ;;  %v2088_v27 = vsel %vm1445_vm1, %v2080_v45, %v2087_v42 }
 0x53d   : > { %v2052_v16 = vperm.slane %v2044_v59, %v13654_v61  ;;  %v2098_v43 = vsel %vm1445_vm1, %v2097_v33, %v2072_v24  ;;  %v2029_v34 = vrot.slane %v2024_v46, 4  ;;  %v2032_v35 = vsel %vm1445_vm1, %v2024_v46, %v2031_v52 }
 0x53e   : > { %v2042_v38 = vsel %vm1445_vm1, %v2041_v21, %v2016_v25  ;;  %v2096_v49 = vperm.slane %v2088_v27, %v13654_v61  ;;  %v2040_v17 = vperm.slane %v2032_v35, %v13654_v61  ;;  %v2086_v23 = vsel %vm1445_vm1, %v2085_v2, %v2068_v4 }
 0x53f   : > { %v2048_v11 = vperm.slane %v2042_v38, %v13654_v61  ;;  %v2059_v58 = vrot.slane %v2052_v16, 4  ;;  %v2030_v56 = vsel %vm1445_vm1, %v2029_v34, %v2012_v36  ;;  %v2092_v42 = vperm.slane %v2086_v23, %v13654_v61 }
 0x540   : > { %v2104_v24 = vperm.slane %v2098_v43, %v13654_v61  ;;  %v2111_v47 = vrot.slane %v2096_v49, 4  ;;  %v2036_v52 = vperm.slane %v2030_v56, %v13654_v61  ;;  %v2055_v62 = vrot.slane %v2040_v17, 4 }
 0x541   : > { %v2057_v25 = vrot.slane %v2048_v11, 4  ;;  %v2060_v10 = vsel %vm1445_vm1, 0.0, %v2059_v58  ;;  %v2109_v29 = vrot.slane %v2092_v42, 4  ;;  %v2115_v39 = vrot.slane %v2108_v50, 4 }
 0x542   : > { %v2112_v37 = vsel %vm1445_vm1, 0.0, %v2111_v47  ;;  %v2113_v40 = vrot.slane %v2104_v24, 4  ;;  %v2053_v9 = vrot.slane %v2036_v52, 4  ;;  %v2056_v4 = vsel %vm1445_vm1, 0.0, %v2055_v62 }
 0x543   : > { %v2058_v36 = vsel %vm1445_vm1, 0.0, %v2057_v25  ;;  %v2881_v15 = vsel %vm1445_vm1, %v2055_v62, %v2036_v52  ;;  %v2110_v45 = vsel %vm1445_vm1, 0.0, %v2109_v29  ;;  %v2116_v12 = vsel %vm1445_vm1, 0.0, %v2115_v39 }
 0x544   : > { %v2114_v33 = vsel %vm1445_vm1, 0.0, %v2113_v40  ;;  %v2885_v30 = vperm.slane %v2881_v15, %v13596_v48  ;;  %v2054_v46 = vsel %vm1445_vm1, 0.0, %v2053_v9  ;;  %v2886_v21 = vrot.slane %v2056_v4, 4 }
 0x545   : > { %v2892_v59 = vsel %vm1445_vm1, %v2059_v58, %v2048_v11  ;;  %v2897_v50 = vrot.slane %v2060_v10, 4  ;;  %v2935_v27 = vsel %vm1445_vm1, %v2111_v47, %v2092_v42  ;;  %v2940_v43 = vrot.slane %v2112_v37, 4 }
 0x546   : > { %v2896_v2 = vperm.slane %v2892_v59, %v13596_v48  ;;  %v2905_v16 = vrot.slane %v2885_v30, 4  ;;  %v2887_v34 = vsel %vm1445_vm1, %v2886_v21, %v2054_v46  ;;  %v2939_v38 = vperm.slane %v2935_v27, %v13596_v48 }
 0x547   : > { %v2898_v35 = vsel %vm1445_vm1, %v2897_v50, %v2058_v36  ;;  %v2946_v49 = vsel %vm1445_vm1, %v2115_v39, %v2104_v24  ;;  %v2891_v17 = vperm.slane %v2887_v34, %v13596_v48  ;;  %v2941_v58 = vsel %vm1445_vm1, %v2940_v43, %v2110_v45 }
 0x548   : > { %v2902_v23 = vperm.slane %v2898_v35, %v13596_v48  ;;  %v2917_v11 = vrot.slane %v2896_v2, 4  ;;  %v2945_v56 = vperm.slane %v2941_v58, %v13596_v48  ;;  %v2950_v42 = vperm.slane %v2946_v49, %v13596_v48 }
 0x549   : > { %v2951_v47 = vrot.slane %v2116_v12, 4  ;;  %v2959_v52 = vrot.slane %v2939_v38, 4  ;;  %v2903_v62 = vrot.slane %v2891_v17, 4  ;;  %v2906_v25 = vsel %vm1445_vm1, %v2891_v17, %v2905_v16 }
 0x54a   : > { %v2915_v10 = vrot.slane %v2902_v23, 4  ;;  %v2918_v29 = vsel %vm1445_vm1, %v2902_v23, %v2917_v11  ;;  %v2914_v24 = vperm.slane %v2906_v25, %v13654_v61  ;;  %v2957_v39 = vrot.slane %v2945_v56, 4 }
 0x54b   : > { %v2926_v37 = vperm.slane %v2918_v29, %v13654_v61  ;;  %v2952_v40 = vsel %vm1445_vm1, %v2951_v47, %v2114_v33  ;;  %v2904_v9 = vsel %vm1445_vm1, %v2903_v62, %v2885_v30  ;;  %v2960_v15 = vsel %vm1445_vm1, %v2945_v56, %v2959_v52 }
 0x54c   : > { %v2916_v4 = vsel %vm1445_vm1, %v2915_v10, %v2896_v2  ;;  %v2956_v36 = vperm.slane %v2952_v40, %v13596_v48  ;;  %v2910_v45 = vperm.slane %v2904_v9, %v13654_v61  ;;  %v2933_v21 = vrot.slane %v2914_v24, 4  ;;  %v12048_v9 = vpop.permute.xlu1 %12047 }
 0x54d   : > { %v2922_v12 = vperm.slane %v2916_v4, %v13654_v61  ;;  %v2931_v46 = vrot.slane %v2926_v37, 4  ;;  %v2958_v59 = vsel %vm1445_vm1, %v2957_v39, %v2939_v38  ;;  %v2968_v50 = vperm.slane %v2960_v15, %v13654_v61 }
 0x54e   : > { %v2969_v33 = vrot.slane %v2956_v36, 4  ;;  %v2971_v16 = vrot.slane %v2950_v42, 4  ;;  %v2929_v30 = vrot.slane %v2910_v45, 4  ;;  %v2934_v43 = vsel %vm1445_vm1, %v2926_v37, %v2933_v21 }
 0x54f   : > { %v2927_v27 = vrot.slane %v2922_v12, 4  ;;  %v2932_v2 = vsel %vm1445_vm1, %v2931_v46, %v2914_v24  ;;  %v2964_v34 = vperm.slane %v2958_v59, %v13654_v61  ;;  %v2987_v17 = vrot.slane %v2968_v50, 4 }
 0x550   : > { %v2970_v35 = vsel %vm1445_vm1, %v2969_v33, %v2950_v42  ;;  %v2972_v49 = vsel %vm1445_vm1, %v2956_v36, %v2971_v16  ;;  %v2930_v38 = vsel %vm1445_vm1, %v2922_v12, %v2929_v30  ;;  %v3247_v62 = vpack.c.bf16 %v2932_v2, %v2932_v2  ;;  %v16381_v12 = vpop.permute.xlu0 %12042 }
 0x551   : > { %v2928_v23 = vsel %vm1445_vm1, %v2927_v27, %v2910_v45  ;;  %v2976_v11 = vperm.slane %v2970_v35, %v13654_v61  ;;  %v2980_v58 = vperm.slane %v2972_v49, %v13654_v61  ;;  %v2983_v56 = vrot.slane %v2964_v34, 4 }
 0x552   : > { %v3215_v47 = vpack.c.bf16 %v2928_v23, %v2928_v23  ;;  %v3231_v52 = vpack.c.bf16 %v2930_v38, %v2930_v38  ;;  %v6338_v25 = vrot.slane %v12064_v53, 4  ;;  %v3263_v37 = vpack.c.bf16 %v2934_v43, %v2934_v43  ;;  %3312 = vst.msk [vmem:[#allocation2 + $0xa8] sm:$0xf] %vm3269_vm2, %v3247_v62 }
 0x553   : > { %v2981_v10 = vrot.slane %v2976_v11, 4  ;;  %v2985_v42 = vrot.slane %v2980_v58, 4  ;;  %v2988_v29 = vsel %vm1445_vm1, %v2980_v58, %v2987_v17  ;;  %v2984_v24 = vsel %vm1445_vm1, %v2976_v11, %v2983_v56 }
 0x554   : > { %3280 = vst.msk [vmem:[#allocation2 + $0x28] sm:$0xf] %vm3269_vm2, %v3215_v47  ;;  %v6397_v40 = vsel %vm1445_vm1, %v12065_v6, %v16299_v51  ;;  %v6401_v39 = vperm.slane %v16297_v22, %v13596_v48  ;;  %v3232_v15 = vpack.c.bf16 %v2984_v24, %v2984_v24  ;;  %v3264_v59 = vpack.c.bf16 %v2988_v29, %v2988_v29 }
 0x555   : > { %v2982_v4 = vsel %vm1445_vm1, %v2981_v10, %v2964_v34  ;;  %v2986_v36 = vsel %vm1445_vm1, %v2985_v42, %v2968_v50  ;;  %3296 = vst.msk [vmem:[#allocation2 + $0x68] sm:$0xf] %vm3269_vm2, %v3231_v52  ;;  %v6405_v45 = vperm.slane %v6397_v40, %v13596_v48  ;;  %v6339_v6 = vsel %vm1445_vm1, %v6338_v25, %v12039_v19 }
 0x556   : > { %v3216_v46 = vpack.c.bf16 %v2982_v4, %v2982_v4  ;;  %v3248_v21 = vpack.c.bf16 %v2986_v36, %v2986_v36  ;;  %3297 = vst.msk [vmem:[#allocation2 + $0x6c] sm:$0xf] %vm3269_vm2, %v3232_v15  ;;  %v6406_v22 = vrot.slane %v6401_v39, 4  ;;  %v6340_v51 = vrot.slane %v12039_v19, 4 }
 0x557   : > { %v6345_v50 = vperm.slane %v6339_v6, %v13596_v48  ;;  %v12050_v33 = vunpack.i.h.bf16 %v12048_v9  ;;  %v6418_v16 = vrot.slane %v6405_v45, 4  ;;  %v12049_v27 = vunpack.i.l.bf16 %v12048_v9  ;;  %3328 = vst.msk [vmem:[#allocation2 + $0xe8] sm:$0xf] %vm3269_vm2, %v3263_v37 }
 0x558   : > { %3281 = vst.msk [vmem:[#allocation2 + $0x2c] sm:$0xf] %vm3269_vm2, %v3216_v46  ;;  %v12045_v30 = vunpack.i.h.bf16 %v16381_v12  ;;  %v12044_v2 = vunpack.i.l.bf16 %v16381_v12  ;;  %v6341_v43 = vsel %vm1445_vm1, %v12064_v53, %v6340_v51 }
 0x559   : > { %3313 = vst.msk [vmem:[#allocation2 + $0xac] sm:$0xf] %vm3269_vm2, %v3248_v21  ;;  %v6350_v34 = vrot.slane %v6345_v50, 4  ;;  %v6382_v28 = vrot.slane %v12050_v33, 4  ;;  %v6385_v19 = vsel %vm1445_vm1, %v12050_v33, %v6384_v3  ;;  %v6349_v35 = vperm.slane %v6341_v43, %v13596_v48 }
 0x55a   : > { %v6393_v49 = vperm.slane %v6385_v19, %v13596_v48  ;;  %v6326_v17 = vrot.slane %v12049_v27, 4  ;;  %v6329_v23 = vsel %vm1445_vm1, %v12049_v27, %v6328_v31  ;;  %3329 = vst.msk [vmem:[#allocation2 + $0xec] sm:$0xf] %vm3269_vm2, %v3264_v59  ;;  %v6158_v38 = vrot.slane %v12045_v30, 4 }
 0x55b   : > { %v6383_v57 = vsel %vm1445_vm1, %v6382_v28, %v14457_v20  ;;  %v6337_v53 = vperm.slane %v6329_v23, %v13596_v48  ;;  %v16414_v3 = vsel %vm1445_vm1, %v12045_v30, %v6160_v44  ;;  %v6362_v11 = vrot.slane %v6349_v35, 4 }
 0x55c   : > { %v6389_v58 = vperm.slane %v6383_v57, %v13596_v48  ;;  %v6420_v56 = vrot.slane %v6393_v49, 4  ;;  %v6327_v31 = vsel %vm1445_vm1, %v6326_v17, %v14454_v54  ;;  %v6419_v20 = vsel %vm1445_vm1, %v6418_v16, %v6393_v49 }
 0x55d   : > { %v6333_v47 = vperm.slane %v6327_v31, %v13596_v48  ;;  %v6364_v52 = vrot.slane %v6337_v53, 4  ;;  %v6159_v62 = vsel %vm1445_vm1, %v6158_v38, %v14344_v8  ;;  %v6363_v10 = vsel %vm1445_vm1, %v6362_v11, %v6337_v53 }
 0x55e   : > { %v6408_v25 = vrot.slane %v6389_v58, 4  ;;  %v6407_v44 = vsel %vm1445_vm1, %v6406_v22, %v6389_v58  ;;  %v6421_v42 = vsel %vm1445_vm1, %v6405_v45, %v6420_v56  ;;  %v6369_v37 = vperm.slane %v6363_v10, %v13654_v61 }
 0x55f   : > { %v6351_v29 = vsel %vm1445_vm1, %v6350_v34, %v6333_v47  ;;  %v6352_v24 = vrot.slane %v6333_v47, 4  ;;  %v6365_v54 = vsel %vm1445_vm1, %v6349_v35, %v6364_v52  ;;  %v6413_v4 = vperm.slane %v6407_v44, %v13654_v61 }
 0x560   : > { %v6357_v40 = vperm.slane %v6351_v29, %v13654_v61  ;;  %v6373_v9 = vperm.slane %v6365_v54, %v13654_v61  ;;  %v6409_v8 = vsel %vm1445_vm1, %v6401_v39, %v6408_v25  ;;  %v6378_v15 = vrot.slane %v6369_v37, 4 }
 0x561   : > { %v6353_v36 = vsel %vm1445_vm1, %v6345_v50, %v6352_v24  ;;  %v6417_v45 = vperm.slane %v6409_v8, %v13654_v61  ;;  %v6425_v46 = vperm.slane %v6419_v20, %v13654_v61  ;;  %v6429_v22 = vperm.slane %v6421_v42, %v13654_v61 }
 0x562   : > { %v6361_v21 = vperm.slane %v6353_v36, %v13654_v61  ;;  %v6374_v59 = vrot.slane %v6357_v40, 4  ;;  %v6380_v6 = vrot.slane %v6373_v9, 4  ;;  %v6379_v51 = vsel %vm1445_vm1, 0.0, %v6378_v15 }
 0x563   : > { %v6430_v33 = vrot.slane %v6413_v4, 4  ;;  %v6432_v16 = vrot.slane %v6417_v45, 4  ;;  %v6434_v39 = vrot.slane %v6425_v46, 4  ;;  %v6436_v43 = vrot.slane %v6429_v22, 4 }
 0x564   : > { %v6375_v27 = vsel %vm1445_vm1, 0.0, %v6374_v59  ;;  %v6376_v30 = vrot.slane %v6361_v21, 4  ;;  %v6381_v50 = vsel %vm1445_vm1, 0.0, %v6380_v6  ;;  %v7205_v35 = vsel %vm1445_vm1, %v6380_v6, %v6369_v37 }
 0x565   : > { %v6431_v34 = vsel %vm1445_vm1, 0.0, %v6430_v33  ;;  %v6433_v28 = vsel %vm1445_vm1, 0.0, %v6432_v16  ;;  %v6435_v19 = vsel %vm1445_vm1, 0.0, %v6434_v39  ;;  %v6437_v17 = vsel %vm1445_vm1, 0.0, %v6436_v43 }
 0x566   : > { %v6377_v49 = vsel %vm1445_vm1, 0.0, %v6376_v30  ;;  %v7194_v23 = vsel %vm1445_vm1, %v6376_v30, %v6357_v40  ;;  %v7209_v57 = vperm.slane %v7205_v35, %v13596_v48  ;;  %v7210_v11 = vrot.slane %v6381_v50, 4 }
 0x567   : > { %v7198_v53 = vperm.slane %v7194_v23, %v13596_v48  ;;  %v7199_v38 = vrot.slane %v6377_v49, 4  ;;  %v7248_v58 = vsel %vm1445_vm1, %v6432_v16, %v6413_v4  ;;  %v7253_v47 = vrot.slane %v6433_v28, 4 }
 0x568   : > { %v7230_v56 = vrot.slane %v7209_v57, 4  ;;  %v7252_v31 = vperm.slane %v7248_v58, %v13596_v48  ;;  %v7259_v52 = vsel %vm1445_vm1, %v6436_v43, %v6425_v46  ;;  %v7211_v25 = vsel %vm1445_vm1, %v7210_v11, %v6379_v51 }
 0x569   : > { %v7200_v20 = vsel %vm1445_vm1, %v7199_v38, %v6375_v27  ;;  %v7218_v10 = vrot.slane %v7198_v53, 4  ;;  %v7263_v44 = vperm.slane %v7259_v52, %v13596_v48  ;;  %v7215_v29 = vperm.slane %v7211_v25, %v13596_v48 }
 0x56a   : > { %v7204_v42 = vperm.slane %v7200_v20, %v13596_v48  ;;  %v7254_v24 = vsel %vm1445_vm1, %v7253_v47, %v6431_v34  ;;  %v7264_v54 = vrot.slane %v6437_v17, 4  ;;  %v7272_v40 = vrot.slane %v7252_v31, 4 }
 0x56b   : > { %v7258_v37 = vperm.slane %v7254_v24, %v13596_v48  ;;  %v7284_v9 = vrot.slane %v7263_v44, 4  ;;  %v16461_v8 = vperm.slane %v6159_v62, %v13596_v48  ;;  %v7228_v15 = vrot.slane %v7215_v29, 4 }
 0x56c   : > { %v7216_v4 = vrot.slane %v7204_v42, 4  ;;  %v7219_v36 = vsel %vm1445_vm1, %v7204_v42, %v7218_v10  ;;  %v7231_v45 = vsel %vm1445_vm1, %v7215_v29, %v7230_v56  ;;  %v7265_v59 = vsel %vm1445_vm1, %v7264_v54, %v6435_v19 }
 0x56d   : > { %v7227_v46 = vperm.slane %v7219_v36, %v13654_v61  ;;  %v7239_v21 = vperm.slane %v7231_v45, %v13654_v61  ;;  %v7270_v6 = vrot.slane %v7258_v37, 4  ;;  %v7229_v51 = vsel %vm1445_vm1, %v7228_v15, %v7209_v57 }
 0x56e   : > { %v7217_v22 = vsel %vm1445_vm1, %v7216_v4, %v7198_v53  ;;  %v7269_v62 = vperm.slane %v7265_v59, %v13596_v48  ;;  %v7273_v33 = vsel %vm1445_vm1, %v7258_v37, %v7272_v40  ;;  %v7235_v39 = vperm.slane %v7229_v51, %v13654_v61  ;;  %v16493_v4 = vpop.permute.xlu0 %12057 }
 0x56f   : > { %v7223_v16 = vperm.slane %v7217_v22, %v13654_v61  ;;  %v7244_v27 = vrot.slane %v7239_v21, 4  ;;  %v7246_v30 = vrot.slane %v7227_v46, 4  ;;  %v7271_v50 = vsel %vm1445_vm1, %v7270_v6, %v7252_v31 }
 0x570   : > { %v7281_v43 = vperm.slane %v7273_v33, %v13654_v61  ;;  %v7282_v34 = vrot.slane %v7269_v62, 4  ;;  %v7285_v28 = vsel %vm1445_vm1, %v7269_v62, %v7284_v9  ;;  %v7240_v19 = vrot.slane %v7235_v39, 4 }
 0x571   : > { %v7242_v35 = vrot.slane %v7223_v16, 4  ;;  %v7245_v49 = vsel %vm1445_vm1, %v7244_v27, %v7227_v46  ;;  %v7247_v17 = vsel %vm1445_vm1, %v7239_v21, %v7246_v30  ;;  %v7277_v23 = vperm.slane %v7271_v50, %v13654_v61 }
 0x572   : > { %v7283_v57 = vsel %vm1445_vm1, %v7282_v34, %v7263_v44  ;;  %v7293_v53 = vperm.slane %v7285_v28, %v13654_v61  ;;  %v7300_v38 = vrot.slane %v7281_v43, 4  ;;  %v7241_v11 = vsel %vm1445_vm1, %v7240_v19, %v7223_v16  ;;  %v12053_v44 = vpop.permute.xlu1 %12052 }
 0x573   : > { %v7243_v58 = vsel %vm1445_vm1, %v7235_v39, %v7242_v35  ;;  %v7289_v56 = vperm.slane %v7283_v57, %v13654_v61  ;;  %v7348_v31 = vpack.c.bf16 %v7245_v49, %v7245_v49  ;;  %v7296_v47 = vrot.slane %v7277_v23, 4 }
 0x574   : > { %v7298_v52 = vrot.slane %v7293_v53, 4  ;;  %v7301_v20 = vsel %vm1445_vm1, %v7293_v53, %v7300_v38  ;;  %v7316_v25 = vpack.c.bf16 %v7241_v11, %v7241_v11  ;;  %v7332_v42 = vpack.c.bf16 %v7243_v58, %v7243_v58 }
 0x575   : > { %v7294_v10 = vrot.slane %v7289_v56, 4  ;;  %v7364_v29 = vpack.c.bf16 %v7247_v17, %v7247_v17  ;;  %v7365_v24 = vpack.c.bf16 %v7301_v20, %v7301_v20  ;;  %7412 = vst.msk [vmem:[#allocation4 + $0xb8] sm:$0xf] %vm3269_vm2, %v7348_v31  ;;  %v7297_v54 = vsel %vm1445_vm1, %v7289_v56, %v7296_v47 }
 0x576   : > { %v7299_v37 = vsel %vm1445_vm1, %v7298_v52, %v7281_v43  ;;  %7380 = vst.msk [vmem:[#allocation4 + $0x38] sm:$0xf] %vm3269_vm2, %v7316_v25  ;;  %v6169_v40 = vperm.slane %v16414_v3, %v13596_v48  ;;  %v6184_v9 = vrot.slane %v16461_v8, 4  ;;  %v7333_v15 = vpack.c.bf16 %v7297_v54, %v7297_v54 }
 0x577   : > { %v7295_v36 = vsel %vm1445_vm1, %v7294_v10, %v7277_v23  ;;  %v7349_v45 = vpack.c.bf16 %v7299_v37, %v7299_v37  ;;  %7396 = vst.msk [vmem:[#allocation4 + $0x78] sm:$0xf] %vm3269_vm2, %v7332_v42  ;;  %v6102_v46 = vrot.slane %v12044_v2, 4  ;;  %v6105_v3 = vsel %vm1445_vm1, %v12044_v2, %v6104_v41 }
 0x578   : > { %v7317_v21 = vpack.c.bf16 %v7295_v36, %v7295_v36  ;;  %7428 = vst.msk [vmem:[#allocation4 + $0xf8] sm:$0xf] %vm3269_vm2, %v7364_v29  ;;  %v6196_v59 = vrot.slane %v6169_v40, 4  ;;  %v12055_v6 = vunpack.i.h.bf16 %v12053_v44  ;;  %v6113_v51 = vperm.slane %v6105_v3, %v13596_v48 }
 0x579   : > { %7397 = vst.msk [vmem:[#allocation4 + $0x7c] sm:$0xf] %vm3269_vm2, %v7333_v15  ;;  %v6103_v22 = vsel %vm1445_vm1, %v6102_v46, %v14331_v1  ;;  %v12054_v62 = vunpack.i.l.bf16 %v12053_v44  ;;  %v12060_v33 = vunpack.i.h.bf16 %v16493_v4  ;;  %v12059_v41 = vunpack.i.l.bf16 %v16493_v4 }
 0x57a   : > { %7381 = vst.msk [vmem:[#allocation4 + $0x3c] sm:$0xf] %vm3269_vm2, %v7317_v21  ;;  %v6109_v16 = vperm.slane %v6103_v22, %v13596_v48  ;;  %v6170_v39 = vrot.slane %v12055_v6, 4  ;;  %v6173_v12 = vsel %vm1445_vm1, %v12055_v6, %v16144_v55  ;;  %v6140_v2 = vrot.slane %v6113_v51, 4 }
 0x57b   : > { %7413 = vst.msk [vmem:[#allocation4 + $0xbc] sm:$0xf] %vm3269_vm2, %v7349_v45  ;;  %v6181_v1 = vperm.slane %v6173_v12, %v13596_v48  ;;  %v6114_v27 = vrot.slane %v12054_v62, 4  ;;  %v6117_v30 = vsel %vm1445_vm1, %v12054_v62, %v16153_v32  ;;  %v16526_v34 = vrot.slane %v12060_v33, 4 }
 0x57c   : > { %7429 = vst.msk [vmem:[#allocation4 + $0xfc] sm:$0xf] %vm3269_vm2, %v7365_v24  ;;  %v6128_v50 = vrot.slane %v6109_v16, 4  ;;  %v6171_v43 = vsel %vm1445_vm1, %v6170_v39, %v12035_v14  ;;  %v6125_v55 = vperm.slane %v6117_v30, %v13596_v48 }
 0x57d   : > { %v6177_v28 = vperm.slane %v6171_v43, %v13596_v48  ;;  %v6194_v19 = vrot.slane %v6181_v1, 4  ;;  %v6115_v32 = vsel %vm1445_vm1, %v6114_v27, %v12034_v63  ;;  %v6197_v35 = vsel %vm1445_vm1, %v6181_v1, %v6196_v59 }
 0x57e   : > { %v6121_v49 = vperm.slane %v6115_v32, %v13596_v48  ;;  %v6138_v17 = vrot.slane %v6125_v55, 4  ;;  %v6141_v14 = vsel %vm1445_vm1, %v6125_v55, %v6140_v2  ;;  %v6205_v23 = vperm.slane %v6197_v35, %v13654_v61 }
 0x57f   : > { %v6182_v57 = vrot.slane %v6177_v28, 4  ;;  %v6149_v53 = vperm.slane %v6141_v14, %v13654_v61  ;;  %v6185_v38 = vsel %vm1445_vm1, %v6177_v28, %v6184_v9  ;;  %v6195_v11 = vsel %vm1445_vm1, %v6194_v19, %v6169_v40 }
 0x580   : > { %v6126_v58 = vrot.slane %v6121_v49, 4  ;;  %v6129_v13 = vsel %vm1445_vm1, %v6121_v49, %v6128_v50  ;;  %v6139_v63 = vsel %vm1445_vm1, %v6138_v17, %v6113_v51  ;;  %v6193_v56 = vperm.slane %v6185_v38, %v13654_v61 }
 0x581   : > { %v6137_v31 = vperm.slane %v6129_v13, %v13654_v61  ;;  %v6145_v47 = vperm.slane %v6139_v63, %v13654_v61  ;;  %v6156_v52 = vrot.slane %v6149_v53, 4  ;;  %v6183_v20 = vsel %vm1445_vm1, %v6182_v57, %v16461_v8 }
 0x582   : > { %v6127_v25 = vsel %vm1445_vm1, %v6126_v58, %v6109_v16  ;;  %v6189_v10 = vperm.slane %v6183_v20, %v13654_v61  ;;  %v6201_v42 = vperm.slane %v6195_v11, %v13654_v61  ;;  %v6208_v29 = vrot.slane %v6193_v56, 4 }
 0x583   : > { %v6133_v24 = vperm.slane %v6127_v25, %v13654_v61  ;;  %v6152_v44 = vrot.slane %v6137_v31, 4  ;;  %v6154_v54 = vrot.slane %v6145_v47, 4  ;;  %v6157_v37 = vsel %vm1445_vm1, 0.0, %v6156_v52 }
 0x584   : > { %v6206_v40 = vrot.slane %v6189_v10, 4  ;;  %v6209_v9 = vsel %vm1445_vm1, 0.0, %v6208_v29  ;;  %v6210_v36 = vrot.slane %v6201_v42, 4  ;;  %v6212_v15 = vrot.slane %v6205_v23, 4 }
 0x585   : > { %v6150_v45 = vrot.slane %v6133_v24, 4  ;;  %v6153_v8 = vsel %vm1445_vm1, 0.0, %v6152_v44  ;;  %v6155_v46 = vsel %vm1445_vm1, 0.0, %v6154_v54  ;;  %v6978_v21 = vsel %vm1445_vm1, %v6152_v44, %v6133_v24 }
 0x586   : > { %v6207_v59 = vsel %vm1445_vm1, 0.0, %v6206_v40  ;;  %v6211_v3 = vsel %vm1445_vm1, 0.0, %v6210_v36  ;;  %v6213_v6 = vsel %vm1445_vm1, 0.0, %v6212_v15  ;;  %v6982_v22 = vperm.slane %v6978_v21, %v13596_v48 }
 0x587   : > { %v6151_v51 = vsel %vm1445_vm1, 0.0, %v6150_v45  ;;  %v6983_v62 = vrot.slane %v6153_v8, 4  ;;  %v6989_v16 = vsel %vm1445_vm1, %v6156_v52, %v6145_v47  ;;  %v6994_v39 = vrot.slane %v6157_v37, 4 }
 0x588   : > { %v6993_v12 = vperm.slane %v6989_v16, %v13596_v48  ;;  %v7002_v2 = vrot.slane %v6982_v22, 4  ;;  %v7032_v1 = vsel %vm1445_vm1, %v6208_v29, %v6189_v10  ;;  %v7037_v27 = vrot.slane %v6209_v9, 4 }
 0x589   : > { %v6984_v30 = vsel %vm1445_vm1, %v6983_v62, %v6151_v51  ;;  %v6995_v50 = vsel %vm1445_vm1, %v6994_v39, %v6155_v46  ;;  %v7036_v43 = vperm.slane %v7032_v1, %v13596_v48  ;;  %v7043_v55 = vsel %vm1445_vm1, %v6212_v15, %v6201_v42 }
 0x58a   : > { %v6988_v28 = vperm.slane %v6984_v30, %v13596_v48  ;;  %v6999_v19 = vperm.slane %v6995_v50, %v13596_v48  ;;  %v7014_v32 = vrot.slane %v6993_v12, 4  ;;  %v7038_v35 = vsel %vm1445_vm1, %v7037_v27, %v6207_v59 }
 0x58b   : > { %v7042_v49 = vperm.slane %v7038_v35, %v13596_v48  ;;  %v7047_v17 = vperm.slane %v7043_v55, %v13596_v48  ;;  %v7048_v14 = vrot.slane %v6213_v6, 4  ;;  %v7056_v23 = vrot.slane %v7036_v43, 4 }
 0x58c   : > { %v7000_v57 = vrot.slane %v6988_v28, 4  ;;  %v7003_v53 = vsel %vm1445_vm1, %v6988_v28, %v7002_v2  ;;  %v7012_v38 = vrot.slane %v6999_v19, 4  ;;  %v7015_v11 = vsel %vm1445_vm1, %v6999_v19, %v7014_v32 }
 0x58d   : > { %v7011_v58 = vperm.slane %v7003_v53, %v13654_v61  ;;  %v7023_v13 = vperm.slane %v7015_v11, %v13654_v61  ;;  %v7049_v63 = vsel %vm1445_vm1, %v7048_v14, %v6211_v3  ;;  %v7054_v56 = vrot.slane %v7042_v49, 4 }
 0x58e   : > { %v7001_v31 = vsel %vm1445_vm1, %v7000_v57, %v6982_v22  ;;  %v7013_v47 = vsel %vm1445_vm1, %v7012_v38, %v6993_v12  ;;  %v7053_v52 = vperm.slane %v7049_v63, %v13596_v48  ;;  %v7057_v20 = vsel %vm1445_vm1, %v7042_v49, %v7056_v23 }
 0x58f   : > { %v7007_v25 = vperm.slane %v7001_v31, %v13654_v61  ;;  %v7019_v10 = vperm.slane %v7013_v47, %v13654_v61  ;;  %v7028_v42 = vrot.slane %v7023_v13, 4  ;;  %v7030_v29 = vrot.slane %v7011_v58, 4 }
 0x590   : > { %v7055_v24 = vsel %vm1445_vm1, %v7054_v56, %v7036_v43  ;;  %v7065_v44 = vperm.slane %v7057_v20, %v13654_v61  ;;  %v7066_v54 = vrot.slane %v7053_v52, 4  ;;  %v7068_v37 = vrot.slane %v7047_v17, 4 }
 0x591   : > { %v7024_v40 = vrot.slane %v7019_v10, 4  ;;  %v7026_v9 = vrot.slane %v7007_v25, 4  ;;  %v7029_v36 = vsel %vm1445_vm1, %v7028_v42, %v7011_v58  ;;  %v7031_v15 = vsel %vm1445_vm1, %v7023_v13, %v7030_v29 }
 0x592   : > { %v7061_v45 = vperm.slane %v7055_v24, %v13654_v61  ;;  %v7067_v8 = vsel %vm1445_vm1, %v7066_v54, %v7047_v17  ;;  %v7069_v46 = vsel %vm1445_vm1, %v7053_v52, %v7068_v37  ;;  %v7084_v21 = vrot.slane %v7065_v44, 4 }
 0x593   : > { %v7025_v59 = vsel %vm1445_vm1, %v7024_v40, %v7007_v25  ;;  %v7027_v3 = vsel %vm1445_vm1, %v7019_v10, %v7026_v9  ;;  %v7073_v6 = vperm.slane %v7067_v8, %v13654_v61  ;;  %v7077_v22 = vperm.slane %v7069_v46, %v13654_v61 }
 0x594   : > { %v7080_v51 = vrot.slane %v7061_v45, 4  ;;  %v7312_v62 = vpack.c.bf16 %v7025_v59, %v7025_v59  ;;  %v7328_v16 = vpack.c.bf16 %v7027_v3, %v7027_v3  ;;  %v7344_v39 = vpack.c.bf16 %v7029_v36, %v7029_v36 }
 0x595   : > { %v17926_v12 = vunpack.i.l.bf16 %v15967_v18  ;;  %v7078_v1 = vrot.slane %v7073_v6, 4  ;;  %v7082_v27 = vrot.slane %v7077_v22, 4  ;;  %v7085_v30 = vsel %vm1445_vm1, %v7077_v22, %v7084_v21 }
 0x596   : > { %v7081_v50 = vsel %vm1445_vm1, %v7073_v6, %v7080_v51  ;;  %v7360_v43 = vpack.c.bf16 %v7031_v15, %v7031_v15  ;;  %7376 = vst.msk [vmem:[#allocation4 + $0x28] sm:$0xf] %vm3269_vm2, %v7312_v62  ;;  %v17927_v55 = vunpack.i.h.bf16 %v15967_v18  ;;  %v6285_v19 = vsel %vm1445_vm1, %v12060_v33, %v16017_v7 }
 0x597   : > { %v6228_v2 = vrot.slane %v17926_v12, 4  ;;  %v7079_v32 = vsel %vm1445_vm1, %v7078_v1, %v7061_v45  ;;  %v7083_v35 = vsel %vm1445_vm1, %v7082_v27, %v7065_v44  ;;  %v7329_v49 = vpack.c.bf16 %v7081_v50, %v7081_v50  ;;  %7392 = vst.msk [vmem:[#allocation4 + $0x68] sm:$0xf] %vm3269_vm2, %v7328_v16 }
 0x598   : > { %v6283_v28 = vsel %vm1445_vm1, %v16526_v34, %v17927_v55  ;;  %v7313_v14 = vpack.c.bf16 %v7079_v32, %v7079_v32  ;;  %v7345_v23 = vpack.c.bf16 %v7083_v35, %v7083_v35  ;;  %7408 = vst.msk [vmem:[#allocation4 + $0xa8] sm:$0xf] %vm3269_vm2, %v7344_v39  ;;  %v6293_v34 = vperm.slane %v6285_v19, %v13596_v48 }
 0x599   : > { %v6289_v17 = vperm.slane %v6283_v28, %v13596_v48  ;;  %v6226_v57 = vrot.slane %v12059_v41, 4  ;;  %v7361_v53 = vpack.c.bf16 %v7085_v30, %v7085_v30  ;;  %7393 = vst.msk [vmem:[#allocation4 + $0x6c] sm:$0xf] %vm3269_vm2, %v7329_v49  ;;  %v17928_v33 = vrot.slane %v15647_v0, 4 }
 0x59a   : > { %v6229_v11 = vsel %vm1445_vm1, %v12059_v41, %v6228_v2  ;;  %7377 = vst.msk [vmem:[#allocation4 + $0x2c] sm:$0xf] %vm3269_vm2, %v7313_v14  ;;  %v6306_v13 = vrot.slane %v6293_v34, 4  ;;  %v17929_v63 = vrot.slane %v15652_v5, 4  ;;  %v17930_v31 = vmov %v17926_v12 }
 0x59b   : > { %v6294_v7 = vrot.slane %v6289_v17, 4  ;;  %v6297_v38 = vsel %vm1445_vm1, %v6289_v17, %v17928_v33  ;;  %v6227_v47 = vsel %vm1445_vm1, %v6226_v57, %v17930_v31  ;;  %v6240_v52 = vrot.slane %v15744_v26, 4  ;;  %7409 = vst.msk [vmem:[#allocation4 + $0xac] sm:$0xf] %vm3269_vm2, %v7345_v23 }
 0x59c   : > { %v6305_v58 = vperm.slane %v6297_v38, %v13654_v61  ;;  %v6309_v56 = vsel %vm1445_vm1, %v6293_v34, %v17929_v63  ;;  %v6233_v20 = vperm.slane %v6227_v47, %v13596_v48  ;;  %7424 = vst.msk [vmem:[#allocation4 + $0xe8] sm:$0xf] %vm3269_vm2, %v7360_v43  ;;  %v6307_v18 = vsel %vm1445_vm1, %v6306_v13, %v15652_v5 }
 0x59d   : > { %v6295_v4 = vsel %vm1445_vm1, %v6294_v7, %v15647_v0  ;;  %v6317_v41 = vperm.slane %v6309_v56, %v13654_v61  ;;  %v6237_v42 = vperm.slane %v6229_v11, %v13596_v48  ;;  %7425 = vst.msk [vmem:[#allocation4 + $0xec] sm:$0xf] %vm3269_vm2, %v7361_v53  ;;  %v6313_v29 = vperm.slane %v6307_v18, %v13654_v61 }
 0x59e   : > { %v6301_v25 = vperm.slane %v6295_v4, %v13654_v61  ;;  %v6320_v10 = vrot.slane %v6305_v58, 4  ;;  %v6238_v0 = vrot.slane %v6233_v20, 4  ;;  %v6241_v44 = vsel %vm1445_vm1, %v6233_v20, %v6240_v52 }
 0x59f   : > { %v6324_v24 = vrot.slane %v6317_v41, 4  ;;  %v6249_v9 = vperm.slane %v6241_v44, %v13654_v61  ;;  %v6322_v36 = vrot.slane %v6313_v29, 4  ;;  %v6250_v12 = vrot.slane %v6237_v42, 4 }
 0x5a0   : > { %v6318_v54 = vrot.slane %v6301_v25, 4  ;;  %v6321_v37 = vsel %vm1445_vm1, 0.0, %v6320_v10  ;;  %v7140_v40 = vsel %vm1445_vm1, %v6320_v10, %v6301_v25  ;;  %v6239_v59 = vsel %vm1445_vm1, %v6238_v0, %v15744_v26 }
 0x5a1   : > { %v6325_v5 = vsel %vm1445_vm1, 0.0, %v6324_v24  ;;  %v7144_v15 = vperm.slane %v7140_v40, %v13596_v48  ;;  %v7145_v45 = vrot.slane %v6321_v37, 4  ;;  %v7151_v46 = vsel %vm1445_vm1, %v6324_v24, %v6313_v29 }
 0x5a2   : > { %v6319_v8 = vsel %vm1445_vm1, 0.0, %v6318_v54  ;;  %v7156_v21 = vrot.slane %v6325_v5, 4  ;;  %v6323_v3 = vsel %vm1445_vm1, 0.0, %v6322_v36  ;;  %v7155_v22 = vperm.slane %v7151_v46, %v13596_v48 }
 0x5a3   : > { %v7146_v6 = vsel %vm1445_vm1, %v7145_v45, %v6319_v8  ;;  %v7164_v51 = vrot.slane %v7144_v15, 4  ;;  %v6245_v39 = vperm.slane %v6239_v59, %v13654_v61  ;;  %v17931_v27 = vrot.slane %v15672_v60, 4 }
 0x5a4   : > { %v7150_v62 = vperm.slane %v7146_v6, %v13596_v48  ;;  %v7157_v16 = vsel %vm1445_vm1, %v7156_v21, %v6323_v3  ;;  %v7176_v1 = vrot.slane %v7155_v22, 4  ;;  %v6264_v30 = vrot.slane %v6249_v9, 4 }
 0x5a5   : > { %v7161_v2 = vperm.slane %v7157_v16, %v13596_v48  ;;  %v6253_v26 = vsel %vm1445_vm1, %v6237_v42, %v17931_v27  ;;  %v6251_v55 = vsel %vm1445_vm1, %v6250_v12, %v15672_v60  ;;  %v6262_v23 = vrot.slane %v6245_v39, 4 }
 0x5a6   : > { %v7162_v50 = vrot.slane %v7150_v62, 4  ;;  %v7165_v43 = vsel %vm1445_vm1, %v7150_v62, %v7164_v51  ;;  %v6261_v28 = vperm.slane %v6253_v26, %v13654_v61  ;;  %v6257_v49 = vperm.slane %v6251_v55, %v13654_v61 }
 0x5a7   : > { %v7173_v19 = vperm.slane %v7165_v43, %v13654_v61  ;;  %v7174_v32 = vrot.slane %v7161_v2, 4  ;;  %v7177_v35 = vsel %vm1445_vm1, %v7161_v2, %v7176_v1  ;;  %v6265_v34 = vsel %vm1445_vm1, 0.0, %v6264_v30 }
 0x5a8   : > { %v7163_v17 = vsel %vm1445_vm1, %v7162_v50, %v7144_v15  ;;  %v7185_v14 = vperm.slane %v7177_v35, %v13654_v61  ;;  %v6266_v7 = vrot.slane %v6257_v49, 4  ;;  %v6263_v11 = vsel %vm1445_vm1, 0.0, %v6262_v23 }
 0x5a9   : > { %v7169_v57 = vperm.slane %v7163_v17, %v13654_v61  ;;  %v7175_v60 = vsel %vm1445_vm1, %v7174_v32, %v7155_v22  ;;  %v7192_v53 = vrot.slane %v7173_v19, 4  ;;  %v6268_v58 = vrot.slane %v6261_v28, 4 }
 0x5aa   : > { %v7181_v33 = vperm.slane %v7175_v60, %v13654_v61  ;;  %v7190_v38 = vrot.slane %v7185_v14, 4  ;;  %v6267_v56 = vsel %vm1445_vm1, 0.0, %v6266_v7  ;;  %v7086_v31 = vsel %vm1445_vm1, %v6264_v30, %v6245_v39 }
 0x5ab   : > { %v7188_v13 = vrot.slane %v7169_v57, 4  ;;  %v7193_v63 = vsel %vm1445_vm1, %v7185_v14, %v7192_v53  ;;  %v6269_v41 = vsel %vm1445_vm1, 0.0, %v6268_v58  ;;  %v7090_v18 = vperm.slane %v7086_v31, %v13596_v48 }
 0x5ac   : > { %v7186_v47 = vrot.slane %v7181_v33, 4  ;;  %v7191_v52 = vsel %vm1445_vm1, %v7190_v38, %v7173_v19  ;;  %v7363_v4 = vpack.c.bf16 %v7193_v63, %v7193_v63  ;;  %v7091_v10 = vrot.slane %v6265_v34, 4 }
 0x5ad   : > { %v7189_v20 = vsel %vm1445_vm1, %v7181_v33, %v7188_v13  ;;  %v7347_v25 = vpack.c.bf16 %v7191_v52, %v7191_v52  ;;  %v7097_v24 = vsel %vm1445_vm1, %v6268_v58, %v6257_v49  ;;  %v7102_v0 = vrot.slane %v6269_v41, 4 }
 0x5ae   : > { %v7187_v42 = vsel %vm1445_vm1, %v7186_v47, %v7169_v57  ;;  %v7331_v29 = vpack.c.bf16 %v7189_v20, %v7189_v20  ;;  %7427 = vst.msk [vmem:[#allocation4 + $0xf4] sm:$0xf] %vm3269_vm2, %v7363_v4  ;;  %v7092_v54 = vsel %vm1445_vm1, %v7091_v10, %v6263_v11  ;;  %v7101_v37 = vperm.slane %v7097_v24, %v13596_v48 }
 0x5af   : > { %v7315_v44 = vpack.c.bf16 %v7187_v42, %v7187_v42  ;;  %7411 = vst.msk [vmem:[#allocation4 + $0xb4] sm:$0xf] %vm3269_vm2, %v7347_v25  ;;  %v7110_v40 = vrot.slane %v7090_v18, 4  ;;  %v7096_v9 = vperm.slane %v7092_v54, %v13596_v48  ;;  %v7103_v36 = vsel %vm1445_vm1, %v7102_v0, %v6267_v56 }
 0x5b0   : > { %7395 = vst.msk [vmem:[#allocation4 + $0x74] sm:$0xf] %vm3269_vm2, %v7331_v29  ;;  %v7107_v5 = vperm.slane %v7103_v36, %v13596_v48  ;;  %v7122_v15 = vrot.slane %v7101_v37, 4 }
 0x5b1   : > { %7379 = vst.msk [vmem:[#allocation4 + $0x34] sm:$0xf] %vm3269_vm2, %v7315_v44  ;;  %v7108_v45 = vrot.slane %v7096_v9, 4  ;;  %v7111_v8 = vsel %vm1445_vm1, %v7096_v9, %v7110_v40 }
 0x5b2   : > { %v7119_v46 = vperm.slane %v7111_v8, %v13654_v61  ;;  %v7120_v21 = vrot.slane %v7107_v5, 4  ;;  %v7123_v59 = vsel %vm1445_vm1, %v7107_v5, %v7122_v15 }
 0x5b3   : > { %v7109_v3 = vsel %vm1445_vm1, %v7108_v45, %v7090_v18  ;;  %v7131_v6 = vperm.slane %v7123_v59, %v13654_v61 }
 0x5b4   : > { %v7115_v22 = vperm.slane %v7109_v3, %v13654_v61  ;;  %v7121_v51 = vsel %vm1445_vm1, %v7120_v21, %v7101_v37  ;;  %v7138_v62 = vrot.slane %v7119_v46, 4 }
 0x5b5   : > { %v7127_v48 = vperm.slane %v7121_v51, %v13654_v61  ;;  %v7136_v16 = vrot.slane %v7131_v6, 4 }
 0x5b6   : > { %v7134_v39 = vrot.slane %v7115_v22, 4  ;;  %v7139_v12 = vsel %vm1445_vm1, %v7131_v6, %v7138_v62 }
 0x5b7   : > { %v7132_v2 = vrot.slane %v7127_v48, 4  ;;  %v7137_v1 = vsel %vm1445_vm1, %v7136_v16, %v7119_v46  ;;  %v7362_v27 = vpack.c.bf16 %v7139_v12, %v7139_v12 }
 0x5b8   : > { %v7135_v26 = vsel %vm1445_vm1, %v7127_v48, %v7134_v39  ;;  %v7346_v30 = vpack.c.bf16 %v7137_v1, %v7137_v1 }
 0x5b9   : > { %v7133_v50 = vsel %vm1445_vm1, %v7132_v2, %v7115_v22  ;;  %v7330_v43 = vpack.c.bf16 %v7135_v26, %v7135_v26  ;;  %7426 = vst.msk [vmem:[#allocation4 + $0xf0] sm:$0xf] %vm3269_vm2, %v7362_v27 }
 0x5ba   : > { %v7314_v55 = vpack.c.bf16 %v7133_v50, %v7133_v50  ;;  %7410 = vst.msk [vmem:[#allocation4 + $0xb0] sm:$0xf] %vm3269_vm2, %v7346_v30 }
 0x5bb   : > { %7394 = vst.msk [vmem:[#allocation4 + $0x70] sm:$0xf] %vm3269_vm2, %v7330_v43 }
 0x5bc   : > { %7378 = vst.msk [vmem:[#allocation4 + $0x30] sm:$0xf] %vm3269_vm2, %v7314_v55 }
 0x5bd PF: > { %v11396_v61 = vld [vmem:[#allocation3 + $0x38] sm:$0xff]  ;;  %vm7600_vm3 = vcmask 261120   ;;  %v11395_v23 = vld [vmem:[#allocation3 + $0x30] sm:$0xff]  ;;  %v11394_v11 = vld [vmem:[#allocation3 + $0x28] sm:$0xff]  ;;  %s17932_s22 = sld [smem:[#allocation22_spill]]  ;;  %vm8968_vm4 = vcmask 1047556  }
 0x5be   : > { %v11404_v28 = vld [vmem:[#allocation3 + $0x78] sm:$0xff]  ;;  %v7635_v35 = vsel %vm7600_vm3, %v11396_v61, 0  ;;  %v11403_v34 = vld [vmem:[#allocation3 + $0x70] sm:$0xff]  ;;  %v7632_v53 = vsel %vm7600_vm3, %v11395_v23, 0  ;;  %v11402_v58 = vld [vmem:[#allocation3 + $0x68] sm:$0xff]  ;;  %v7629_v56 = vsel %vm7600_vm3, %v11394_v11, 0 }
 0x5bf   : > { %v11412_v19 = vld [vmem:[#allocation3 + $0xb8] sm:$0xff]  ;;  %v7760_v49 = vsel %vm7600_vm3, %v11404_v28, 0  ;;  %7637 = vmatpush.bf16.xpose.msra.mxu0 %v7635_v35  ;;  %v11411_v57 = vld [vmem:[#allocation3 + $0xb0] sm:$0xff]  ;;  %v7757_v7 = vsel %vm7600_vm3, %v11403_v34, 0  ;;  %v11410_v13 = vld [vmem:[#allocation3 + $0xa8] sm:$0xff]  ;;  %v7754_v31 = vsel %vm7600_vm3, %v11402_v58, 0 }
 0x5c0   : > { %v11420_v32 = vld [vmem:[#allocation3 + $0xf8] sm:$0xff]  ;;  %v7885_v17 = vsel %vm7600_vm3, %v11412_v19, 0  ;;  %7762 = vmatpush.bf16.xpose.msra.mxu1 %v7760_v49  ;;  %v11419_v60 = vld [vmem:[#allocation3 + $0xf0] sm:$0xff]  ;;  %v7882_v33 = vsel %vm7600_vm3, %v11411_v57, 0  ;;  %v11418_v63 = vld [vmem:[#allocation3 + $0xe8] sm:$0xff]  ;;  %v7879_v47 = vsel %vm7600_vm3, %v11410_v13, 0 }
 0x5c1   : > { %v8010_v14 = vsel %vm7600_vm3, %v11420_v32, 0  ;;  %7887 = vmatpush.bf16.xpose.msra.mxu2 %v7885_v17  ;;  %v8007_v38 = vsel %vm7600_vm3, %v11419_v60, 0  ;;  %v8004_v52 = vsel %vm7600_vm3, %v11418_v63, 0  ;;  %v11393_v4 = vld [vmem:[#allocation3 + $0x20] sm:$0xff]  ;;  %v11392_v24 = vld [vmem:[#allocation3 + $0x18] sm:$0xff]  ;;  %v11391_v5 = vld [vmem:[#allocation3 + $0x10] sm:$0xff] }
 0x5c2   : > { %8012 = vmatpush.bf16.xpose.msra.mxu3 %v8010_v14  ;;  %v11401_v41 = vld [vmem:[#allocation3 + $0x60] sm:$0xff]  ;;  %v7626_v18 = vsel %vm7600_vm3, %v11393_v4, 0  ;;  %v11400_v0 = vld [vmem:[#allocation3 + $0x58] sm:$0xff]  ;;  %v7623_v37 = vsel %vm7600_vm3, %v11392_v24, 0  ;;  %v11399_v15 = vld [vmem:[#allocation3 + $0x50] sm:$0xff]  ;;  %v7620_v46 = vsel %vm7600_vm3, %v11391_v5, 0 }
 0x5c3   : > { %v11409_v20 = vld [vmem:[#allocation3 + $0xa0] sm:$0xff]  ;;  %v7751_v10 = vsel %vm7600_vm3, %v11401_v41, 0  ;;  %v11408_v44 = vld [vmem:[#allocation3 + $0x98] sm:$0xff]  ;;  %v7748_v40 = vsel %vm7600_vm3, %v11400_v0, 0  ;;  %v11407_v45 = vld [vmem:[#allocation3 + $0x90] sm:$0xff]  ;;  %v7745_v21 = vsel %vm7600_vm3, %v11399_v15, 0 }
 0x5c4   : > { %v11417_v25 = vld [vmem:[#allocation3 + $0xe0] sm:$0xff]  ;;  %v7876_v42 = vsel %vm7600_vm3, %v11409_v20, 0  ;;  %v11416_v54 = vld [vmem:[#allocation3 + $0xd8] sm:$0xff]  ;;  %v7873_v9 = vsel %vm7600_vm3, %v11408_v44, 0  ;;  %v11415_v8 = vld [vmem:[#allocation3 + $0xd0] sm:$0xff]  ;;  %v7870_v59 = vsel %vm7600_vm3, %v11407_v45, 0 }
 0x5c5   : > { %v8001_v29 = vsel %vm7600_vm3, %v11417_v25, 0  ;;  %v7998_v36 = vsel %vm7600_vm3, %v11416_v54, 0  ;;  %v7995_v3 = vsel %vm7600_vm3, %v11415_v8, 0  ;;  %v11390_v6 = vld [vmem:[#allocation3 + $0x8] sm:$0xff]  ;;  %s10844_s23 = sshll.u32 %s17932_s22, 6  ;;  %v11389_v2 = vld [vmem:[#allocation3] sm:$0xff] }
 0x5c6   : > { %v11398_v22 = vld [vmem:[#allocation3 + $0x48] sm:$0xff]  ;;  %v7617_v48 = vsel %vm7600_vm3, %v11390_v6, 0  ;;  %v11397_v1 = vld [vmem:[#allocation3 + $0x40] sm:$0xff]  ;;  %s7440_s28 = sshra.s32 %s10844_s23, 3  ;;  %v7614_v30 = vsel %vm7600_vm3, %v11389_v2, 0  ;;  %s12587_s3 = smov 32  }
 0x5c7   : > { %7638 = vmatpush.bf16.xpose.msra.mxu0 %v7632_v53  ;;  %v11406_v51 = vld [vmem:[#allocation3 + $0x88] sm:$0xff]  ;;  %v7742_v16 = vsel %vm7600_vm3, %v11398_v22, 0  ;;  %v11405_v27 = vld [vmem:[#allocation3 + $0x80] sm:$0xff]  ;;  %v7739_v50 = vsel %vm7600_vm3, %v11397_v1, 0  ;;  %s10845_s5 = sshll.u32 %s7440_s28, 2  ;;  %s12588_s20 = smov 64  }
 0x5c8   : > { %7763 = vmatpush.bf16.xpose.msra.mxu1 %v7757_v7  ;;  %v11414_v62 = vld [vmem:[#allocation3 + $0xc8] sm:$0xff]  ;;  %v7867_v39 = vsel %vm7600_vm3, %v11406_v51, 0  ;;  %v11413_v26 = vld [vmem:[#allocation3 + $0xc0] sm:$0xff]  ;;  %v7864_v43 = vsel %vm7600_vm3, %v11405_v27, 0  ;;  %s16746_s9 = scalar_lea.vmem [#allocation2], %s10845_s5  ;;  %s12589_s8 = smov 96  }
 0x5c9   : > { %7888 = vmatpush.bf16.xpose.msra.mxu2 %v7882_v33  ;;  %v7992_v12 = vsel %vm7600_vm3, %v11414_v62, 0  ;;  %v7989_v55 = vsel %vm7600_vm3, %v11413_v26, 0  ;;  %v11373_v61 = vld [vmem:[%s16746_s9] sm:$0xff]  ;;  %v11374_v35 = vld [vmem:[%s16746_s9 + $0x8] sm:$0xff]  ;;  %v11375_v23 = vld [vmem:[%s16746_s9 + $0x10] sm:$0xff]  ;;  %vm9858_vm5 = vcmask 523264   ;;  %s17534_s14 = scalar_lea.vmem %s12832_s0, %s10844_s23 [#allocation5] }
 0x5ca   : > { %8013 = vmatpush.bf16.xpose.msra.mxu3 %v8007_v38  ;;  %v11377_v28 = vld [vmem:[%s16746_s9 + $0x40] sm:$0xff]  ;;  %v11378_v49 = vld [vmem:[%s16746_s9 + $0x48] sm:$0xff]  ;;  %v11379_v34 = vld [vmem:[%s16746_s9 + $0x50] sm:$0xff]  ;;  %vm9867_vm6 = vcmask 785408   ;;  %s17933_s13 = sld [smem:[#allocation43_spill]]  ;;  %s11343_s12 = sshll.u32 %s17932_s22, 3 }
 0x5cb   : > { %v11381_v19 = vld [vmem:[%s16746_s9 + $0x80] sm:$0xff]  ;;  %v11382_v17 = vld [vmem:[%s16746_s9 + $0x88] sm:$0xff]  ;;  %v11383_v57 = vld [vmem:[%s16746_s9 + $0x90] sm:$0xff]  ;;  %s17936_s4 = sld [smem:[#allocation46_spill]]  ;;  %s10585_s5 = sshll.u32 %s12853_s11, 4  ;;  %s10586_s5 = int_to_ptr.vmem [resolvable:$true] %s10585_s5 }
 0x5cc   : > { %v11385_v32 = vld [vmem:[%s16746_s9 + $0xc0] sm:$0xff]  ;;  %v11386_v14 = vld [vmem:[%s16746_s9 + $0xc8] sm:$0xff]  ;;  %v11387_v60 = vld [vmem:[%s16746_s9 + $0xd0] sm:$0xff]  ;;  %s17937_s28 = sld [smem:[#allocation47_spill]] }
 0x5cd   : > { %v11376_v53 = vld [vmem:[%s16746_s9 + $0x18] sm:$0xff]  ;;  %s17940_s19 = sld [smem:[#allocation23_spill]] }
 0x5ce   : > { %v11388_v7 = vld [vmem:[%s16746_s9 + $0xd8] sm:$0xff]  ;;  %s17941_s23 = sld [smem:[#allocation52_spill]] }
 0x5cf   : > { %7639 = vmatpush.bf16.xpose.msra.mxu0 %v7629_v56  ;;  %v11384_v33 = vld [vmem:[%s16746_s9 + $0x98] sm:$0xff] }
 0x5d0   : > { %7764 = vmatpush.bf16.xpose.msra.mxu1 %v7754_v31  ;;  %v11380_v56 = vld [vmem:[%s16746_s9 + $0x58] sm:$0xff]  ;;  %s10571_s9 = scalar_lea.sflag [#allocation7], %s553_s2 }
 0x5d1   : > { %7889 = vmatpush.bf16.xpose.msra.mxu2 %v7879_v47 }
 0x5d2   : > { %8014 = vmatpush.bf16.xpose.msra.mxu3 %v8004_v52 }
 0x5d7   : > { %7640 = vmatpush.bf16.xpose.msra.mxu0 %v7626_v18 }
 0x5d8   : > { %7765 = vmatpush.bf16.xpose.msra.mxu1 %v7751_v10 }
 0x5d9   : > { %7890 = vmatpush.bf16.xpose.msra.mxu2 %v7876_v42 }
 0x5da   : > { %8015 = vmatpush.bf16.xpose.msra.mxu3 %v8001_v29 }
 0x5df   : > { %7641 = vmatpush.bf16.xpose.msra.mxu0 %v7623_v37 }
 0x5e0   : > { %7766 = vmatpush.bf16.xpose.msra.mxu1 %v7748_v40 }
 0x5e1   : > { %7891 = vmatpush.bf16.xpose.msra.mxu2 %v7873_v9 }
 0x5e2   : > { %8016 = vmatpush.bf16.xpose.msra.mxu3 %v7998_v36 }
 0x5e7   : > { %7642 = vmatpush.bf16.xpose.msra.mxu0 %v7620_v46 }
 0x5e8   : > { %7767 = vmatpush.bf16.xpose.msra.mxu1 %v7745_v21 }
 0x5e9   : > { %7892 = vmatpush.bf16.xpose.msra.mxu2 %v7870_v59 }
 0x5ea   : > { %8017 = vmatpush.bf16.xpose.msra.mxu3 %v7995_v3 }
 0x5ef   : > { %7643 = vmatpush.bf16.xpose.msra.mxu0 %v7617_v48 }
 0x5f0   : > { %7768 = vmatpush.bf16.xpose.msra.mxu1 %v7742_v16 }
 0x5f1   : > { %7893 = vmatpush.bf16.xpose.msra.mxu2 %v7867_v39 }
 0x5f2   : > { %8018 = vmatpush.bf16.xpose.msra.mxu3 %v7992_v12 }
 0x5f7   : > { %7644 = vmatpush.bf16.xpose.msra.mxu0 %v7614_v30 }
 0x5f8   : > { %7769 = vmatpush.bf16.xpose.msra.mxu1 %v7739_v50 }
 0x5f9   : > { %7894 = vmatpush.bf16.xpose.msra.mxu2 %v7864_v43 }
 0x5fa   : > { %8019 = vmatpush.bf16.xpose.msra.mxu3 %v7989_v55 }
 0x5fe   : > { %10894 = vmatmul.msk.bf16.vlgmr.msra.gmra.mxu0 %vm7600_vm3, %v11373_v61 }
 0x5ff   : > { %10946 = vmatmul.msk.bf16.vlgmr.msra.gmra.mxu1 %vm7600_vm3, %v11377_v28 }
 0x600   : > { %10998 = vmatmul.msk.bf16.vlgmr.msra.gmra.mxu2 %vm7600_vm3, %v11381_v19 }
 0x601   : > { %11050 = vmatmul.msk.bf16.vlgmr.msra.gmra.mxu3 %vm7600_vm3, %v11385_v32 }
 0x60e   : > { %10895 = vmatmul.msk.bf16.gmra.mxu0 %vm7600_vm3, %v11374_v35 }
 0x60f   : > { %10947 = vmatmul.msk.bf16.gmra.mxu1 %vm7600_vm3, %v11378_v49 }
 0x610   : > { %10999 = vmatmul.msk.bf16.gmra.mxu2 %vm7600_vm3, %v11382_v17 }
 0x611   : > { %11051 = vmatmul.msk.bf16.gmra.mxu3 %vm7600_vm3, %v11386_v14 }
 0x61e   : > { %10896 = vmatmul.msk.bf16.gmra.mxu0 %vm7600_vm3, %v11375_v23 }
 0x61f   : > { %10948 = vmatmul.msk.bf16.gmra.mxu1 %vm7600_vm3, %v11379_v34 }
 0x620   : > { %11000 = vmatmul.msk.bf16.gmra.mxu2 %vm7600_vm3, %v11383_v57 }
 0x621   : > { %11052 = vmatmul.msk.bf16.gmra.mxu3 %vm7600_vm3, %v11387_v60 }
 0x62e   : > { %10897 = vmatmul.msk.bf16.gmra.mxu0 %vm7600_vm3, %v11376_v53 }
 0x62f   : > { %10949 = vmatmul.msk.bf16.gmra.mxu1 %vm7600_vm3, %v11380_v56 }
 0x630   : > { %11001 = vmatmul.msk.bf16.gmra.mxu2 %vm7600_vm3, %v11384_v33 }
 0x631   : > { %11053 = vmatmul.msk.bf16.gmra.mxu3 %vm7600_vm3, %v11388_v7 }
 0x67b   : > { %v16778_v38 = vpop.f32.mrf.mxu0 }
 0x67c   : > { %v16780_v11 = vpop.f32.mrf.mxu1  ;;  %8041 = vmax.xlane.f32.xlu2 %v16778_v38 }
 0x67d   : > { %8057 = vmax.xlane.f32.xlu1 %v16780_v11 }
 0x683   : > { %v16784_v58 = vpop.f32.mrf.mxu2  ;;  %v16789_v63 = vpop.f32.mrf.mxu0 }
 0x684   : > { %v16786_v13 = vpop.f32.mrf.mxu3  ;;  %8073 = vmax.xlane.f32.xlu2 %v16784_v58  ;;  %v16796_v52 = vpop.f32.mrf.mxu1 }
 0x685   : > { %8089 = vmax.xlane.f32.xlu0 %v16786_v13 }
 0x68b   : > { %v16794_v31 = vpop.f32.mrf.mxu2  ;;  %v16799_v4 = vpop.f32.mrf.mxu0 }
 0x68c   : > { %v8023_v47 = vpop.f32.mrf.mxu3  ;;  %8059 = vmax.xlane.f32.xlu2 %v16796_v52  ;;  %v16819_v29 = vpop.f32.mrf.mxu1 }
 0x68d   : > { %8091 = vmax.xlane.f32.xlu1 %v8023_v47  ;;  %8043 = vmax.xlane.f32.xlu0 %v16789_v63 }
 0x693   : > { %v16802_v41 = vpop.f32.mrf.mxu2  ;;  %v16807_v25 = vpop.f32.mrf.mxu0 }
 0x694   : > { %v16804_v20 = vpop.f32.mrf.mxu3  ;;  %8075 = vmax.xlane.f32.xlu2 %v16794_v31  ;;  %v16827_v54 = vpop.f32.mrf.mxu1 }
 0x695   : > { %8077 = vmax.xlane.f32.xlu0 %v16802_v41 }
 0x69b   : > { %v16810_v18 = vpop.f32.mrf.mxu2  ;;  %v16813_v10 = vpop.f32.mrf.mxu0 }
 0x69c   : > { %8079 = vmax.xlane.f32.xlu1 %v16810_v18  ;;  %v16815_v42 = vpop.f32.mrf.mxu3  ;;  %8093 = vmax.xlane.f32.xlu2 %v16804_v20  ;;  %v16838_v36 = vpop.f32.mrf.mxu1 }
 0x69d   : > { %8049 = vmax.xlane.f32.xlu0 %v16813_v10 }
 0x6a3   : > { %v16821_v24 = vpop.f32.mrf.mxu2  ;;  %v7658_v0 = vpop.f32.mrf.mxu0 }
 0x6a4   : > { %8045 = vmax.xlane.f32.xlu1 %v16799_v4  ;;  %8047 = vmax.xlane.f32.xlu2 %v16807_v25  ;;  %v16825_v44 = vpop.f32.mrf.mxu3  ;;  %v16850_v45 = vpop.f32.mrf.mxu1 }
 0x6a5   : > { %8051 = vmax.xlane.f32.xlu0 %v7658_v0 }
 0x6ab   : > { %v16829_v37 = vpop.f32.mrf.mxu2  ;;  %v16836_v9 = vpop.f32.mrf.mxu0 }
 0x6ac   : > { %8063 = vmax.xlane.f32.xlu1 %v16827_v54  ;;  %8083 = vmax.xlane.f32.xlu2 %v16829_v37  ;;  %v16834_v40 = vpop.f32.mrf.mxu3  ;;  %v16884_v53 = vpop.f32.mrf.mxu1 }
 0x6ad   : > { %8095 = vmax.xlane.f32.xlu0 %v16815_v42 }
 0x6b3   : > { %v16845_v15 = vpop.f32.mrf.mxu0  ;;  %v16854_v8 = vpop.f32.mrf.mxu2 }
 0x6b4   : > { %8053 = vmax.xlane.f32.xlu1 %v16836_v9  ;;  %8065 = vmax.xlane.f32.xlu2 %v16838_v36  ;;  %v16843_v5 = vpop.f32.mrf.mxu3 }
 0x6b5   : > { %8061 = vmax.xlane.f32.xlu0 %v16819_v29 }
 0x6bb   : > { %v16858_v46 = vpop.f32.mrf.mxu2 }
 0x6bc   : > { %8055 = vmax.xlane.f32.xlu1 %v16845_v15  ;;  %8101 = vmax.xlane.f32.xlu2 %v16843_v5  ;;  %v16860_v21 = vpop.f32.mrf.mxu3 }
 0x6bd   : > { %8097 = vmax.xlane.f32.xlu0 %v16825_v44 }
 0x6c4   : > { %8081 = vmax.xlane.f32.xlu1 %v16821_v24 }
 0x6c5   : > { %8067 = vmax.xlane.f32.xlu0 %v16850_v45 }
 0x6cc   : > { %8099 = vmax.xlane.f32.xlu1 %v16834_v40 }
 0x6cd   : > { %8085 = vmax.xlane.f32.xlu0 %v16854_v8 }
 0x6d4   : > { %8087 = vmax.xlane.f32.xlu1 %v16858_v46 }
 0x6d5   : > { %8103 = vmax.xlane.f32.xlu0 %v16860_v21 }
 0x6ef   : > { %v8042_v59 = vpop.xlane.xlu2 %8041 }
 0x6f0   : > { %v8058_v3 = vpop.xlane.xlu1 %8057 }
 0x6f7   : > { %v8074_v22 = vpop.xlane.xlu2 %8073 }
 0x6f8   : > { %v8090_v6 = vpop.xlane.xlu0 %8089  ;;  %v8121_v51 = vsub.f32 %v16784_v58, %v8074_v22 }
 0x6f9   : > { %v8129_v34 = vsub.f32 %v16786_v13, %v8090_v6 }
 0x6fa   : > { %v8169_v62 = vmul.f32 1.442695, %v8121_v51 }
 0x6fb   : > { %v8185_v60 = vmul.f32 1.442695, %v8129_v34 }
 0x6fc   : > { %12106 = vpow2.f32 %v8169_v62 }
 0x6ff   : > { %v8060_v12 = vpop.xlane.xlu2 %8059 }
 0x700   : > { %v8092_v48 = vpop.xlane.xlu1 %8091  ;;  %v8044_v16 = vpop.xlane.xlu0 %8043 }
 0x701   : > { %v8130_v39 = vsub.f32 %v8023_v47, %v8092_v48  ;;  %v8113_v47 = vsub.f32 %v16780_v11, %v8058_v3 }
 0x702   : > { %v16865_v1 = vpop.eup %12106 }
 0x703   : > { %v8187_v2 = vmul.f32 1.442695, %v8130_v39  ;;  %8233 = vadd.xlane.f32.xlu1 %v16865_v1  ;;  %v8153_v62 = vmul.f32 1.442695, %v8113_v47  ;;  %v16902_v39 = vpop.f32.mrf.mxu1 }
 0x705   : > { %12108 = vpow2.f32 %v8187_v2 }
 0x707   : > { %v8076_v26 = vpop.xlane.xlu2 %8075 }
 0x708   : > { %v16868_v27 = vpop.xlane.xlu0 %8077  ;;  %v8122_v30 = vsub.f32 %v16794_v31, %v8076_v26  ;;  %v8105_v31 = vsub.f32 %v16778_v38, %v8042_v59  ;;  %v8114_v59 = vsub.f32 %v16796_v52, %v8060_v12 }
 0x709   : > { %v8123_v52 = vsub.f32 %v16802_v41, %v16868_v27 }
 0x70a   : > { %v8171_v43 = vmul.f32 1.442695, %v8122_v30  ;;  %v8155_v3 = vmul.f32 1.442695, %v8114_v59 }
 0x70b   : > { %v16871_v50 = vpop.eup %12108 }
 0x70c   : > { %8251 = vadd.xlane.f32.xlu1 %v16871_v50  ;;  %12110 = vpow2.f32 %v8171_v43 }
 0x70f   : > { %v8080_v55 = vpop.xlane.xlu1 %8079  ;;  %v8094_v38 = vpop.xlane.xlu2 %8093 }
 0x710   : > { %v8050_v61 = vpop.xlane.xlu0 %8049  ;;  %v8124_v11 = vsub.f32 %v16810_v18, %v8080_v55  ;;  %v8131_v18 = vsub.f32 %v16804_v20, %v8094_v38  ;;  %v8173_v55 = vmul.f32 1.442695, %v8123_v52 }
 0x711   : > { %v8109_v28 = vsub.f32 %v16813_v10, %v8050_v61  ;;  %v8137_v10 = vmul.f32 1.442695, %v8105_v31  ;;  %v11428_v31 = vld [vmem:[#allocation4 + $0x38] sm:$0xff] }
 0x712   : > { %v16875_v19 = vpop.eup %12110  ;;  %v8189_v61 = vmul.f32 1.442695, %v8131_v18  ;;  %11517 = vmatpush.bf16.msrb.mxu1 %v11428_v31  ;;  %8497 = vmatpush.bf16.msrb.mxu0 %v11428_v31  ;;  %v11452_v31 = vld [vmem:[#allocation4 + $0xf8] sm:$0xff] }
 0x713   : > { %v8145_v32 = vmul.f32 1.442695, %v8109_v28  ;;  %8235 = vadd.xlane.f32.xlu2 %v16875_v19  ;;  %8800 = vmatpush.bf16.msrb.mxu3 %v11452_v31 }
 0x715   : > { %12112 = vpow2.f32 %v8145_v32 }
 0x717   : > { %v8046_v35 = vpop.xlane.xlu1 %8045  ;;  %v8048_v12 = vpop.xlane.xlu2 %8047 }
 0x718   : > { %v8052_v49 = vpop.xlane.xlu0 %8051  ;;  %v8107_v43 = vsub.f32 %v16799_v4, %v8046_v35  ;;  %v8108_v32 = vsub.f32 %v16807_v25, %v8048_v12  ;;  %v11443_v12 = vld [vmem:[#allocation4 + $0xb0] sm:$0xff] }
 0x719   : > { %v8110_v17 = vsub.f32 %v7658_v0, %v8052_v49 }
 0x71a   : > { %v8141_v27 = vmul.f32 1.442695, %v8107_v43 }
 0x71b   : > { %v8147_v14 = vmul.f32 1.442695, %v8110_v17  ;;  %v16878_v23 = vpop.eup %12112  ;;  %v8143_v17 = vmul.f32 1.442695, %v8108_v32 }
 0x71c   : > { %8209 = vadd.xlane.f32.xlu2 %v16878_v23 }
 0x71d   : > { %12114 = vpow2.f32 %v8147_v14 }
 0x71e   : > { %12116 = vpow2.f32 %v8185_v60 }
 0x71f   : > { %v16882_v57 = vpop.xlane.xlu1 %8063  ;;  %v8084_v14 = vpop.xlane.xlu2 %8083 }
 0x720   : > { %v8096_v0 = vpop.xlane.xlu0 %8095  ;;  %v8116_v35 = vsub.f32 %v16827_v54, %v16882_v57 }
 0x721   : > { %v8132_v4 = vsub.f32 %v16815_v42, %v8096_v0 }
 0x723   : > { %v16886_v7 = vpop.eup %12114  ;;  %v8191_v25 = vmul.f32 1.442695, %v8132_v4  ;;  %v11425_v4 = vld [vmem:[#allocation4 + $0x20] sm:$0xff] }
 0x724   : > { %8069 = vmax.xlane.f32.xlu2 %v16884_v53  ;;  %8211 = vadd.xlane.f32.xlu0 %v16886_v7  ;;  %v16892_v13 = vpop.eup %12116 }
 0x727   : > { %v8054_v33 = vpop.xlane.xlu1 %8053 }
 0x728   : > { %v8111_v58 = vsub.f32 %v16836_v9, %v8054_v33  ;;  %v8106_v9 = vsub.f32 %v16789_v63, %v8044_v16  ;;  %v8062_v26 = vpop.xlane.xlu0 %8061  ;;  %v8175_v63 = vmul.f32 1.442695, %v8124_v11 }
 0x72a   : > { %v8149_v56 = vmul.f32 1.442695, %v8111_v58  ;;  %v8159_v58 = vmul.f32 1.442695, %v8116_v35 }
 0x72c   : > { %12118 = vpow2.f32 %v8149_v56  ;;  %8249 = vadd.xlane.f32.xlu0 %v16892_v13  ;;  %v8115_v56 = vsub.f32 %v16819_v29, %v8062_v26  ;;  %v11426_v26 = vld [vmem:[#allocation4 + $0x28] sm:$0xff] }
 0x72d   : > { %12120 = vpow2.f32 %v8137_v10 }
 0x72e   : > { %v8157_v10 = vmul.f32 1.442695, %v8115_v56 }
 0x72f   : > { %v8056_v6 = vpop.xlane.xlu1 %8055 }
 0x730   : > { %v8112_v22 = vsub.f32 %v16845_v15, %v8056_v6  ;;  %v8139_v15 = vmul.f32 1.442695, %v8106_v9  ;;  %v8098_v49 = vpop.xlane.xlu0 %8097  ;;  %v8066_v6 = vpop.xlane.xlu2 %8065  ;;  %v11427_v9 = vld [vmem:[#allocation4 + $0x30] sm:$0xff] }
 0x731   : > { %v8133_v47 = vsub.f32 %v16825_v44, %v8098_v49  ;;  %11518 = vmatpush.bf16.msrb.mxu1 %v11427_v9  ;;  %8498 = vmatpush.bf16.msrb.mxu0 %v11427_v9  ;;  %v11442_v49 = vld [vmem:[#allocation4 + $0xa8] sm:$0xff] }
 0x732   : > { %v16897_v51 = vpop.eup %12118  ;;  %v8151_v48 = vmul.f32 1.442695, %v8112_v22 }
 0x733   : > { %8213 = vadd.xlane.f32.xlu1 %v16897_v51  ;;  %v16906_v2 = vpop.eup %12120 }
 0x734   : > { %12122 = vpow2.f32 %v8151_v48  ;;  %8071 = vmax.xlane.f32.xlu0 %v16902_v39  ;;  %v8193_v48 = vmul.f32 1.442695, %v8133_v47 }
 0x735   : > { %12124 = vpow2.f32 %v8153_v62  ;;  %11519 = vmatpush.bf16.msrb.mxu1 %v11426_v26  ;;  %8499 = vmatpush.bf16.msrb.mxu0 %v11426_v26  ;;  %v11421_v26 = vld [vmem:[#allocation4] sm:$0xff] }
 0x736   : > { %12126 = vpow2.f32 %v8139_v15 }
 0x737   : > { %12128 = vpow2.f32 %v8155_v3  ;;  %v8082_v34 = vpop.xlane.xlu1 %8081  ;;  %v11444_v3 = vld [vmem:[#allocation4 + $0xb8] sm:$0xff] }
 0x738   : > { %12130 = vpow2.f32 %v8175_v63  ;;  %v8125_v54 = vsub.f32 %v16821_v24, %v8082_v34  ;;  %v8068_v57 = vpop.xlane.xlu0 %8067  ;;  %v8126_v24 = vsub.f32 %v16829_v37, %v8084_v14  ;;  %8699 = vmatpush.bf16.msrb.mxu2 %v11444_v3  ;;  %v8102_v43 = vpop.xlane.xlu2 %8101  ;;  %v11448_v3 = vld [vmem:[#allocation4 + $0xd8] sm:$0xff] }
 0x739   : > { %12132 = vpow2.f32 %v8173_v55  ;;  %v8118_v59 = vsub.f32 %v16850_v45, %v8068_v57  ;;  %11520 = vmatpush.bf16.msrb.mxu1 %v11425_v4  ;;  %8500 = vmatpush.bf16.msrb.mxu0 %v11425_v4  ;;  %v11440_v57 = vld [vmem:[#allocation4 + $0x98] sm:$0xff] }
 0x73a   : > { %v16908_v30 = vpop.eup %12122  ;;  %12134 = vpow2.f32 %v8189_v61  ;;  %v8177_v29 = vmul.f32 1.442695, %v8125_v54  ;;  %v8179_v11 = vmul.f32 1.442695, %v8126_v24  ;;  %v8135_v61 = vsub.f32 %v16843_v5, %v8102_v43  ;;  %v11423_v24 = vld [vmem:[#allocation4 + $0x10] sm:$0xff]  ;;  %v11446_v43 = vld [vmem:[#allocation4 + $0xc8] sm:$0xff] }
 0x73b   : > { %8201 = vadd.xlane.f32.xlu1 %v16906_v2  ;;  %8215 = vadd.xlane.f32.xlu2 %v16908_v30  ;;  %v16914_v16 = vpop.eup %12124  ;;  %12136 = vpow2.f32 %v8141_v27  ;;  %v8163_v18 = vmul.f32 1.442695, %v8118_v59  ;;  %v11450_v59 = vld [vmem:[#allocation4 + $0xe8] sm:$0xff] }
 0x73c   : > { %8217 = vadd.xlane.f32.xlu0 %v16914_v16  ;;  %v16919_v28 = vpop.eup %12126  ;;  %12138 = vpow2.f32 %v8143_v17  ;;  %8700 = vmatpush.bf16.msrb.mxu2 %v11443_v12  ;;  %v8197_v34 = vmul.f32 1.442695, %v8135_v61  ;;  %v11445_v61 = vld [vmem:[#allocation4 + $0xc0] sm:$0xff] }
 0x73d   : > { %v16921_v41 = vpop.eup %12128  ;;  %12140 = vpow2.f32 %v8191_v25 }
 0x73e   : > { %v16926_v20 = vpop.eup %12130  ;;  %12142 = vpow2.f32 %v8159_v58 }
 0x73f   : > { %v16932_v60 = vpop.eup %12132  ;;  %v8100_v22 = vpop.xlane.xlu1 %8099  ;;  %12144 = vpow2.f32 %v8157_v10 }
 0x740   : > { %v16934_v33 = vpop.eup %12134  ;;  %12146 = vpow2.f32 %v8177_v29  ;;  %v8134_v38 = vsub.f32 %v16834_v40, %v8100_v22  ;;  %v8086_v37 = vpop.xlane.xlu0 %8085  ;;  %v8117_v40 = vsub.f32 %v16838_v36, %v8066_v6  ;;  %8701 = vmatpush.bf16.msrb.mxu2 %v11442_v49  ;;  %v11439_v29 = vld [vmem:[#allocation4 + $0x90] sm:$0xff]  ;;  %v11438_v6 = vld [vmem:[#allocation4 + $0x88] sm:$0xff] }
 0x741   : > { %v16939_v42 = vpop.eup %12136  ;;  %12148 = vpow2.f32 %v8193_v48  ;;  %v8127_v55 = vsub.f32 %v16854_v8, %v8086_v37  ;;  %v11441_v8 = vld [vmem:[#allocation4 + $0xa0] sm:$0xff]  ;;  %v11451_v48 = vld [vmem:[#allocation4 + $0xf0] sm:$0xff]  ;;  %v11422_v37 = vld [vmem:[#allocation4 + $0x8] sm:$0xff] }
 0x742   : > { %v16944_v0 = vpop.eup %12138  ;;  %v8195_v15 = vmul.f32 1.442695, %v8134_v38  ;;  %12150 = vpow2.f32 %v8179_v11  ;;  %v8161_v27 = vmul.f32 1.442695, %v8117_v40  ;;  %v11437_v38 = vld [vmem:[#allocation4 + $0x80] sm:$0xff]  ;;  %8801 = vmatpush.bf16.msrb.mxu3 %v11451_v48  ;;  %v11432_v48 = vld [vmem:[#allocation4 + $0x58] sm:$0xff] }
 0x743   : > { %8219 = vadd.xlane.f32.xlu1 %v16921_v41  ;;  %8203 = vadd.xlane.f32.xlu2 %v16919_v28  ;;  %v16946_v62 = vpop.eup %12140  ;;  %v8181_v32 = vmul.f32 1.442695, %v8127_v55  ;;  %v11449_v11 = vld [vmem:[#allocation4 + $0xe0] sm:$0xff] }
 0x744   : > { %8239 = vadd.xlane.f32.xlu0 %v16926_v20  ;;  %v16951_v44 = vpop.eup %12142  ;;  %12152 = vpow2.f32 %v8195_v15  ;;  %8702 = vmatpush.bf16.msrb.mxu2 %v11441_v8 }
 0x745   : > { %v16956_v63 = vpop.eup %12144  ;;  %12154 = vpow2.f32 %v8163_v18  ;;  %v11447_v18 = vld [vmem:[#allocation4 + $0xd0] sm:$0xff] }
 0x746   : > { %v16958_v52 = vpop.eup %12146  ;;  %12156 = vpow2.f32 %v8161_v27  ;;  %8802 = vmatpush.bf16.msrb.mxu3 %v11450_v59  ;;  %v11436_v27 = vld [vmem:[#allocation4 + $0x78] sm:$0xff] }
 0x747   : > { %v16963_v45 = vpop.eup %12148  ;;  %v8088_v36 = vpop.xlane.xlu1 %8087  ;;  %12158 = vpow2.f32 %v8181_v32 }
 0x748   : > { %v16968_v35 = vpop.eup %12150  ;;  %v8104_v17 = vpop.xlane.xlu0 %8103  ;;  %v8128_v25 = vsub.f32 %v16858_v46, %v8088_v36  ;;  %12160 = vpow2.f32 %v8197_v34  ;;  %v11424_v46 = vld [vmem:[#allocation4 + $0x18] sm:$0xff]  ;;  %8703 = vmatpush.bf16.msrb.mxu2 %v11440_v57  ;;  %v11435_v34 = vld [vmem:[#allocation4 + $0x70] sm:$0xff] }
 0x749   : > { %v8136_v58 = vsub.f32 %v16860_v21, %v8104_v17  ;;  %11521 = vmatpush.bf16.msrb.mxu1 %v11424_v46  ;;  %8501 = vmatpush.bf16.msrb.mxu0 %v11424_v46 }
 0x74a   : > { %v16970_v14 = vpop.eup %12152  ;;  %v8183_v56 = vmul.f32 1.442695, %v8128_v25  ;;  %8803 = vmatpush.bf16.msrb.mxu3 %v11449_v11 }
 0x74b   : > { %8253 = vadd.xlane.f32.xlu1 %v16934_v33  ;;  %8237 = vadd.xlane.f32.xlu2 %v16932_v60  ;;  %v16975_v5 = vpop.eup %12154  ;;  %v8199_v54 = vmul.f32 1.442695, %v8136_v58 }
 0x74c   : > { %8205 = vadd.xlane.f32.xlu0 %v16939_v42  ;;  %v16979_v47 = vpop.eup %12156  ;;  %12162 = vpow2.f32 %v8183_v56  ;;  %8704 = vmatpush.bf16.msrb.mxu2 %v11439_v29  ;;  %v11434_v56 = vld [vmem:[#allocation4 + $0x68] sm:$0xff] }
 0x74d   : > { %v16981_v10 = vpop.eup %12158  ;;  %12164 = vpow2.f32 %v8199_v54  ;;  %11522 = vmatpush.bf16.msrb.mxu1 %v11423_v24  ;;  %8502 = vmatpush.bf16.msrb.mxu0 %v11423_v24 }
 0x74e   : > { %v16985_v21 = vpop.eup %12160  ;;  %8804 = vmatpush.bf16.msrb.mxu3 %v11448_v3  ;;  %v11431_v3 = vld [vmem:[#allocation4 + $0x50] sm:$0xff] }
 0x750   : > { %8705 = vmatpush.bf16.msrb.mxu2 %v11438_v6 }
 0x751   : > { %11523 = vmatpush.bf16.msrb.mxu1 %v11422_v37  ;;  %8503 = vmatpush.bf16.msrb.mxu0 %v11422_v37 }
 0x752   : > { %v16988_v22 = vpop.eup %12162  ;;  %8805 = vmatpush.bf16.msrb.mxu3 %v11447_v18 }
 0x753   : > { %8207 = vadd.xlane.f32.xlu1 %v16944_v0  ;;  %8255 = vadd.xlane.f32.xlu2 %v16946_v62  ;;  %v16990_v9 = vpop.eup %12164 }
 0x754   : > { %8223 = vadd.xlane.f32.xlu0 %v16951_v44  ;;  %8706 = vmatpush.bf16.msrb.mxu2 %v11437_v38 }
 0x755   : > { %11524 = vmatpush.bf16.msrb.mxu1 %v11421_v26  ;;  %8504 = vmatpush.bf16.msrb.mxu0 %v11421_v26 }
 0x756   : > { %8806 = vmatpush.bf16.msrb.mxu3 %v11446_v43 }
 0x759   : > { %8598 = vmatpush.bf16.msra.mxu1 %v11436_v27 }
 0x75a   : > { %8807 = vmatpush.bf16.msrb.mxu3 %v11445_v61 }
 0x75b   : > { %8221 = vadd.xlane.f32.xlu2 %v16956_v63  ;;  %8241 = vadd.xlane.f32.xlu1 %v16958_v52 }
 0x75c   : > { %8257 = vadd.xlane.f32.xlu0 %v16963_v45 }
 0x75d   : > { %8599 = vmatpush.bf16.msra.mxu1 %v11435_v34 }
 0x761   : > { %8600 = vmatpush.bf16.msra.mxu1 %v11434_v56 }
 0x763   : > { %8243 = vadd.xlane.f32.xlu2 %v16968_v35  ;;  %8259 = vadd.xlane.f32.xlu1 %v16970_v14 }
 0x764   : > { %8227 = vadd.xlane.f32.xlu0 %v16975_v5 }
 0x76b   : > { %8225 = vadd.xlane.f32.xlu2 %v16979_v47  ;;  %8245 = vadd.xlane.f32.xlu1 %v16981_v10 }
 0x76c   : > { %8261 = vadd.xlane.f32.xlu0 %v16985_v21 }
 0x773   : > { %8263 = vadd.xlane.f32.xlu1 %v16990_v9  ;;  %8247 = vadd.xlane.f32.xlu2 %v16988_v22 }
 0x776   : > { %v8234_v15 = vpop.xlane.xlu1 %8233 }
 0x777   : > { %12166 = vrcp.f32 %v8234_v15 }
 0x77d   : > { %v12167_v40 = vpop.eup %12166 }
 0x77e   : > { %v8313_v55 = vmul.f32 %v12167_v40, %v16865_v1 }
 0x77f   : > { %v8252_v54 = vpop.xlane.xlu1 %8251 }
 0x780   : > { %v8345_v49 = vpack.c.bf16 %v8313_v55, %v8313_v55 }
 0x782   : > { %v8635_v8 = vunpack.c.l.b16 %v8345_v49 }
 0x786   : > { %v8236_v12 = vpop.xlane.xlu2 %8235 }
 0x787   : > { %12168 = vrcp.f32 %v8236_v12  ;;  %v11430_v12 = vld [vmem:[#allocation4 + $0x48] sm:$0xff] }
 0x78d   : > { %v12169_v32 = vpop.eup %12168 }
 0x78e   : > { %v8314_v36 = vmul.f32 %v12169_v32, %v16875_v19  ;;  %v11433_v19 = vld [vmem:[#allocation4 + $0x60] sm:$0xff] }
 0x78f   : > { %v8210_v4 = vpop.xlane.xlu2 %8209  ;;  %8601 = vmatpush.bf16.msra.mxu1 %v11433_v19 }
 0x790   : > { %v8346_v17 = vpack.c.bf16 %v8314_v36, %v8314_v36  ;;  %12170 = vrcp.f32 %v8210_v4  ;;  %v11429_v36 = vld [vmem:[#allocation4 + $0x40] sm:$0xff] }
 0x792   : > { %v8636_v25 = vunpack.c.l.b16 %v8346_v17 }
 0x793   : > { %8602 = vmatpush.bf16.msra.mxu1 %v11432_v48 }
 0x794   : > { %v8643_v58 = vpack.c.b16 %v8636_v25, %v8635_v8 }
 0x796   : > { %8707 = vmatmul.bf16.vlgmr.msrb.gmra.mxu2 %v8643_v58  ;;  %v12171_v31 = vpop.eup %12170 }
 0x797   : > { %v8070_v1 = vpop.xlane.xlu2 %8069  ;;  %v8212_v57 = vpop.xlane.xlu0 %8211  ;;  %v8301_v6 = vmul.f32 %v12171_v31, %v16878_v23  ;;  %8603 = vmatpush.bf16.msra.mxu1 %v11431_v3 }
 0x798   : > { %v8119_v46 = vsub.f32 %v16884_v53, %v8070_v1  ;;  %12172 = vrcp.f32 %v8212_v57 }
 0x799   : > { %12174 = vrcp.f32 %v8252_v54  ;;  %v8333_v11 = vpack.c.bf16 %v8301_v6, %v8301_v6 }
 0x79a   : > { %v8165_v29 = vmul.f32 1.442695, %v8119_v46 }
 0x79b   : > { %v8437_v26 = vunpack.c.l.b16 %v8333_v11  ;;  %8604 = vmatpush.bf16.msra.mxu1 %v11430_v12 }
 0x79c   : > { %12176 = vpow2.f32 %v8165_v29 }
 0x79e   : > { %v12173_v24 = vpop.eup %12172 }
 0x79f   : > { %v8250_v38 = vpop.xlane.xlu0 %8249  ;;  %v8302_v59 = vmul.f32 %v12173_v24, %v16886_v7  ;;  %v12175_v37 = vpop.eup %12174  ;;  %8605 = vmatpush.bf16.msra.mxu1 %v11429_v36 }
 0x7a0   : > { %12178 = vrcp.f32 %v8250_v38  ;;  %v8322_v23 = vmul.f32 %v12175_v37, %v16871_v50 }
 0x7a1   : > { %v8334_v15 = vpack.c.bf16 %v8302_v59, %v8302_v59 }
 0x7a2   : > { %v16999_v53 = vpop.eup %12176  ;;  %v8354_v27 = vpack.c.bf16 %v8322_v23, %v8322_v23 }
 0x7a3   : > { %8229 = vadd.xlane.f32.xlu2 %v16999_v53  ;;  %v8438_v18 = vunpack.c.l.b16 %v8334_v15 }
 0x7a4   : > { %v8737_v34 = vunpack.c.l.b16 %v8354_v27 }
 0x7a5   : > { %v8443_v43 = vpack.c.b16 %v8438_v18, %v8437_v26 }
 0x7a6   : > { %v8214_v40 = vpop.xlane.xlu1 %8213  ;;  %v12179_v55 = vpop.eup %12178 }
 0x7a7   : > { %8515 = vmatmul.bf16.vlgmr.msrb.gmra.mxu1 %v8443_v43  ;;  %v8072_v7 = vpop.xlane.xlu0 %8071  ;;  %v8321_v61 = vmul.f32 %v12179_v55, %v16892_v13  ;;  %12180 = vrcp.f32 %v8214_v40 }
 0x7a8   : > { %v8120_v32 = vsub.f32 %v16902_v39, %v8072_v7 }
 0x7a9   : > { %v8353_v49 = vpack.c.bf16 %v8321_v61, %v8321_v61 }
 0x7aa   : > { %v8167_v4 = vmul.f32 1.442695, %v8120_v32 }
 0x7ab   : > { %v8736_v17 = vunpack.c.l.b16 %v8353_v49 }
 0x7ac   : > { %12182 = vpow2.f32 %v8167_v4 }
 0x7ad   : > { %v8744_v25 = vpack.c.b16 %v8737_v34, %v8736_v17  ;;  %v12181_v58 = vpop.eup %12180 }
 0x7ae   : > { %v8216_v50 = vpop.xlane.xlu2 %8215  ;;  %v8202_v8 = vpop.xlane.xlu1 %8201  ;;  %v8303_v13 = vmul.f32 %v12181_v58, %v16897_v51 }
 0x7af   : > { %12184 = vrcp.f32 %v8216_v50  ;;  %v8218_v56 = vpop.xlane.xlu0 %8217  ;;  %8808 = vmatmul.bf16.vlgmr.msrb.gmra.mxu3 %v8744_v25 }
 0x7b0   : > { %12186 = vrcp.f32 %v8202_v8  ;;  %v8335_v46 = vpack.c.bf16 %v8303_v13, %v8303_v13 }
 0x7b1   : > { %12188 = vrcp.f32 %v8218_v56 }
 0x7b2   : > { %v17006_v54 = vpop.eup %12182  ;;  %v8439_v48 = vunpack.c.l.b16 %v8335_v46 }
 0x7b3   : > { %8231 = vadd.xlane.f32.xlu0 %v17006_v54 }
 0x7b5   : > { %v12185_v39 = vpop.eup %12184 }
 0x7b6   : > { %v8204_v1 = vpop.xlane.xlu2 %8203  ;;  %v8220_v57 = vpop.xlane.xlu1 %8219  ;;  %v8304_v31 = vmul.f32 %v12185_v39, %v16908_v30 }
 0x7b7   : > { %v12187_v19 = vpop.eup %12186  ;;  %12190 = vrcp.f32 %v8204_v1  ;;  %v8240_v29 = vpop.xlane.xlu0 %8239 }
 0x7b8   : > { %12192 = vrcp.f32 %v8220_v57  ;;  %v8336_v6 = vpack.c.bf16 %v8304_v31, %v8304_v31  ;;  %v8297_v51 = vmul.f32 %v12187_v19, %v16906_v2  ;;  %v12189_v38 = vpop.eup %12188 }
 0x7b9   : > { %12194 = vrcp.f32 %v8240_v29  ;;  %v8305_v43 = vmul.f32 %v12189_v38, %v16914_v16 }
 0x7ba   : > { %v8440_v24 = vunpack.c.l.b16 %v8336_v6  ;;  %v8329_v26 = vpack.c.bf16 %v8297_v51, %v8297_v51 }
 0x7bb   : > { %v8337_v36 = vpack.c.bf16 %v8305_v43, %v8305_v43 }
 0x7bc   : > { %v8444_v59 = vpack.c.b16 %v8440_v24, %v8439_v48  ;;  %v8433_v2 = vunpack.c.l.b16 %v8329_v26 }
 0x7bd   : > { %v12191_v11 = vpop.eup %12190  ;;  %v8534_v25 = vunpack.c.l.b16 %v8337_v36 }
 0x7be   : > { %v12193_v37 = vpop.eup %12192  ;;  %v8238_v15 = vpop.xlane.xlu2 %8237  ;;  %8520 = vmatmul.bf16.gmra.mxu1 %v8444_v59  ;;  %v8298_v30 = vmul.f32 %v12191_v11, %v16919_v28 }
 0x7bf   : > { %v8254_v3 = vpop.xlane.xlu1 %8253  ;;  %v12195_v18 = vpop.eup %12194  ;;  %12196 = vrcp.f32 %v8238_v15  ;;  %v8306_v23 = vmul.f32 %v12193_v37, %v16921_v41 }
 0x7c0   : > { %v8206_v12 = vpop.xlane.xlu0 %8205  ;;  %v8330_v40 = vpack.c.bf16 %v8298_v30, %v8298_v30  ;;  %12198 = vrcp.f32 %v8254_v3  ;;  %v8316_v7 = vmul.f32 %v12195_v18, %v16926_v20 }
 0x7c1   : > { %12200 = vrcp.f32 %v8206_v12  ;;  %v8338_v61 = vpack.c.bf16 %v8306_v23, %v8306_v23 }
 0x7c2   : > { %v8434_v55 = vunpack.c.l.b16 %v8330_v40  ;;  %v8348_v41 = vpack.c.bf16 %v8316_v7, %v8316_v7 }
 0x7c3   : > { %v8535_v16 = vunpack.c.l.b16 %v8338_v61 }
 0x7c4   : > { %v8441_v27 = vpack.c.b16 %v8434_v55, %v8433_v2  ;;  %v8638_v58 = vunpack.c.l.b16 %v8348_v41 }
 0x7c5   : > { %v12197_v32 = vpop.eup %12196  ;;  %v8542_v39 = vpack.c.b16 %v8535_v16, %v8534_v25 }
 0x7c6   : > { %v8256_v28 = vpop.xlane.xlu2 %8255  ;;  %8505 = vmatmul.bf16.vlgmr.msrb.gmra.mxu0 %v8441_v27  ;;  %v8315_v4 = vmul.f32 %v12197_v32, %v16932_v60  ;;  %v12199_v17 = vpop.eup %12198 }
 0x7c7   : > { %v8208_v49 = vpop.xlane.xlu1 %8207  ;;  %12202 = vrcp.f32 %v8256_v28  ;;  %v12201_v34 = vpop.eup %12200  ;;  %v8323_v56 = vmul.f32 %v12199_v17, %v16934_v33 }
 0x7c8   : > { %12204 = vrcp.f32 %v8208_v49  ;;  %v8224_v50 = vpop.xlane.xlu0 %8223  ;;  %v8347_v8 = vpack.c.bf16 %v8315_v4, %v8315_v4  ;;  %v8299_v13 = vmul.f32 %v12201_v34, %v16939_v42 }
 0x7c9   : > { %12206 = vrcp.f32 %v8224_v50  ;;  %v8355_v29 = vpack.c.bf16 %v8323_v56, %v8323_v56 }
 0x7ca   : > { %v8637_v20 = vunpack.c.l.b16 %v8347_v8  ;;  %v8331_v24 = vpack.c.bf16 %v8299_v13, %v8299_v13 }
 0x7cb   : > { %v8738_v38 = vunpack.c.l.b16 %v8355_v29 }
 0x7cc   : > { %v8644_v1 = vpack.c.b16 %v8638_v58, %v8637_v20  ;;  %v8435_v37 = vunpack.c.l.b16 %v8331_v24 }
 0x7cd   : > { %v12203_v57 = vpop.eup %12202 }
 0x7ce   : > { %v12205_v60 = vpop.eup %12204  ;;  %v8222_v31 = vpop.xlane.xlu2 %8221  ;;  %8606 = vmatmul.bf16.vlgmr.msra.gmra.mxu1 %v8542_v39  ;;  %8712 = vmatmul.bf16.gmra.mxu2 %v8644_v1  ;;  %v8324_v19 = vmul.f32 %v12203_v57, %v16946_v62 }
 0x7cf   : > { %v8242_v46 = vpop.xlane.xlu1 %8241  ;;  %v12207_v6 = vpop.eup %12206  ;;  %12208 = vrcp.f32 %v8222_v31  ;;  %v8300_v48 = vmul.f32 %v12205_v60, %v16944_v0 }
 0x7d0   : > { %v8258_v51 = vpop.xlane.xlu0 %8257  ;;  %v8356_v33 = vpack.c.bf16 %v8324_v19, %v8324_v19  ;;  %12210 = vrcp.f32 %v8242_v46  ;;  %v8308_v11 = vmul.f32 %v12207_v6, %v16951_v44 }
 0x7d1   : > { %v8332_v42 = vpack.c.bf16 %v8300_v48, %v8300_v48  ;;  %12212 = vrcp.f32 %v8258_v51 }
 0x7d2   : > { %v8739_v59 = vunpack.c.l.b16 %v8356_v33  ;;  %v8340_v23 = vpack.c.bf16 %v8308_v11, %v8308_v11 }
 0x7d3   : > { %v8436_v15 = vunpack.c.l.b16 %v8332_v42 }
 0x7d4   : > { %v8745_v3 = vpack.c.b16 %v8739_v59, %v8738_v38  ;;  %v8537_v55 = vunpack.c.l.b16 %v8340_v23 }
 0x7d5   : > { %v12209_v30 = vpop.eup %12208  ;;  %v8442_v62 = vpack.c.b16 %v8436_v15, %v8435_v37 }
 0x7d6   : > { %v8244_v26 = vpop.xlane.xlu2 %8243  ;;  %8813 = vmatmul.bf16.gmra.mxu3 %v8745_v3  ;;  %v8307_v0 = vmul.f32 %v12209_v30, %v16956_v63  ;;  %v12211_v12 = vpop.eup %12210 }
 0x7d7   : > { %v8260_v18 = vpop.xlane.xlu1 %8259  ;;  %12214 = vrcp.f32 %v8244_v26  ;;  %8510 = vmatmul.bf16.gmra.mxu0 %v8442_v62  ;;  %v12213_v40 = vpop.eup %12212  ;;  %v8317_v7 = vmul.f32 %v12211_v12, %v16958_v52 }
 0x7d8   : > { %12216 = vrcp.f32 %v8260_v18  ;;  %v8228_v43 = vpop.xlane.xlu0 %8227  ;;  %v8339_v2 = vpack.c.bf16 %v8307_v0, %v8307_v0  ;;  %v8325_v61 = vmul.f32 %v12213_v40, %v16963_v45 }
 0x7d9   : > { %12218 = vrcp.f32 %v8228_v43  ;;  %v8349_v4 = vpack.c.bf16 %v8317_v7, %v8317_v7 }
 0x7da   : > { %v8536_v44 = vunpack.c.l.b16 %v8339_v2  ;;  %v8357_v34 = vpack.c.bf16 %v8325_v61, %v8325_v61 }
 0x7db   : > { %v8639_v45 = vunpack.c.l.b16 %v8349_v4 }
 0x7dc   : > { %v8543_v27 = vpack.c.b16 %v8537_v55, %v8536_v44  ;;  %v8740_v20 = vunpack.c.l.b16 %v8357_v34 }
 0x7dd   : > { %v12215_v32 = vpop.eup %12214 }
 0x7de   : > { %v12217_v36 = vpop.eup %12216  ;;  %v8226_v28 = vpop.xlane.xlu2 %8225  ;;  %8611 = vmatmul.bf16.gmra.mxu1 %v8543_v27  ;;  %v8318_v49 = vmul.f32 %v12215_v32, %v16968_v35 }
 0x7df   : > { %v8246_v63 = vpop.xlane.xlu1 %8245  ;;  %v12219_v41 = vpop.eup %12218  ;;  %12220 = vrcp.f32 %v8226_v28  ;;  %v8326_v17 = vmul.f32 %v12217_v36, %v16970_v14 }
 0x7e0   : > { %v8262_v16 = vpop.xlane.xlu0 %8261  ;;  %v8350_v50 = vpack.c.bf16 %v8318_v49, %v8318_v49  ;;  %12222 = vrcp.f32 %v8246_v63  ;;  %v8310_v25 = vmul.f32 %v12219_v41, %v16975_v5  ;;  %v12585_v63 = vmov 1983009808  }
 0x7e1   : > { %v8358_v52 = vpack.c.bf16 %v8326_v17, %v8326_v17  ;;  %12224 = vrcp.f32 %v8262_v16  ;;  %v8959_v49 = vunpack.c.l.s4 %v12585_v63 }
 0x7e2   : > { %v8640_v8 = vunpack.c.l.b16 %v8350_v50  ;;  %v8342_v57 = vpack.c.bf16 %v8310_v25, %v8310_v25 }
 0x7e3   : > { %v8741_v58 = vunpack.c.l.b16 %v8358_v52 }
 0x7e4   : > { %v8645_v56 = vpack.c.b16 %v8640_v8, %v8639_v45  ;;  %v8539_v29 = vunpack.c.l.b16 %v8342_v57 }
 0x7e5   : > { %v12221_v13 = vpop.eup %12220  ;;  %v8746_v35 = vpack.c.b16 %v8741_v58, %v8740_v20 }
 0x7e6   : > { %v8248_v39 = vpop.xlane.xlu2 %8247  ;;  %8717 = vmatmul.bf16.gmra.mxu2 %v8645_v56  ;;  %v8309_v14 = vmul.f32 %v12221_v13, %v16979_v47  ;;  %v12223_v60 = vpop.eup %12222  ;;  %v12586_v13 = vmov 1934713408  }
 0x7e7   : > { %v8264_v1 = vpop.xlane.xlu1 %8263  ;;  %12226 = vrcp.f32 %v8248_v39  ;;  %8818 = vmatmul.bf16.gmra.mxu3 %v8746_v35  ;;  %v12225_v31 = vpop.eup %12224  ;;  %v8319_v5 = vmul.f32 %v12223_v60, %v16981_v10  ;;  %v8973_v35 = vunpack.c.l.s4 %v12586_v13 }
 0x7e8   : > { %12228 = vrcp.f32 %v8264_v1  ;;  %v8341_v46 = vpack.c.bf16 %v8309_v14, %v8309_v14  ;;  %v8327_v6 = vmul.f32 %v12225_v31, %v16985_v21 }
 0x7e9   : > { %v8351_v47 = vpack.c.bf16 %v8319_v5, %v8319_v5  ;;  %v17041_v5 = vunpack.c.0.s8 %v8973_v35 }
 0x7ea   : > { %v8538_v19 = vunpack.c.l.b16 %v8341_v46  ;;  %v8359_v38 = vpack.c.bf16 %v8327_v6, %v8327_v6 }
 0x7eb   : > { %v8641_v37 = vunpack.c.l.b16 %v8351_v47 }
 0x7ec   : > { %v8544_v48 = vpack.c.b16 %v8539_v29, %v8538_v19  ;;  %v8742_v3 = vunpack.c.l.b16 %v8359_v38 }
 0x7ed   : > { %v12227_v24 = vpop.eup %12226 }
 0x7ee   : > { %v12229_v51 = vpop.eup %12228  ;;  %8616 = vmatmul.bf16.gmra.mxu1 %v8544_v48  ;;  %v8320_v33 = vmul.f32 %v12227_v24, %v16988_v22 }
 0x7ef   : > { %v8328_v42 = vmul.f32 %v12229_v51, %v16990_v9 }
 0x7f0   : > { %v8352_v59 = vpack.c.bf16 %v8320_v33, %v8320_v33 }
 0x7f1   : > { %v8360_v11 = vpack.c.bf16 %v8328_v42, %v8328_v42 }
 0x7f2   : > { %v8642_v15 = vunpack.c.l.b16 %v8352_v59 }
 0x7f3   : > { %v8743_v30 = vunpack.c.l.b16 %v8360_v11 }
 0x7f4   : > { %v8646_v62 = vpack.c.b16 %v8642_v15, %v8641_v37 }
 0x7f5   : > { %v8747_v10 = vpack.c.b16 %v8743_v30, %v8742_v3 }
 0x7f6   : > { %8722 = vmatmul.bf16.gmra.mxu2 %v8646_v62 }
 0x7f7   : > { %8823 = vmatmul.bf16.gmra.mxu3 %v8747_v10 }
 0x816   : > { %v8230_v21 = vpop.xlane.xlu2 %8229 }
 0x817   : > { %12230 = vrcp.f32 %v8230_v21 }
 0x819   : > { %v8708_v27 = vpop.f32.mrf.mxu2 }
 0x81d   : > { %v12231_v18 = vpop.eup %12230 }
 0x81e   : > { %v8311_v0 = vmul.f32 %v12231_v18, %v16999_v53  ;;  %v8845_v53 = vpack.c.bf16 %v8708_v27, %v8708_v27 }
 0x820   : > { %v8343_v12 = vpack.c.bf16 %v8311_v0, %v8311_v0  ;;  %v8870_v34 = vshrl.u32 %v8845_v53, 16 }
 0x821   : > { %v8710_v16 = vpop.f32.mrf.mxu2 }
 0x822   : > { %v8540_v2 = vunpack.c.l.b16 %v8343_v12  ;;  %v8846_v58 = vpack.c.bf16 %v8710_v16, %v8710_v16 }
 0x824   : > { %v8516_v22 = vpop.f32.mrf.mxu1  ;;  %v8882_v29 = vshrl.u32 %v8846_v58, 16 }
 0x825   : > { %v17046_v37 = vpack.c.bf16 %v8516_v22, %v8516_v22 }
 0x826   : > { %v8232_v26 = vpop.xlane.xlu0 %8231 }
 0x827   : > { %12232 = vrcp.f32 %v8232_v26 }
 0x82c   : > { %v8518_v43 = vpop.f32.mrf.mxu1 }
 0x82d   : > { %v12233_v9 = vpop.eup %12232  ;;  %v17051_v62 = vpack.c.bf16 %v8518_v43, %v8518_v43 }
 0x82e   : > { %v8312_v23 = vmul.f32 %v12233_v9, %v17006_v54  ;;  %v17036_v54 = vunpack.c.0.s8 %v8959_v49  ;;  %v8912_v49 = vshrl.u32 %v17046_v37, 16 }
 0x830   : > { %v8344_v40 = vpack.c.bf16 %v8312_v23, %v8312_v23 }
 0x832   : > { %v8541_v44 = vunpack.c.l.b16 %v8344_v40  ;;  %v8809_v61 = vpop.f32.mrf.mxu3 }
 0x833   : > { %v8853_v32 = vpack.c.bf16 %v8809_v61, %v8809_v61 }
 0x834   : > { %v8545_v55 = vpack.c.b16 %v8541_v44, %v8540_v2 }
 0x835   : > { %v8871_v4 = vshrl.u32 %v8853_v32, 16  ;;  %v8869_v41 = vpack.i.b16 %v8853_v32, %v8845_v53 }
 0x836   : > { %8621 = vmatmul.bf16.gmra.mxu1 %v8545_v55 }
 0x837   : > { %v8872_v52 = vpack.i.b16 %v8871_v4, %v8870_v34  ;;  %v8966_v25 = vperm.slane %v8869_v41, %v17036_v54  ;;  %v8924_v34 = vshrl.u32 %v17051_v62, 16 }
 0x839   : > { %v8993_v57 = vperm.slane %v8872_v52, %v17036_v54  ;;  %v8967_v31 = vrot.slane %v8966_v25, 4 }
 0x83a   : > { %v8811_v17 = vpop.f32.mrf.mxu3 }
 0x83b   : > { %v8521_v7 = vpop.f32.mrf.mxu1  ;;  %v8854_v45 = vpack.c.bf16 %v8811_v17, %v8811_v17  ;;  %v8994_v51 = vrot.slane %v8993_v57, 4 }
 0x83c   : > { %v17053_v10 = vpack.c.bf16 %v8521_v7, %v8521_v7 }
 0x83d   : > { %v8883_v60 = vshrl.u32 %v8854_v45, 16  ;;  %v8881_v33 = vpack.i.b16 %v8854_v45, %v8846_v58 }
 0x83e   : > { %v8936_v16 = vshrl.u32 %v17053_v10, 16 }
 0x83f   : > { %v8884_v47 = vpack.i.b16 %v8883_v60, %v8882_v29  ;;  %v9019_v0 = vperm.slane %v8881_v33, %v17036_v54 }
 0x841   : > { %v9045_v9 = vperm.slane %v8884_v47, %v17036_v54  ;;  %v9020_v53 = vrot.slane %v9019_v0, 4 }
 0x843   : > { %v8506_v36 = vpop.f32.mrf.mxu0  ;;  %v17034_v28 = vpop.f32.mrf.mxu1 }
 0x844   : > { %v8829_v50 = vpack.c.bf16 %v8506_v36, %v8506_v36 }
 0x846   : > { %v8864_v39 = vshrl.u32 %v8829_v50, 16 }
 0x84b   : > { %v8607_v8 = vpop.f32.mrf.mxu1  ;;  %v8508_v56 = vpop.f32.mrf.mxu0 }
 0x84c   : > { %v8837_v20 = vpack.c.bf16 %v8607_v8, %v8607_v8  ;;  %v8830_v38 = vpack.c.bf16 %v8508_v56, %v8508_v56 }
 0x84e   : > { %v8863_v1 = vpack.i.b16 %v8837_v20, %v8829_v50  ;;  %v8865_v14 = vshrl.u32 %v8837_v20, 16  ;;  %v8876_v40 = vshrl.u32 %v8830_v38, 16  ;;  %v9046_v50 = vrot.slane %v9045_v9, 4 }
 0x850   : > { %v8866_v46 = vpack.i.b16 %v8865_v14, %v8864_v39  ;;  %v8961_v19 = vperm.slane %v8863_v1, %v17036_v54 }
 0x851   : > { %v8713_v26 = vpop.f32.mrf.mxu2 }
 0x852   : > { %v8969_v6 = vsel %vm8968_vm4, %v8967_v31, %v8961_v19  ;;  %v8970_v48 = vrot.slane %v8961_v19, 4  ;;  %v8988_v24 = vperm.slane %v8866_v46, %v17036_v54  ;;  %v8847_v7 = vpack.c.bf16 %v8713_v26, %v8713_v26 }
 0x853   : > { %v8609_v42 = vpop.f32.mrf.mxu1  ;;  %v8975_v15 = vperm.slane %v8969_v6, %v17041_v5 }
 0x854   : > { %v8971_v59 = vsel %vm8968_vm4, %v8966_v25, %v8970_v48  ;;  %v8996_v11 = vrot.slane %v8988_v24, 4  ;;  %v8995_v30 = vsel %vm8968_vm4, %v8994_v51, %v8988_v24  ;;  %v8838_v18 = vpack.c.bf16 %v8609_v42, %v8609_v42  ;;  %v8511_v12 = vpop.f32.mrf.mxu0 }
 0x855   : > { %v8979_v3 = vperm.slane %v8971_v59, %v17041_v5  ;;  %v9001_v2 = vperm.slane %v8995_v30, %v17041_v5  ;;  %v8980_v55 = vrot.slane %v8975_v15, 4  ;;  %v8831_v32 = vpack.c.bf16 %v8511_v12, %v8511_v12 }
 0x856   : > { %v8997_v21 = vsel %vm8968_vm4, %v8993_v57, %v8996_v11  ;;  %v8875_v44 = vpack.i.b16 %v8838_v18, %v8830_v38  ;;  %v8877_v43 = vshrl.u32 %v8838_v18, 16  ;;  %v8894_v56 = vshrl.u32 %v8847_v7, 16 }
 0x857   : > { %v8982_v22 = vrot.slane %v8979_v3, 4  ;;  %v9005_v23 = vperm.slane %v8997_v21, %v17041_v5  ;;  %v9006_v52 = vrot.slane %v9001_v2, 4  ;;  %v8981_v58 = vsel %vm8968_vm4, 0, %v8980_v55 }
 0x858   : > { %v8878_v36 = vpack.i.b16 %v8877_v43, %v8876_v40  ;;  %v9014_v63 = vperm.slane %v8875_v44, %v17036_v54  ;;  %v8888_v13 = vshrl.u32 %v8831_v32, 16 }
 0x859   : > { %v8814_v61 = vpop.f32.mrf.mxu3  ;;  %v8983_v27 = vsel %vm8968_vm4, 0, %v8982_v22  ;;  %v9008_v4 = vrot.slane %v9005_v23, 4  ;;  %v17070_v1 = vsel %vm8968_vm4, %v8982_v22, %v8975_v15  ;;  %v8715_v19 = vpop.f32.mrf.mxu2  ;;  %v9007_v6 = vsel %vm8968_vm4, 0, %v9006_v52 }
 0x85a   : > { %v8855_v41 = vpack.c.bf16 %v8814_v61, %v8814_v61  ;;  %v9379_v45 = vrot.slane %v8983_v27, 4  ;;  %v9021_v8 = vsel %vm8968_vm4, %v9020_v53, %v9014_v63  ;;  %v9022_v25 = vrot.slane %v9014_v63, 4 }
 0x85b   : > { %v8612_v17 = vpop.f32.mrf.mxu1  ;;  %v9040_v20 = vperm.slane %v8878_v36, %v17036_v54  ;;  %v9009_v39 = vsel %vm8968_vm4, 0, %v9008_v4  ;;  %v9027_v60 = vperm.slane %v9021_v8, %v17041_v5  ;;  %v9378_v33 = vperm.slane %v17070_v1, %v17036_v54 }
 0x85c   : > { %v8893_v35 = vpack.i.b16 %v8855_v41, %v8847_v7  ;;  %v9023_v14 = vsel %vm8968_vm4, %v9019_v0, %v9022_v25  ;;  %v8895_v29 = vshrl.u32 %v8855_v41, 16  ;;  %v9380_v48 = vsel %vm8968_vm4, %v9379_v45, %v8981_v58  ;;  %v8513_v59 = vpop.f32.mrf.mxu0 }
 0x85d   : > { %v9047_v57 = vsel %vm8968_vm4, %v9046_v50, %v9040_v20  ;;  %v9031_v31 = vperm.slane %v9023_v14, %v17041_v5  ;;  %v9048_v46 = vrot.slane %v9040_v20, 4  ;;  %v8839_v51 = vpack.c.bf16 %v8612_v17, %v8612_v17 }
 0x85e   : > { %v9071_v24 = vperm.slane %v8893_v35, %v17036_v54  ;;  %v17082_v47 = vsel %vm8968_vm4, %v9008_v4, %v9001_v2  ;;  %v9053_v38 = vperm.slane %v9047_v57, %v17041_v5  ;;  %v9398_v11 = vrot.slane %v9009_v39, 4 }
 0x85f   : > { %v9049_v42 = vsel %vm8968_vm4, %v9045_v9, %v9048_v46  ;;  %v9034_v15 = vrot.slane %v9031_v31, 4  ;;  %v8848_v3 = vpack.c.bf16 %v8715_v19, %v8715_v19  ;;  %v8887_v30 = vpack.i.b16 %v8839_v51, %v8831_v32 }
 0x860   : > { %v9384_v18 = vperm.slane %v9380_v48, %v17036_v54  ;;  %v9032_v0 = vrot.slane %v9027_v60, 4  ;;  %v8896_v22 = vpack.i.b16 %v8895_v29, %v8894_v56  ;;  %v9072_v23 = vrot.slane %v9071_v24, 4 }
 0x861   : > { %v8816_v21 = vpop.f32.mrf.mxu3  ;;  %v9397_v12 = vperm.slane %v17082_v47, %v17036_v54  ;;  %v9057_v40 = vperm.slane %v9049_v42, %v17041_v5  ;;  %v8832_v9 = vpack.c.bf16 %v8513_v59, %v8513_v59  ;;  %v8889_v2 = vshrl.u32 %v8839_v51, 16 }
 0x862   : > { %v9058_v44 = vrot.slane %v9053_v38, 4  ;;  %v9066_v43 = vperm.slane %v8887_v30, %v17036_v54  ;;  %v8856_v55 = vpack.c.bf16 %v8816_v21, %v8816_v21  ;;  %v17092_v61 = vsel %vm8968_vm4, %v9398_v11, %v9007_v6 }
 0x863   : > { %v8614_v26 = vpop.f32.mrf.mxu1  ;;  %v9035_v27 = vsel %vm8968_vm4, 0, %v9034_v15  ;;  %v8906_v32 = vshrl.u32 %v8848_v3, 16  ;;  %v8890_v36 = vpack.i.b16 %v8889_v2, %v8888_v13  ;;  %v9385_v63 = vrot.slane %v9384_v18, 4 }
 0x864   : > { %v8840_v7 = vpack.c.bf16 %v8614_v26, %v8614_v26  ;;  %v9033_v53 = vsel %vm8968_vm4, 0, %v9032_v0  ;;  %v9097_v4 = vperm.slane %v8896_v22, %v17036_v54  ;;  %v9073_v41 = vsel %vm8968_vm4, %v9072_v23, %v9066_v43 }
 0x865   : > { %v9060_v17 = vrot.slane %v9057_v40, 4  ;;  %v9074_v50 = vrot.slane %v9066_v43, 4  ;;  %v9092_v52 = vperm.slane %v8890_v36, %v17036_v54  ;;  %v8905_v45 = vpack.i.b16 %v8856_v55, %v8848_v3 }
 0x866   : > { %v9059_v8 = vsel %vm8968_vm4, 0, %v9058_v44  ;;  %v9417_v25 = vrot.slane %v9035_v27, 4  ;;  %v8900_v20 = vshrl.u32 %v8832_v9, 16  ;;  %v8899_v58 = vpack.i.b16 %v8840_v7, %v8832_v9 }
 0x867   : > { %v9075_v56 = vsel %vm8968_vm4, %v9071_v24, %v9074_v50  ;;  %v9079_v13 = vperm.slane %v9073_v41, %v17041_v5  ;;  %v9100_v35 = vrot.slane %v9092_v52, 4  ;;  %v8907_v39 = vshrl.u32 %v8856_v55, 16 }
 0x868   : > { %v17103_v14 = vsel %vm8968_vm4, %v9034_v15, %v9027_v60  ;;  %v9098_v57 = vrot.slane %v9097_v4, 4  ;;  %v9083_v31 = vperm.slane %v9075_v56, %v17041_v5  ;;  %v9123_v46 = vperm.slane %v8905_v45, %v17036_v54 }
 0x869   : > { %v9061_v19 = vsel %vm8968_vm4, 0, %v9060_v17  ;;  %v9101_v29 = vsel %vm8968_vm4, %v9097_v4, %v9100_v35  ;;  %v8901_v6 = vshrl.u32 %v8840_v7, 16  ;;  %v9118_v48 = vperm.slane %v8899_v58, %v17036_v54  ;;  %v8718_v24 = vpop.f32.mrf.mxu2 }
 0x86a   : > { %v9418_v51 = vsel %vm8968_vm4, %v9417_v25, %v9033_v53  ;;  %v9086_v42 = vrot.slane %v9083_v31, 4  ;;  %v9109_v59 = vperm.slane %v9101_v29, %v17041_v5  ;;  %v9124_v60 = vrot.slane %v9123_v46, 4  ;;  %v8819_v22 = vpop.f32.mrf.mxu3 }
 0x86b   : > { %v17113_v11 = vsel %vm8968_vm4, %v9060_v17, %v9053_v38  ;;  %v9084_v15 = vrot.slane %v9079_v13, 4  ;;  %v8908_v3 = vpack.i.b16 %v8907_v39, %v8906_v32  ;;  %v9126_v30 = vrot.slane %v9118_v48, 4  ;;  %v8617_v7 = vpop.f32.mrf.mxu1 }
 0x86c   : > { %v9087_v21 = vsel %vm8968_vm4, 0, %v9086_v42  ;;  %v9099_v26 = vsel %vm8968_vm4, %v9098_v57, %v9092_v52  ;;  %v9112_v18 = vrot.slane %v9109_v59, 4  ;;  %v8902_v0 = vpack.i.b16 %v8901_v6, %v8900_v20 }
 0x86d   : > { %v9416_v23 = vperm.slane %v17103_v14, %v17036_v54  ;;  %v9455_v40 = vrot.slane %v9087_v21, 4  ;;  %v9125_v9 = vsel %vm8968_vm4, %v9124_v60, %v9118_v48  ;;  %v17124_v38 = vsel %vm8968_vm4, %v9385_v63, %v9378_v33 }
 0x86e   : > { %v9422_v2 = vperm.slane %v9418_v51, %v17036_v54  ;;  %v9436_v44 = vrot.slane %v9061_v19, 4  ;;  %v9127_v43 = vsel %vm8968_vm4, %v9123_v46, %v9126_v30  ;;  %v8849_v55 = vpack.c.bf16 %v8718_v24, %v8718_v24 }
 0x86f   : > { %v9435_v27 = vperm.slane %v17113_v11, %v17036_v54  ;;  %v9105_v32 = vperm.slane %v9099_v26, %v17041_v5  ;;  %v9149_v36 = vperm.slane %v8908_v3, %v17036_v54  ;;  %v9135_v53 = vperm.slane %v9127_v43, %v17041_v5 }
 0x870   : > { %v9085_v1 = vsel %vm8968_vm4, 0, %v9084_v15  ;;  %v9113_v33 = vsel %vm8968_vm4, 0, %v9112_v18  ;;  %v9131_v63 = vperm.slane %v9125_v9, %v17041_v5  ;;  %v9144_v4 = vperm.slane %v8902_v0, %v17036_v54 }
 0x871   : > { %v9456_v41 = vsel %vm8968_vm4, %v9455_v40, %v9085_v1  ;;  %v9138_v17 = vrot.slane %v9135_v53, 4  ;;  %v8857_v50 = vpack.c.bf16 %v8819_v22, %v8819_v22  ;;  %v8841_v52 = vpack.c.bf16 %v8617_v7, %v8617_v7  ;;  %v8720_v31 = vpop.f32.mrf.mxu2 }
 0x872   : > { %v17138_v45 = vrot.slane %v9422_v2, 4  ;;  %v17141_v25 = vsel %vm8968_vm4, %v9436_v44, %v9059_v8  ;;  %v9152_v20 = vrot.slane %v9144_v4, 4  ;;  %v8918_v58 = vshrl.u32 %v8849_v55, 16  ;;  %v8821_v15 = vpop.f32.mrf.mxu3 }
 0x873   : > { %v9110_v56 = vrot.slane %v9105_v32, 4  ;;  %v17144_v35 = vsel %vm8968_vm4, %v9086_v42, %v9079_v13  ;;  %v9150_v39 = vrot.slane %v9149_v36, 4  ;;  %v8917_v57 = vpack.i.b16 %v8857_v50, %v8849_v55  ;;  %v8619_v55 = vpop.f32.mrf.mxu1 }
 0x874   : > { %v9460_v46 = vperm.slane %v9456_v41, %v17036_v54  ;;  %v17148_v19 = vsel %vm8968_vm4, %v9112_v18, %v9105_v32  ;;  %v9474_v29 = vrot.slane %v9113_v33, 4  ;;  %v8919_v6 = vshrl.u32 %v8857_v50, 16 }
 0x875   : > { %v9136_v48 = vrot.slane %v9131_v63, 4  ;;  %v9139_v8 = vsel %vm8968_vm4, 0, %v9138_v17  ;;  %v9175_v24 = vperm.slane %v8917_v57, %v17036_v54  ;;  %v8911_v51 = vpack.i.b16 %v8841_v52, %v17046_v37 }
 0x876   : > { %v9153_v13 = vsel %vm8968_vm4, %v9149_v36, %v9152_v20  ;;  %v8920_v42 = vpack.i.b16 %v8919_v6, %v8918_v58  ;;  %v8913_v59 = vshrl.u32 %v8841_v52, 16  ;;  %v8850_v60 = vpack.c.bf16 %v8720_v31, %v8720_v31 }
 0x877   : > { %v9111_v3 = vsel %vm8968_vm4, 0, %v9110_v56  ;;  %v9454_v30 = vperm.slane %v17144_v35, %v17036_v54  ;;  %v9151_v21 = vsel %vm8968_vm4, %v9150_v39, %v9144_v4  ;;  %v9176_v26 = vrot.slane %v9175_v24, 4 }
 0x878   : > { %v9473_v18 = vperm.slane %v17148_v19, %v17036_v54  ;;  %v9201_v0 = vperm.slane %v8920_v42, %v17036_v54  ;;  %v8914_v22 = vpack.i.b16 %v8913_v59, %v8912_v49  ;;  %v9170_v40 = vperm.slane %v8911_v51, %v17036_v54 }
 0x879   : > { %v17165_v9 = vsel %vm8968_vm4, %v9474_v29, %v9111_v3  ;;  %v9161_v2 = vperm.slane %v9153_v13, %v17041_v5  ;;  %v9493_v44 = vrot.slane %v9139_v8, 4  ;;  %v8858_v43 = vpack.c.bf16 %v8821_v15, %v8821_v15 }
 0x87a   : > { %v17168_v7 = vrot.slane %v9460_v46, 4  ;;  %v9137_v32 = vsel %vm8968_vm4, 0, %v9136_v48  ;;  %v9157_v36 = vperm.slane %v9151_v21, %v17041_v5  ;;  %v8930_v53 = vshrl.u32 %v8850_v60, 16  ;;  %v8824_v11 = vpop.f32.mrf.mxu3 }
 0x87b   : > { %v9177_v37 = vsel %vm8968_vm4, %v9176_v26, %v9170_v40  ;;  %v9178_v49 = vrot.slane %v9170_v40, 4  ;;  %v9196_v1 = vperm.slane %v8914_v22, %v17036_v54  ;;  %v8929_v33 = vpack.i.b16 %v8858_v43, %v8850_v60 }
 0x87c   : > { %v17175_v4 = vsel %vm8968_vm4, %v9138_v17, %v9131_v63  ;;  %v9202_v41 = vrot.slane %v9201_v0, 4  ;;  %v8931_v50 = vshrl.u32 %v8858_v43, 16  ;;  %v8842_v52 = vpack.c.bf16 %v8619_v55, %v8619_v55 }
 0x87d   : > { %v9164_v20 = vrot.slane %v9161_v2, 4  ;;  %v9494_v58 = vsel %vm8968_vm4, %v9493_v44, %v9137_v32  ;;  %v9179_v56 = vsel %vm8968_vm4, %v9175_v24, %v9178_v49  ;;  %v9204_v39 = vrot.slane %v9196_v1, 4 }
 0x87e   : > { %v9183_v57 = vperm.slane %v9177_v37, %v17041_v5  ;;  %v9187_v31 = vperm.slane %v9179_v56, %v17041_v5  ;;  %v8932_v46 = vpack.i.b16 %v8931_v50, %v8930_v53  ;;  %v9227_v29 = vperm.slane %v8929_v33, %v17036_v54 }
 0x87f   : > { %v9162_v6 = vrot.slane %v9157_v36, 4  ;;  %v9205_v63 = vsel %vm8968_vm4, %v9201_v0, %v9204_v39  ;;  %v8923_v17 = vpack.i.b16 %v8842_v52, %v17051_v62  ;;  %v8925_v48 = vshrl.u32 %v8842_v52, 16 }
 0x880   : > { %v9498_v8 = vperm.slane %v9494_v58, %v17036_v54  ;;  %v9190_v51 = vrot.slane %v9187_v31, 4  ;;  %v9203_v13 = vsel %vm8968_vm4, %v9202_v41, %v9196_v1  ;;  %v9213_v24 = vperm.slane %v9205_v63, %v17041_v5 }
 0x881   : > { %v9228_v42 = vrot.slane %v9227_v29, 4  ;;  %v9253_v59 = vperm.slane %v8932_v46, %v17036_v54  ;;  %v8926_v60 = vpack.i.b16 %v8925_v48, %v8924_v34  ;;  %v9222_v15 = vperm.slane %v8923_v17, %v17036_v54 }
 0x882   : > { %v9165_v3 = vsel %vm8968_vm4, 0, %v9164_v20  ;;  %v9188_v21 = vrot.slane %v9183_v57, 4  ;;  %v9191_v26 = vsel %vm8968_vm4, 0, %v9190_v51  ;;  %v9403_v0 = vperm.slane %v17092_v61, %v17036_v54 }
 0x883   : > { %v9163_v22 = vsel %vm8968_vm4, 0, %v9162_v6  ;;  %v9492_v40 = vperm.slane %v17175_v4, %v17036_v54  ;;  %v9209_v2 = vperm.slane %v9203_v13, %v17041_v5  ;;  %v9216_v44 = vrot.slane %v9213_v24, 4 }
 0x884   : > { %v17199_v62 = vrot.slane %v9498_v8, 4  ;;  %v9531_v34 = vrot.slane %v9191_v26, 4  ;;  %v9254_v43 = vrot.slane %v9253_v59, 4  ;;  %v9230_v55 = vrot.slane %v9222_v15, 4 }
 0x885   : > { %v17202_v32 = vsel %vm8968_vm4, %v9164_v20, %v9157_v36  ;;  %v9512_v53 = vrot.slane %v9165_v3, 4  ;;  %v9229_v37 = vsel %vm8968_vm4, %v9228_v42, %v9222_v15  ;;  %v9248_v61 = vperm.slane %v8926_v60, %v17036_v54 }
 0x886   : > { %v9189_v49 = vsel %vm8968_vm4, 0, %v9188_v21  ;;  %v9231_v1 = vsel %vm8968_vm4, %v9227_v29, %v9230_v55  ;;  %v17210_v33 = vperm.slane %v17124_v38, %v17041_v5  ;;  %v9404_v41 = vrot.slane %v9403_v0, 4 }
 0x887   : > { %v9214_v50 = vrot.slane %v9209_v2, 4  ;;  %v9217_v52 = vsel %vm8968_vm4, 0, %v9216_v44  ;;  %v9239_v36 = vperm.slane %v9231_v1, %v17041_v5  ;;  %v9256_v20 = vrot.slane %v9248_v61, 4 }
 0x888   : > { %v9532_v58 = vsel %vm8968_vm4, %v9531_v34, %v9189_v49  ;;  %v9235_v56 = vperm.slane %v9229_v37, %v17041_v5  ;;  %v9255_v39 = vsel %vm8968_vm4, %v9254_v43, %v9248_v61  ;;  %v9405_v31 = vsel %vm8968_vm4, %v9404_v41, %v9397_v12 }
 0x889   : > { %v9242_v38 = vrot.slane %v9239_v36, 4  ;;  %v9257_v46 = vsel %vm8968_vm4, %v9253_v59, %v9256_v20  ;;  %v17223_v29 = vperm.slane %v9405_v31, %v17041_v5  ;;  %v9424_v6 = vsel %vm8968_vm4, %v17138_v45, %v9416_v23 }
 0x88a   : > { %v9511_v63 = vperm.slane %v17202_v32, %v17036_v54  ;;  %v17233_v17 = vsel %vm8968_vm4, %v9512_v53, %v9163_v22  ;;  %v9550_v47 = vrot.slane %v9217_v52, 4  ;;  %v9441_v12 = vperm.slane %v17141_v25, %v17036_v54  ;;  %v8723_v53 = vpop.f32.mrf.mxu2 }
 0x88b   : > { %v17238_v48 = vsel %vm8968_vm4, %v9190_v51, %v9183_v57  ;;  %v9536_v8 = vperm.slane %v9532_v58, %v17036_v54  ;;  %v17242_v14 = vsel %vm8968_vm4, %v9216_v44, %v9209_v2  ;;  %v9265_v23 = vperm.slane %v9257_v46, %v17041_v5 }
 0x88c   : > { %v9215_v45 = vsel %vm8968_vm4, 0, %v9214_v50  ;;  %v9240_v13 = vrot.slane %v9235_v56, 4  ;;  %v9261_v24 = vperm.slane %v9255_v39, %v17041_v5  ;;  %v17248_v42 = vperm.slane %v9424_v6, %v17041_v5 }
 0x88d   : > { %v9243_v25 = vsel %vm8968_vm4, 0, %v9242_v38  ;;  %v9442_v59 = vrot.slane %v9441_v12, 4  ;;  %v9682_v57 = vshrl.u32 %v17223_v29, 16  ;;  %v9391_v51 = vrot.slane %v17210_v33, 4 }
 0x88e   : > { %v9530_v60 = vperm.slane %v17238_v48, %v17036_v54  ;;  %v9549_v15 = vperm.slane %v17242_v14, %v17036_v54  ;;  %v17258_v3 = vsel %vm8968_vm4, %v9550_v47, %v9215_v45  ;;  %v9410_v21 = vrot.slane %v17223_v29, 4 }
 0x88f   : > { %v17261_v26 = vrot.slane %v9536_v8, 4  ;;  %v9268_v0 = vrot.slane %v9265_v23, 4  ;;  %v9443_v22 = vsel %vm8968_vm4, %v9442_v59, %v9435_v27  ;;  %v9681_v2 = vshrl.u32 %v17210_v33, 16 }
 0x890   : > { %v9569_v44 = vrot.slane %v9243_v25, 4  ;;  %v17269_v34 = vperm.slane %v9443_v22, %v17041_v5  ;;  %v9392_v43 = vsel %vm8968_vm4, 0, %v9391_v51  ;;  %v9411_v55 = vsel %vm8968_vm4, 0, %v9410_v21 }
 0x891   : > { %v9241_v37 = vsel %vm8968_vm4, 0, %v9240_v13  ;;  %v9266_v61 = vrot.slane %v9261_v24, 4  ;;  %v9683_v49 = vpack.i.b16 %v9682_v57, %v9681_v2  ;;  %v9429_v1 = vrot.slane %v17248_v42, 4 }
 0x892   : > { %v9693_v27 = vshrl.u32 %v17248_v42, 16  ;;  %v9694_v41 = vshrl.u32 %v17269_v34, 16  ;;  %v9448_v50 = vrot.slane %v17269_v34, 4  ;;  %v9688_v52 = vshrl.u32 %v9411_v55, 16 }
 0x893   : > { %v17279_v36 = vsel %vm8968_vm4, %v9242_v38, %v9235_v56  ;;  %v9430_v20 = vsel %vm8968_vm4, 0, %v9429_v1  ;;  %v9686_v58 = vpack.i.b16 %v9411_v55, %v9392_v43  ;;  %v9687_v39 = vshrl.u32 %v9392_v43, 16 }
 0x894   : > { %v9269_v31 = vsel %vm8968_vm4, 0, %v9268_v0  ;;  %v9570_v46 = vsel %vm8968_vm4, %v9569_v44, %v9241_v37  ;;  %v9695_v6 = vpack.i.b16 %v9694_v41, %v9693_v27  ;;  %v9449_v47 = vsel %vm8968_vm4, 0, %v9448_v50 }
 0x895   : > { %v9698_v12 = vpack.i.b16 %v9449_v47, %v9430_v20  ;;  %v9689_v8 = vpack.i.b16 %v9688_v52, %v9687_v39  ;;  %v9699_v23 = vshrl.u32 %v9430_v20, 16  ;;  %v9700_v45 = vshrl.u32 %v9449_v47, 16 }
 0x896   : > { %v9267_v13 = vsel %vm8968_vm4, 0, %v9266_v61  ;;  %v17287_v56 = vsel %vm8968_vm4, %v9268_v0, %v9261_v24  ;;  %v9786_v38 = vunpack.c.l.b16 %v9683_v49  ;;  %v9787_v25 = vunpack.c.l.b16 %v9695_v6 }
 0x897   : > { %v9574_v59 = vperm.slane %v9570_v46, %v17036_v54  ;;  %v9806_v57 = vunpack.c.l.b16 %v9686_v58  ;;  %v9807_v51 = vunpack.c.l.b16 %v9698_v12  ;;  %v9701_v21 = vpack.i.b16 %v9700_v45, %v9699_v23 }
 0x898   : > { %v9588_v22 = vrot.slane %v9269_v31, 4  ;;  %v9794_v2 = vpack.c.b16 %v9787_v25, %v9786_v38  ;;  %v17290_v44 = vpack.c.bf16 %v8723_v53, %v8723_v53  ;;  %v9462_v43 = vsel %vm8968_vm4, %v17168_v7, %v9454_v30  ;;  %v8725_v53 = vpop.f32.mrf.mxu2 }
 0x899   : > { %v9814_v55 = vpack.c.b16 %v9807_v51, %v9806_v57  ;;  %v9826_v24 = vunpack.c.l.b16 %v9689_v8  ;;  %v9827_v0 = vunpack.c.l.b16 %v9701_v21  ;;  %v17297_v37 = vpack.c.bf16 %v8824_v11, %v8824_v11  ;;  %v8826_v11 = vpop.f32.mrf.mxu3 }
 0x89a   : > { %v9568_v61 = vperm.slane %v17279_v36, %v17036_v54  ;;  %v9587_v49 = vperm.slane %v17287_v56, %v17036_v54  ;;  %9798 = vrot.lane.b32.xlu1 %v9794_v2, %s12587_s3  ;;  %v17305_v35 = vperm.slane %v9462_v43, %v17041_v5  ;;  %v9479_v30 = vperm.slane %v17165_v9, %v17036_v54 }
 0x89b   : > { %v9575_v7 = vrot.slane %v9574_v59, 4  ;;  %9818 = vrot.lane.b32.xlu2 %v9814_v55, %s12588_s20  ;;  %v9834_v1 = vpack.c.b16 %v9827_v0, %v9826_v24  ;;  %v9500_v27 = vsel %vm8968_vm4, %v17199_v62, %v9492_v40  ;;  %v9517_v41 = vperm.slane %v17233_v17, %v17036_v54 }
 0x89c   : > { %v9589_v50 = vsel %vm8968_vm4, %v9588_v22, %v9267_v13  ;;  %v8942_v52 = vshrl.u32 %v17290_v44, 16  ;;  %v9480_v9 = vrot.slane %v9479_v30, 4  ;;  %v17320_v36 = vperm.slane %v9500_v27, %v17041_v5 }
 0x89d   : > { %9838 = vrot.lane.b32.xlu0 %v9834_v1, %s12589_s8  ;;  %v8941_v4 = vpack.i.b16 %v17297_v37, %v17290_v44  ;;  %v17325_v20 = vpack.c.bf16 %v8725_v53, %v8725_v53  ;;  %v9518_v40 = vrot.slane %v9517_v41, 4  ;;  %v9467_v62 = vrot.slane %v17305_v35, 4 }
 0x89e   : > { %v17328_v17 = vpack.c.bf16 %v8826_v11, %v8826_v11  ;;  %v9481_v58 = vsel %vm8968_vm4, %v9480_v9, %v9473_v18  ;;  %v9705_v39 = vshrl.u32 %v17305_v35, 16  ;;  %v9505_v31 = vrot.slane %v17320_v36, 4 }
 0x89f   : > { %v17337_v46 = vperm.slane %v9481_v58, %v17041_v5  ;;  %v9519_v6 = vsel %vm8968_vm4, %v9518_v40, %v9511_v63  ;;  %v9468_v47 = vsel %vm8968_vm4, 0, %v9467_v62  ;;  %v9538_v19 = vsel %vm8968_vm4, %v17261_v26, %v9530_v60 }
 0x8a0   : > { %v17350_v18 = vperm.slane %v9519_v6, %v17041_v5  ;;  %v9717_v12 = vshrl.u32 %v17320_v36, 16  ;;  %v9506_v8 = vsel %vm8968_vm4, 0, %v9505_v31  ;;  %v9711_v23 = vshrl.u32 %v9468_v47, 16 }
 0x8a1   : > { %v9706_v32 = vshrl.u32 %v17337_v46, 16  ;;  %v9486_v63 = vrot.slane %v17337_v46, 4  ;;  %v9723_v45 = vshrl.u32 %v9506_v8, 16  ;;  %v17357_v13 = vperm.slane %v9538_v19, %v17041_v5 }
 0x8a2   : > { %v9718_v48 = vshrl.u32 %v17350_v18, 16  ;;  %v9524_v60 = vrot.slane %v17350_v18, 4  ;;  %v9555_v26 = vperm.slane %v17258_v3, %v17036_v54  ;;  %v9576_v38 = vsel %vm8968_vm4, %v9575_v7, %v9568_v61 }
 0x8a3   : > { %v9707_v25 = vpack.i.b16 %v9706_v32, %v9705_v39  ;;  %v9487_v59 = vsel %vm8968_vm4, 0, %v9486_v63  ;;  %v17366_v57 = vperm.slane %v9576_v38, %v17041_v5  ;;  %v9593_v51 = vperm.slane %v9589_v50, %v17036_v54 }
 0x8a4   : > { %v9719_v21 = vpack.i.b16 %v9718_v48, %v9717_v12  ;;  %v9525_v22 = vsel %vm8968_vm4, 0, %v9524_v60  ;;  %v9710_v2 = vpack.i.b16 %v9487_v59, %v9468_v47  ;;  %v9712_v43 = vshrl.u32 %v9487_v59, 16 }
 0x8a5   : > { %v9788_v55 = vunpack.c.l.b16 %v9707_v25  ;;  %v9722_v24 = vpack.i.b16 %v9525_v22, %v9506_v8  ;;  %v9724_v0 = vshrl.u32 %v9525_v22, 16  ;;  %v9556_v53 = vrot.slane %v9555_v26, 4  ;;  %v11460_v25 = vld [vmem:[#allocation11 + $0x38] sm:$0xff] }
 0x8a6   : > { %v9789_v3 = vunpack.c.l.b16 %v9719_v21  ;;  %v9808_v30 = vunpack.c.l.b16 %v9710_v2  ;;  %v9713_v61 = vpack.i.b16 %v9712_v43, %v9711_v23  ;;  %v9594_v7 = vrot.slane %v9593_v51, 4  ;;  %9948 = vmatpush.bf16.msra.mxu0 %v11460_v25  ;;  %v11459_v43 = vld [vmem:[#allocation11 + $0x30] sm:$0xff] }
 0x8a7   : > { %v9809_v1 = vunpack.c.l.b16 %v9722_v24  ;;  %v9725_v11 = vpack.i.b16 %v9724_v0, %v9723_v45  ;;  %v9557_v27 = vsel %vm8968_vm4, %v9556_v53, %v9549_v15  ;;  %v9729_v41 = vshrl.u32 %v17357_v13, 16 }
 0x8a8   : > { %v9795_v50 = vpack.c.b16 %v9789_v3, %v9788_v55  ;;  %v9828_v9 = vunpack.c.l.b16 %v9713_v61  ;;  %v17376_v40 = vperm.slane %v9557_v27, %v17041_v5  ;;  %v9595_v62 = vsel %vm8968_vm4, %v9594_v7, %v9587_v49 }
 0x8a9   : > { %v9815_v58 = vpack.c.b16 %v9809_v1, %v9808_v30  ;;  %v9829_v39 = vunpack.c.l.b16 %v9725_v11  ;;  %v17383_v31 = vperm.slane %v9595_v62, %v17041_v5  ;;  %v9741_v14 = vshrl.u32 %v17366_v57, 16 }
 0x8aa   : > { %9800 = vrot.lane.b32.xlu2 %v9795_v50, %s12587_s3  ;;  %v9730_v15 = vshrl.u32 %v17376_v40, 16  ;;  %v9543_v6 = vrot.slane %v17357_v13, 4  ;;  %v9562_v47 = vrot.slane %v17376_v40, 4  ;;  %v9581_v19 = vrot.slane %v17366_v57, 4  ;;  %9949 = vmatpush.bf16.msra.mxu0 %v11459_v43 }
 0x8ab   : > { %9820 = vrot.lane.b32.xlu1 %v9815_v58, %s12588_s20  ;;  %v9835_v56 = vpack.c.b16 %v9829_v39, %v9828_v9  ;;  %v9742_v49 = vshrl.u32 %v17383_v31, 16  ;;  %v9600_v12 = vrot.slane %v17383_v31, 4  ;;  %v9704_v8 = vpack.i.b16 %v17337_v46, %v17305_v35 }
 0x8ac   : > { %v9731_v23 = vpack.i.b16 %v9730_v15, %v9729_v41  ;;  %v9544_v32 = vsel %vm8968_vm4, 0, %v9543_v6  ;;  %v9563_v63 = vsel %vm8968_vm4, 0, %v9562_v47  ;;  %v9582_v45 = vsel %vm8968_vm4, 0, %v9581_v19 }
 0x8ad   : > { %9840 = vrot.lane.b32.xlu0 %v9835_v56, %s12589_s8  ;;  %v9743_v48 = vpack.i.b16 %v9742_v49, %v9741_v14  ;;  %v9601_v60 = vsel %vm8968_vm4, 0, %v9600_v12  ;;  %v9734_v26 = vpack.i.b16 %v9563_v63, %v9544_v32  ;;  %v9735_v38 = vshrl.u32 %v9544_v32, 16 }
 0x8ae   : > { %v9790_v59 = vunpack.c.l.b16 %v9731_v23  ;;  %v9746_v51 = vpack.i.b16 %v9601_v60, %v9582_v45  ;;  %v9736_v21 = vshrl.u32 %v9563_v63, 16  ;;  %v9747_v22 = vshrl.u32 %v9582_v45, 16 }
 0x8af   : > { %v9791_v35 = vunpack.c.l.b16 %v9743_v48  ;;  %v9810_v46 = vunpack.c.l.b16 %v9734_v26  ;;  %v9748_v2 = vshrl.u32 %v9601_v60, 16  ;;  %v17401_v55 = vunpack.c.l.b16 %v9704_v8 }
 0x8b0   : > { %v9811_v24 = vunpack.c.l.b16 %v9746_v51  ;;  %v9737_v0 = vpack.i.b16 %v9736_v21, %v9735_v38  ;;  %v9716_v3 = vpack.i.b16 %v17350_v18, %v17320_v36  ;;  %v9680_v30 = vpack.i.b16 %v17223_v29, %v17210_v33 }
 0x8b1   : > { %v9796_v61 = vpack.c.b16 %v9791_v35, %v9790_v59  ;;  %v9749_v7 = vpack.i.b16 %v9748_v2, %v9747_v22  ;;  %v9692_v11 = vpack.i.b16 %v17269_v34, %v17248_v42  ;;  %v8943_v29 = vshrl.u32 %v17297_v37, 16 }
 0x8b2   : > { %v9816_v27 = vpack.c.b16 %v9811_v24, %v9810_v46  ;;  %v9830_v41 = vunpack.c.l.b16 %v9737_v0  ;;  %v17409_v50 = vunpack.c.l.b16 %v9716_v3  ;;  %v17411_v9 = vunpack.c.l.b16 %v9680_v30 }
 0x8b3   : > { %v8622_v53 = vpop.f32.mrf.mxu1  ;;  %9802 = vrot.lane.b32.xlu2 %v9796_v61, %s12587_s3  ;;  %v9831_v62 = vunpack.c.l.b16 %v9749_v7  ;;  %v17415_v33 = vunpack.c.l.b16 %v9692_v11  ;;  %v8953_v42 = vpack.i.b16 %v17328_v17, %v17325_v20  ;;  %v9728_v58 = vpack.i.b16 %v17376_v40, %v17357_v13 }
 0x8b4   : > { %v8843_v1 = vpack.c.bf16 %v8622_v53, %v8622_v53  ;;  %9822 = vrot.lane.b32.xlu1 %v9816_v27, %s12588_s20  ;;  %v9783_v34 = vpack.c.b16 %v17409_v50, %v17401_v55  ;;  %v8836_v47 = vpack.c.bf16 %v17034_v28, %v17034_v28  ;;  %v9279_v19 = vperm.slane %v8941_v4, %v17036_v54 }
 0x8b5   : > { %v9836_v39 = vpack.c.b16 %v9831_v62, %v9830_v41  ;;  %v9782_v6 = vpack.c.b16 %v17415_v33, %v17411_v9  ;;  %v8955_v56 = vshrl.u32 %v17328_v17, 16  ;;  %v9740_v28 = vpack.i.b16 %v17383_v31, %v17366_v57 }
 0x8b6   : > { %v8935_v36 = vpack.i.b16 %v8843_v1, %v17053_v10  ;;  %v8937_v18 = vshrl.u32 %v8843_v1, 16  ;;  %v8944_v10 = vpack.i.b16 %v8943_v29, %v8942_v52  ;;  %v9331_v12 = vperm.slane %v8953_v42, %v17036_v54 }
 0x8b7   : > { %9842 = vrot.lane.b32.xlu0 %v9836_v39, %s12589_s8  ;;  %v8948_v8 = vshrl.u32 %v8836_v47, 16  ;;  %v17446_v32 = vunpack.c.l.b16 %v9740_v28  ;;  %v9280_v17 = vrot.slane %v9279_v19, 4 }
 0x8b8   : > { %v8938_v14 = vpack.i.b16 %v8937_v18, %v8936_v16  ;;  %v9274_v15 = vperm.slane %v8935_v36, %v17036_v54  ;;  %v8954_v16 = vshrl.u32 %v17325_v20, 16  ;;  %v17449_v20 = vunpack.c.l.b16 %v9728_v58 }
 0x8b9   : > { %v9305_v45 = vperm.slane %v8944_v10, %v17036_v54  ;;  %v9332_v57 = vrot.slane %v9331_v12, 4 }
 0x8ba   : > { %v9282_v13 = vrot.slane %v9274_v15, 4  ;;  %v9300_v40 = vperm.slane %v8938_v14, %v17036_v54  ;;  %v8956_v48 = vpack.i.b16 %v8955_v56, %v8954_v16  ;;  %v9784_v26 = vpack.c.b16 %v17446_v32, %v17449_v20  ;;  %v12102_v32 = vld [vmem:[%s17933_s13] ss:$0 sm:$0xff]  ;;  %s11344_s13 = sshll.u32 %s17940_s19, 4  ;;  %s12452_s19 = scalar_lea.hbm %s17941_s23, 256 }
 0x8bb   : > { %v8624_v49 = vpop.f32.mrf.mxu1  ;;  %v9281_v38 = vsel %vm8968_vm4, %v9280_v17, %v9274_v15  ;;  %v9306_v0 = vrot.slane %v9305_v45, 4  ;;  %v7432_v20 = vld [vmem:[%s17534_s14] sm:$0xff]  ;;  %s10582_s0 = sadd.s32 %s11344_s13, %s11343_s12 }
 0x8bc   : > { %v9283_v37 = vsel %vm8968_vm4, %v9279_v19, %v9282_v13  ;;  %v8844_v4 = vpack.c.bf16 %v8624_v49, %v8624_v49  ;;  %v9308_v23 = vrot.slane %v9300_v40, 4  ;;  %v9357_v22 = vperm.slane %v8956_v48, %v17036_v54  ;;  %s11345_s21 = sshll.u32 %s10582_s0, 3 }
 0x8bd   : > { %v9291_v44 = vperm.slane %v9283_v37, %v17041_v5  ;;  %v9287_v46 = vperm.slane %v9281_v38, %v17041_v5  ;;  %v9307_v7 = vsel %vm8968_vm4, %v9306_v0, %v9300_v40 }
 0x8be   : > { %v8947_v52 = vpack.i.b16 %v8844_v4, %v8836_v47  ;;  %v8949_v63 = vshrl.u32 %v8844_v4, 16  ;;  %v9309_v25 = vsel %vm8968_vm4, %v9305_v45, %v9308_v23  ;;  %v9358_v61 = vrot.slane %v9357_v22, 4 }
 0x8bf   : > { %v9294_v59 = vrot.slane %v9291_v44, 4  ;;  %v9317_v2 = vperm.slane %v9309_v25, %v17041_v5  ;;  %v9292_v11 = vrot.slane %v9287_v46, 4  ;;  %v9313_v58 = vperm.slane %v9307_v7, %v17041_v5 }
 0x8c0   : > { %v8950_v31 = vpack.i.b16 %v8949_v63, %v8948_v8  ;;  %v9326_v60 = vperm.slane %v8947_v52, %v17036_v54 }
 0x8c1   : > { %v9295_v3 = vsel %vm8968_vm4, 0, %v9294_v59  ;;  %v9320_v27 = vrot.slane %v9317_v2, 4  ;;  %v9293_v15 = vsel %vm8968_vm4, 0, %v9292_v11  ;;  %v9318_v16 = vrot.slane %v9313_v58, 4 }
 0x8c2   : > { %v9333_v51 = vsel %vm8968_vm4, %v9332_v57, %v9326_v60  ;;  %v9334_v21 = vrot.slane %v9326_v60, 4  ;;  %v9352_v35 = vperm.slane %v8950_v31, %v17036_v54  ;;  %v9607_v36 = vrot.slane %v9295_v3, 4 }
 0x8c3   : > { %v9339_v24 = vperm.slane %v9333_v51, %v17041_v5  ;;  %v9321_v47 = vsel %vm8968_vm4, 0, %v9320_v27  ;;  %v9319_v8 = vsel %vm8968_vm4, 0, %v9318_v16  ;;  %v9602_v23 = vsel %vm8968_vm4, %v9294_v59, %v9287_v46  ;;  %v11458_v51 = vld [vmem:[#allocation11 + $0x28] sm:$0xff] }
 0x8c4   : > { %v9335_v43 = vsel %vm8968_vm4, %v9331_v12, %v9334_v21  ;;  %v9360_v30 = vrot.slane %v9352_v35, 4  ;;  %v9359_v29 = vsel %vm8968_vm4, %v9358_v61, %v9352_v35  ;;  %v9608_v40 = vsel %vm8968_vm4, %v9607_v36, %v9293_v15  ;;  %9950 = vmatpush.bf16.msra.mxu0 %v11458_v51 }
 0x8c5   : > { %v9343_v53 = vperm.slane %v9335_v43, %v17041_v5  ;;  %v9344_v41 = vrot.slane %v9339_v24, 4  ;;  %v9365_v13 = vperm.slane %v9359_v29, %v17041_v5  ;;  %v9626_v49 = vrot.slane %v9321_v47, 4  ;;  %v11455_v47 = vld [vmem:[#allocation11 + $0x10] sm:$0xff] }
 0x8c6   : > { %v9361_v62 = vsel %vm8968_vm4, %v9357_v22, %v9360_v30  ;;  %v9612_v28 = vperm.slane %v9608_v40, %v17036_v54  ;;  %v9621_v17 = vsel %vm8968_vm4, %v9320_v27, %v9313_v58  ;;  %v9606_v31 = vperm.slane %v9602_v23, %v17036_v54  ;;  %v11456_v27 = vld [vmem:[#allocation11 + $0x18] sm:$0xff] }
 0x8c7   : > { %v9346_v1 = vrot.slane %v9343_v53, 4  ;;  %v9369_v42 = vperm.slane %v9361_v62, %v17041_v5  ;;  %v9345_v19 = vsel %vm8968_vm4, 0, %v9344_v41  ;;  %v9370_v12 = vrot.slane %v9365_v13, 4 }
 0x8c8   : > { %v9627_v44 = vsel %vm8968_vm4, %v9626_v49, %v9319_v8  ;;  %v9613_v63 = vrot.slane %v9612_v28, 4  ;;  %v9625_v25 = vperm.slane %v9621_v17, %v17036_v54 }
 0x8c9   : > { %v9347_v18 = vsel %vm8968_vm4, 0, %v9346_v1  ;;  %v9372_v14 = vrot.slane %v9369_v42, 4  ;;  %v9640_v52 = vsel %vm8968_vm4, %v9346_v1, %v9339_v24  ;;  %v9371_v45 = vsel %vm8968_vm4, 0, %v9370_v12  ;;  %v11457_v24 = vld [vmem:[#allocation11 + $0x20] sm:$0xff] }
 0x8ca   : > { %v9645_v39 = vrot.slane %v9347_v18, 4  ;;  %v9644_v60 = vperm.slane %v9640_v52, %v17036_v54  ;;  %v9631_v38 = vperm.slane %v9627_v44, %v17036_v54  ;;  %v9614_v21 = vsel %vm8968_vm4, %v9613_v63, %v9606_v31  ;;  %9951 = vmatpush.bf16.msra.mxu0 %v11457_v24 }
 0x8cb   : > { %v9373_v56 = vsel %vm8968_vm4, 0, %v9372_v14  ;;  %v9659_v59 = vsel %vm8968_vm4, %v9372_v14, %v9365_v13  ;;  %v9618_v2 = vperm.slane %v9614_v21, %v17041_v5 }
 0x8cc   : > { %v9646_v10 = vsel %vm8968_vm4, %v9645_v39, %v9345_v19  ;;  %v9664_v4 = vrot.slane %v9373_v56, 4  ;;  %v9632_v22 = vrot.slane %v9631_v38, 4  ;;  %v9663_v43 = vperm.slane %v9659_v59, %v17036_v54 }
 0x8cd   : > { %v9650_v37 = vperm.slane %v9646_v10, %v17036_v54  ;;  %v9753_v1 = vshrl.u32 %v9618_v2, 16  ;;  %v9619_v58 = vrot.slane %v9618_v2, 4  ;;  %v11454_v10 = vld [vmem:[#allocation11 + $0x8] sm:$0xff] }
 0x8ce   : > { %v9665_v57 = vsel %vm8968_vm4, %v9664_v4, %v9371_v45  ;;  %v9633_v0 = vsel %vm8968_vm4, %v9632_v22, %v9625_v25  ;;  %9952 = vmatpush.bf16.msra.mxu0 %v11456_v27  ;;  %v11453_v45 = vld [vmem:[#allocation11] sm:$0xff] }
 0x8cf   : > { %v9651_v48 = vrot.slane %v9650_v37, 4  ;;  %v9669_v46 = vperm.slane %v9665_v57, %v17036_v54  ;;  %v9637_v3 = vperm.slane %v9633_v0, %v17041_v5 }
 0x8d1   : > { %v9652_v35 = vsel %vm8968_vm4, %v9651_v48, %v9644_v60  ;;  %v9670_v53 = vrot.slane %v9669_v46, 4  ;;  %v9754_v11 = vshrl.u32 %v9637_v3, 16  ;;  %v9638_v39 = vrot.slane %v9637_v3, 4 }
 0x8d2   : > { %v9656_v30 = vperm.slane %v9652_v35, %v17041_v5  ;;  %9953 = vmatpush.bf16.msra.mxu0 %v11455_v47  ;;  %v9752_v57 = vpack.i.b16 %v9637_v3, %v9618_v2 }
 0x8d3   : > { %v9671_v61 = vsel %vm8968_vm4, %v9670_v53, %v9663_v43  ;;  %v9755_v41 = vpack.i.b16 %v9754_v11, %v9753_v1  ;;  %v9639_v19 = vsel %vm8968_vm4, 0, %v9638_v39 }
 0x8d4   : > { %v9675_v7 = vperm.slane %v9671_v61, %v17041_v5  ;;  %v9765_v62 = vshrl.u32 %v9656_v30, 16  ;;  %v9657_v14 = vrot.slane %v9656_v30, 4  ;;  %v9620_v5 = vsel %vm8968_vm4, 0, %v9619_v58 }
 0x8d5   : > { %v9792_v18 = vunpack.c.l.b16 %v9755_v41  ;;  %v9758_v16 = vpack.i.b16 %v9639_v19, %v9620_v5  ;;  %v9759_v49 = vshrl.u32 %v9620_v5, 16  ;;  %v9760_v28 = vshrl.u32 %v9639_v19, 16 }
 0x8d6   : > { %v9766_v54 = vshrl.u32 %v9675_v7, 16  ;;  %v9676_v15 = vrot.slane %v9675_v7, 4  ;;  %v9658_v13 = vsel %vm8968_vm4, 0, %v9657_v14  ;;  %9954 = vmatpush.bf16.msra.mxu0 %v11454_v10  ;;  %v9764_v31 = vpack.i.b16 %v9675_v7, %v9656_v30 }
 0x8d7   : > { %v9771_v12 = vshrl.u32 %v9658_v13, 16  ;;  %v9812_v4 = vunpack.c.l.b16 %v9758_v16  ;;  %v9761_v23 = vpack.i.b16 %v9760_v28, %v9759_v49  ;;  %v9780_v60 = vunpack.c.l.b16 %v9752_v57 }
 0x8d8   : > { %v9767_v36 = vpack.i.b16 %v9766_v54, %v9765_v62  ;;  %v9677_v40 = vsel %vm8968_vm4, 0, %v9676_v15  ;;  %v9781_v38 = vunpack.c.l.b16 %v9764_v31  ;;  %v7433_v54 = vld [vmem:[%s17534_s14 + $0x8] sm:$0xff]  ;;  %v7435_v15 = vld [vmem:[%s17534_s14 + $0x18] sm:$0xff] }
 0x8d9   : > { %v9770_v56 = vpack.i.b16 %v9677_v40, %v9658_v13  ;;  %v9772_v37 = vshrl.u32 %v9677_v40, 16  ;;  %v9832_v63 = vunpack.c.l.b16 %v9761_v23  ;;  %v7436_v13 = vld [vmem:[%s17534_s14 + $0x20] sm:$0xff] }
 0x8da   : > { %v9793_v29 = vunpack.c.l.b16 %v9767_v36  ;;  %9955 = vmatpush.bf16.msra.mxu0 %v11453_v45  ;;  %v9785_v25 = vpack.c.b16 %v9781_v38, %v9780_v60 }
 0x8db   : > { %v9813_v8 = vunpack.c.l.b16 %v9770_v56  ;;  %v9773_v44 = vpack.i.b16 %v9772_v37, %v9771_v12  ;;  %v7437_v56 = vld [vmem:[%s17534_s14 + $0x28] sm:$0xff]  ;;  %v7438_v37 = vld [vmem:[%s17534_s14 + $0x30] sm:$0xff] }
 0x8dc   : > { %v9797_v42 = vpack.c.b16 %v9793_v29, %v9792_v18 }
 0x8dd   : > { %v9817_v52 = vpack.c.b16 %v9813_v8, %v9812_v4  ;;  %v9833_v17 = vunpack.c.l.b16 %v9773_v44  ;;  %v12590_v44 = vmov 128.0  }
 0x8de   : > { %9804 = vrot.lane.b32.xlu2 %v9797_v42, %s12587_s3  ;;  %v7434_v42 = vld [vmem:[%s17534_s14 + $0x10] sm:$0xff]  ;;  %12234 = vrcp.f32 %v12590_v44  ;;  %s17938_s3 = sld [smem:[#allocation49_spill]] }
 0x8df   : > { %9824 = vrot.lane.b32.xlu1 %v9817_v52, %s12588_s20  ;;  %v9837_v48 = vpack.c.b16 %v9833_v17, %v9832_v63 }
 0x8e1   : > { %9844 = vrot.lane.b32.xlu0 %v9837_v48, %s12589_s8 }
 0x8e4   : > { %v12235_v52 = vpop.eup %12234 }
 0x8e5   : > { %v10004_v63 = vmul.f32 128.0, %v12235_v52  ;;  %vm10008_vm7 = vweird.f32 %v12235_v52 }
 0x8e7   : > { %v10005_v17 = vsub.f32 1.0, %v10004_v63 }
 0x8e9   : > { %v10006_v45 = vmul.f32 %v12235_v52, %v10005_v17  ;;  %v11248_v17 = vld [vmem:[#allocation13 + $0x40] sm:$0xf] }
 0x8eb   : > { %v10007_v48 = vadd.f32 %v12235_v52, %v10006_v45  ;;  %v11470_v45 = vld [vmem:[#allocation13 + $0x44] sm:$0xf0] }
 0x8ed   : > { %v17567_v57 = vsel %vm10008_vm7, %v12235_v52, %v10007_v48  ;;  %v11469_v48 = vld [vmem:[#allocation13 + $0x44] sm:$0xf] }
 0x8f5   : > { %v9819_v51 = vpop.permute.xlu2 %9818 }
 0x904   : > { %v9801_v2 = vpop.permute.xlu2 %9800 }
 0x905   : > { %v9851_v43 = vsel %vm7600_vm3, %v9783_v34, %v9801_v2 }
 0x90c   : > { %v9799_v59 = vpop.permute.xlu1 %9798 }
 0x90d   : > { %v9848_v21 = vsel %vm7600_vm3, %v9782_v6, %v9799_v59  ;;  %v9803_v33 = vpop.permute.xlu2 %9802 }
 0x90e   : > { %v9860_v22 = vsel %vm9858_vm5, %v9848_v21, %v9819_v51  ;;  %v9854_v3 = vsel %vm7600_vm3, %v9784_v26, %v9803_v33 }
 0x90f   : > { %v9839_v35 = vpop.permute.xlu0 %9838 }
 0x910   : > { %v9869_v46 = vsel %vm9867_vm6, %v9860_v22, %v9839_v35  ;;  %v7439_v35 = vld [vmem:[%s17534_s14 + $0x38] sm:$0xff]  ;;  %s17939_s14 = sld [smem:[#allocation51_spill]] }
 0x911   : > { %9956 = vmatmul.bf16.vlgmr.msra.gmra.mxu0 %v9869_v46 }
 0x91d   : > { %v9821_v24 = vpop.permute.xlu1 %9820 }
 0x91e   : > { %v9862_v0 = vsel %vm9858_vm5, %v9851_v43, %v9821_v24 }
 0x91f   : > { %v9841_v53 = vpop.permute.xlu0 %9840 }
 0x920   : > { %v9872_v9 = vsel %vm9867_vm6, %v9862_v0, %v9841_v53 }
 0x921   : > { %9961 = vmatmul.bf16.gmra.mxu0 %v9872_v9 }
 0x926   : > { %v9823_v6 = vpop.permute.xlu1 %9822 }
 0x927   : > { %v9864_v55 = vsel %vm9858_vm5, %v9854_v3, %v9823_v6 }
 0x929   : > { %v9843_v50 = vpop.permute.xlu0 %9842 }
 0x92a   : > { %v9875_v34 = vsel %vm9867_vm6, %v9864_v55, %v9843_v50 }
 0x931   : > { %9966 = vmatmul.bf16.gmra.mxu0 %v9875_v34 }
 0x938   : > { %v9805_v30 = vpop.permute.xlu2 %9804 }
 0x939   : > { %v9857_v61 = vsel %vm7600_vm3, %v9785_v25, %v9805_v30 }
 0x951   : > { %v9825_v7 = vpop.permute.xlu1 %9824 }
 0x952   : > { %v9866_v1 = vsel %vm9858_vm5, %v9857_v61, %v9825_v7 }
 0x953   : > { %v9845_v11 = vpop.permute.xlu0 %9844 }
 0x954   : > { %v9878_v27 = vsel %vm9867_vm6, %v9866_v1, %v9845_v11 }
 0x955   : > { %9971 = vmatmul.bf16.gmra.mxu0 %v9878_v27 }
 0x98e   : > { %v9957_v26 = vpop.f32.mrf.mxu0 }
 0x98f   : > { %v9958_v41 = vadd.f32 %v12102_v32, %v9957_v26 }
 0x991   : > { %v17540_v62 = vadd.f32 %v9958_v41, %v7432_v20 }
 0x993   : > { %9987 = vadd.xlane.f32.xlu2 %v17540_v62 }
 0x996   : > { %v9959_v36 = vpop.f32.mrf.mxu0 }
 0x997   : > { %v9960_v18 = vadd.f32 %v12102_v32, %v9959_v36  ;;  %v11476_v36 = vld [vmem:[#allocation13 + $0x74] sm:$0xf0] }
 0x999   : > { %v17544_v29 = vadd.f32 %v9960_v18, %v7433_v54  ;;  %v11272_v54 = vld [vmem:[#allocation13 + $0x70] sm:$0xf]  ;;  %v11475_v18 = vld [vmem:[#allocation13 + $0x74] sm:$0xf] }
 0x99b   : > { %9989 = vadd.xlane.f32.xlu1 %v17544_v29 }
 0x99e   : > { %v9962_v58 = vpop.f32.mrf.mxu0 }
 0x99f   : > { %v9963_v39 = vadd.f32 %v12102_v32, %v9962_v58  ;;  %v11274_v58 = vld [vmem:[#allocation13 + $0x78] sm:$0xf0] }
 0x9a1   : > { %v17548_v14 = vadd.f32 %v9963_v39, %v7434_v42  ;;  %v11273_v42 = vor.u32 %v11476_v36, %v11272_v54  ;;  %v11277_v39 = vor.u32 %v11475_v18, %v11274_v58  ;;  %v11224_v36 = vld [vmem:[#allocation13 + $0x10] sm:$0xf]  ;;  %v11464_v18 = vld [vmem:[#allocation13 + $0x14] sm:$0xf0] }
 0x9a3   : > { %9991 = vadd.xlane.f32.xlu0 %v17548_v14  ;;  %10282 = vmatpush.bf16.msrb.mxu1 %v11273_v42 }
 0x9a4   : > { %10311 = vmatpush.bf16.msra.mxu2 %v11277_v39  ;;  %v11463_v39 = vld [vmem:[#allocation13 + $0x14] sm:$0xf] }
 0x9a6   : > { %v9964_v47 = vpop.f32.mrf.mxu0 }
 0x9a7   : > { %v9965_v5 = vadd.f32 %v12102_v32, %v9964_v47  ;;  %v11474_v47 = vld [vmem:[#allocation13 + $0x64] sm:$0xf0] }
 0x9a9   : > { %v17552_v19 = vadd.f32 %v9965_v5, %v7435_v15  ;;  %v11264_v15 = vld [vmem:[#allocation13 + $0x60] sm:$0xf]  ;;  %v11473_v5 = vld [vmem:[#allocation13 + $0x64] sm:$0xf] }
 0x9ab   : > { %9993 = vadd.xlane.f32.xlu2 %v17552_v19 }
 0x9ae   : > { %v9967_v40 = vpop.f32.mrf.mxu0 }
 0x9af   : > { %v9968_v10 = vadd.f32 %v12102_v32, %v9967_v40  ;;  %v11265_v40 = vor.u32 %v11474_v47, %v11264_v15  ;;  %v11226_v15 = vld [vmem:[#allocation13 + $0x18] sm:$0xf0] }
 0x9b1   : > { %v17556_v16 = vadd.f32 %v9968_v10, %v7436_v13  ;;  %v11266_v10 = vld [vmem:[#allocation13 + $0x68] sm:$0xf0]  ;;  %10283 = vmatpush.bf16.msrb.mxu1 %v11265_v40 }
 0x9b3   : > { %9995 = vadd.xlane.f32.xlu1 %v17556_v16 }
 0x9b6   : > { %v9969_v49 = vpop.f32.mrf.mxu0 }
 0x9b7   : > { %v9970_v28 = vadd.f32 %v12102_v32, %v9969_v49  ;;  %v11472_v49 = vld [vmem:[#allocation13 + $0x54] sm:$0xf0] }
 0x9b9   : > { %v17560_v12 = vadd.f32 %v9970_v28, %v7437_v56  ;;  %v11256_v56 = vld [vmem:[#allocation13 + $0x50] sm:$0xf] }
 0x9ba   : > { %v11257_v44 = vor.u32 %v11472_v49, %v11256_v56  ;;  %v11229_v56 = vor.u32 %v11463_v39, %v11226_v15 }
 0x9bb   : > { %9997 = vadd.xlane.f32.xlu0 %v17560_v12 }
 0x9bc   : > { %10284 = vmatpush.bf16.msrb.mxu1 %v11257_v44  ;;  %v11462_v44 = vld [vmem:[#allocation13 + $0x4] sm:$0xf0] }
 0x9d2   : > { %v9972_v4 = vpop.f32.mrf.mxu0 }
 0x9d3   : > { %v9973_v8 = vadd.f32 %v12102_v32, %v9972_v4  ;;  %v11471_v4 = vld [vmem:[#allocation13 + $0x54] sm:$0xf] }
 0x9d5   : > { %v17564_v23 = vadd.f32 %v9973_v8, %v7438_v37  ;;  %v11269_v37 = vor.u32 %v11473_v5, %v11266_v10  ;;  %v11258_v8 = vld [vmem:[#allocation13 + $0x58] sm:$0xf0] }
 0x9d6   : > { %v11261_v63 = vor.u32 %v11471_v4, %v11258_v8  ;;  %v11216_v8 = vld [vmem:[#allocation13] sm:$0xf] }
 0x9d7   : > { %9999 = vadd.xlane.f32.xlu0 %v17564_v23  ;;  %10312 = vmatpush.bf16.msra.mxu2 %v11269_v37 }
 0x9da   : > { %v9974_v59 = vpop.f32.mrf.mxu0 }
 0x9db   : > { %v9975_v21 = vadd.f32 %v12102_v32, %v9974_v59  ;;  %10313 = vmatpush.bf16.msra.mxu2 %v11261_v63  ;;  %v11240_v59 = vld [vmem:[#allocation13 + $0x30] sm:$0xf]  ;;  %v11461_v63 = vld [vmem:[#allocation13 + $0x4] sm:$0xf] }
 0x9dd   : > { %v17580_v2 = vadd.f32 %v9975_v21, %v7439_v35  ;;  %v11467_v35 = vld [vmem:[#allocation13 + $0x34] sm:$0xf] }
 0xa06   : > { %v9988_v31 = vpop.xlane.xlu2 %9987 }
 0xa07   : > { %v10010_v60 = vmul.f32 %v17567_v57, %v9988_v31  ;;  %v11250_v31 = vld [vmem:[#allocation13 + $0x48] sm:$0xf0] }
 0xa09   : > { %v17571_v38 = vsub.f32 %v17540_v62, %v10010_v60  ;;  %v11249_v60 = vor.u32 %v11470_v45, %v11248_v17 }
 0xa0b   : > { %v10026_v25 = vmul.f32 %v17571_v38, %v17571_v38  ;;  %10285 = vmatpush.bf16.msrb.mxu1 %v11249_v60  ;;  %v11218_v60 = vld [vmem:[#allocation13 + $0x8] sm:$0xf0] }
 0xa0d   : > { %10034 = vadd.xlane.f32.xlu2 %v10026_v25  ;;  %v11253_v25 = vor.u32 %v11469_v48, %v11250_v31  ;;  %v11217_v31 = vor.u32 %v11462_v44, %v11216_v8 }
 0xa0e   : > { %v9990_v51 = vpop.xlane.xlu1 %9989 }
 0xa0f   : > { %v10011_v22 = vmul.f32 %v17567_v57, %v9990_v51  ;;  %v11468_v51 = vld [vmem:[#allocation13 + $0x34] sm:$0xf0]  ;;  %10314 = vmatpush.bf16.msra.mxu2 %v11253_v25  ;;  %v11221_v25 = vor.u32 %v11461_v63, %v11218_v60 }
 0xa11   : > { %v17578_v46 = vsub.f32 %v17544_v29, %v10011_v22 }
 0xa13   : > { %v10027_v43 = vmul.f32 %v17578_v46, %v17578_v46 }
 0xa15   : > { %10036 = vadd.xlane.f32.xlu1 %v10027_v43  ;;  %10001 = vadd.xlane.f32.xlu2 %v17580_v2  ;;  %v11242_v43 = vld [vmem:[#allocation13 + $0x38] sm:$0xf0] }
 0xa16   : > { %v9992_v24 = vpop.xlane.xlu0 %9991 }
 0xa17   : > { %v10012_v0 = vmul.f32 %v17567_v57, %v9992_v24 }
 0xa19   : > { %v17587_v53 = vsub.f32 %v17548_v14, %v10012_v0 }
 0xa1b   : > { %v10028_v9 = vmul.f32 %v17587_v53, %v17587_v53 }
 0xa1d   : > { %10038 = vadd.xlane.f32.xlu1 %v10028_v9  ;;  %v11241_v9 = vor.u32 %v11468_v51, %v11240_v59 }
 0xa1e   : > { %v9994_v33 = vpop.xlane.xlu2 %9993 }
 0xa1f   : > { %v10013_v6 = vmul.f32 %v17567_v57, %v9994_v33  ;;  %10286 = vmatpush.bf16.msrb.mxu1 %v11241_v9 }
 0xa21   : > { %v17593_v3 = vsub.f32 %v17552_v19, %v10013_v6 }
 0xa23   : > { %v10029_v55 = vmul.f32 %v17593_v3, %v17593_v3 }
 0xa25   : > { %10040 = vadd.xlane.f32.xlu0 %v10029_v55 }
 0xa26   : > { %v9996_v50 = vpop.xlane.xlu1 %9995 }
 0xa27   : > { %v10014_v34 = vmul.f32 %v17567_v57, %v9996_v50  ;;  %v11245_v50 = vor.u32 %v11467_v35, %v11242_v43  ;;  %v17635_v35 = vld [vmem:[%s17936_s4] ss:$0 sm:$0xff] }
 0xa29   : > { %v17599_v30 = vsub.f32 %v17556_v16, %v10014_v34  ;;  %10315 = vmatpush.bf16.msra.mxu2 %v11245_v50 }
 0xa2b   : > { %v10030_v61 = vmul.f32 %v17599_v30, %v17599_v30 }
 0xa2d   : > { %10042 = vadd.xlane.f32.xlu2 %v10030_v61  ;;  %v11232_v61 = vld [vmem:[#allocation13 + $0x20] sm:$0xf] }
 0xa2e   : > { %v9998_v7 = vpop.xlane.xlu0 %9997 }
 0xa2f   : > { %v10015_v1 = vmul.f32 %v17567_v57, %v9998_v7  ;;  %v11466_v7 = vld [vmem:[#allocation13 + $0x24] sm:$0xf0] }
 0xa31   : > { %v17605_v11 = vsub.f32 %v17560_v12, %v10015_v1  ;;  %v11465_v1 = vld [vmem:[#allocation13 + $0x24] sm:$0xf] }
 0xa33   : > { %v10031_v27 = vmul.f32 %v17605_v11, %v17605_v11 }
 0xa35   : > { %10044 = vadd.xlane.f32.xlu1 %v10031_v27 }
 0xa4a   : > { %v10000_v32 = vpop.xlane.xlu0 %9999 }
 0xa4b   : > { %v10016_v20 = vmul.f32 %v17567_v57, %v10000_v32  ;;  %v11234_v32 = vld [vmem:[#allocation13 + $0x28] sm:$0xf0] }
 0xa4c   : > { %v11237_v54 = vor.u32 %v11465_v1, %v11234_v32 }
 0xa4d   : > { %v17611_v26 = vsub.f32 %v17564_v23, %v10016_v20 }
 0xa4e   : > { %10316 = vmatpush.bf16.msra.mxu2 %v11237_v54 }
 0xa4f   : > { %v10032_v41 = vmul.f32 %v17611_v26, %v17611_v26 }
 0xa51   : > { %10046 = vadd.xlane.f32.xlu0 %v10032_v41  ;;  %v11233_v41 = vor.u32 %v11466_v7, %v11232_v61 }
 0xa52   : > { %10317 = vmatpush.bf16.msra.mxu2 %v11229_v56 }
 0xa53   : > { %10287 = vmatpush.bf16.msrb.mxu1 %v11233_v41 }
 0xa56   : > { %10318 = vmatpush.bf16.msra.mxu2 %v11221_v25 }
 0xa80   : > { %v10035_v13 = vpop.xlane.xlu2 %10034 }
 0xa81   : > { %v10050_v28 = vmul.f32 %v10035_v13, %v17567_v57  ;;  %v11225_v13 = vor.u32 %v11464_v18, %v11224_v36 }
 0xa83   : > { %v10058_v52 = vadd.f32 1e-05, %v10050_v28  ;;  %10288 = vmatpush.bf16.msrb.mxu1 %v11225_v13 }
 0xa85   : > { %12236 = vrsqrt.f32 %v10058_v52  ;;  %vm10072_vm9 = vweird.f32 %v10058_v52 }
 0xa87   : > { %10289 = vmatpush.bf16.msrb.mxu1 %v11217_v31 }
 0xa88   : > { %v10037_v21 = vpop.xlane.xlu1 %10036  ;;  %v10002_v22 = vpop.xlane.xlu2 %10001 }
 0xa89   : > { %v10051_v24 = vmul.f32 %v10037_v21, %v17567_v57  ;;  %v10017_v0 = vmul.f32 %v17567_v57, %v10002_v22 }
 0xa8b   : > { %v12237_v33 = vpop.eup %12236  ;;  %v10059_v6 = vadd.f32 1e-05, %v10051_v24  ;;  %v17619_v55 = vsub.f32 %v17580_v2, %v10017_v0 }
 0xa8c   : > { %v10067_v34 = vmul.f32 %v12237_v33, %v10058_v52  ;;  %vm10073_vm8 = vweird.f32 %v12237_v33 }
 0xa8d   : > { %12238 = vrsqrt.f32 %v10059_v6  ;;  %v10033_v27 = vmul.f32 %v17619_v55, %v17619_v55  ;;  %vm17624_vm10 = vmor %vm10072_vm9, %vm10073_vm8  ;;  %vm10082_vm12 = vweird.f32 %v10059_v6 }
 0xa8e   : > { %v10068_v20 = vmul.f32 %v12237_v33, %v10067_v34 }
 0xa8f   : > { %10048 = vadd.xlane.f32.xlu2 %v10033_v27 }
 0xa90   : > { %v10069_v42 = vmul.f32 0.5, %v10068_v20  ;;  %v10039_v58 = vpop.xlane.xlu1 %10038 }
 0xa91   : > { %v10052_v47 = vmul.f32 %v10039_v58, %v17567_v57 }
 0xa92   : > { %v10070_v5 = vsub.f32 1.5, %v10069_v42 }
 0xa93   : > { %v12239_v40 = vpop.eup %12238  ;;  %v10060_v10 = vadd.f32 1e-05, %v10052_v47 }
 0xa94   : > { %v10071_v49 = vmul.f32 %v12237_v33, %v10070_v5  ;;  %v10077_v28 = vmul.f32 %v12239_v40, %v10059_v6  ;;  %vm10083_vm11 = vweird.f32 %v12239_v40 }
 0xa95   : > { %12240 = vrsqrt.f32 %v10060_v10  ;;  %vm10084_vm13 = vmor %vm10082_vm12, %vm10083_vm11  ;;  %vm10092_vm0 = vweird.f32 %v10060_v10 }
 0xa96   : > { %v10078_v4 = vmul.f32 %v12239_v40, %v10077_v28  ;;  %v10075_v17 = vsel %vm17624_vm10, %v12237_v33, %v10071_v49 }
 0xa97   : > { %v10146_v21 = vmul.f32 %v10075_v17, %v17571_v38  ;;  %v17642_v38 = vld [vmem:[%s17937_s28] ss:$0 sm:$0xff]  ;;  %s10584_s28 = scalar_lea.hbm %s17941_s23, %s11345_s21 }
 0xa98   : > { %v10079_v45 = vmul.f32 0.5, %v10078_v4  ;;  %v10041_v48 = vpop.xlane.xlu0 %10040  ;;  %s10587_s22 = sshll.u32 %s10584_s28, 4  ;;  %s10588_s22 = int_to_ptr.hbm [resolvable:$true] %s10587_s22 }
 0xa99   : > { %v10053_v52 = vmul.f32 %v10041_v48, %v17567_v57  ;;  %v10157_v50 = vmul.f32 %v17635_v35, %v10146_v21 }
 0xa9a   : > { %v10080_v59 = vsub.f32 1.5, %v10079_v45 }
 0xa9b   : > { %v12241_v51 = vpop.eup %12240  ;;  %v10061_v22 = vadd.f32 1e-05, %v10053_v52  ;;  %v10168_v20 = vadd.f32 %v17642_v38, %v10157_v50 }
 0xa9c   : > { %v10081_v43 = vmul.f32 %v12239_v40, %v10080_v59  ;;  %v10087_v24 = vmul.f32 %v12241_v51, %v10060_v10  ;;  %vm10093_vm14 = vweird.f32 %v12241_v51 }
 0xa9d   : > { %12242 = vrsqrt.f32 %v10061_v22  ;;  %vm10094_vm15 = vmor %vm10092_vm0, %vm10093_vm14  ;;  %vm10102_vm2 = vweird.f32 %v10061_v22 }
 0xa9e   : > { %v10085_v0 = vsel %vm10084_vm13, %v12239_v40, %v10081_v43  ;;  %v10088_v9 = vmul.f32 %v12241_v51, %v10087_v24 }
 0xa9f   : > { %v10147_v33 = vmul.f32 %v10085_v0, %v17578_v46 }
 0xaa0   : > { %v10089_v34 = vmul.f32 0.5, %v10088_v9  ;;  %v10043_v61 = vpop.xlane.xlu2 %10042 }
 0xaa1   : > { %v10054_v7 = vmul.f32 %v10043_v61, %v17567_v57  ;;  %v10158_v6 = vmul.f32 %v17635_v35, %v10147_v33 }
 0xaa2   : > { %v10090_v1 = vsub.f32 1.5, %v10089_v34 }
 0xaa3   : > { %v12243_v27 = vpop.eup %12242  ;;  %v10062_v32 = vadd.f32 1e-05, %v10054_v7  ;;  %v10169_v46 = vadd.f32 %v17642_v38, %v10158_v6  ;;  %v11484_v7 = vld [vmem:[#allocation14 + $0x38] sm:$0xff] }
 0xaa4   : > { %v10091_v41 = vmul.f32 %v12241_v51, %v10090_v1  ;;  %v10097_v54 = vmul.f32 %v12243_v27, %v10061_v22  ;;  %vm10103_vm1 = vweird.f32 %v12243_v27  ;;  %v11492_v6 = vld [vmem:[#allocation14 + $0x78] sm:$0xff]  ;;  %10496 = vmatpush.bf16.msra.mxu3 %v11484_v7 }
 0xaa5   : > { %12244 = vrsqrt.f32 %v10062_v32  ;;  %v10176_v36 = vpack.c.bf16 %v10169_v46, %v10168_v20  ;;  %vm10104_vm3 = vmor %vm10102_vm2, %vm10103_vm1  ;;  %vm10112_vm5 = vweird.f32 %v10062_v32  ;;  %10525 = vmatpush.bf16.msrb.mxu0 %v11492_v6  ;;  %11525 = vmatpush.bf16.msrb.mxu2 %v11492_v6  ;;  %v11482_v20 = vld [vmem:[#allocation14 + $0x28] sm:$0xff] }
 0xaa6   : > { %v10098_v18 = vmul.f32 %v12243_v27, %v10097_v54  ;;  %v10095_v39 = vsel %vm10094_vm15, %v12241_v51, %v10091_v41  ;;  %v11490_v46 = vld [vmem:[#allocation14 + $0x68] sm:$0xff] }
 0xaa7   : > { %10290 = vmatmul.bf16.vlgmr.msrb.gmra.mxu1 %v10176_v36  ;;  %10319 = vmatmul.bf16.vlgmr.msra.gmra.mxu2 %v10176_v36  ;;  %v10148_v40 = vmul.f32 %v10095_v39, %v17587_v53  ;;  %v11480_v39 = vld [vmem:[#allocation14 + $0x18] sm:$0xff] }
 0xaa8   : > { %v10099_v42 = vmul.f32 0.5, %v10098_v18  ;;  %v10045_v58 = vpop.xlane.xlu1 %10044  ;;  %v11481_v18 = vld [vmem:[#allocation14 + $0x20] sm:$0xff] }
 0xaa9   : > { %v10055_v15 = vmul.f32 %v10045_v58, %v17567_v57  ;;  %v10159_v4 = vmul.f32 %v17635_v35, %v10148_v40  ;;  %v11488_v40 = vld [vmem:[#allocation14 + $0x58] sm:$0xff] }
 0xaaa   : > { %v10100_v47 = vsub.f32 1.5, %v10099_v42 }
 0xaab   : > { %v12245_v5 = vpop.eup %12244  ;;  %v10063_v13 = vadd.f32 1e-05, %v10055_v15  ;;  %v10170_v45 = vadd.f32 %v17642_v38, %v10159_v4  ;;  %v11489_v15 = vld [vmem:[#allocation14 + $0x60] sm:$0xff] }
 0xaac   : > { %v10101_v56 = vmul.f32 %v12243_v27, %v10100_v47  ;;  %v10107_v49 = vmul.f32 %v12245_v5, %v10062_v32  ;;  %vm10113_vm4 = vweird.f32 %v12245_v5 }
 0xaad   : > { %12246 = vrsqrt.f32 %v10063_v13  ;;  %vm10114_vm6 = vmor %vm10112_vm5, %vm10113_vm4  ;;  %vm10122_vm8 = vweird.f32 %v10063_v13 }
 0xaae   : > { %v10108_v10 = vmul.f32 %v12245_v5, %v10107_v49  ;;  %v10105_v28 = vsel %vm10104_vm3, %v12243_v27, %v10101_v56  ;;  %v11491_v27 = vld [vmem:[#allocation14 + $0x70] sm:$0xff] }
 0xaaf   : > { %v10149_v37 = vmul.f32 %v10105_v28, %v17593_v3  ;;  %10526 = vmatpush.bf16.msrb.mxu0 %v11491_v27  ;;  %11526 = vmatpush.bf16.msrb.mxu2 %v11491_v27  ;;  %v11487_v28 = vld [vmem:[#allocation14 + $0x50] sm:$0xff] }
 0xab0   : > { %v10109_v8 = vmul.f32 0.5, %v10108_v10  ;;  %v11478_v10 = vld [vmem:[#allocation14 + $0x8] sm:$0xff] }
 0xab1   : > { %v10160_v44 = vmul.f32 %v17635_v35, %v10149_v37 }
 0xab2   : > { %v10110_v63 = vsub.f32 1.5, %v10109_v8  ;;  %v11477_v8 = vld [vmem:[#allocation14] sm:$0xff] }
 0xab3   : > { %v12247_v17 = vpop.eup %12246  ;;  %v10171_v53 = vadd.f32 %v17642_v38, %v10160_v44  ;;  %10527 = vmatpush.bf16.msrb.mxu0 %v11490_v46  ;;  %11527 = vmatpush.bf16.msrb.mxu2 %v11490_v46 }
 0xab4   : > { %v10111_v48 = vmul.f32 %v12245_v5, %v10110_v63  ;;  %v10117_v31 = vmul.f32 %v12247_v17, %v10063_v13  ;;  %vm10123_vm7 = vweird.f32 %v12247_v17 }
 0xab5   : > { %v10177_v60 = vpack.c.bf16 %v10171_v53, %v10170_v45  ;;  %vm10124_vm9 = vmor %vm10122_vm8, %vm10123_vm7  ;;  %v11486_v45 = vld [vmem:[#allocation14 + $0x48] sm:$0xff] }
 0xab6   : > { %v10118_v52 = vmul.f32 %v12247_v17, %v10117_v31  ;;  %v10115_v3 = vsel %vm10114_vm6, %v12245_v5, %v10111_v48  ;;  %v11479_v5 = vld [vmem:[#allocation14 + $0x10] sm:$0xff] }
 0xab7   : > { %10295 = vmatmul.bf16.gmra.mxu1 %v10177_v60  ;;  %10324 = vmatmul.bf16.gmra.mxu2 %v10177_v60  ;;  %v10150_v51 = vmul.f32 %v10115_v3, %v17599_v30  ;;  %v11485_v60 = vld [vmem:[#allocation14 + $0x40] sm:$0xff] }
 0xab8   : > { %v10119_v25 = vmul.f32 0.5, %v10118_v52  ;;  %10528 = vmatpush.bf16.msrb.mxu0 %v11489_v15  ;;  %11528 = vmatpush.bf16.msrb.mxu2 %v11489_v15 }
 0xab9   : > { %v10161_v24 = vmul.f32 %v17635_v35, %v10150_v51 }
 0xaba   : > { %v10120_v59 = vsub.f32 1.5, %v10119_v25 }
 0xabb   : > { %v10172_v9 = vadd.f32 %v17642_v38, %v10161_v24 }
 0xabc   : > { %v10121_v21 = vmul.f32 %v12247_v17, %v10120_v59  ;;  %10529 = vmatpush.bf16.msrb.mxu0 %v11488_v40  ;;  %11529 = vmatpush.bf16.msrb.mxu2 %v11488_v40 }
 0xabe   : > { %v10125_v22 = vsel %vm10124_vm9, %v12247_v17, %v10121_v21 }
 0xabf   : > { %v10151_v43 = vmul.f32 %v10125_v22, %v17605_v11  ;;  %v11483_v11 = vld [vmem:[#allocation14 + $0x30] sm:$0xff] }
 0xac0   : > { %10497 = vmatpush.bf16.msra.mxu3 %v11483_v11  ;;  %10530 = vmatpush.bf16.msrb.mxu0 %v11487_v28 }
 0xac1   : > { %v10162_v0 = vmul.f32 %v17635_v35, %v10151_v43  ;;  %11530 = vmatpush.bf16.msrb.mxu2 %v11487_v28 }
 0xac3   : > { %v10173_v33 = vadd.f32 %v17642_v38, %v10162_v0 }
 0xac4   : > { %v10047_v34 = vpop.xlane.xlu0 %10046  ;;  %10498 = vmatpush.bf16.msra.mxu3 %v11482_v20  ;;  %10531 = vmatpush.bf16.msrb.mxu0 %v11486_v45 }
 0xac5   : > { %v10178_v50 = vpack.c.bf16 %v10173_v33, %v10172_v9  ;;  %v10056_v30 = vmul.f32 %v10047_v34, %v17567_v57  ;;  %11531 = vmatpush.bf16.msrb.mxu2 %v11486_v45 }
 0xac7   : > { %10300 = vmatmul.bf16.gmra.mxu1 %v10178_v50  ;;  %10329 = vmatmul.bf16.gmra.mxu2 %v10178_v50  ;;  %v10064_v61 = vadd.f32 1e-05, %v10056_v30 }
 0xac8   : > { %10499 = vmatpush.bf16.msra.mxu3 %v11481_v18  ;;  %10532 = vmatpush.bf16.msrb.mxu0 %v11485_v60 }
 0xac9   : > { %12248 = vrsqrt.f32 %v10064_v61  ;;  %vm10132_vm11 = vweird.f32 %v10064_v61  ;;  %11532 = vmatpush.bf16.msrb.mxu2 %v11485_v60 }
 0xacc   : > { %10500 = vmatpush.bf16.msra.mxu3 %v11480_v39 }
 0xacf   : > { %v12249_v1 = vpop.eup %12248 }
 0xad0   : > { %v10127_v32 = vmul.f32 %v12249_v1, %v10064_v61  ;;  %vm10133_vm10 = vweird.f32 %v12249_v1  ;;  %10501 = vmatpush.bf16.msra.mxu3 %v11479_v5 }
 0xad1   : > { %vm10134_vm12 = vmor %vm10132_vm11, %vm10133_vm10 }
 0xad2   : > { %v10128_v41 = vmul.f32 %v12249_v1, %v10127_v32 }
 0xad4   : > { %v10129_v58 = vmul.f32 0.5, %v10128_v41  ;;  %10502 = vmatpush.bf16.msra.mxu3 %v11478_v10 }
 0xad6   : > { %v10130_v47 = vsub.f32 1.5, %v10129_v58 }
 0xad8   : > { %v10131_v56 = vmul.f32 %v12249_v1, %v10130_v47  ;;  %10503 = vmatpush.bf16.msra.mxu3 %v11477_v8 }
 0xada   : > { %v10135_v37 = vsel %vm10134_vm12, %v12249_v1, %v10131_v56 }
 0xadb   : > { %v10152_v63 = vmul.f32 %v10135_v37, %v17611_v26 }
 0xadd   : > { %v10163_v31 = vmul.f32 %v17635_v35, %v10152_v63 }
 0xadf   : > { %v10174_v3 = vadd.f32 %v17642_v38, %v10163_v31 }
 0xb02   : > { %v10049_v54 = vpop.xlane.xlu2 %10048 }
 0xb03   : > { %v10057_v36 = vmul.f32 %v10049_v54, %v17567_v57 }
 0xb05   : > { %v10065_v42 = vadd.f32 1e-05, %v10057_v36 }
 0xb07   : > { %12250 = vrsqrt.f32 %v10065_v42  ;;  %vm10142_vm14 = vweird.f32 %v10065_v42 }
 0xb0d   : > { %v12251_v13 = vpop.eup %12250 }
 0xb0e   : > { %v10137_v57 = vmul.f32 %v12251_v13, %v10065_v42  ;;  %vm10143_vm13 = vweird.f32 %v12251_v13 }
 0xb0f   : > { %vm10144_vm0 = vmor %vm10142_vm14, %vm10143_vm13 }
 0xb10   : > { %v10138_v49 = vmul.f32 %v12251_v13, %v10137_v57 }
 0xb12   : > { %v10139_v4 = vmul.f32 0.5, %v10138_v49 }
 0xb14   : > { %v10140_v44 = vsub.f32 1.5, %v10139_v4 }
 0xb16   : > { %v10141_v17 = vmul.f32 %v12251_v13, %v10140_v44 }
 0xb18   : > { %v10145_v53 = vsel %vm10144_vm0, %v12251_v13, %v10141_v17 }
 0xb19   : > { %v10153_v48 = vmul.f32 %v10145_v53, %v17619_v55  ;;  %v10196_v55 = vld [vmem:[%s17938_s3] sm:$0x3]  ;;  %s12446_s3 = sshra.s32 %s10588_s22, 4  ;;  %s12447_s3 = int_to_ptr.hbm [resolvable:$true] %s12446_s3 }
 0xb1a   : > { %v10198_v51 = vperm.slane %v10196_v55, 0  ;;  %v10199_v24 = vperm.slane %v10196_v55, 1  ;;  %s12448_s20 = scalar_lea.hbm %s12447_s3, 64  ;;  %p12453_p13 = scmp.lt.s32.totalorder %s12447_s3, %s17941_s23 }
 0xb1b   : > { %v10164_v52 = vmul.f32 %v17635_v35, %v10153_v48  ;;  %p12449_p1 = scmp.ne.s32.totalorder %s12447_s3, %s12448_s20  ;;  %p12454_p0 = scmp.lt.s32.totalorder %s12452_s19, %s12448_s20 }
 0xb1d   : > { %v10175_v25 = vadd.f32 %v17642_v38, %v10164_v52  ;;  %p12450_p11 = pnand %p12449_p1, %p12804_p7  ;;  %p12455_p3 = por %p12454_p0, %p12453_p13 }
 0xb1f   : > { %v10179_v26 = vpack.c.bf16 %v10175_v25, %v10174_v3  ;;  %p12451_p12 = pneg %p12450_p11 }
 0xb21   : > { %10305 = vmatmul.bf16.gmra.mxu1 %v10179_v26  ;;  %10334 = vmatmul.bf16.gmra.mxu2 %v10179_v26  ;;  %p12456_p5 = pnand %p12455_p3, %p12451_p12 }
 0xb24   : > { %v10291_v59 = vpop.f32.mrf.mxu1 }
 0xb25   : > { %v10292_v22 = vadd.f32 %v10291_v59, %v10198_v51 }
 0xb27   : > { %v10340_v0 = vmax.f32 %v10292_v22, 0.0  ;;  %v12105_v22 = vld [vmem:[%s17939_s14] ss:$0 sm:$0xff] }
 0xb2a   : > { %v10320_v21 = vpop.f32.mrf.mxu2 }
 0xb2b   : > { %v10321_v33 = vadd.f32 %v10320_v21, %v10199_v24 }
 0xb2c   : > { %v10293_v43 = vpop.f32.mrf.mxu1 }
 0xb2d   : > { %v10294_v35 = vadd.f32 %v10293_v43, %v10198_v51  ;;  %v10341_v61 = vmax.f32 %v10321_v33, 0.0 }
 0xb2f   : > { %v10342_v9 = vmax.f32 %v10294_v35, 0.0 }
 0xb31   : > { %v10356_v38 = vpack.c.bf16 %v10342_v9, %v10340_v0 }
 0xb32   : > { %v10322_v50 = vpop.f32.mrf.mxu2 }
 0xb33   : > { %v10323_v34 = vadd.f32 %v10322_v50, %v10199_v24  ;;  %10504 = vmatmul.bf16.vlgmr.msra.gmra.mxu3 %v10356_v38 }
 0xb34   : > { %v10296_v30 = vpop.f32.mrf.mxu1 }
 0xb35   : > { %v10343_v7 = vmax.f32 %v10323_v34, 0.0  ;;  %v10297_v11 = vadd.f32 %v10296_v30, %v10198_v51 }
 0xb37   : > { %v10357_v6 = vpack.c.bf16 %v10343_v7, %v10341_v61  ;;  %v10344_v20 = vmax.f32 %v10297_v11, 0.0 }
 0xb39   : > { %10533 = vmatmul.bf16.vlgmr.msrb.gmra.mxu0 %v10357_v6 }
 0xb3a   : > { %v10325_v1 = vpop.f32.mrf.mxu2 }
 0xb3b   : > { %v10326_v41 = vadd.f32 %v10325_v1, %v10199_v24 }
 0xb3c   : > { %v10298_v27 = vpop.f32.mrf.mxu1 }
 0xb3d   : > { %v10299_v32 = vadd.f32 %v10298_v27, %v10198_v51  ;;  %v10345_v58 = vmax.f32 %v10326_v41, 0.0 }
 0xb3f   : > { %v10346_v46 = vmax.f32 %v10299_v32, 0.0 }
 0xb41   : > { %v10358_v54 = vpack.c.bf16 %v10346_v46, %v10344_v20 }
 0xb42   : > { %v10327_v36 = vpop.f32.mrf.mxu2 }
 0xb43   : > { %v10328_v18 = vadd.f32 %v10327_v36, %v10199_v24  ;;  %10509 = vmatmul.bf16.gmra.mxu3 %v10358_v54 }
 0xb44   : > { %v10301_v42 = vpop.f32.mrf.mxu1 }
 0xb45   : > { %v10347_v39 = vmax.f32 %v10328_v18, 0.0  ;;  %v10302_v5 = vadd.f32 %v10301_v42, %v10198_v51 }
 0xb47   : > { %v10359_v15 = vpack.c.bf16 %v10347_v39, %v10345_v58  ;;  %v10348_v56 = vmax.f32 %v10302_v5, 0.0 }
 0xb49   : > { %10538 = vmatmul.bf16.gmra.mxu0 %v10359_v15 }
 0xb4a   : > { %v10330_v47 = vpop.f32.mrf.mxu2 }
 0xb4b   : > { %v10331_v49 = vadd.f32 %v10330_v47, %v10199_v24 }
 0xb4c   : > { %v10303_v13 = vpop.f32.mrf.mxu1 }
 0xb4d   : > { %v10304_v40 = vadd.f32 %v10303_v13, %v10198_v51  ;;  %v10349_v4 = vmax.f32 %v10331_v49, 0.0 }
 0xb4f   : > { %v10350_v57 = vmax.f32 %v10304_v40, 0.0 }
 0xb51   : > { %v10360_v10 = vpack.c.bf16 %v10350_v57, %v10348_v56 }
 0xb52   : > { %v10332_v28 = vpop.f32.mrf.mxu2 }
 0xb53   : > { %v10333_v37 = vadd.f32 %v10332_v28, %v10199_v24  ;;  %10514 = vmatmul.bf16.gmra.mxu3 %v10360_v10 }
 0xb55   : > { %v10351_v8 = vmax.f32 %v10333_v37, 0.0 }
 0xb57   : > { %v10361_v44 = vpack.c.bf16 %v10351_v8, %v10349_v4 }
 0xb59   : > { %10543 = vmatmul.bf16.gmra.mxu0 %v10361_v44 }
 0xb9e   : > { %v10306_v63 = vpop.f32.mrf.mxu1 }
 0xb9f   : > { %v10307_v45 = vadd.f32 %v10306_v63, %v10198_v51 }
 0xba1   : > { %v10352_v31 = vmax.f32 %v10307_v45, 0.0 }
 0xba4   : > { %v10335_v17 = vpop.f32.mrf.mxu2 }
 0xba5   : > { %v10336_v52 = vadd.f32 %v10335_v17, %v10199_v24 }
 0xba6   : > { %v10308_v53 = vpop.f32.mrf.mxu1 }
 0xba7   : > { %v10309_v48 = vadd.f32 %v10308_v53, %v10198_v51  ;;  %v10353_v55 = vmax.f32 %v10336_v52, 0.0 }
 0xba9   : > { %v10354_v60 = vmax.f32 %v10309_v48, 0.0 }
 0xbab   : > { %v10362_v3 = vpack.c.bf16 %v10354_v60, %v10352_v31 }
 0xbac   : > { %v10337_v25 = vpop.f32.mrf.mxu2 }
 0xbad   : > { %v10338_v26 = vadd.f32 %v10337_v25, %v10199_v24  ;;  %10519 = vmatmul.bf16.gmra.mxu3 %v10362_v3 }
 0xbaf   : > { %v10355_v59 = vmax.f32 %v10338_v26, 0.0 }
 0xbb1   : > { %v10363_v21 = vpack.c.bf16 %v10355_v59, %v10353_v55 }
 0xbb3   : > { %10548 = vmatmul.bf16.vlgmr.msrb.gmra.mxu2 %v10363_v21 }
 0xbb6   : > { %v10505_v43 = vpop.f32.mrf.mxu3  ;;  %v10534_v35 = vpop.f32.mrf.mxu0 }
 0xbb7   : > { %v10506_v51 = vadd.f32 %v12105_v22, %v10505_v43 }
 0xbb9   : > { %v10535_v0 = vadd.f32 %v10534_v35, %v10506_v51 }
 0xbbb   : > { %v10554_v9 = vadd.f32 %v10535_v0, %v17540_v62 }
 0xbbd   : > { %10562 = vst [vmem:[%s12853_s11] sm:$0xff] %v10554_v9 }
 0xbbe   : > { %v10507_v33 = vpop.f32.mrf.mxu3  ;;  %v10536_v24 = vpop.f32.mrf.mxu0 }
 0xbbf   : > { %v10508_v38 = vadd.f32 %v12105_v22, %v10507_v33 }
 0xbc1   : > { %v10537_v50 = vadd.f32 %v10536_v24, %v10508_v38 }
 0xbc3   : > { %v10555_v34 = vadd.f32 %v10537_v50, %v17544_v29 }
 0xbc5   : > { %10563 = vst [vmem:[%s12853_s11 + $0x8] sm:$0xff] %v10555_v34 }
 0xbc6   : > { %v10510_v30 = vpop.f32.mrf.mxu3  ;;  %v10539_v61 = vpop.f32.mrf.mxu0 }
 0xbc7   : > { %v10511_v7 = vadd.f32 %v12105_v22, %v10510_v30 }
 0xbc9   : > { %v10540_v6 = vadd.f32 %v10539_v61, %v10511_v7 }
 0xbcb   : > { %v10556_v1 = vadd.f32 %v10540_v6, %v17548_v14 }
 0xbcd   : > { %10564 = vst [vmem:[%s12853_s11 + $0x10] sm:$0xff] %v10556_v1 }
 0xbce   : > { %v10512_v11 = vpop.f32.mrf.mxu3  ;;  %v10541_v27 = vpop.f32.mrf.mxu0 }
 0xbcf   : > { %v10513_v62 = vadd.f32 %v12105_v22, %v10512_v11 }
 0xbd1   : > { %v10542_v32 = vadd.f32 %v10541_v27, %v10513_v62 }
 0xbd3   : > { %v10557_v20 = vadd.f32 %v10542_v32, %v17552_v19 }
 0xbd5   : > { %10565 = vst [vmem:[%s12853_s11 + $0x18] sm:$0xff] %v10557_v20 }
 0xbd6   : > { %v10515_v29 = vpop.f32.mrf.mxu3  ;;  %v10544_v46 = vpop.f32.mrf.mxu0 }
 0xbd7   : > { %v10516_v41 = vadd.f32 %v12105_v22, %v10515_v29 }
 0xbd9   : > { %v10545_v54 = vadd.f32 %v10544_v46, %v10516_v41 }
 0xbdb   : > { %v10558_v36 = vadd.f32 %v10545_v54, %v17556_v16 }
 0xbdd   : > { %10566 = vst [vmem:[%s12853_s11 + $0x20] sm:$0xff] %v10558_v36 }
 0xbde   : > { %v10517_v18 = vpop.f32.mrf.mxu3  ;;  %v10546_v42 = vpop.f32.mrf.mxu0 }
 0xbdf   : > { %v10518_v14 = vadd.f32 %v12105_v22, %v10517_v18 }
 0xbe1   : > { %v10547_v58 = vadd.f32 %v10546_v42, %v10518_v14 }
 0xbe3   : > { %v10559_v39 = vadd.f32 %v10547_v58, %v17560_v12 }
 0xbe5   : > { %10567 = vst [vmem:[%s12853_s11 + $0x28] sm:$0xff] %v10559_v39 }
 0xc30   : > { %v10520_v15 = vpop.f32.mrf.mxu3 }
 0xc31   : > { %v10521_v19 = vadd.f32 %v12105_v22, %v10520_v15 }
 0xc36   : > { %v10549_v47 = vpop.f32.mrf.mxu2 }
 0xc37   : > { %v10550_v5 = vadd.f32 %v10549_v47, %v10521_v19 }
 0xc38   : > { %v10522_v13 = vpop.f32.mrf.mxu3 }
 0xc39   : > { %v10560_v16 = vadd.f32 %v10550_v5, %v17564_v23  ;;  %v10523_v12 = vadd.f32 %v12105_v22, %v10522_v13 }
 0xc3b   : > { %10568 = vst [vmem:[%s12853_s11 + $0x30] sm:$0xff] %v10560_v16 }
 0xc3e   : > { %v10551_v40 = vpop.f32.mrf.mxu2 }
 0xc3f   : > { %v10552_v56 = vadd.f32 %v10551_v40, %v10523_v12 }
 0xc41   : > { %v10561_v57 = vadd.f32 %v10552_v56, %v17580_v2 }
 0xc43   : > { %10569 = vst [vmem:[%s12853_s11 + $0x38] sm:$0xff] %v10561_v57 }
 0xc44   : > { %12459 = shalt.err (!%p12456_p5)
}
 0xc45   : > { %s12591_s2 = smov 128   ;;  %s12592_s11 = smov 8  }
 0xc46   : > { %11555 = dma.vmem_to_hbm [thread:$0]  (%p12804_p7), %s10586_s5, 1024, %s10588_s22, %s10571_s9, %s12591_s2, %s12591_s2, %s12592_s11  }
 0xc47 PF: > { %p11592_p6 = scmp.ge.s32.totalorder %s12566_s18, 2  ;;  %s10602_s0 = sand.u32 1, %s12526_s25  }
 0xc48   : > { %s10603_s21 = scalar_lea.sflag [#allocation7], %s10602_s0 }
 0xc49   : > { %p11578_p8 = pnand %p11592_p6, %p12817_p10 }
 0xc4b   : > { %p11579_p9 = pneg %p11578_p8 }
 0xc4d   : > { %12521 = dma.done.wait (%p11579_p9), %s10603_s21, 1024  }
 0xc4e   : > { %12523 = vsyncadd (%p11579_p9), %s10603_s21, 4294966272  ;;  %s32_s18 = sadd.s32 1, %s12566_s18   ;;  %s17942_s6 = smov %s17955_s15 }
 0xc4f   : > { %p29_p2 = scmp.ge.s32.totalorder %s32_s18, 6   ;;  %s17943_s4 = sld [smem:[#allocation25_spill]] }
 0xc50   : > { %s17944_s25 = smov %s12530_s26  ;;  %s17945_s26 = smov %s12534_s27 }
 0xc51   : > { %s17946_s27 = smov %s12812_s7  ;;  %s17947_s28 = smov %s12542_s29 }
 0xc52   : > { %s17948_s29 = smov %s12546_s30  ;;  %s17949_s30 = smov %s12809_s1 }
 0xc53   : > { %s17950_s14 = smov %s12558_s16  ;;  %s17951_s15 = smov %s12562_s17 }
 0xc54   : > { %s17952_s16 = smov %s17942_s6  ;;  %31 = sbr.rel (!%p29_p2) target bundleno = 27 (0x1b), region = 143 }
 0xc55   : > { %s17953_s17 = smov %s17943_s4 }
 0xc59   :  { %10609 = vsyncpa [#allocation6], 1 }
 0xc5a   :  { %10611 = vsyncpa [#allocation6 + $0x1], 1 }
 0xc5b   :  { %10612 = vsyncpa [#allocation9], 1 }
 0xc5c   :  { %10613 = vsyncpa [#allocation12], 1 }
 0xc5d   :  { %10614 = vsyncpa [#allocation15], 1 }
 0xc5e   :  { %10615 = vsyncpa [#allocation7], 1 }
 0xc5f   :  { %10617 = vsyncpa [#allocation7 + $0x1], 1 }

</bundles_post_ra>
